<compile_context>
chip_gen: v7x
topology: tpu7x:2x2x1
jax: 0.10.0
libtpu: 0.0.40
codegen_flags: <defaults>
</compile_context>

<pallas_src>
import functools

import jax
import jax.numpy as jnp
from jax.experimental import pallas as pl
from jax.experimental.pallas import tpu as pltpu


LANES = 128            # lane-dense channel padding for conv GEMM outputs
C1_OUT, C2_OUT = 20, 50
K1_PAD = 32            # conv1 contraction 5*5*1  = 25  -> 32
K2_PAD = 512           # conv2 contraction 5*5*20 = 500 -> 512
FC1_OUT = 512
POOL2_S = 16           # 4x4 spatial positions after the second maxpool


def _largest_divisor_le(n, cap):
    for d in range(min(n, cap), 0, -1):
        if n % d == 0:
            return d
    return 1


# ----------------------------- Pallas kernels --------------------------------

def _conv1_kernel(cols_ref, w_ref, b_ref, o_ref):
    # cols: (TM, 32) bf16, w: (32, 128) bf16, b: (1, 128) f32 -> o: (TM, 128) bf16
    y = jnp.dot(cols_ref[...], w_ref[...], preferred_element_type=jnp.float32)
    y = jnp.maximum(y + b_ref[...], 0.0)
    o_ref[...] = y.astype(o_ref.dtype)


def conv1_gemm(cols, w, b, *, block_rows):
    m = cols.shape[0]
    return pl.pallas_call(
        _conv1_kernel,
        out_shape=jax.ShapeDtypeStruct((m, LANES), jnp.bfloat16),
        grid=(m // block_rows,),
        in_specs=[
            pl.BlockSpec((block_rows, K1_PAD), lambda i: (i, 0)),
            pl.BlockSpec((K1_PAD, LANES), lambda i: (0, 0)),
            pl.BlockSpec((1, LANES), lambda i: (0, 0)),
        ],
        out_specs=pl.BlockSpec((block_rows, LANES), lambda i: (i, 0)),
        compiler_params=pltpu.CompilerParams(
            dimension_semantics=("parallel",),
            vmem_limit_bytes=32 * 1024 * 1024,
        ),
    )(cols, w, b)


def _tail_kernel(cols2_ref, w2_ref, b2_ref, w1_ref, b1_ref,
                 wa_ref, ba_ref, wf_ref, bf_ref, o_ref, *, n_real, n_pad):
    # --- conv2 GEMM + bias + ReLU for each of the 4 maxpool offsets; pool = max of branches ---
    def branch(k):
        y = jnp.dot(cols2_ref[k], w2_ref[...], preferred_element_type=jnp.float32)
        return jnp.maximum(y + b2_ref[...], 0.0)

    pooled = branch(0)
    for k in range(1, 4):
        pooled = jnp.maximum(pooled, branch(k))            # (16*n_pad, 128) f32, rows = s*n_pad + n
    pooled = pooled.astype(jnp.bfloat16)

    # --- fc1: contract over (spatial s, channel c); weight pre-packed as (16, 128, 512) ---
    acc = jnp.zeros((n_pad, FC1_OUT), jnp.float32)
    for s in range(POOL2_S):
        acc = acc + jnp.dot(pooled[s * n_pad:(s + 1) * n_pad, :], w1_ref[s],
                            preferred_element_type=jnp.float32)
    h = jnp.maximum(acc + b1_ref[...], 0.0)                # (n_pad, 512) f32, stays in VMEM

    # --- attention scores as a lane reduce (avoid a 1-column MXU matmul) ---
    raw = jnp.sum(h * wa_ref[...], axis=1, keepdims=True) + ba_ref[...]     # (n_pad, 1)
    if n_pad != n_real:
        # mask the zero-padded (fake) instances out of the softmax
        row = jax.lax.broadcasted_iota(jnp.int32, (n_pad, 1), 0)
        raw = jnp.where(row < n_real, raw, jnp.float32(-1e30))

    m = jnp.max(raw, axis=0, keepdims=True)
    e = jnp.exp(raw - m)
    a = e * pl.reciprocal(jnp.sum(e, axis=0, keepdims=True), approx=True)   # softmax over instances

    pooled_feat = jnp.sum(a * h, axis=0, keepdims=True)                     # (1, 512) = A @ x
    logit = jnp.sum(pooled_feat * wf_ref[...], axis=1, keepdims=True) + bf_ref[...]
    o_ref[...] = logit


def tail_fused(cols2, w2, b2, w1, b1, wa, ba, wf, bf, *, n_real, n_pad):
    vmem = pl.BlockSpec(memory_space=pltpu.MemorySpace.VMEM)
    return pl.pallas_call(
        functools.partial(_tail_kernel, n_real=n_real, n_pad=n_pad),
        out_shape=jax.ShapeDtypeStruct((1, 1), jnp.float32),
        in_specs=[vmem] * 9,
        out_specs=vmem,
        compiler_params=pltpu.CompilerParams(vmem_limit_bytes=32 * 1024 * 1024),
    )(cols2, w2, b2, w1, b1, wa, ba, wf, bf)


# --------------------------- one-time weight packing ---------------------------

def prepare_params(params):
    """Pre-transpose / zero-pad / cast weights ONCE into kernel layouts."""
    f32, bf16 = jnp.float32, jnp.bfloat16

    # conv1 (20,1,5,5) -> (kh*kw*cin=25, 20) -> pad -> (32, 128)
    w1 = jnp.transpose(params["w_c1"], (2, 3, 1, 0)).reshape(25, C1_OUT)
    w1 = jnp.pad(w1, ((0, K1_PAD - 25), (0, LANES - C1_OUT))).astype(bf16)
    b1 = jnp.pad(params["b_c1"], (0, LANES - C1_OUT)).reshape(1, LANES).astype(f32)

    # conv2 (50,20,5,5) -> (500, 50) -> pad -> (512, 128)
    w2 = jnp.transpose(params["w_c2"], (2, 3, 1, 0)).reshape(500, C2_OUT)
    w2 = jnp.pad(w2, ((0, K2_PAD - 500), (0, LANES - C2_OUT))).astype(bf16)
    b2 = jnp.pad(params["b_c2"], (0, LANES - C2_OUT)).reshape(1, LANES).astype(f32)

    # fc1: PyTorch (512, 800), flatten order of the input is (c, p, q) with s = p*4+q.
    # Repack as (s=16, c padded to 128, 512) so the kernel contracts per spatial slot.
    w_fc1 = params["w_fc1"].T.reshape(C2_OUT, POOL2_S, FC1_OUT)   # (c, s, d)
    w_fc1 = jnp.transpose(w_fc1, (1, 0, 2))                        # (s, c, d)
    w_fc1 = jnp.pad(w_fc1, ((0, 0), (0, LANES - C2_OUT), (0, 0))).astype(bf16)
    b_fc1 = params["b_fc1"].reshape(1, FC1_OUT).astype(f32)

    return dict(
        w1=w1, b1=b1, w2=w2, b2=b2, w_fc1=w_fc1, b_fc1=b_fc1,
        w_att=params["w_att"].reshape(1, FC1_OUT).astype(f32),
        b_att=params["b_att"].reshape(1, 1).astype(f32),
        w_fc=params["w_fc"].reshape(1, FC1_OUT).astype(f32),
        b_fc=params["b_fc"].reshape(1, 1).astype(f32),
    )


# ------------------------------ forward (glue) --------------------------------

def attention_forward(prep, x, criterion, labels):
    n = x.shape[1]                              # bag size (static under jit)
    n_pad = ((n + 7) // 8) * 8                  # pad instances to a sublane multiple
    ipb = _largest_divisor_le(n, 8)             # instances per conv1 grid block

    # ---- conv1 im2col (XLA glue: data-layout gather only) ----
    xs = x.reshape(n, 28, 28)                   # squeeze batch & single input channel
    cols1 = jnp.stack(
        [xs[:, i:i + 24, j:j + 24] for i in range(5) for j in range(5)],
        axis=-1).reshape(n * 576, 25)           # patch order (kh, kw), cin = 1
    cols1 = jnp.pad(cols1, ((0, 0), (0, K1_PAD - 25))).astype(jnp.bfloat16)

    y1 = conv1_gemm(cols1, prep["w1"], prep["b1"], block_rows=576 * ipb)   # (n*576,128) bf16

    # ---- 2x2 maxpool + conv2 im2col, split into the 4 maxpool offsets ----
    y1 = y1.reshape(n, 24, 24, LANES)[..., :C1_OUT]                         # (n,24,24,20)
    p1 = jnp.max(y1.reshape(n, 12, 2, 12, 2, C1_OUT), axis=(2, 4))          # (n,12,12,20)

    branches = []
    for a in range(2):
        for b in range(2):
            pats = [p1[:, a + i:a + i + 8:2, b + j:b + j + 8:2, :]
                    for i in range(5) for j in range(5)]                    # 25 x (n,4,4,20)
            ck = jnp.stack(pats, axis=3).reshape(n, POOL2_S, 500)           # patch = (i*5+j)*20+c
            ck = jnp.transpose(ck, (1, 0, 2))                               # (16, n, 500)
            ck = jnp.pad(ck, ((0, 0), (0, n_pad - n), (0, K2_PAD - 500)))
            branches.append(ck.reshape(POOL2_S * n_pad, K2_PAD))
    cols2 = jnp.stack(branches, axis=0).astype(jnp.bfloat16)                # (4, 16*n_pad, 512)

    # ---- fused conv2 + pool + fc1 + attention + fc (single pallas_call) ----
    # TODO(synk): for very large bags the tail kernel would need an instance grid with an
    # online softmax; at typical MIL bag sizes everything fits comfortably in VMEM.
    logit = tail_fused(cols2, prep["w2"], prep["b2"], prep["w_fc1"], prep["b_fc1"],
                       prep["w_att"], prep["b_att"], prep["w_fc"], prep["b_fc"],
                       n_real=n, n_pad=n_pad)                               # (1, 1)

    logits = logit.reshape(1)                                               # squeeze(-1)
    loss = jnp.mean(criterion(logits, labels))                              # criterion is injected
    return logits, loss


# --------------------------- pure-JAX reference (f32) --------------------------

def reference_forward(params, x, criterion, labels):
    n = x.shape[1]
    xi = x.reshape(n, 1, 28, 28).astype(jnp.float32)
    dn = ("NCHW", "OIHW", "NCHW")
    y = jax.lax.conv_general_dilated(xi, params["w_c1"], (1, 1), "VALID", dimension_numbers=dn)
    y = jax.nn.relu(y + params["b_c1"][None, :, None, None])
    y = jnp.max(y.reshape(n, C1_OUT, 12, 2, 12, 2), axis=(3, 5))
    y = jax.lax.conv_general_dilated(y, params["w_c2"], (1, 1), "VALID", dimension_numbers=dn)
    y = jax.nn.relu(y + params["b_c2"][None, :, None, None])
    y = jnp.max(y.reshape(n, C2_OUT, 4, 2, 4, 2), axis=(3, 5))
    feats = y.reshape(n, 800)
    h = jax.nn.relu(feats @ params["w_fc1"].T + params["b_fc1"])
    raw = (h @ params["w_att"].T + params["b_att"]).T
    a = jax.nn.softmax(raw, axis=1)
    m = a @ h
    logits = (m @ params["w_fc"].T + params["b_fc"]).reshape(1)
    loss = jnp.mean(criterion(logits, labels))
    return logits, loss


# --------------------------------- main ---------------------------------------

def init_params(key):
    ks = jax.random.split(key, 10)
    f32 = jnp.float32
    return {
        "w_c1":  0.10 * jax.random.normal(ks[0], (20, 1, 5, 5), f32),
        "b_c1":  0.10 * jax.random.normal(ks[1], (20,), f32),
        "w_c2":  0.05 * jax.random.normal(ks[2], (50, 20, 5, 5), f32),
        "b_c2":  0.05 * jax.random.normal(ks[3], (50,), f32),
        "w_fc1": 0.02 * jax.random.normal(ks[4], (512, 800), f32),   # PyTorch (out, in)
        "b_fc1": 0.02 * jax.random.normal(ks[5], (512,), f32),
        "w_att": 0.05 * jax.random.normal(ks[6], (1, 512), f32),
        "b_att": 0.05 * jax.random.normal(ks[7], (1,), f32),
        "w_fc":  0.05 * jax.random.normal(ks[8], (1, 512), f32),
        "b_fc":  0.05 * jax.random.normal(ks[9], (1,), f32),
    }


if __name__ == "__main__":
    key = jax.random.PRNGKey(0)
    pkey, xkey = jax.random.split(key)
    params = init_params(pkey)

    bag = 4
    x = jax.random.normal(xkey, (1, bag, 1, 28, 28), jnp.float32)
    labels = jnp.array([1.0], dtype=jnp.float32)
    criterion = lambda pred, target: (pred - target) ** 2      # MSE, reduction='none'

    prep = prepare_params(params)                              # one-time weight packing
    fwd = jax.jit(lambda p, xx, yy: attention_forward(p, xx, criterion, yy))

    logits, loss = fwd(prep, x, labels)
    jax.block_until_ready((logits, loss))

    ref_logits, ref_loss = reference_forward(params, x, criterion, labels)
    assert logits.shape == (1,) and loss.shape == ()
    assert jnp.allclose(logits, ref_logits, rtol=0.1, atol=0.1), (logits, ref_logits)
    assert jnp.allclose(loss, ref_loss, rtol=0.2, atol=0.1), (loss, ref_loss)
    print("KERNEL_OK")
</pallas_src>

<mosaic_0001>
module attributes {stable_mosaic.version = 11 : i64} {
  func.func @_conv1_kernel(%arg0: i32, %arg1: memref<2304x32xbf16, #tpu.memory_space<vmem>>, %arg2: memref<32x128xbf16, #tpu.memory_space<vmem>>, %arg3: memref<1x128xf32, #tpu.memory_space<vmem>>, %arg4: memref<2304x128xbf16, #tpu.memory_space<vmem>>) attributes {dimension_semantics = [#tpu.dimension_semantics<parallel>], iteration_bounds = array<i64: 1>, scalar_prefetch = 0 : i64, scratch_operands = 0 : i64, tpu.core_type = #tpu.core_type<tc>, window_params = [{transform_indices = @transform_0, window_bounds = array<i64: 2304, 32>}, {pipeline_mode = #tpu.pipeline_mode<synchronous>, transform_indices = @transform_1, window_bounds = array<i64: 32, 128>}, {pipeline_mode = #tpu.pipeline_mode<synchronous>, transform_indices = @transform_2, window_bounds = array<i64: 1, 128>}, {transform_indices = @transform_3, window_bounds = array<i64: 2304, 128>}]} {
    %c0 = arith.constant 0 : index
    %c0_0 = arith.constant 0 : index
    %0 = vector.load %arg1[%c0, %c0_0] : memref<2304x32xbf16, #tpu.memory_space<vmem>>, vector<2304x32xbf16>
    %c0_1 = arith.constant 0 : index
    %c0_2 = arith.constant 0 : index
    %1 = vector.load %arg2[%c0_1, %c0_2] : memref<32x128xbf16, #tpu.memory_space<vmem>>, vector<32x128xbf16>
    %cst = arith.constant dense<0.000000e+00> : vector<2304x128xf32>
    %2 = tpu.matmul %0, %1, %cst {dimension_numbers = #tpu.dot_dimension_numbers<[1], [0], [0], [1], [0, 0, 1, 1], [], []>} : vector<2304x32xbf16>, vector<32x128xbf16>, vector<2304x128xf32> -> vector<2304x128xf32>
    %c0_3 = arith.constant 0 : index
    %c0_4 = arith.constant 0 : index
    %3 = vector.load %arg3[%c0_3, %c0_4] : memref<1x128xf32, #tpu.memory_space<vmem>>, vector<1x128xf32>
    %4 = vector.broadcast %3 : vector<1x128xf32> to vector<2304x128xf32>
    %5 = arith.addf %2, %4 : vector<2304x128xf32>
    %cst_5 = arith.constant 0.000000e+00 : f32
    %6 = vector.broadcast %cst_5 : f32 to vector<2304x128xf32>
    %7 = arith.maximumf %5, %6 : vector<2304x128xf32>
    %8 = arith.truncf %7 : vector<2304x128xf32> to vector<2304x128xbf16>
    %c0_6 = arith.constant 0 : index
    %c0_7 = arith.constant 0 : index
    %9 = vector.load %arg4[%c0_6, %c0_7] : memref<2304x128xbf16, #tpu.memory_space<vmem>>, vector<2304x128xbf16>
    tpu.vector_store %arg4[%c0_6, %c0_7], %8 {strides = array<i32>} : memref<2304x128xbf16, #tpu.memory_space<vmem>>, vector<2304x128xbf16>,
    return
  }
  func.func @transform_0(%arg0: i32) -> (i32, i32) {
    %c0_i32 = arith.constant 0 : i32
    %c0_i32_0 = arith.constant 0 : i32
    return %arg0, %c0_i32 : i32, i32
  }
  func.func @transform_1(%arg0: i32) -> (i32, i32) {
    %c0_i32 = arith.constant 0 : i32
    %c0_i32_0 = arith.constant 0 : i32
    %c0_i32_1 = arith.constant 0 : i32
    return %c0_i32, %c0_i32_0 : i32, i32
  }
  func.func @transform_2(%arg0: i32) -> (i32, i32) {
    %c0_i32 = arith.constant 0 : i32
    %c0_i32_0 = arith.constant 0 : i32
    %c0_i32_1 = arith.constant 0 : i32
    return %c0_i32, %c0_i32_0 : i32, i32
  }
  func.func @transform_3(%arg0: i32) -> (i32, i32) {
    %c0_i32 = arith.constant 0 : i32
    %c0_i32_0 = arith.constant 0 : i32
    return %arg0, %c0_i32 : i32, i32
  }
}

module attributes {stable_mosaic.version = 11 : i64} {
  func.func @_tail_kernel(%arg0: memref<4x128x512xbf16, #tpu.memory_space<vmem>>, %arg1: memref<512x128xbf16, #tpu.memory_space<vmem>>, %arg2: memref<1x128xf32, #tpu.memory_space<vmem>>, %arg3: memref<16x128x512xbf16, #tpu.memory_space<vmem>>, %arg4: memref<1x512xf32, #tpu.memory_space<vmem>>, %arg5: memref<1x512xf32, #tpu.memory_space<vmem>>, %arg6: memref<1x1xf32, #tpu.memory_space<vmem>>, %arg7: memref<1x512xf32, #tpu.memory_space<vmem>>, %arg8: memref<1x1xf32, #tpu.memory_space<vmem>>, %arg9: memref<1x1xf32, #tpu.memory_space<vmem>>) attributes {dimension_semantics = [], scalar_prefetch = 0 : i64, scratch_operands = 0 : i64, tpu.core_type = #tpu.core_type<tc>} {
    %c0 = arith.constant 0 : index
    %c0_0 = arith.constant 0 : index
    %c0_1 = arith.constant 0 : index
    %0 = vector.load %arg0[%c0, %c0_0, %c0_1] : memref<4x128x512xbf16, #tpu.memory_space<vmem>>, vector<1x128x512xbf16>
    %1 = vector.shape_cast %0 : vector<1x128x512xbf16> to vector<128x512xbf16>
    %c0_2 = arith.constant 0 : index
    %c0_3 = arith.constant 0 : index
    %2 = vector.load %arg1[%c0_2, %c0_3] : memref<512x128xbf16, #tpu.memory_space<vmem>>, vector<512x128xbf16>
    %cst = arith.constant dense<0.000000e+00> : vector<128x128xf32>
    %3 = tpu.matmul %1, %2, %cst {dimension_numbers = #tpu.dot_dimension_numbers<[1], [0], [0], [1], [0, 0, 1, 1], [], []>} : vector<128x512xbf16>, vector<512x128xbf16>, vector<128x128xf32> -> vector<128x128xf32>
    %c0_4 = arith.constant 0 : index
    %c0_5 = arith.constant 0 : index
    %4 = vector.load %arg2[%c0_4, %c0_5] : memref<1x128xf32, #tpu.memory_space<vmem>>, vector<1x128xf32>
    %5 = vector.broadcast %4 : vector<1x128xf32> to vector<128x128xf32>
    %6 = arith.addf %3, %5 : vector<128x128xf32>
    %cst_6 = arith.constant 0.000000e+00 : f32
    %7 = vector.broadcast %cst_6 : f32 to vector<128x128xf32>
    %8 = arith.maximumf %6, %7 : vector<128x128xf32>
    %c1 = arith.constant 1 : index
    %c0_7 = arith.constant 0 : index
    %c0_8 = arith.constant 0 : index
    %9 = vector.load %arg0[%c1, %c0_7, %c0_8] : memref<4x128x512xbf16, #tpu.memory_space<vmem>>, vector<1x128x512xbf16>
    %10 = vector.shape_cast %9 : vector<1x128x512xbf16> to vector<128x512xbf16>
    %c0_9 = arith.constant 0 : index
    %c0_10 = arith.constant 0 : index
    %11 = vector.load %arg1[%c0_9, %c0_10] : memref<512x128xbf16, #tpu.memory_space<vmem>>, vector<512x128xbf16>
    %cst_11 = arith.constant dense<0.000000e+00> : vector<128x128xf32>
    %12 = tpu.matmul %10, %11, %cst_11 {dimension_numbers = #tpu.dot_dimension_numbers<[1], [0], [0], [1], [0, 0, 1, 1], [], []>} : vector<128x512xbf16>, vector<512x128xbf16>, vector<128x128xf32> -> vector<128x128xf32>
    %c0_12 = arith.constant 0 : index
    %c0_13 = arith.constant 0 : index
    %13 = vector.load %arg2[%c0_12, %c0_13] : memref<1x128xf32, #tpu.memory_space<vmem>>, vector<1x128xf32>
    %14 = vector.broadcast %13 : vector<1x128xf32> to vector<128x128xf32>
    %15 = arith.addf %12, %14 : vector<128x128xf32>
    %cst_14 = arith.constant 0.000000e+00 : f32
    %16 = vector.broadcast %cst_14 : f32 to vector<128x128xf32>
    %17 = arith.maximumf %15, %16 : vector<128x128xf32>
    %18 = arith.maximumf %8, %17 : vector<128x128xf32>
    %c2 = arith.constant 2 : index
    %c0_15 = arith.constant 0 : index
    %c0_16 = arith.constant 0 : index
    %19 = vector.load %arg0[%c2, %c0_15, %c0_16] : memref<4x128x512xbf16, #tpu.memory_space<vmem>>, vector<1x128x512xbf16>
    %20 = vector.shape_cast %19 : vector<1x128x512xbf16> to vector<128x512xbf16>
    %c0_17 = arith.constant 0 : index
    %c0_18 = arith.constant 0 : index
    %21 = vector.load %arg1[%c0_17, %c0_18] : memref<512x128xbf16, #tpu.memory_space<vmem>>, vector<512x128xbf16>
    %cst_19 = arith.constant dense<0.000000e+00> : vector<128x128xf32>
    %22 = tpu.matmul %20, %21, %cst_19 {dimension_numbers = #tpu.dot_dimension_numbers<[1], [0], [0], [1], [0, 0, 1, 1], [], []>} : vector<128x512xbf16>, vector<512x128xbf16>, vector<128x128xf32> -> vector<128x128xf32>
    %c0_20 = arith.constant 0 : index
    %c0_21 = arith.constant 0 : index
    %23 = vector.load %arg2[%c0_20, %c0_21] : memref<1x128xf32, #tpu.memory_space<vmem>>, vector<1x128xf32>
    %24 = vector.broadcast %23 : vector<1x128xf32> to vector<128x128xf32>
    %25 = arith.addf %22, %24 : vector<128x128xf32>
    %cst_22 = arith.constant 0.000000e+00 : f32
    %26 = vector.broadcast %cst_22 : f32 to vector<128x128xf32>
    %27 = arith.maximumf %25, %26 : vector<128x128xf32>
    %28 = arith.maximumf %18, %27 : vector<128x128xf32>
    %c3 = arith.constant 3 : index
    %c0_23 = arith.constant 0 : index
    %c0_24 = arith.constant 0 : index
    %29 = vector.load %arg0[%c3, %c0_23, %c0_24] : memref<4x128x512xbf16, #tpu.memory_space<vmem>>, vector<1x128x512xbf16>
    %30 = vector.shape_cast %29 : vector<1x128x512xbf16> to vector<128x512xbf16>
    %c0_25 = arith.constant 0 : index
    %c0_26 = arith.constant 0 : index
    %31 = vector.load %arg1[%c0_25, %c0_26] : memref<512x128xbf16, #tpu.memory_space<vmem>>, vector<512x128xbf16>
    %cst_27 = arith.constant dense<0.000000e+00> : vector<128x128xf32>
    %32 = tpu.matmul %30, %31, %cst_27 {dimension_numbers = #tpu.dot_dimension_numbers<[1], [0], [0], [1], [0, 0, 1, 1], [], []>} : vector<128x512xbf16>, vector<512x128xbf16>, vector<128x128xf32> -> vector<128x128xf32>
    %c0_28 = arith.constant 0 : index
    %c0_29 = arith.constant 0 : index
    %33 = vector.load %arg2[%c0_28, %c0_29] : memref<1x128xf32, #tpu.memory_space<vmem>>, vector<1x128xf32>
    %34 = vector.broadcast %33 : vector<1x128xf32> to vector<128x128xf32>
    %35 = arith.addf %32, %34 : vector<128x128xf32>
    %cst_30 = arith.constant 0.000000e+00 : f32
    %36 = vector.broadcast %cst_30 : f32 to vector<128x128xf32>
    %37 = arith.maximumf %35, %36 : vector<128x128xf32>
    %38 = arith.maximumf %28, %37 : vector<128x128xf32>
    %39 = arith.truncf %38 : vector<128x128xf32> to vector<128x128xbf16>
    %cst_31 = arith.constant 0.000000e+00 : f32
    %40 = vector.broadcast %cst_31 : f32 to vector<8x512xf32>
    %41 = vector.extract_strided_slice %39 {offsets = [0, 0], sizes = [8, 128], strides = [1, 1]} : vector<128x128xbf16> to vector<8x128xbf16>
    %c0_32 = arith.constant 0 : index
    %c0_33 = arith.constant 0 : index
    %c0_34 = arith.constant 0 : index
    %42 = vector.load %arg3[%c0_32, %c0_33, %c0_34] : memref<16x128x512xbf16, #tpu.memory_space<vmem>>, vector<1x128x512xbf16>
    %43 = vector.shape_cast %42 : vector<1x128x512xbf16> to vector<128x512xbf16>
    %cst_35 = arith.constant dense<0.000000e+00> : vector<8x512xf32>
    %44 = tpu.matmul %41, %43, %cst_35 {dimension_numbers = #tpu.dot_dimension_numbers<[1], [0], [0], [1], [0, 0, 1, 1], [], []>} : vector<8x128xbf16>, vector<128x512xbf16>, vector<8x512xf32> -> vector<8x512xf32>
    %45 = arith.addf %40, %44 : vector<8x512xf32>
    %46 = vector.extract_strided_slice %39 {offsets = [8, 0], sizes = [8, 128], strides = [1, 1]} : vector<128x128xbf16> to vector<8x128xbf16>
    %c1_36 = arith.constant 1 : index
    %c0_37 = arith.constant 0 : index
    %c0_38 = arith.constant 0 : index
    %47 = vector.load %arg3[%c1_36, %c0_37, %c0_38] : memref<16x128x512xbf16, #tpu.memory_space<vmem>>, vector<1x128x512xbf16>
    %48 = vector.shape_cast %47 : vector<1x128x512xbf16> to vector<128x512xbf16>
    %cst_39 = arith.constant dense<0.000000e+00> : vector<8x512xf32>
    %49 = tpu.matmul %46, %48, %cst_39 {dimension_numbers = #tpu.dot_dimension_numbers<[1], [0], [0], [1], [0, 0, 1, 1], [], []>} : vector<8x128xbf16>, vector<128x512xbf16>, vector<8x512xf32> -> vector<8x512xf32>
    %50 = arith.addf %45, %49 : vector<8x512xf32>
    %51 = vector.extract_strided_slice %39 {offsets = [16, 0], sizes = [8, 128], strides = [1, 1]} : vector<128x128xbf16> to vector<8x128xbf16>
    %c2_40 = arith.constant 2 : index
    %c0_41 = arith.constant 0 : index
    %c0_42 = arith.constant 0 : index
    %52 = vector.load %arg3[%c2_40, %c0_41, %c0_42] : memref<16x128x512xbf16, #tpu.memory_space<vmem>>, vector<1x128x512xbf16>
    %53 = vector.shape_cast %52 : vector<1x128x512xbf16> to vector<128x512xbf16>
    %cst_43 = arith.constant dense<0.000000e+00> : vector<8x512xf32>
    %54 = tpu.matmul %51, %53, %cst_43 {dimension_numbers = #tpu.dot_dimension_numbers<[1], [0], [0], [1], [0, 0, 1, 1], [], []>} : vector<8x128xbf16>, vector<128x512xbf16>, vector<8x512xf32> -> vector<8x512xf32>
    %55 = arith.addf %50, %54 : vector<8x512xf32>
    %56 = vector.extract_strided_slice %39 {offsets = [24, 0], sizes = [8, 128], strides = [1, 1]} : vector<128x128xbf16> to vector<8x128xbf16>
    %c3_44 = arith.constant 3 : index
    %c0_45 = arith.constant 0 : index
    %c0_46 = arith.constant 0 : index
    %57 = vector.load %arg3[%c3_44, %c0_45, %c0_46] : memref<16x128x512xbf16, #tpu.memory_space<vmem>>, vector<1x128x512xbf16>
    %58 = vector.shape_cast %57 : vector<1x128x512xbf16> to vector<128x512xbf16>
    %cst_47 = arith.constant dense<0.000000e+00> : vector<8x512xf32>
    %59 = tpu.matmul %56, %58, %cst_47 {dimension_numbers = #tpu.dot_dimension_numbers<[1], [0], [0], [1], [0, 0, 1, 1], [], []>} : vector<8x128xbf16>, vector<128x512xbf16>, vector<8x512xf32> -> vector<8x512xf32>
    %60 = arith.addf %55, %59 : vector<8x512xf32>
    %61 = vector.extract_strided_slice %39 {offsets = [32, 0], sizes = [8, 128], strides = [1, 1]} : vector<128x128xbf16> to vector<8x128xbf16>
    %c4 = arith.constant 4 : index
    %c0_48 = arith.constant 0 : index
    %c0_49 = arith.constant 0 : index
    %62 = vector.load %arg3[%c4, %c0_48, %c0_49] : memref<16x128x512xbf16, #tpu.memory_space<vmem>>, vector<1x128x512xbf16>
    %63 = vector.shape_cast %62 : vector<1x128x512xbf16> to vector<128x512xbf16>
    %cst_50 = arith.constant dense<0.000000e+00> : vector<8x512xf32>
    %64 = tpu.matmul %61, %63, %cst_50 {dimension_numbers = #tpu.dot_dimension_numbers<[1], [0], [0], [1], [0, 0, 1, 1], [], []>} : vector<8x128xbf16>, vector<128x512xbf16>, vector<8x512xf32> -> vector<8x512xf32>
    %65 = arith.addf %60, %64 : vector<8x512xf32>
    %66 = vector.extract_strided_slice %39 {offsets = [40, 0], sizes = [8, 128], strides = [1, 1]} : vector<128x128xbf16> to vector<8x128xbf16>
    %c5 = arith.constant 5 : index
    %c0_51 = arith.constant 0 : index
    %c0_52 = arith.constant 0 : index
    %67 = vector.load %arg3[%c5, %c0_51, %c0_52] : memref<16x128x512xbf16, #tpu.memory_space<vmem>>, vector<1x128x512xbf16>
    %68 = vector.shape_cast %67 : vector<1x128x512xbf16> to vector<128x512xbf16>
    %cst_53 = arith.constant dense<0.000000e+00> : vector<8x512xf32>
    %69 = tpu.matmul %66, %68, %cst_53 {dimension_numbers = #tpu.dot_dimension_numbers<[1], [0], [0], [1], [0, 0, 1, 1], [], []>} : vector<8x128xbf16>, vector<128x512xbf16>, vector<8x512xf32> -> vector<8x512xf32>
    %70 = arith.addf %65, %69 : vector<8x512xf32>
    %71 = vector.extract_strided_slice %39 {offsets = [48, 0], sizes = [8, 128], strides = [1, 1]} : vector<128x128xbf16> to vector<8x128xbf16>
    %c6 = arith.constant 6 : index
    %c0_54 = arith.constant 0 : index
    %c0_55 = arith.constant 0 : index
    %72 = vector.load %arg3[%c6, %c0_54, %c0_55] : memref<16x128x512xbf16, #tpu.memory_space<vmem>>, vector<1x128x512xbf16>
    %73 = vector.shape_cast %72 : vector<1x128x512xbf16> to vector<128x512xbf16>
    %cst_56 = arith.constant dense<0.000000e+00> : vector<8x512xf32>
    %74 = tpu.matmul %71, %73, %cst_56 {dimension_numbers = #tpu.dot_dimension_numbers<[1], [0], [0], [1], [0, 0, 1, 1], [], []>} : vector<8x128xbf16>, vector<128x512xbf16>, vector<8x512xf32> -> vector<8x512xf32>
    %75 = arith.addf %70, %74 : vector<8x512xf32>
    %76 = vector.extract_strided_slice %39 {offsets = [56, 0], sizes = [8, 128], strides = [1, 1]} : vector<128x128xbf16> to vector<8x128xbf16>
    %c7 = arith.constant 7 : index
    %c0_57 = arith.constant 0 : index
    %c0_58 = arith.constant 0 : index
    %77 = vector.load %arg3[%c7, %c0_57, %c0_58] : memref<16x128x512xbf16, #tpu.memory_space<vmem>>, vector<1x128x512xbf16>
    %78 = vector.shape_cast %77 : vector<1x128x512xbf16> to vector<128x512xbf16>
    %cst_59 = arith.constant dense<0.000000e+00> : vector<8x512xf32>
    %79 = tpu.matmul %76, %78, %cst_59 {dimension_numbers = #tpu.dot_dimension_numbers<[1], [0], [0], [1], [0, 0, 1, 1], [], []>} : vector<8x128xbf16>, vector<128x512xbf16>, vector<8x512xf32> -> vector<8x512xf32>
    %80 = arith.addf %75, %79 : vector<8x512xf32>
    %81 = vector.extract_strided_slice %39 {offsets = [64, 0], sizes = [8, 128], strides = [1, 1]} : vector<128x128xbf16> to vector<8x128xbf16>
    %c8 = arith.constant 8 : index
    %c0_60 = arith.constant 0 : index
    %c0_61 = arith.constant 0 : index
    %82 = vector.load %arg3[%c8, %c0_60, %c0_61] : memref<16x128x512xbf16, #tpu.memory_space<vmem>>, vector<1x128x512xbf16>
    %83 = vector.shape_cast %82 : vector<1x128x512xbf16> to vector<128x512xbf16>
    %cst_62 = arith.constant dense<0.000000e+00> : vector<8x512xf32>
    %84 = tpu.matmul %81, %83, %cst_62 {dimension_numbers = #tpu.dot_dimension_numbers<[1], [0], [0], [1], [0, 0, 1, 1], [], []>} : vector<8x128xbf16>, vector<128x512xbf16>, vector<8x512xf32> -> vector<8x512xf32>
    %85 = arith.addf %80, %84 : vector<8x512xf32>
    %86 = vector.extract_strided_slice %39 {offsets = [72, 0], sizes = [8, 128], strides = [1, 1]} : vector<128x128xbf16> to vector<8x128xbf16>
    %c9 = arith.constant 9 : index
    %c0_63 = arith.constant 0 : index
    %c0_64 = arith.constant 0 : index
    %87 = vector.load %arg3[%c9, %c0_63, %c0_64] : memref<16x128x512xbf16, #tpu.memory_space<vmem>>, vector<1x128x512xbf16>
    %88 = vector.shape_cast %87 : vector<1x128x512xbf16> to vector<128x512xbf16>
    %cst_65 = arith.constant dense<0.000000e+00> : vector<8x512xf32>
    %89 = tpu.matmul %86, %88, %cst_65 {dimension_numbers = #tpu.dot_dimension_numbers<[1], [0], [0], [1], [0, 0, 1, 1], [], []>} : vector<8x128xbf16>, vector<128x512xbf16>, vector<8x512xf32> -> vector<8x512xf32>
    %90 = arith.addf %85, %89 : vector<8x512xf32>
    %91 = vector.extract_strided_slice %39 {offsets = [80, 0], sizes = [8, 128], strides = [1, 1]} : vector<128x128xbf16> to vector<8x128xbf16>
    %c10 = arith.constant 10 : index
    %c0_66 = arith.constant 0 : index
    %c0_67 = arith.constant 0 : index
    %92 = vector.load %arg3[%c10, %c0_66, %c0_67] : memref<16x128x512xbf16, #tpu.memory_space<vmem>>, vector<1x128x512xbf16>
    %93 = vector.shape_cast %92 : vector<1x128x512xbf16> to vector<128x512xbf16>
    %cst_68 = arith.constant dense<0.000000e+00> : vector<8x512xf32>
    %94 = tpu.matmul %91, %93, %cst_68 {dimension_numbers = #tpu.dot_dimension_numbers<[1], [0], [0], [1], [0, 0, 1, 1], [], []>} : vector<8x128xbf16>, vector<128x512xbf16>, vector<8x512xf32> -> vector<8x512xf32>
    %95 = arith.addf %90, %94 : vector<8x512xf32>
    %96 = vector.extract_strided_slice %39 {offsets = [88, 0], sizes = [8, 128], strides = [1, 1]} : vector<128x128xbf16> to vector<8x128xbf16>
    %c11 = arith.constant 11 : index
    %c0_69 = arith.constant 0 : index
    %c0_70 = arith.constant 0 : index
    %97 = vector.load %arg3[%c11, %c0_69, %c0_70] : memref<16x128x512xbf16, #tpu.memory_space<vmem>>, vector<1x128x512xbf16>
    %98 = vector.shape_cast %97 : vector<1x128x512xbf16> to vector<128x512xbf16>
    %cst_71 = arith.constant dense<0.000000e+00> : vector<8x512xf32>
    %99 = tpu.matmul %96, %98, %cst_71 {dimension_numbers = #tpu.dot_dimension_numbers<[1], [0], [0], [1], [0, 0, 1, 1], [], []>} : vector<8x128xbf16>, vector<128x512xbf16>, vector<8x512xf32> -> vector<8x512xf32>
    %100 = arith.addf %95, %99 : vector<8x512xf32>
    %101 = vector.extract_strided_slice %39 {offsets = [96, 0], sizes = [8, 128], strides = [1, 1]} : vector<128x128xbf16> to vector<8x128xbf16>
    %c12 = arith.constant 12 : index
    %c0_72 = arith.constant 0 : index
    %c0_73 = arith.constant 0 : index
    %102 = vector.load %arg3[%c12, %c0_72, %c0_73] : memref<16x128x512xbf16, #tpu.memory_space<vmem>>, vector<1x128x512xbf16>
    %103 = vector.shape_cast %102 : vector<1x128x512xbf16> to vector<128x512xbf16>
    %cst_74 = arith.constant dense<0.000000e+00> : vector<8x512xf32>
    %104 = tpu.matmul %101, %103, %cst_74 {dimension_numbers = #tpu.dot_dimension_numbers<[1], [0], [0], [1], [0, 0, 1, 1], [], []>} : vector<8x128xbf16>, vector<128x512xbf16>, vector<8x512xf32> -> vector<8x512xf32>
    %105 = arith.addf %100, %104 : vector<8x512xf32>
    %106 = vector.extract_strided_slice %39 {offsets = [104, 0], sizes = [8, 128], strides = [1, 1]} : vector<128x128xbf16> to vector<8x128xbf16>
    %c13 = arith.constant 13 : index
    %c0_75 = arith.constant 0 : index
    %c0_76 = arith.constant 0 : index
    %107 = vector.load %arg3[%c13, %c0_75, %c0_76] : memref<16x128x512xbf16, #tpu.memory_space<vmem>>, vector<1x128x512xbf16>
    %108 = vector.shape_cast %107 : vector<1x128x512xbf16> to vector<128x512xbf16>
    %cst_77 = arith.constant dense<0.000000e+00> : vector<8x512xf32>
    %109 = tpu.matmul %106, %108, %cst_77 {dimension_numbers = #tpu.dot_dimension_numbers<[1], [0], [0], [1], [0, 0, 1, 1], [], []>} : vector<8x128xbf16>, vector<128x512xbf16>, vector<8x512xf32> -> vector<8x512xf32>
    %110 = arith.addf %105, %109 : vector<8x512xf32>
    %111 = vector.extract_strided_slice %39 {offsets = [112, 0], sizes = [8, 128], strides = [1, 1]} : vector<128x128xbf16> to vector<8x128xbf16>
    %c14 = arith.constant 14 : index
    %c0_78 = arith.constant 0 : index
    %c0_79 = arith.constant 0 : index
    %112 = vector.load %arg3[%c14, %c0_78, %c0_79] : memref<16x128x512xbf16, #tpu.memory_space<vmem>>, vector<1x128x512xbf16>
    %113 = vector.shape_cast %112 : vector<1x128x512xbf16> to vector<128x512xbf16>
    %cst_80 = arith.constant dense<0.000000e+00> : vector<8x512xf32>
    %114 = tpu.matmul %111, %113, %cst_80 {dimension_numbers = #tpu.dot_dimension_numbers<[1], [0], [0], [1], [0, 0, 1, 1], [], []>} : vector<8x128xbf16>, vector<128x512xbf16>, vector<8x512xf32> -> vector<8x512xf32>
    %115 = arith.addf %110, %114 : vector<8x512xf32>
    %116 = vector.extract_strided_slice %39 {offsets = [120, 0], sizes = [8, 128], strides = [1, 1]} : vector<128x128xbf16> to vector<8x128xbf16>
    %c15 = arith.constant 15 : index
    %c0_81 = arith.constant 0 : index
    %c0_82 = arith.constant 0 : index
    %117 = vector.load %arg3[%c15, %c0_81, %c0_82] : memref<16x128x512xbf16, #tpu.memory_space<vmem>>, vector<1x128x512xbf16>
    %118 = vector.shape_cast %117 : vector<1x128x512xbf16> to vector<128x512xbf16>
    %cst_83 = arith.constant dense<0.000000e+00> : vector<8x512xf32>
    %119 = tpu.matmul %116, %118, %cst_83 {dimension_numbers = #tpu.dot_dimension_numbers<[1], [0], [0], [1], [0, 0, 1, 1], [], []>} : vector<8x128xbf16>, vector<128x512xbf16>, vector<8x512xf32> -> vector<8x512xf32>
    %120 = arith.addf %115, %119 : vector<8x512xf32>
    %c0_84 = arith.constant 0 : index
    %c0_85 = arith.constant 0 : index
    %121 = vector.load %arg4[%c0_84, %c0_85] : memref<1x512xf32, #tpu.memory_space<vmem>>, vector<1x512xf32>
    %122 = vector.broadcast %121 : vector<1x512xf32> to vector<8x512xf32>
    %123 = arith.addf %120, %122 : vector<8x512xf32>
    %cst_86 = arith.constant 0.000000e+00 : f32
    %124 = vector.broadcast %cst_86 : f32 to vector<8x512xf32>
    %125 = arith.maximumf %123, %124 : vector<8x512xf32>
    %c0_87 = arith.constant 0 : index
    %c0_88 = arith.constant 0 : index
    %126 = vector.load %arg5[%c0_87, %c0_88] : memref<1x512xf32, #tpu.memory_space<vmem>>, vector<1x512xf32>
    %127 = vector.broadcast %126 : vector<1x512xf32> to vector<8x512xf32>
    %128 = arith.mulf %125, %127 : vector<8x512xf32>
    %cst_89 = arith.constant dense<0.000000e+00> : vector<8xf32>
    %129 = vector.multi_reduction <add>, %128, %cst_89 [1] : vector<8x512xf32> to vector<8xf32>
    %130 = vector.shape_cast %129 : vector<8xf32> to vector<8x1xf32>
    %c0_90 = arith.constant 0 : index
    %c0_91 = arith.constant 0 : index
    %131 = vector.load %arg6[%c0_90, %c0_91] : memref<1x1xf32, #tpu.memory_space<vmem>>, vector<1x1xf32>
    %132 = vector.broadcast %131 : vector<1x1xf32> to vector<8x1xf32>
    %133 = arith.addf %130, %132 : vector<8x1xf32>
    %134 = tpu.iota {dimensions = array<i32: 0>} : vector<8x1xi32>
    %c4_i32 = arith.constant 4 : i32
    %135 = vector.broadcast %c4_i32 : i32 to vector<8x1xi32>
    %136 = arith.cmpi slt, %134, %135 : vector<8x1xi32>
    %cst_92 = arith.constant -1.000000e+30 : f32
    %137 = vector.broadcast %cst_92 : f32 to vector<8x1xf32>
    %138 = arith.select %136, %133, %137 : vector<8x1xi1>, vector<8x1xf32>
    %cst_93 = arith.constant dense<0xFF800000> : vector<1xf32>
    %139 = vector.multi_reduction <maximumf>, %138, %cst_93 [0] : vector<8x1xf32> to vector<1xf32>
    %140 = vector.shape_cast %139 : vector<1xf32> to vector<1x1xf32>
    %141 = vector.broadcast %140 : vector<1x1xf32> to vector<8x1xf32>
    %142 = arith.subf %138, %141 : vector<8x1xf32>
    %143 = math.exp %142 : vector<8x1xf32>
    %cst_94 = arith.constant dense<0.000000e+00> : vector<1xf32>
    %144 = vector.multi_reduction <add>, %143, %cst_94 [0] : vector<8x1xf32> to vector<1xf32>
    %145 = vector.shape_cast %144 : vector<1xf32> to vector<1x1xf32>
    %146 = tpu.reciprocal %145 {approx = true} : vector<1x1xf32> -> vector<1x1xf32>
    %147 = vector.broadcast %146 : vector<1x1xf32> to vector<8x1xf32>
    %148 = arith.mulf %143, %147 : vector<8x1xf32>
    %149 = vector.broadcast %148 : vector<8x1xf32> to vector<8x512xf32>
    %150 = arith.mulf %149, %125 : vector<8x512xf32>
    %cst_95 = arith.constant dense<0.000000e+00> : vector<512xf32>
    %151 = vector.multi_reduction <add>, %150, %cst_95 [0] : vector<8x512xf32> to vector<512xf32>
    %152 = vector.shape_cast %151 : vector<512xf32> to vector<1x512xf32>
    %c0_96 = arith.constant 0 : index
    %c0_97 = arith.constant 0 : index
    %153 = vector.load %arg7[%c0_96, %c0_97] : memref<1x512xf32, #tpu.memory_space<vmem>>, vector<1x512xf32>
    %154 = arith.mulf %152, %153 : vector<1x512xf32>
    %cst_98 = arith.constant dense<0.000000e+00> : vector<1xf32>
    %155 = vector.multi_reduction <add>, %154, %cst_98 [1] : vector<1x512xf32> to vector<1xf32>
    %156 = vector.shape_cast %155 : vector<1xf32> to vector<1x1xf32>
    %c0_99 = arith.constant 0 : index
    %c0_100 = arith.constant 0 : index
    %157 = vector.load %arg8[%c0_99, %c0_100] : memref<1x1xf32, #tpu.memory_space<vmem>>, vector<1x1xf32>
    %158 = arith.addf %156, %157 : vector<1x1xf32>
    %c0_101 = arith.constant 0 : index
    %c0_102 = arith.constant 0 : index
    %159 = vector.load %arg9[%c0_101, %c0_102] : memref<1x1xf32, #tpu.memory_space<vmem>>, vector<1x1xf32>
    tpu.vector_store %arg9[%c0_101, %c0_102], %158 {strides = array<i32>} : memref<1x1xf32, #tpu.memory_space<vmem>>, vector<1x1xf32>,
    return
  }
}

</mosaic_0001>

<bundles_post_ra>
// kernel: _lambda_.2
= control target key start
LH: loop header
LB: loop body
LE: loop exit
PB: predicated region body
PF: predicated region fallthrough
CT: control target
= control target key end

     0   :  { %vm1046_vm0 = vcmask 261120   ;;  %s8053_s1 = inlined_call_operand.vmem [shape: bf16[32,128], index: 1, kind: input, shape index: {}]   ;;  %s8054_s0 = inlined_call_operand.vmem [shape: bf16[2304,32], index: 0, kind: input, shape index: {}]   ;;  %s8055_s2 = inlined_call_operand.vmem [shape: f32[1,128], index: 2, kind: input, shape index: {}]   ;;  %s8056_s3 = inlined_call_operand.vmem [shape: bf16[2304,128], index: 3, kind: output, shape index: {}]  }
   0x1   :  { %v6568_v0 = vld [vmem:[%s8053_s1] sm:$0xff]   ;;  %v6569_v1 = vld [vmem:[%s8053_s1 + $0x8] sm:$0xff]   ;;  %v6574_v6 = vld [vmem:[%s8054_s0 + $0x10] sm:$0xff]  }
   0x2   :  { %6272 = vmatprep.subr.bf16.mxu0 %v6568_v0  ;;  %6564 = vmatprep.subr.bf16.mxu1 %v6568_v0  ;;  %v6570_v2 = vld [vmem:[%s8054_s0] sm:$0xff]   ;;  %v6572_v4 = vld [vmem:[%s8054_s0 + $0x8] sm:$0xff]   ;;  %v6575_v7 = vld [vmem:[%s8054_s0 + $0x250] sm:$0xff]  }
   0x3   :  { %6273 = vmatpush3.bf16.msra.mxu0 %v6568_v0  ;;  %6566 = vmatpush3.bf16.msra.mxu1 %v6568_v0  ;;  %v6571_v3 = vld [vmem:[%s8054_s0 + $0x240] sm:$0xff]   ;;  %v6573_v5 = vld [vmem:[%s8054_s0 + $0x248] sm:$0xff]   ;;  %v6576_v8 = vld [vmem:[%s8054_s0 + $0x18] sm:$0xff]  }
   0x4   :  { %6274 = vmatprep.subr.bf16.mxu0 %v6569_v1  ;;  %6565 = vmatprep.subr.bf16.mxu1 %v6569_v1  ;;  %v6577_v9 = vld [vmem:[%s8054_s0 + $0x258] sm:$0xff]   ;;  %v6578_v10 = vld [vmem:[%s8054_s0 + $0x20] sm:$0xff]   ;;  %v6580_v12 = vld [vmem:[%s8054_s0 + $0x28] sm:$0xff]  }
   0x5   :  { %6276 = vmatprep.mubr.msk.bf16.mxu0 %vm1046_vm0, %v6570_v2  ;;  %6420 = vmatprep.mubr.msk.bf16.mxu1 %vm1046_vm0, %v6571_v3  ;;  %v6579_v11 = vld [vmem:[%s8054_s0 + $0x260] sm:$0xff]   ;;  %v6581_v13 = vld [vmem:[%s8054_s0 + $0x268] sm:$0xff]   ;;  %v6582_v14 = vld [vmem:[%s8054_s0 + $0x30] sm:$0xff]  }
   0x6   :  { %v6583_v15 = vld [vmem:[%s8054_s0 + $0x270] sm:$0xff]   ;;  %v6584_v16 = vld [vmem:[%s8054_s0 + $0x38] sm:$0xff]   ;;  %v6586_v18 = vld [vmem:[%s8054_s0 + $0x40] sm:$0xff]  }
   0x7   :  { %6275 = vmatpush3.bf16.msra.mxu0 %v6569_v1  ;;  %6567 = vmatpush3.bf16.msra.mxu1 %v6569_v1  ;;  %v6585_v17 = vld [vmem:[%s8054_s0 + $0x278] sm:$0xff]   ;;  %v6587_v19 = vld [vmem:[%s8054_s0 + $0x280] sm:$0xff]   ;;  %v6588_v20 = vld [vmem:[%s8054_s0 + $0x48] sm:$0xff]  }
   0x8   :  { %v6589_v21 = vld [vmem:[%s8054_s0 + $0x288] sm:$0xff]   ;;  %v6590_v22 = vld [vmem:[%s8054_s0 + $0x50] sm:$0xff]   ;;  %v6592_v24 = vld [vmem:[%s8054_s0 + $0x58] sm:$0xff]  }
   0x9   :  { %v6591_v23 = vld [vmem:[%s8054_s0 + $0x290] sm:$0xff]   ;;  %v6593_v25 = vld [vmem:[%s8054_s0 + $0x298] sm:$0xff]   ;;  %v6594_v26 = vld [vmem:[%s8054_s0 + $0x60] sm:$0xff]  }
   0xa   :  { %6277 = vmatmul.mubr.msk.bf16.vlgmr.msra.gmra.mrb[0].mxu0 %vm1046_vm0, %v6572_v4  ;;  %6421 = vmatmul.mubr.msk.bf16.vlgmr.msra.gmra.mrb[0].mxu1 %vm1046_vm0, %v6573_v5  ;;  %v6595_v27 = vld [vmem:[%s8054_s0 + $0x2a0] sm:$0xff]   ;;  %v6596_v28 = vld [vmem:[%s8054_s0 + $0x68] sm:$0xff]   ;;  %v6598_v30 = vld [vmem:[%s8054_s0 + $0x70] sm:$0xff]  }
   0xb   :  { %6280 = vmatprep.mubr.msk.bf16.mxu0 %vm1046_vm0, %v6574_v6  ;;  %6424 = vmatprep.mubr.msk.bf16.mxu1 %vm1046_vm0, %v6575_v7  ;;  %v6597_v29 = vld [vmem:[%s8054_s0 + $0x2a8] sm:$0xff]   ;;  %v6599_v31 = vld [vmem:[%s8054_s0 + $0x2b0] sm:$0xff]   ;;  %v6600_v32 = vld [vmem:[%s8054_s0 + $0x78] sm:$0xff]  }
   0xc   :  { %v6601_v33 = vld [vmem:[%s8054_s0 + $0x2b8] sm:$0xff]   ;;  %v6602_v34 = vld [vmem:[%s8054_s0 + $0x80] sm:$0xff]   ;;  %v6604_v36 = vld [vmem:[%s8054_s0 + $0x88] sm:$0xff]  }
   0xd   :  { %v6603_v35 = vld [vmem:[%s8054_s0 + $0x2c0] sm:$0xff]   ;;  %v6605_v37 = vld [vmem:[%s8054_s0 + $0x2c8] sm:$0xff]   ;;  %v6606_v38 = vld [vmem:[%s8054_s0 + $0x90] sm:$0xff]  }
   0xe   :  { %v6607_v39 = vld [vmem:[%s8054_s0 + $0x2d0] sm:$0xff]   ;;  %v6608_v40 = vld [vmem:[%s8054_s0 + $0x98] sm:$0xff]   ;;  %v6610_v42 = vld [vmem:[%s8054_s0 + $0xa0] sm:$0xff]  }
   0xf   :  { %v6609_v41 = vld [vmem:[%s8054_s0 + $0x2d8] sm:$0xff]   ;;  %v6611_v43 = vld [vmem:[%s8054_s0 + $0x2e0] sm:$0xff]   ;;  %v6612_v44 = vld [vmem:[%s8054_s0 + $0xa8] sm:$0xff]  }
  0x10   :  { %v6613_v45 = vld [vmem:[%s8054_s0 + $0x2e8] sm:$0xff]   ;;  %v6614_v46 = vld [vmem:[%s8054_s0 + $0xb0] sm:$0xff]   ;;  %v6616_v48 = vld [vmem:[%s8054_s0 + $0xb8] sm:$0xff]  }
  0x11   :  { %v6615_v47 = vld [vmem:[%s8054_s0 + $0x2f0] sm:$0xff]   ;;  %v6617_v49 = vld [vmem:[%s8054_s0 + $0x2f8] sm:$0xff]   ;;  %v6618_v50 = vld [vmem:[%s8054_s0 + $0xc0] sm:$0xff]  }
  0x12   :  { %6281 = vmatmul.mubr.msk.bf16.gmra.mrb[4].mxu0 %vm1046_vm0, %v6576_v8  ;;  %6425 = vmatmul.mubr.msk.bf16.gmra.mrb[4].mxu1 %vm1046_vm0, %v6577_v9  ;;  %v6619_v51 = vld [vmem:[%s8054_s0 + $0x300] sm:$0xff]   ;;  %v6620_v52 = vld [vmem:[%s8054_s0 + $0xc8] sm:$0xff]   ;;  %v6622_v54 = vld [vmem:[%s8054_s0 + $0xd0] sm:$0xff]  }
  0x13   :  { %6284 = vmatprep.mubr.msk.bf16.mxu0 %vm1046_vm0, %v6578_v10  ;;  %6428 = vmatprep.mubr.msk.bf16.mxu1 %vm1046_vm0, %v6579_v11  ;;  %v6621_v53 = vld [vmem:[%s8054_s0 + $0x308] sm:$0xff]   ;;  %v6623_v55 = vld [vmem:[%s8054_s0 + $0x310] sm:$0xff]   ;;  %v6624_v56 = vld [vmem:[%s8054_s0 + $0xd8] sm:$0xff]  }
  0x14   :  { %v6625_v57 = vld [vmem:[%s8054_s0 + $0x318] sm:$0xff]   ;;  %v6626_v58 = vld [vmem:[%s8054_s0 + $0xe0] sm:$0xff]   ;;  %v6628_v60 = vld [vmem:[%s8054_s0 + $0xe8] sm:$0xff]  }
  0x15   :  { %v6627_v59 = vld [vmem:[%s8054_s0 + $0x320] sm:$0xff]   ;;  %v6629_v61 = vld [vmem:[%s8054_s0 + $0x328] sm:$0xff]   ;;  %v6630_v62 = vld [vmem:[%s8054_s0 + $0xf0] sm:$0xff]  }
  0x16   :  { %v6631_v63 = vld [vmem:[%s8054_s0 + $0x330] sm:$0xff]   ;;  %v6632_v0 = vld [vmem:[%s8054_s0 + $0xf8] sm:$0xff]   ;;  %v6634_v2 = vld [vmem:[%s8054_s0 + $0x100] sm:$0xff]  }
  0x17   :  { %v6633_v1 = vld [vmem:[%s8054_s0 + $0x338] sm:$0xff]   ;;  %v6635_v3 = vld [vmem:[%s8054_s0 + $0x340] sm:$0xff]   ;;  %v6636_v4 = vld [vmem:[%s8054_s0 + $0x108] sm:$0xff]  }
  0x18   :  { %v6637_v5 = vld [vmem:[%s8054_s0 + $0x348] sm:$0xff]   ;;  %v6638_v6 = vld [vmem:[%s8054_s0 + $0x110] sm:$0xff]   ;;  %v6640_v8 = vld [vmem:[%s8054_s0 + $0x118] sm:$0xff]  }
  0x19   :  { %v6639_v7 = vld [vmem:[%s8054_s0 + $0x350] sm:$0xff]   ;;  %v6641_v9 = vld [vmem:[%s8054_s0 + $0x358] sm:$0xff]   ;;  %v6642_v10 = vld [vmem:[%s8054_s0 + $0x120] sm:$0xff]  }
  0x1a   :  { %6285 = vmatmul.mubr.msk.bf16.gmra.mrb[8].mxu0 %vm1046_vm0, %v6580_v12  ;;  %6429 = vmatmul.mubr.msk.bf16.gmra.mrb[8].mxu1 %vm1046_vm0, %v6581_v13  ;;  %v6643_v11 = vld [vmem:[%s8054_s0 + $0x360] sm:$0xff]   ;;  %v6644_v12 = vld [vmem:[%s8054_s0 + $0x128] sm:$0xff]  }
  0x1b   :  { %6288 = vmatprep.mubr.msk.bf16.mxu0 %vm1046_vm0, %v6582_v14  ;;  %6432 = vmatprep.mubr.msk.bf16.mxu1 %vm1046_vm0, %v6583_v15  ;;  %v6645_v13 = vld [vmem:[%s8054_s0 + $0x368] sm:$0xff]   ;;  %v6646_v14 = vld [vmem:[%s8054_s0 + $0x130] sm:$0xff]  }
  0x1c   :  { %v6647_v15 = vld [vmem:[%s8054_s0 + $0x370] sm:$0xff]  }
  0x22   :  { %6289 = vmatmul.mubr.msk.bf16.gmra.mrb[12].mxu0 %vm1046_vm0, %v6584_v16  ;;  %6433 = vmatmul.mubr.msk.bf16.gmra.mrb[12].mxu1 %vm1046_vm0, %v6585_v17  ;;  %v6648_v16 = vld [vmem:[%s8054_s0 + $0x138] sm:$0xff]  }
  0x23   :  { %6292 = vmatprep.mubr.msk.bf16.mxu0 %vm1046_vm0, %v6586_v18  ;;  %6436 = vmatprep.mubr.msk.bf16.mxu1 %vm1046_vm0, %v6587_v19  ;;  %v6649_v17 = vld [vmem:[%s8054_s0 + $0x378] sm:$0xff]   ;;  %v6650_v18 = vld [vmem:[%s8054_s0 + $0x140] sm:$0xff]  }
  0x24   :  { %v6651_v19 = vld [vmem:[%s8054_s0 + $0x380] sm:$0xff]  }
  0x2a   :  { %6293 = vmatmul.mubr.msk.bf16.gmra.mrb[16].mxu0 %vm1046_vm0, %v6588_v20  ;;  %6437 = vmatmul.mubr.msk.bf16.gmra.mrb[16].mxu1 %vm1046_vm0, %v6589_v21  ;;  %v6652_v20 = vld [vmem:[%s8054_s0 + $0x148] sm:$0xff]  }
  0x2b   :  { %6296 = vmatprep.mubr.msk.bf16.mxu0 %vm1046_vm0, %v6590_v22  ;;  %6440 = vmatprep.mubr.msk.bf16.mxu1 %vm1046_vm0, %v6591_v23  ;;  %v6653_v21 = vld [vmem:[%s8054_s0 + $0x388] sm:$0xff]   ;;  %v6654_v22 = vld [vmem:[%s8054_s0 + $0x150] sm:$0xff]  }
  0x2c   :  { %v6655_v23 = vld [vmem:[%s8054_s0 + $0x390] sm:$0xff]  }
  0x32   :  { %6297 = vmatmul.mubr.msk.bf16.gmra.mrb[20].mxu0 %vm1046_vm0, %v6592_v24  ;;  %6441 = vmatmul.mubr.msk.bf16.gmra.mrb[20].mxu1 %vm1046_vm0, %v6593_v25  ;;  %v6656_v24 = vld [vmem:[%s8054_s0 + $0x158] sm:$0xff]  }
  0x33   :  { %6300 = vmatprep.mubr.msk.bf16.mxu0 %vm1046_vm0, %v6594_v26  ;;  %6444 = vmatprep.mubr.msk.bf16.mxu1 %vm1046_vm0, %v6595_v27  ;;  %v6657_v25 = vld [vmem:[%s8054_s0 + $0x398] sm:$0xff]   ;;  %v6658_v26 = vld [vmem:[%s8054_s0 + $0x160] sm:$0xff]  }
  0x34   :  { %v6659_v27 = vld [vmem:[%s8054_s0 + $0x3a0] sm:$0xff]  }
  0x3a   :  { %6301 = vmatmul.mubr.msk.bf16.gmra.mrb[24].mxu0 %vm1046_vm0, %v6596_v28  ;;  %6445 = vmatmul.mubr.msk.bf16.gmra.mrb[24].mxu1 %vm1046_vm0, %v6597_v29  ;;  %v6660_v28 = vld [vmem:[%s8054_s0 + $0x168] sm:$0xff]  }
  0x3b   :  { %6304 = vmatprep.mubr.msk.bf16.mxu0 %vm1046_vm0, %v6598_v30  ;;  %6448 = vmatprep.mubr.msk.bf16.mxu1 %vm1046_vm0, %v6599_v31  ;;  %v6661_v29 = vld [vmem:[%s8054_s0 + $0x3a8] sm:$0xff]   ;;  %v6662_v30 = vld [vmem:[%s8054_s0 + $0x170] sm:$0xff]  }
  0x3c   :  { %v6663_v31 = vld [vmem:[%s8054_s0 + $0x3b0] sm:$0xff]  }
  0x42   :  { %6305 = vmatmul.mubr.msk.bf16.gmra.mrb[28].mxu0 %vm1046_vm0, %v6600_v32  ;;  %6449 = vmatmul.mubr.msk.bf16.gmra.mrb[28].mxu1 %vm1046_vm0, %v6601_v33  ;;  %v6664_v32 = vld [vmem:[%s8054_s0 + $0x178] sm:$0xff]  }
  0x43   :  { %6308 = vmatprep.mubr.msk.bf16.mxu0 %vm1046_vm0, %v6602_v34  ;;  %6452 = vmatprep.mubr.msk.bf16.mxu1 %vm1046_vm0, %v6603_v35  ;;  %v6665_v33 = vld [vmem:[%s8054_s0 + $0x3b8] sm:$0xff]   ;;  %v6666_v34 = vld [vmem:[%s8054_s0 + $0x180] sm:$0xff]  }
  0x44   :  { %v6667_v35 = vld [vmem:[%s8054_s0 + $0x3c0] sm:$0xff]  }
  0x4a   :  { %6309 = vmatmul.mubr.msk.bf16.gmra.mrb[32].mxu0 %vm1046_vm0, %v6604_v36  ;;  %6453 = vmatmul.mubr.msk.bf16.gmra.mrb[32].mxu1 %vm1046_vm0, %v6605_v37  ;;  %v6668_v36 = vld [vmem:[%s8054_s0 + $0x188] sm:$0xff]  }
  0x4b   :  { %6312 = vmatprep.mubr.msk.bf16.mxu0 %vm1046_vm0, %v6606_v38  ;;  %6456 = vmatprep.mubr.msk.bf16.mxu1 %vm1046_vm0, %v6607_v39  ;;  %v6669_v37 = vld [vmem:[%s8054_s0 + $0x3c8] sm:$0xff]   ;;  %v6670_v38 = vld [vmem:[%s8054_s0 + $0x190] sm:$0xff]  }
  0x4c   :  { %v6671_v39 = vld [vmem:[%s8054_s0 + $0x3d0] sm:$0xff]  }
  0x52   :  { %6313 = vmatmul.mubr.msk.bf16.gmra.mrb[36].mxu0 %vm1046_vm0, %v6608_v40  ;;  %6457 = vmatmul.mubr.msk.bf16.gmra.mrb[36].mxu1 %vm1046_vm0, %v6609_v41  ;;  %v6672_v40 = vld [vmem:[%s8054_s0 + $0x198] sm:$0xff]  }
  0x53   :  { %6316 = vmatprep.mubr.msk.bf16.mxu0 %vm1046_vm0, %v6610_v42  ;;  %6460 = vmatprep.mubr.msk.bf16.mxu1 %vm1046_vm0, %v6611_v43  ;;  %v6673_v41 = vld [vmem:[%s8054_s0 + $0x3d8] sm:$0xff]   ;;  %v6674_v42 = vld [vmem:[%s8054_s0 + $0x1a0] sm:$0xff]  }
  0x54   :  { %v6675_v43 = vld [vmem:[%s8054_s0 + $0x3e0] sm:$0xff]  }
  0x5a   :  { %6317 = vmatmul.mubr.msk.bf16.gmra.mrb[40].mxu0 %vm1046_vm0, %v6612_v44  ;;  %6461 = vmatmul.mubr.msk.bf16.gmra.mrb[40].mxu1 %vm1046_vm0, %v6613_v45  ;;  %v6676_v44 = vld [vmem:[%s8054_s0 + $0x1a8] sm:$0xff]  }
  0x5b   :  { %6320 = vmatprep.mubr.msk.bf16.mxu0 %vm1046_vm0, %v6614_v46  ;;  %6464 = vmatprep.mubr.msk.bf16.mxu1 %vm1046_vm0, %v6615_v47  ;;  %v6677_v45 = vld [vmem:[%s8054_s0 + $0x3e8] sm:$0xff]   ;;  %v6678_v46 = vld [vmem:[%s8054_s0 + $0x1b0] sm:$0xff]  }
  0x5c   :  { %v6679_v47 = vld [vmem:[%s8054_s0 + $0x3f0] sm:$0xff]  }
  0x62   :  { %6321 = vmatmul.mubr.msk.bf16.gmra.mrb[44].mxu0 %vm1046_vm0, %v6616_v48  ;;  %6465 = vmatmul.mubr.msk.bf16.gmra.mrb[44].mxu1 %vm1046_vm0, %v6617_v49  ;;  %v7183_v48 = vld [vmem:[%s8055_s2] ss:$0 sm:$0xff] }
  0x63   :  { %6324 = vmatprep.mubr.msk.bf16.mxu0 %vm1046_vm0, %v6618_v50  ;;  %6468 = vmatprep.mubr.msk.bf16.mxu1 %vm1046_vm0, %v6619_v51 }
  0x6a   :  { %6325 = vmatmul.mubr.msk.bf16.gmra.mrb[48].mxu0 %vm1046_vm0, %v6620_v52  ;;  %6469 = vmatmul.mubr.msk.bf16.gmra.mrb[48].mxu1 %vm1046_vm0, %v6621_v53 }
  0x6b   :  { %6328 = vmatprep.mubr.msk.bf16.mxu0 %vm1046_vm0, %v6622_v54  ;;  %6472 = vmatprep.mubr.msk.bf16.mxu1 %vm1046_vm0, %v6623_v55  ;;  %v6680_v55 = vld [vmem:[%s8054_s0 + $0x1b8] sm:$0xff]  }
  0x72   :  { %6329 = vmatmul.mubr.msk.bf16.gmra.mrb[52].mxu0 %vm1046_vm0, %v6624_v56  ;;  %6473 = vmatmul.mubr.msk.bf16.gmra.mrb[52].mxu1 %vm1046_vm0, %v6625_v57  ;;  %v6681_v56 = vld [vmem:[%s8054_s0 + $0x3f8] sm:$0xff]  }
  0x73   :  { %6332 = vmatprep.mubr.msk.bf16.mxu0 %vm1046_vm0, %v6626_v58  ;;  %6476 = vmatprep.mubr.msk.bf16.mxu1 %vm1046_vm0, %v6627_v59 }
  0x7a   :  { %6333 = vmatmul.mubr.msk.bf16.gmra.mrb[56].mxu0 %vm1046_vm0, %v6628_v60  ;;  %6477 = vmatmul.mubr.msk.bf16.gmra.mrb[56].mxu1 %vm1046_vm0, %v6629_v61  ;;  %v6682_v61 = vld [vmem:[%s8054_s0 + $0x1c0] sm:$0xff]  }
  0x7b   :  { %6336 = vmatprep.mubr.msk.bf16.mxu0 %vm1046_vm0, %v6630_v62  ;;  %6480 = vmatprep.mubr.msk.bf16.mxu1 %vm1046_vm0, %v6631_v63  ;;  %v6683_v62 = vld [vmem:[%s8054_s0 + $0x400] sm:$0xff]  }
  0x82   :  { %6337 = vmatmul.mubr.msk.bf16.gmra.mrb[60].mxu0 %vm1046_vm0, %v6632_v0  ;;  %6481 = vmatmul.mubr.msk.bf16.gmra.mrb[60].mxu1 %vm1046_vm0, %v6633_v1 }
  0x83   :  { %6340 = vmatprep.mubr.msk.bf16.mxu0 %vm1046_vm0, %v6634_v2  ;;  %6484 = vmatprep.mubr.msk.bf16.mxu1 %vm1046_vm0, %v6635_v3 }
  0x8a   :  { %6341 = vmatmul.mubr.msk.bf16.gmra.mrb[64].mxu0 %vm1046_vm0, %v6636_v4  ;;  %6485 = vmatmul.mubr.msk.bf16.gmra.mrb[64].mxu1 %vm1046_vm0, %v6637_v5 }
  0x8b   :  { %6344 = vmatprep.mubr.msk.bf16.mxu0 %vm1046_vm0, %v6638_v6  ;;  %6488 = vmatprep.mubr.msk.bf16.mxu1 %vm1046_vm0, %v6639_v7 }
  0x92   :  { %6345 = vmatmul.mubr.msk.bf16.gmra.mrb[68].mxu0 %vm1046_vm0, %v6640_v8  ;;  %6489 = vmatmul.mubr.msk.bf16.gmra.mrb[68].mxu1 %vm1046_vm0, %v6641_v9 }
  0x93   :  { %6348 = vmatprep.mubr.msk.bf16.mxu0 %vm1046_vm0, %v6642_v10  ;;  %6492 = vmatprep.mubr.msk.bf16.mxu1 %vm1046_vm0, %v6643_v11 }
  0x9a   :  { %6349 = vmatmul.mubr.msk.bf16.gmra.mrb[72].mxu0 %vm1046_vm0, %v6644_v12  ;;  %6493 = vmatmul.mubr.msk.bf16.gmra.mrb[72].mxu1 %vm1046_vm0, %v6645_v13 }
  0x9b   :  { %6352 = vmatprep.mubr.msk.bf16.mxu0 %vm1046_vm0, %v6646_v14  ;;  %6496 = vmatprep.mubr.msk.bf16.mxu1 %vm1046_vm0, %v6647_v15 }
  0xa2   :  { %6353 = vmatmul.mubr.msk.bf16.gmra.mrb[76].mxu0 %vm1046_vm0, %v6648_v16  ;;  %6497 = vmatmul.mubr.msk.bf16.gmra.mrb[76].mxu1 %vm1046_vm0, %v6649_v17 }
  0xa3   :  { %6356 = vmatprep.mubr.msk.bf16.mxu0 %vm1046_vm0, %v6650_v18  ;;  %6500 = vmatprep.mubr.msk.bf16.mxu1 %vm1046_vm0, %v6651_v19 }
  0xaa   :  { %6357 = vmatmul.mubr.msk.bf16.gmra.mrb[80].mxu0 %vm1046_vm0, %v6652_v20  ;;  %6501 = vmatmul.mubr.msk.bf16.gmra.mrb[80].mxu1 %vm1046_vm0, %v6653_v21 }
  0xab   :  { %6360 = vmatprep.mubr.msk.bf16.mxu0 %vm1046_vm0, %v6654_v22  ;;  %6504 = vmatprep.mubr.msk.bf16.mxu1 %vm1046_vm0, %v6655_v23  ;;  %v6684_v23 = vld [vmem:[%s8054_s0 + $0x1c8] sm:$0xff]  }
  0xb2   :  { %6361 = vmatmul.mubr.msk.bf16.gmra.mrb[84].mxu0 %vm1046_vm0, %v6656_v24  ;;  %6505 = vmatmul.mubr.msk.bf16.gmra.mrb[84].mxu1 %vm1046_vm0, %v6657_v25  ;;  %v6685_v24 = vld [vmem:[%s8054_s0 + $0x408] sm:$0xff]  }
  0xb3   :  { %6364 = vmatprep.mubr.msk.bf16.mxu0 %vm1046_vm0, %v6658_v26  ;;  %6508 = vmatprep.mubr.msk.bf16.mxu1 %vm1046_vm0, %v6659_v27 }
  0xba   :  { %6365 = vmatmul.mubr.msk.bf16.gmra.mrb[88].mxu0 %vm1046_vm0, %v6660_v28  ;;  %6509 = vmatmul.mubr.msk.bf16.gmra.mrb[88].mxu1 %vm1046_vm0, %v6661_v29  ;;  %v6686_v29 = vld [vmem:[%s8054_s0 + $0x1d0] sm:$0xff]  }
  0xbb   :  { %6368 = vmatprep.mubr.msk.bf16.mxu0 %vm1046_vm0, %v6662_v30  ;;  %6512 = vmatprep.mubr.msk.bf16.mxu1 %vm1046_vm0, %v6663_v31  ;;  %v6687_v30 = vld [vmem:[%s8054_s0 + $0x410] sm:$0xff]  }
  0xc2   :  { %6369 = vmatmul.mubr.msk.bf16.gmra.mrb[92].mxu0 %vm1046_vm0, %v6664_v32  ;;  %6513 = vmatmul.mubr.msk.bf16.gmra.mrb[92].mxu1 %vm1046_vm0, %v6665_v33 }
  0xc3   :  { %6372 = vmatprep.mubr.msk.bf16.mxu0 %vm1046_vm0, %v6666_v34  ;;  %6516 = vmatprep.mubr.msk.bf16.mxu1 %vm1046_vm0, %v6667_v35 }
  0xca   :  { %6373 = vmatmul.mubr.msk.bf16.gmra.mrb[96].mxu0 %vm1046_vm0, %v6668_v36  ;;  %6517 = vmatmul.mubr.msk.bf16.gmra.mrb[96].mxu1 %vm1046_vm0, %v6669_v37 }
  0xcb   :  { %6376 = vmatprep.mubr.msk.bf16.mxu0 %vm1046_vm0, %v6670_v38  ;;  %6520 = vmatprep.mubr.msk.bf16.mxu1 %vm1046_vm0, %v6671_v39 }
  0xd2   :  { %6377 = vmatmul.mubr.msk.bf16.gmra.mrb[100].mxu0 %vm1046_vm0, %v6672_v40  ;;  %6521 = vmatmul.mubr.msk.bf16.gmra.mrb[100].mxu1 %vm1046_vm0, %v6673_v41 }
  0xd3   :  { %6380 = vmatprep.mubr.msk.bf16.mxu0 %vm1046_vm0, %v6674_v42  ;;  %6524 = vmatprep.mubr.msk.bf16.mxu1 %vm1046_vm0, %v6675_v43 }
  0xda   :  { %6381 = vmatmul.mubr.msk.bf16.gmra.mrb[104].mxu0 %vm1046_vm0, %v6676_v44  ;;  %6525 = vmatmul.mubr.msk.bf16.gmra.mrb[104].mxu1 %vm1046_vm0, %v6677_v45 }
  0xdb   :  { %6384 = vmatprep.mubr.msk.bf16.mxu0 %vm1046_vm0, %v6678_v46  ;;  %6528 = vmatprep.mubr.msk.bf16.mxu1 %vm1046_vm0, %v6679_v47 }
  0xdd   :  { %v6278_v49 = vpop.f32.mrb[0].mxu0  ;;  %v6422_v50 = vpop.f32.mrb[0].mxu1 }
  0xde   :  { %v1522_v51 = vadd.f32 %v6278_v49, %v7183_v48  ;;  %v2098_v52 = vadd.f32 %v6422_v50, %v7183_v48  ;;  %v1513_v53 = vpop.f32.mrb[1].mxu0  ;;  %v2089_v54 = vpop.f32.mrb[1].mxu1 }
  0xdf   :  { %v1514_v57 = vadd.f32 %v7183_v48, %v1513_v53  ;;  %v2090_v58 = vadd.f32 %v7183_v48, %v2089_v54  ;;  %v6279_v59 = vpop.f32.mrb[2].mxu0  ;;  %v6423_v60 = vpop.f32.mrb[2].mxu1 }
  0xe0   :  { %v1525_v63 = vadd.f32 %v6279_v59, %v7183_v48  ;;  %v2101_v0 = vadd.f32 %v6423_v60, %v7183_v48  ;;  %v1516_v1 = vpop.f32.mrb[3].mxu0  ;;  %v2092_v2 = vpop.f32.mrb[3].mxu1  ;;  %v2666_v5 = vmax.f32 %v1522_v51, 0.0  ;;  %v2810_v6 = vmax.f32 %v2098_v52, 0.0 }
  0xe1   :  { %v1517_v3 = vadd.f32 %v7183_v48, %v1516_v1  ;;  %v2093_v4 = vadd.f32 %v7183_v48, %v2092_v2  ;;  %v2664_v9 = vmax.f32 %v1514_v57, 0.0  ;;  %v2808_v10 = vmax.f32 %v2090_v58, 0.0  ;;  %v6689_v57 = vld [vmem:[%s8054_s0 + $0x418] sm:$0xff]  }
  0xe2   :  { %v2667_v7 = vmax.f32 %v1525_v63, 0.0  ;;  %v2811_v8 = vmax.f32 %v2101_v0, 0.0  ;;  %6385 = vmatmul.mubr.msk.bf16.gmra.mrb[108].mxu0 %vm1046_vm0, %v6680_v55  ;;  %6529 = vmatmul.mubr.msk.bf16.gmra.mrb[108].mxu1 %vm1046_vm0, %v6681_v56  ;;  %v6688_v56 = vld [vmem:[%s8054_s0 + $0x1d8] sm:$0xff]   ;;  %v6691_v63 = vld [vmem:[%s8054_s0 + $0x420] sm:$0xff]  }
  0xe3   :  { %v2665_v11 = vmax.f32 %v1517_v3, 0.0  ;;  %v2809_v12 = vmax.f32 %v2093_v4, 0.0  ;;  %6388 = vmatprep.mubr.msk.bf16.mxu0 %vm1046_vm0, %v6682_v61  ;;  %6532 = vmatprep.mubr.msk.bf16.mxu1 %vm1046_vm0, %v6683_v62  ;;  %v6690_v62 = vld [vmem:[%s8054_s0 + $0x1e0] sm:$0xff]  }
  0xe4   :  { %v5271_v13 = vpack.c.bf16 %v2667_v7, %v2666_v5  ;;  %v5631_v14 = vpack.c.bf16 %v2811_v8, %v2810_v6 }
  0xe5   :  { %v5266_v15 = vpack.c.bf16 %v2665_v11, %v2664_v9  ;;  %v5626_v16 = vpack.c.bf16 %v2809_v12, %v2808_v10  ;;  %v6282_v17 = vpop.f32.mrb[4].mxu0  ;;  %v6426_v18 = vpop.f32.mrb[4].mxu1 }
  0xe6   :  { %5983 = vst [vmem:[%s8056_s3 + $0x8] sm:$0xff] %v5271_v13   ;;  %6055 = vst [vmem:[%s8056_s3 + $0x248] sm:$0xff] %v5631_v14   ;;  %v1538_v19 = vadd.f32 %v6282_v17, %v7183_v48  ;;  %v2114_v20 = vadd.f32 %v6426_v18, %v7183_v48  ;;  %v1529_v21 = vpop.f32.mrb[5].mxu0  ;;  %v2105_v22 = vpop.f32.mrb[5].mxu1 }
  0xe7   :  { %5267 = vst [vmem:[%s8056_s3] sm:$0xff] %v5266_v15   ;;  %6054 = vst [vmem:[%s8056_s3 + $0x240] sm:$0xff] %v5626_v16   ;;  %v1530_v25 = vadd.f32 %v7183_v48, %v1529_v21  ;;  %v2106_v26 = vadd.f32 %v7183_v48, %v2105_v22  ;;  %v6283_v27 = vpop.f32.mrb[6].mxu0  ;;  %v6427_v28 = vpop.f32.mrb[6].mxu1 }
  0xe8   :  { %v1541_v31 = vadd.f32 %v6283_v27, %v7183_v48  ;;  %v2117_v32 = vadd.f32 %v6427_v28, %v7183_v48  ;;  %v1532_v33 = vpop.f32.mrb[7].mxu0  ;;  %v2108_v34 = vpop.f32.mrb[7].mxu1  ;;  %v2670_v37 = vmax.f32 %v1538_v19, 0.0  ;;  %v2814_v38 = vmax.f32 %v2114_v20, 0.0 }
  0xe9   :  { %v1533_v35 = vadd.f32 %v7183_v48, %v1532_v33  ;;  %v2109_v36 = vadd.f32 %v7183_v48, %v2108_v34  ;;  %v2668_v41 = vmax.f32 %v1530_v25, 0.0  ;;  %v2812_v42 = vmax.f32 %v2106_v26, 0.0  ;;  %v6693_v25 = vld [vmem:[%s8054_s0 + $0x428] sm:$0xff]  }
  0xea   :  { %v2671_v39 = vmax.f32 %v1541_v31, 0.0  ;;  %v2815_v40 = vmax.f32 %v2117_v32, 0.0  ;;  %6389 = vmatmul.mubr.msk.bf16.gmra.mrb[112].mxu0 %vm1046_vm0, %v6684_v23  ;;  %6533 = vmatmul.mubr.msk.bf16.gmra.mrb[112].mxu1 %vm1046_vm0, %v6685_v24  ;;  %v6692_v24 = vld [vmem:[%s8054_s0 + $0x1e8] sm:$0xff]   ;;  %v6695_v31 = vld [vmem:[%s8054_s0 + $0x430] sm:$0xff]  }
  0xeb   :  { %v2669_v43 = vmax.f32 %v1533_v35, 0.0  ;;  %v2813_v44 = vmax.f32 %v2109_v36, 0.0  ;;  %6392 = vmatprep.mubr.msk.bf16.mxu0 %vm1046_vm0, %v6686_v29  ;;  %6536 = vmatprep.mubr.msk.bf16.mxu1 %vm1046_vm0, %v6687_v30  ;;  %v6694_v30 = vld [vmem:[%s8054_s0 + $0x1f0] sm:$0xff]  }
  0xec   :  { %v5281_v45 = vpack.c.bf16 %v2671_v39, %v2670_v37  ;;  %v5641_v46 = vpack.c.bf16 %v2815_v40, %v2814_v38 }
  0xed   :  { %v5276_v47 = vpack.c.bf16 %v2669_v43, %v2668_v41  ;;  %v5636_v49 = vpack.c.bf16 %v2813_v44, %v2812_v42  ;;  %v6286_v50 = vpop.f32.mrb[8].mxu0  ;;  %v6430_v51 = vpop.f32.mrb[8].mxu1 }
  0xee   :  { %5985 = vst [vmem:[%s8056_s3 + $0x18] sm:$0xff] %v5281_v45   ;;  %6057 = vst [vmem:[%s8056_s3 + $0x258] sm:$0xff] %v5641_v46   ;;  %v1554_v52 = vadd.f32 %v6286_v50, %v7183_v48  ;;  %v2130_v53 = vadd.f32 %v6430_v51, %v7183_v48  ;;  %v1545_v54 = vpop.f32.mrb[9].mxu0  ;;  %v2121_v55 = vpop.f32.mrb[9].mxu1 }
  0xef   :  { %5984 = vst [vmem:[%s8056_s3 + $0x10] sm:$0xff] %v5276_v47   ;;  %6056 = vst [vmem:[%s8056_s3 + $0x250] sm:$0xff] %v5636_v49   ;;  %v1546_v58 = vadd.f32 %v7183_v48, %v1545_v54  ;;  %v2122_v59 = vadd.f32 %v7183_v48, %v2121_v55  ;;  %v6287_v60 = vpop.f32.mrb[10].mxu0  ;;  %v6431_v61 = vpop.f32.mrb[10].mxu1 }
  0xf0   :  { %v1557_v0 = vadd.f32 %v6287_v60, %v7183_v48  ;;  %v2133_v1 = vadd.f32 %v6431_v61, %v7183_v48  ;;  %v1548_v2 = vpop.f32.mrb[11].mxu0  ;;  %v2124_v3 = vpop.f32.mrb[11].mxu1  ;;  %v2674_v6 = vmax.f32 %v1554_v52, 0.0  ;;  %v2818_v7 = vmax.f32 %v2130_v53, 0.0 }
  0xf1   :  { %v1549_v4 = vadd.f32 %v7183_v48, %v1548_v2  ;;  %v2125_v5 = vadd.f32 %v7183_v48, %v2124_v3  ;;  %v2672_v10 = vmax.f32 %v1546_v58, 0.0  ;;  %v2816_v11 = vmax.f32 %v2122_v59, 0.0  ;;  %v6697_v58 = vld [vmem:[%s8054_s0 + $0x438] sm:$0xff]  }
  0xf2   :  { %v2675_v8 = vmax.f32 %v1557_v0, 0.0  ;;  %v2819_v9 = vmax.f32 %v2133_v1, 0.0  ;;  %6393 = vmatmul.mubr.msk.bf16.gmra.mrb[116].mxu0 %vm1046_vm0, %v6688_v56  ;;  %6537 = vmatmul.mubr.msk.bf16.gmra.mrb[116].mxu1 %vm1046_vm0, %v6689_v57  ;;  %v6696_v57 = vld [vmem:[%s8054_s0 + $0x1f8] sm:$0xff]   ;;  %v6699_v0 = vld [vmem:[%s8054_s0 + $0x440] sm:$0xff]  }
  0xf3   :  { %v2673_v12 = vmax.f32 %v1549_v4, 0.0  ;;  %v2817_v13 = vmax.f32 %v2125_v5, 0.0  ;;  %6396 = vmatprep.mubr.msk.bf16.mxu0 %vm1046_vm0, %v6690_v62  ;;  %6540 = vmatprep.mubr.msk.bf16.mxu1 %vm1046_vm0, %v6691_v63  ;;  %v6698_v63 = vld [vmem:[%s8054_s0 + $0x200] sm:$0xff]  }
  0xf4   :  { %v5291_v14 = vpack.c.bf16 %v2675_v8, %v2674_v6  ;;  %v5651_v15 = vpack.c.bf16 %v2819_v9, %v2818_v7 }
  0xf5   :  { %v5286_v16 = vpack.c.bf16 %v2673_v12, %v2672_v10  ;;  %v5646_v17 = vpack.c.bf16 %v2817_v13, %v2816_v11  ;;  %v6290_v18 = vpop.f32.mrb[12].mxu0  ;;  %v6434_v19 = vpop.f32.mrb[12].mxu1 }
  0xf6   :  { %5987 = vst [vmem:[%s8056_s3 + $0x28] sm:$0xff] %v5291_v14   ;;  %6059 = vst [vmem:[%s8056_s3 + $0x268] sm:$0xff] %v5651_v15   ;;  %v1570_v20 = vadd.f32 %v6290_v18, %v7183_v48  ;;  %v2146_v21 = vadd.f32 %v6434_v19, %v7183_v48  ;;  %v1561_v22 = vpop.f32.mrb[13].mxu0  ;;  %v2137_v23 = vpop.f32.mrb[13].mxu1 }
  0xf7   :  { %5986 = vst [vmem:[%s8056_s3 + $0x20] sm:$0xff] %v5286_v16   ;;  %6058 = vst [vmem:[%s8056_s3 + $0x260] sm:$0xff] %v5646_v17   ;;  %v1562_v26 = vadd.f32 %v7183_v48, %v1561_v22  ;;  %v2138_v27 = vadd.f32 %v7183_v48, %v2137_v23  ;;  %v6291_v28 = vpop.f32.mrb[14].mxu0  ;;  %v6435_v29 = vpop.f32.mrb[14].mxu1 }
  0xf8   :  { %v1573_v32 = vadd.f32 %v6291_v28, %v7183_v48  ;;  %v2149_v33 = vadd.f32 %v6435_v29, %v7183_v48  ;;  %v1564_v34 = vpop.f32.mrb[15].mxu0  ;;  %v2140_v35 = vpop.f32.mrb[15].mxu1  ;;  %v2678_v38 = vmax.f32 %v1570_v20, 0.0  ;;  %v2822_v39 = vmax.f32 %v2146_v21, 0.0 }
  0xf9   :  { %v1565_v36 = vadd.f32 %v7183_v48, %v1564_v34  ;;  %v2141_v37 = vadd.f32 %v7183_v48, %v2140_v35  ;;  %v2676_v42 = vmax.f32 %v1562_v26, 0.0  ;;  %v2820_v43 = vmax.f32 %v2138_v27, 0.0  ;;  %v6701_v26 = vld [vmem:[%s8054_s0 + $0x448] sm:$0xff]  }
  0xfa   :  { %v2679_v40 = vmax.f32 %v1573_v32, 0.0  ;;  %v2823_v41 = vmax.f32 %v2149_v33, 0.0  ;;  %6397 = vmatmul.mubr.msk.bf16.gmra.mrb[120].mxu0 %vm1046_vm0, %v6692_v24  ;;  %6541 = vmatmul.mubr.msk.bf16.gmra.mrb[120].mxu1 %vm1046_vm0, %v6693_v25  ;;  %v6700_v25 = vld [vmem:[%s8054_s0 + $0x208] sm:$0xff]   ;;  %v6703_v32 = vld [vmem:[%s8054_s0 + $0x450] sm:$0xff]  }
  0xfb   :  { %v2677_v44 = vmax.f32 %v1565_v36, 0.0  ;;  %v2821_v45 = vmax.f32 %v2141_v37, 0.0  ;;  %6400 = vmatprep.mubr.msk.bf16.mxu0 %vm1046_vm0, %v6694_v30  ;;  %6544 = vmatprep.mubr.msk.bf16.mxu1 %vm1046_vm0, %v6695_v31  ;;  %v6702_v31 = vld [vmem:[%s8054_s0 + $0x210] sm:$0xff]  }
  0xfc   :  { %v5301_v46 = vpack.c.bf16 %v2679_v40, %v2678_v38  ;;  %v5661_v47 = vpack.c.bf16 %v2823_v41, %v2822_v39 }
  0xfd   :  { %v5296_v49 = vpack.c.bf16 %v2677_v44, %v2676_v42  ;;  %v5656_v50 = vpack.c.bf16 %v2821_v45, %v2820_v43  ;;  %v6294_v51 = vpop.f32.mrb[16].mxu0  ;;  %v6438_v52 = vpop.f32.mrb[16].mxu1 }
  0xfe   :  { %5989 = vst [vmem:[%s8056_s3 + $0x38] sm:$0xff] %v5301_v46   ;;  %6061 = vst [vmem:[%s8056_s3 + $0x278] sm:$0xff] %v5661_v47   ;;  %v1586_v53 = vadd.f32 %v6294_v51, %v7183_v48  ;;  %v2162_v54 = vadd.f32 %v6438_v52, %v7183_v48  ;;  %v1577_v55 = vpop.f32.mrb[17].mxu0  ;;  %v2153_v56 = vpop.f32.mrb[17].mxu1 }
  0xff   :  { %5988 = vst [vmem:[%s8056_s3 + $0x30] sm:$0xff] %v5296_v49   ;;  %6060 = vst [vmem:[%s8056_s3 + $0x270] sm:$0xff] %v5656_v50   ;;  %v1578_v59 = vadd.f32 %v7183_v48, %v1577_v55  ;;  %v2154_v60 = vadd.f32 %v7183_v48, %v2153_v56  ;;  %v6295_v61 = vpop.f32.mrb[18].mxu0  ;;  %v6439_v62 = vpop.f32.mrb[18].mxu1 }
 0x100   :  { %v1589_v1 = vadd.f32 %v6295_v61, %v7183_v48  ;;  %v2165_v2 = vadd.f32 %v6439_v62, %v7183_v48  ;;  %v1580_v3 = vpop.f32.mrb[19].mxu0  ;;  %v2156_v4 = vpop.f32.mrb[19].mxu1  ;;  %v2682_v7 = vmax.f32 %v1586_v53, 0.0  ;;  %v2826_v8 = vmax.f32 %v2162_v54, 0.0 }
 0x101   :  { %v1581_v5 = vadd.f32 %v7183_v48, %v1580_v3  ;;  %v2157_v6 = vadd.f32 %v7183_v48, %v2156_v4  ;;  %v2680_v11 = vmax.f32 %v1578_v59, 0.0  ;;  %v2824_v12 = vmax.f32 %v2154_v60, 0.0  ;;  %v6705_v59 = vld [vmem:[%s8054_s0 + $0x458] sm:$0xff]  }
 0x102   :  { %v2683_v9 = vmax.f32 %v1589_v1, 0.0  ;;  %v2827_v10 = vmax.f32 %v2165_v2, 0.0  ;;  %6401 = vmatmul.mubr.msk.bf16.gmra.mrb[124].mxu0 %vm1046_vm0, %v6696_v57  ;;  %6545 = vmatmul.mubr.msk.bf16.gmra.mrb[124].mxu1 %vm1046_vm0, %v6697_v58  ;;  %v6704_v58 = vld [vmem:[%s8054_s0 + $0x218] sm:$0xff]   ;;  %v6707_v1 = vld [vmem:[%s8054_s0 + $0x460] sm:$0xff]  }
 0x103   :  { %v2681_v13 = vmax.f32 %v1581_v5, 0.0  ;;  %v2825_v14 = vmax.f32 %v2157_v6, 0.0  ;;  %6404 = vmatprep.mubr.msk.bf16.mxu0 %vm1046_vm0, %v6698_v63  ;;  %6548 = vmatprep.mubr.msk.bf16.mxu1 %vm1046_vm0, %v6699_v0  ;;  %v6706_v0 = vld [vmem:[%s8054_s0 + $0x220] sm:$0xff]  }
 0x104   :  { %v5311_v15 = vpack.c.bf16 %v2683_v9, %v2682_v7  ;;  %v5671_v16 = vpack.c.bf16 %v2827_v10, %v2826_v8 }
 0x105   :  { %v5306_v17 = vpack.c.bf16 %v2681_v13, %v2680_v11  ;;  %v5666_v18 = vpack.c.bf16 %v2825_v14, %v2824_v12  ;;  %v6298_v19 = vpop.f32.mrb[20].mxu0  ;;  %v6442_v20 = vpop.f32.mrb[20].mxu1 }
 0x106   :  { %5991 = vst [vmem:[%s8056_s3 + $0x48] sm:$0xff] %v5311_v15   ;;  %6063 = vst [vmem:[%s8056_s3 + $0x288] sm:$0xff] %v5671_v16   ;;  %v1602_v21 = vadd.f32 %v6298_v19, %v7183_v48  ;;  %v2178_v22 = vadd.f32 %v6442_v20, %v7183_v48  ;;  %v1593_v23 = vpop.f32.mrb[21].mxu0  ;;  %v2169_v24 = vpop.f32.mrb[21].mxu1 }
 0x107   :  { %5990 = vst [vmem:[%s8056_s3 + $0x40] sm:$0xff] %v5306_v17   ;;  %6062 = vst [vmem:[%s8056_s3 + $0x280] sm:$0xff] %v5666_v18   ;;  %v1594_v27 = vadd.f32 %v7183_v48, %v1593_v23  ;;  %v2170_v28 = vadd.f32 %v7183_v48, %v2169_v24  ;;  %v6299_v29 = vpop.f32.mrb[22].mxu0  ;;  %v6443_v30 = vpop.f32.mrb[22].mxu1 }
 0x108   :  { %v1605_v33 = vadd.f32 %v6299_v29, %v7183_v48  ;;  %v2181_v34 = vadd.f32 %v6443_v30, %v7183_v48  ;;  %v1596_v35 = vpop.f32.mrb[23].mxu0  ;;  %v2172_v36 = vpop.f32.mrb[23].mxu1  ;;  %v2686_v39 = vmax.f32 %v1602_v21, 0.0  ;;  %v2830_v40 = vmax.f32 %v2178_v22, 0.0 }
 0x109   :  { %v1597_v37 = vadd.f32 %v7183_v48, %v1596_v35  ;;  %v2173_v38 = vadd.f32 %v7183_v48, %v2172_v36  ;;  %v2684_v43 = vmax.f32 %v1594_v27, 0.0  ;;  %v2828_v44 = vmax.f32 %v2170_v28, 0.0  ;;  %v6709_v27 = vld [vmem:[%s8054_s0 + $0x468] sm:$0xff]  }
 0x10a   :  { %v2687_v41 = vmax.f32 %v1605_v33, 0.0  ;;  %v2831_v42 = vmax.f32 %v2181_v34, 0.0  ;;  %6405 = vmatmul.mubr.msk.bf16.gmra.mrb[128].mxu0 %vm1046_vm0, %v6700_v25  ;;  %6549 = vmatmul.mubr.msk.bf16.gmra.mrb[128].mxu1 %vm1046_vm0, %v6701_v26  ;;  %v6708_v26 = vld [vmem:[%s8054_s0 + $0x228] sm:$0xff]   ;;  %v6711_v33 = vld [vmem:[%s8054_s0 + $0x470] sm:$0xff]  }
 0x10b   :  { %v2685_v45 = vmax.f32 %v1597_v37, 0.0  ;;  %v2829_v46 = vmax.f32 %v2173_v38, 0.0  ;;  %6408 = vmatprep.mubr.msk.bf16.mxu0 %vm1046_vm0, %v6702_v31  ;;  %6552 = vmatprep.mubr.msk.bf16.mxu1 %vm1046_vm0, %v6703_v32  ;;  %v6710_v32 = vld [vmem:[%s8054_s0 + $0x230] sm:$0xff]  }
 0x10c   :  { %v5321_v47 = vpack.c.bf16 %v2687_v41, %v2686_v39  ;;  %v5681_v49 = vpack.c.bf16 %v2831_v42, %v2830_v40 }
 0x10d   :  { %v5316_v50 = vpack.c.bf16 %v2685_v45, %v2684_v43  ;;  %v5676_v51 = vpack.c.bf16 %v2829_v46, %v2828_v44  ;;  %v6302_v52 = vpop.f32.mrb[24].mxu0  ;;  %v6446_v53 = vpop.f32.mrb[24].mxu1 }
 0x10e   :  { %5993 = vst [vmem:[%s8056_s3 + $0x58] sm:$0xff] %v5321_v47   ;;  %6065 = vst [vmem:[%s8056_s3 + $0x298] sm:$0xff] %v5681_v49   ;;  %v1618_v54 = vadd.f32 %v6302_v52, %v7183_v48  ;;  %v2194_v55 = vadd.f32 %v6446_v53, %v7183_v48  ;;  %v1609_v56 = vpop.f32.mrb[25].mxu0  ;;  %v2185_v57 = vpop.f32.mrb[25].mxu1 }
 0x10f   :  { %5992 = vst [vmem:[%s8056_s3 + $0x50] sm:$0xff] %v5316_v50   ;;  %6064 = vst [vmem:[%s8056_s3 + $0x290] sm:$0xff] %v5676_v51   ;;  %v1610_v60 = vadd.f32 %v7183_v48, %v1609_v56  ;;  %v2186_v61 = vadd.f32 %v7183_v48, %v2185_v57  ;;  %v6303_v62 = vpop.f32.mrb[26].mxu0  ;;  %v6447_v63 = vpop.f32.mrb[26].mxu1 }
 0x110   :  { %v1621_v2 = vadd.f32 %v6303_v62, %v7183_v48  ;;  %v2197_v3 = vadd.f32 %v6447_v63, %v7183_v48  ;;  %v1612_v4 = vpop.f32.mrb[27].mxu0  ;;  %v2188_v5 = vpop.f32.mrb[27].mxu1  ;;  %v2690_v8 = vmax.f32 %v1618_v54, 0.0  ;;  %v2834_v9 = vmax.f32 %v2194_v55, 0.0 }
 0x111   :  { %v1613_v6 = vadd.f32 %v7183_v48, %v1612_v4  ;;  %v2189_v7 = vadd.f32 %v7183_v48, %v2188_v5  ;;  %v2688_v12 = vmax.f32 %v1610_v60, 0.0  ;;  %v2832_v13 = vmax.f32 %v2186_v61, 0.0  ;;  %v6713_v60 = vld [vmem:[%s8054_s0 + $0x478] sm:$0xff]  }
 0x112   :  { %v2691_v10 = vmax.f32 %v1621_v2, 0.0  ;;  %v2835_v11 = vmax.f32 %v2197_v3, 0.0  ;;  %6409 = vmatmul.mubr.msk.bf16.gmra.mrb[132].mxu0 %vm1046_vm0, %v6704_v58  ;;  %6553 = vmatmul.mubr.msk.bf16.gmra.mrb[132].mxu1 %vm1046_vm0, %v6705_v59  ;;  %v6712_v59 = vld [vmem:[%s8054_s0 + $0x238] sm:$0xff]  }
 0x113   :  { %v2689_v14 = vmax.f32 %v1613_v6, 0.0  ;;  %v2833_v15 = vmax.f32 %v2189_v7, 0.0  ;;  %6412 = vmatprep.mubr.msk.bf16.mxu0 %vm1046_vm0, %v6706_v0  ;;  %6556 = vmatprep.mubr.msk.bf16.mxu1 %vm1046_vm0, %v6707_v1 }
 0x114   :  { %v5331_v16 = vpack.c.bf16 %v2691_v10, %v2690_v8  ;;  %v5691_v17 = vpack.c.bf16 %v2835_v11, %v2834_v9 }
 0x115   :  { %v5326_v18 = vpack.c.bf16 %v2689_v14, %v2688_v12  ;;  %v5686_v19 = vpack.c.bf16 %v2833_v15, %v2832_v13  ;;  %v6306_v20 = vpop.f32.mrb[28].mxu0  ;;  %v6450_v21 = vpop.f32.mrb[28].mxu1 }
 0x116   :  { %5995 = vst [vmem:[%s8056_s3 + $0x68] sm:$0xff] %v5331_v16   ;;  %6067 = vst [vmem:[%s8056_s3 + $0x2a8] sm:$0xff] %v5691_v17   ;;  %v1634_v22 = vadd.f32 %v6306_v20, %v7183_v48  ;;  %v2210_v23 = vadd.f32 %v6450_v21, %v7183_v48  ;;  %v1625_v24 = vpop.f32.mrb[29].mxu0  ;;  %v2201_v25 = vpop.f32.mrb[29].mxu1 }
 0x117   :  { %5994 = vst [vmem:[%s8056_s3 + $0x60] sm:$0xff] %v5326_v18   ;;  %6066 = vst [vmem:[%s8056_s3 + $0x2a0] sm:$0xff] %v5686_v19   ;;  %v1626_v28 = vadd.f32 %v7183_v48, %v1625_v24  ;;  %v2202_v29 = vadd.f32 %v7183_v48, %v2201_v25  ;;  %v6307_v30 = vpop.f32.mrb[30].mxu0  ;;  %v6451_v31 = vpop.f32.mrb[30].mxu1 }
 0x118   :  { %v1637_v34 = vadd.f32 %v6307_v30, %v7183_v48  ;;  %v2213_v35 = vadd.f32 %v6451_v31, %v7183_v48  ;;  %v1628_v36 = vpop.f32.mrb[31].mxu0  ;;  %v2204_v37 = vpop.f32.mrb[31].mxu1  ;;  %v2694_v40 = vmax.f32 %v1634_v22, 0.0  ;;  %v2838_v41 = vmax.f32 %v2210_v23, 0.0 }
 0x119   :  { %v1629_v38 = vadd.f32 %v7183_v48, %v1628_v36  ;;  %v2205_v39 = vadd.f32 %v7183_v48, %v2204_v37  ;;  %v2692_v44 = vmax.f32 %v1626_v28, 0.0  ;;  %v2836_v45 = vmax.f32 %v2202_v29, 0.0 }
 0x11a   :  { %v2695_v42 = vmax.f32 %v1637_v34, 0.0  ;;  %v2839_v43 = vmax.f32 %v2213_v35, 0.0  ;;  %6413 = vmatmul.mubr.msk.bf16.gmra.mrb[136].mxu0 %vm1046_vm0, %v6708_v26  ;;  %6557 = vmatmul.mubr.msk.bf16.gmra.mrb[136].mxu1 %vm1046_vm0, %v6709_v27 }
 0x11b   :  { %v2693_v46 = vmax.f32 %v1629_v38, 0.0  ;;  %v2837_v47 = vmax.f32 %v2205_v39, 0.0  ;;  %6416 = vmatprep.mubr.msk.bf16.mxu0 %vm1046_vm0, %v6710_v32  ;;  %6560 = vmatprep.mubr.msk.bf16.mxu1 %vm1046_vm0, %v6711_v33 }
 0x11c   :  { %v5341_v49 = vpack.c.bf16 %v2695_v42, %v2694_v40  ;;  %v5701_v50 = vpack.c.bf16 %v2839_v43, %v2838_v41 }
 0x11d   :  { %v5336_v51 = vpack.c.bf16 %v2693_v46, %v2692_v44  ;;  %v5696_v52 = vpack.c.bf16 %v2837_v47, %v2836_v45  ;;  %v6310_v53 = vpop.f32.mrb[32].mxu0  ;;  %v6454_v54 = vpop.f32.mrb[32].mxu1 }
 0x11e   :  { %5997 = vst [vmem:[%s8056_s3 + $0x78] sm:$0xff] %v5341_v49   ;;  %6069 = vst [vmem:[%s8056_s3 + $0x2b8] sm:$0xff] %v5701_v50   ;;  %v1650_v55 = vadd.f32 %v6310_v53, %v7183_v48  ;;  %v2226_v56 = vadd.f32 %v6454_v54, %v7183_v48  ;;  %v1641_v57 = vpop.f32.mrb[33].mxu0  ;;  %v2217_v58 = vpop.f32.mrb[33].mxu1 }
 0x11f   :  { %5996 = vst [vmem:[%s8056_s3 + $0x70] sm:$0xff] %v5336_v51   ;;  %6068 = vst [vmem:[%s8056_s3 + $0x2b0] sm:$0xff] %v5696_v52   ;;  %v1642_v61 = vadd.f32 %v7183_v48, %v1641_v57  ;;  %v2218_v62 = vadd.f32 %v7183_v48, %v2217_v58  ;;  %v6311_v63 = vpop.f32.mrb[34].mxu0  ;;  %v6455_v0 = vpop.f32.mrb[34].mxu1 }
 0x120   :  { %v1653_v1 = vadd.f32 %v6311_v63, %v7183_v48  ;;  %v2229_v2 = vadd.f32 %v6455_v0, %v7183_v48  ;;  %v1644_v3 = vpop.f32.mrb[35].mxu0  ;;  %v2220_v4 = vpop.f32.mrb[35].mxu1  ;;  %v2698_v7 = vmax.f32 %v1650_v55, 0.0  ;;  %v2842_v8 = vmax.f32 %v2226_v56, 0.0 }
 0x121   :  { %v1645_v5 = vadd.f32 %v7183_v48, %v1644_v3  ;;  %v2221_v6 = vadd.f32 %v7183_v48, %v2220_v4  ;;  %v2696_v11 = vmax.f32 %v1642_v61, 0.0  ;;  %v2840_v12 = vmax.f32 %v2218_v62, 0.0 }
 0x122   :  { %v2699_v9 = vmax.f32 %v1653_v1, 0.0  ;;  %v2843_v10 = vmax.f32 %v2229_v2, 0.0  ;;  %6417 = vmatmul.mubr.msk.bf16.gmra.mrb[140].mxu0 %vm1046_vm0, %v6712_v59  ;;  %6561 = vmatmul.mubr.msk.bf16.gmra.mrb[140].mxu1 %vm1046_vm0, %v6713_v60 }
 0x123   :  { %v2697_v13 = vmax.f32 %v1645_v5, 0.0  ;;  %v2841_v14 = vmax.f32 %v2221_v6, 0.0 }
 0x124   :  { %v5351_v15 = vpack.c.bf16 %v2699_v9, %v2698_v7  ;;  %v5711_v16 = vpack.c.bf16 %v2843_v10, %v2842_v8 }
 0x125   :  { %v5346_v17 = vpack.c.bf16 %v2697_v13, %v2696_v11  ;;  %v5706_v18 = vpack.c.bf16 %v2841_v14, %v2840_v12  ;;  %v6314_v19 = vpop.f32.mrb[36].mxu0  ;;  %v6458_v20 = vpop.f32.mrb[36].mxu1 }
 0x126   :  { %5999 = vst [vmem:[%s8056_s3 + $0x88] sm:$0xff] %v5351_v15   ;;  %6071 = vst [vmem:[%s8056_s3 + $0x2c8] sm:$0xff] %v5711_v16   ;;  %v1666_v21 = vadd.f32 %v6314_v19, %v7183_v48  ;;  %v2242_v22 = vadd.f32 %v6458_v20, %v7183_v48  ;;  %v1657_v23 = vpop.f32.mrb[37].mxu0  ;;  %v2233_v24 = vpop.f32.mrb[37].mxu1 }
 0x127   :  { %5998 = vst [vmem:[%s8056_s3 + $0x80] sm:$0xff] %v5346_v17   ;;  %6070 = vst [vmem:[%s8056_s3 + $0x2c0] sm:$0xff] %v5706_v18   ;;  %v1658_v25 = vadd.f32 %v7183_v48, %v1657_v23  ;;  %v2234_v26 = vadd.f32 %v7183_v48, %v2233_v24  ;;  %v6315_v27 = vpop.f32.mrb[38].mxu0  ;;  %v6459_v28 = vpop.f32.mrb[38].mxu1 }
 0x128   :  { %v1669_v29 = vadd.f32 %v6315_v27, %v7183_v48  ;;  %v2245_v30 = vadd.f32 %v6459_v28, %v7183_v48  ;;  %v1660_v31 = vpop.f32.mrb[39].mxu0  ;;  %v2236_v32 = vpop.f32.mrb[39].mxu1  ;;  %v2702_v35 = vmax.f32 %v1666_v21, 0.0  ;;  %v2846_v36 = vmax.f32 %v2242_v22, 0.0 }
 0x129   :  { %v1661_v33 = vadd.f32 %v7183_v48, %v1660_v31  ;;  %v2237_v34 = vadd.f32 %v7183_v48, %v2236_v32  ;;  %v2700_v39 = vmax.f32 %v1658_v25, 0.0  ;;  %v2844_v40 = vmax.f32 %v2234_v26, 0.0 }
 0x12a   :  { %v2703_v37 = vmax.f32 %v1669_v29, 0.0  ;;  %v2847_v38 = vmax.f32 %v2245_v30, 0.0 }
 0x12b   :  { %v2701_v41 = vmax.f32 %v1661_v33, 0.0  ;;  %v2845_v42 = vmax.f32 %v2237_v34, 0.0 }
 0x12c   :  { %v5361_v43 = vpack.c.bf16 %v2703_v37, %v2702_v35  ;;  %v5721_v44 = vpack.c.bf16 %v2847_v38, %v2846_v36 }
 0x12d   :  { %v5356_v45 = vpack.c.bf16 %v2701_v41, %v2700_v39  ;;  %v5716_v46 = vpack.c.bf16 %v2845_v42, %v2844_v40  ;;  %v6318_v47 = vpop.f32.mrb[40].mxu0  ;;  %v6462_v49 = vpop.f32.mrb[40].mxu1 }
 0x12e   :  { %6001 = vst [vmem:[%s8056_s3 + $0x98] sm:$0xff] %v5361_v43   ;;  %6073 = vst [vmem:[%s8056_s3 + $0x2d8] sm:$0xff] %v5721_v44   ;;  %v1682_v50 = vadd.f32 %v6318_v47, %v7183_v48  ;;  %v2258_v51 = vadd.f32 %v6462_v49, %v7183_v48  ;;  %v1673_v52 = vpop.f32.mrb[41].mxu0  ;;  %v2249_v53 = vpop.f32.mrb[41].mxu1 }
 0x12f   :  { %6000 = vst [vmem:[%s8056_s3 + $0x90] sm:$0xff] %v5356_v45   ;;  %6072 = vst [vmem:[%s8056_s3 + $0x2d0] sm:$0xff] %v5716_v46   ;;  %v1674_v54 = vadd.f32 %v7183_v48, %v1673_v52  ;;  %v2250_v55 = vadd.f32 %v7183_v48, %v2249_v53  ;;  %v6319_v56 = vpop.f32.mrb[42].mxu0  ;;  %v6463_v57 = vpop.f32.mrb[42].mxu1 }
 0x130   :  { %v1685_v58 = vadd.f32 %v6319_v56, %v7183_v48  ;;  %v2261_v59 = vadd.f32 %v6463_v57, %v7183_v48  ;;  %v1676_v60 = vpop.f32.mrb[43].mxu0  ;;  %v2252_v61 = vpop.f32.mrb[43].mxu1  ;;  %v2706_v0 = vmax.f32 %v1682_v50, 0.0  ;;  %v2850_v1 = vmax.f32 %v2258_v51, 0.0 }
 0x131   :  { %v1677_v62 = vadd.f32 %v7183_v48, %v1676_v60  ;;  %v2253_v63 = vadd.f32 %v7183_v48, %v2252_v61  ;;  %v2704_v4 = vmax.f32 %v1674_v54, 0.0  ;;  %v2848_v5 = vmax.f32 %v2250_v55, 0.0 }
 0x132   :  { %v2707_v2 = vmax.f32 %v1685_v58, 0.0  ;;  %v2851_v3 = vmax.f32 %v2261_v59, 0.0 }
 0x133   :  { %v2705_v6 = vmax.f32 %v1677_v62, 0.0  ;;  %v2849_v7 = vmax.f32 %v2253_v63, 0.0 }
 0x134   :  { %v5371_v8 = vpack.c.bf16 %v2707_v2, %v2706_v0  ;;  %v5731_v9 = vpack.c.bf16 %v2851_v3, %v2850_v1 }
 0x135   :  { %v5366_v10 = vpack.c.bf16 %v2705_v6, %v2704_v4  ;;  %v5726_v11 = vpack.c.bf16 %v2849_v7, %v2848_v5  ;;  %v6322_v12 = vpop.f32.mrb[44].mxu0  ;;  %v6466_v13 = vpop.f32.mrb[44].mxu1 }
 0x136   :  { %6003 = vst [vmem:[%s8056_s3 + $0xa8] sm:$0xff] %v5371_v8   ;;  %6075 = vst [vmem:[%s8056_s3 + $0x2e8] sm:$0xff] %v5731_v9   ;;  %v1698_v14 = vadd.f32 %v6322_v12, %v7183_v48  ;;  %v2274_v15 = vadd.f32 %v6466_v13, %v7183_v48  ;;  %v1689_v16 = vpop.f32.mrb[45].mxu0  ;;  %v2265_v17 = vpop.f32.mrb[45].mxu1 }
 0x137   :  { %6002 = vst [vmem:[%s8056_s3 + $0xa0] sm:$0xff] %v5366_v10   ;;  %6074 = vst [vmem:[%s8056_s3 + $0x2e0] sm:$0xff] %v5726_v11   ;;  %v1690_v18 = vadd.f32 %v7183_v48, %v1689_v16  ;;  %v2266_v19 = vadd.f32 %v7183_v48, %v2265_v17  ;;  %v6323_v20 = vpop.f32.mrb[46].mxu0  ;;  %v6467_v21 = vpop.f32.mrb[46].mxu1 }
 0x138   :  { %v1701_v22 = vadd.f32 %v6323_v20, %v7183_v48  ;;  %v2277_v23 = vadd.f32 %v6467_v21, %v7183_v48  ;;  %v1692_v24 = vpop.f32.mrb[47].mxu0  ;;  %v2268_v25 = vpop.f32.mrb[47].mxu1  ;;  %v2710_v28 = vmax.f32 %v1698_v14, 0.0  ;;  %v2854_v29 = vmax.f32 %v2274_v15, 0.0 }
 0x139   :  { %v1693_v26 = vadd.f32 %v7183_v48, %v1692_v24  ;;  %v2269_v27 = vadd.f32 %v7183_v48, %v2268_v25  ;;  %v2708_v32 = vmax.f32 %v1690_v18, 0.0  ;;  %v2852_v33 = vmax.f32 %v2266_v19, 0.0 }
 0x13a   :  { %v2711_v30 = vmax.f32 %v1701_v22, 0.0  ;;  %v2855_v31 = vmax.f32 %v2277_v23, 0.0 }
 0x13b   :  { %v2709_v34 = vmax.f32 %v1693_v26, 0.0  ;;  %v2853_v35 = vmax.f32 %v2269_v27, 0.0 }
 0x13c   :  { %v5381_v36 = vpack.c.bf16 %v2711_v30, %v2710_v28  ;;  %v5741_v37 = vpack.c.bf16 %v2855_v31, %v2854_v29 }
 0x13d   :  { %v5376_v38 = vpack.c.bf16 %v2709_v34, %v2708_v32  ;;  %v5736_v39 = vpack.c.bf16 %v2853_v35, %v2852_v33  ;;  %v6326_v40 = vpop.f32.mrb[48].mxu0  ;;  %v6470_v41 = vpop.f32.mrb[48].mxu1 }
 0x13e   :  { %6005 = vst [vmem:[%s8056_s3 + $0xb8] sm:$0xff] %v5381_v36   ;;  %6077 = vst [vmem:[%s8056_s3 + $0x2f8] sm:$0xff] %v5741_v37   ;;  %v1714_v42 = vadd.f32 %v6326_v40, %v7183_v48  ;;  %v2290_v43 = vadd.f32 %v6470_v41, %v7183_v48  ;;  %v1705_v44 = vpop.f32.mrb[49].mxu0  ;;  %v2281_v45 = vpop.f32.mrb[49].mxu1 }
 0x13f   :  { %6004 = vst [vmem:[%s8056_s3 + $0xb0] sm:$0xff] %v5376_v38   ;;  %6076 = vst [vmem:[%s8056_s3 + $0x2f0] sm:$0xff] %v5736_v39   ;;  %v1706_v46 = vadd.f32 %v7183_v48, %v1705_v44  ;;  %v2282_v47 = vadd.f32 %v7183_v48, %v2281_v45  ;;  %v6327_v49 = vpop.f32.mrb[50].mxu0  ;;  %v6471_v50 = vpop.f32.mrb[50].mxu1 }
 0x140   :  { %v1717_v51 = vadd.f32 %v6327_v49, %v7183_v48  ;;  %v2293_v52 = vadd.f32 %v6471_v50, %v7183_v48  ;;  %v1708_v53 = vpop.f32.mrb[51].mxu0  ;;  %v2284_v54 = vpop.f32.mrb[51].mxu1  ;;  %v2714_v57 = vmax.f32 %v1714_v42, 0.0  ;;  %v2858_v58 = vmax.f32 %v2290_v43, 0.0 }
 0x141   :  { %v1709_v55 = vadd.f32 %v7183_v48, %v1708_v53  ;;  %v2285_v56 = vadd.f32 %v7183_v48, %v2284_v54  ;;  %v2712_v61 = vmax.f32 %v1706_v46, 0.0  ;;  %v2856_v62 = vmax.f32 %v2282_v47, 0.0 }
 0x142   :  { %v2715_v59 = vmax.f32 %v1717_v51, 0.0  ;;  %v2859_v60 = vmax.f32 %v2293_v52, 0.0 }
 0x143   :  { %v2713_v63 = vmax.f32 %v1709_v55, 0.0  ;;  %v2857_v0 = vmax.f32 %v2285_v56, 0.0 }
 0x144   :  { %v5391_v1 = vpack.c.bf16 %v2715_v59, %v2714_v57  ;;  %v5751_v2 = vpack.c.bf16 %v2859_v60, %v2858_v58 }
 0x145   :  { %v5386_v3 = vpack.c.bf16 %v2713_v63, %v2712_v61  ;;  %v5746_v4 = vpack.c.bf16 %v2857_v0, %v2856_v62  ;;  %v6330_v5 = vpop.f32.mrb[52].mxu0  ;;  %v6474_v6 = vpop.f32.mrb[52].mxu1 }
 0x146   :  { %6007 = vst [vmem:[%s8056_s3 + $0xc8] sm:$0xff] %v5391_v1   ;;  %6079 = vst [vmem:[%s8056_s3 + $0x308] sm:$0xff] %v5751_v2   ;;  %v1730_v7 = vadd.f32 %v6330_v5, %v7183_v48  ;;  %v2306_v8 = vadd.f32 %v6474_v6, %v7183_v48  ;;  %v1721_v9 = vpop.f32.mrb[53].mxu0  ;;  %v2297_v10 = vpop.f32.mrb[53].mxu1 }
 0x147   :  { %6006 = vst [vmem:[%s8056_s3 + $0xc0] sm:$0xff] %v5386_v3   ;;  %6078 = vst [vmem:[%s8056_s3 + $0x300] sm:$0xff] %v5746_v4   ;;  %v1722_v11 = vadd.f32 %v7183_v48, %v1721_v9  ;;  %v2298_v12 = vadd.f32 %v7183_v48, %v2297_v10  ;;  %v6331_v13 = vpop.f32.mrb[54].mxu0  ;;  %v6475_v14 = vpop.f32.mrb[54].mxu1 }
 0x148   :  { %v1733_v15 = vadd.f32 %v6331_v13, %v7183_v48  ;;  %v2309_v16 = vadd.f32 %v6475_v14, %v7183_v48  ;;  %v1724_v17 = vpop.f32.mrb[55].mxu0  ;;  %v2300_v18 = vpop.f32.mrb[55].mxu1  ;;  %v2718_v21 = vmax.f32 %v1730_v7, 0.0  ;;  %v2862_v22 = vmax.f32 %v2306_v8, 0.0 }
 0x149   :  { %v1725_v19 = vadd.f32 %v7183_v48, %v1724_v17  ;;  %v2301_v20 = vadd.f32 %v7183_v48, %v2300_v18  ;;  %v2716_v25 = vmax.f32 %v1722_v11, 0.0  ;;  %v2860_v26 = vmax.f32 %v2298_v12, 0.0  ;;  %v7600_v48 = vld [vmem:[%s8055_s2] ss:$0 sm:$0xff] }
 0x14a   :  { %v2719_v23 = vmax.f32 %v1733_v15, 0.0  ;;  %v2863_v24 = vmax.f32 %v2309_v16, 0.0 }
 0x14b   :  { %v2717_v27 = vmax.f32 %v1725_v19, 0.0  ;;  %v2861_v28 = vmax.f32 %v2301_v20, 0.0 }
 0x14c   :  { %v5401_v29 = vpack.c.bf16 %v2719_v23, %v2718_v21  ;;  %v5761_v30 = vpack.c.bf16 %v2863_v24, %v2862_v22 }
 0x14d   :  { %v5396_v31 = vpack.c.bf16 %v2717_v27, %v2716_v25  ;;  %v5756_v32 = vpack.c.bf16 %v2861_v28, %v2860_v26  ;;  %v6334_v33 = vpop.f32.mrb[56].mxu0  ;;  %v6478_v34 = vpop.f32.mrb[56].mxu1 }
 0x14e   :  { %6009 = vst [vmem:[%s8056_s3 + $0xd8] sm:$0xff] %v5401_v29   ;;  %6081 = vst [vmem:[%s8056_s3 + $0x318] sm:$0xff] %v5761_v30   ;;  %v1746_v35 = vadd.f32 %v7600_v48, %v6334_v33  ;;  %v2322_v36 = vadd.f32 %v7600_v48, %v6478_v34  ;;  %v1737_v37 = vpop.f32.mrb[57].mxu0  ;;  %v2313_v38 = vpop.f32.mrb[57].mxu1 }
 0x14f   :  { %6008 = vst [vmem:[%s8056_s3 + $0xd0] sm:$0xff] %v5396_v31   ;;  %6080 = vst [vmem:[%s8056_s3 + $0x310] sm:$0xff] %v5756_v32   ;;  %v1738_v39 = vadd.f32 %v7600_v48, %v1737_v37  ;;  %v2314_v40 = vadd.f32 %v7600_v48, %v2313_v38  ;;  %v6335_v41 = vpop.f32.mrb[58].mxu0  ;;  %v6479_v42 = vpop.f32.mrb[58].mxu1 }
 0x150   :  { %v1749_v43 = vadd.f32 %v7600_v48, %v6335_v41  ;;  %v2325_v44 = vadd.f32 %v7600_v48, %v6479_v42  ;;  %v1740_v45 = vpop.f32.mrb[59].mxu0  ;;  %v2316_v46 = vpop.f32.mrb[59].mxu1  ;;  %v2722_v50 = vmax.f32 %v1746_v35, 0.0  ;;  %v2866_v51 = vmax.f32 %v2322_v36, 0.0 }
 0x151   :  { %v1741_v47 = vadd.f32 %v7600_v48, %v1740_v45  ;;  %v2317_v49 = vadd.f32 %v7600_v48, %v2316_v46  ;;  %v2720_v54 = vmax.f32 %v1738_v39, 0.0  ;;  %v2864_v55 = vmax.f32 %v2314_v40, 0.0 }
 0x152   :  { %v2723_v52 = vmax.f32 %v1749_v43, 0.0  ;;  %v2867_v53 = vmax.f32 %v2325_v44, 0.0 }
 0x153   :  { %v2721_v56 = vmax.f32 %v1741_v47, 0.0  ;;  %v2865_v57 = vmax.f32 %v2317_v49, 0.0 }
 0x154   :  { %v5411_v58 = vpack.c.bf16 %v2723_v52, %v2722_v50  ;;  %v5771_v59 = vpack.c.bf16 %v2867_v53, %v2866_v51 }
 0x155   :  { %v5406_v60 = vpack.c.bf16 %v2721_v56, %v2720_v54  ;;  %v5766_v61 = vpack.c.bf16 %v2865_v57, %v2864_v55  ;;  %v6338_v62 = vpop.f32.mrb[60].mxu0  ;;  %v6482_v63 = vpop.f32.mrb[60].mxu1 }
 0x156   :  { %6011 = vst [vmem:[%s8056_s3 + $0xe8] sm:$0xff] %v5411_v58   ;;  %6083 = vst [vmem:[%s8056_s3 + $0x328] sm:$0xff] %v5771_v59   ;;  %v1762_v0 = vadd.f32 %v7600_v48, %v6338_v62  ;;  %v2338_v1 = vadd.f32 %v7600_v48, %v6482_v63  ;;  %v1753_v2 = vpop.f32.mrb[61].mxu0  ;;  %v2329_v3 = vpop.f32.mrb[61].mxu1 }
 0x157   :  { %6010 = vst [vmem:[%s8056_s3 + $0xe0] sm:$0xff] %v5406_v60   ;;  %6082 = vst [vmem:[%s8056_s3 + $0x320] sm:$0xff] %v5766_v61   ;;  %v1754_v4 = vadd.f32 %v7600_v48, %v1753_v2  ;;  %v2330_v5 = vadd.f32 %v7600_v48, %v2329_v3  ;;  %v6339_v6 = vpop.f32.mrb[62].mxu0  ;;  %v6483_v7 = vpop.f32.mrb[62].mxu1 }
 0x158   :  { %v1765_v8 = vadd.f32 %v7600_v48, %v6339_v6  ;;  %v2341_v9 = vadd.f32 %v7600_v48, %v6483_v7  ;;  %v1756_v10 = vpop.f32.mrb[63].mxu0  ;;  %v2332_v11 = vpop.f32.mrb[63].mxu1  ;;  %v2726_v14 = vmax.f32 %v1762_v0, 0.0  ;;  %v2870_v15 = vmax.f32 %v2338_v1, 0.0 }
 0x159   :  { %v1757_v12 = vadd.f32 %v7600_v48, %v1756_v10  ;;  %v2333_v13 = vadd.f32 %v7600_v48, %v2332_v11  ;;  %v2724_v18 = vmax.f32 %v1754_v4, 0.0  ;;  %v2868_v19 = vmax.f32 %v2330_v5, 0.0 }
 0x15a   :  { %v2727_v16 = vmax.f32 %v1765_v8, 0.0  ;;  %v2871_v17 = vmax.f32 %v2341_v9, 0.0 }
 0x15b   :  { %v2725_v20 = vmax.f32 %v1757_v12, 0.0  ;;  %v2869_v21 = vmax.f32 %v2333_v13, 0.0 }
 0x15c   :  { %v5421_v22 = vpack.c.bf16 %v2727_v16, %v2726_v14  ;;  %v5781_v23 = vpack.c.bf16 %v2871_v17, %v2870_v15 }
 0x15d   :  { %v5416_v24 = vpack.c.bf16 %v2725_v20, %v2724_v18  ;;  %v5776_v25 = vpack.c.bf16 %v2869_v21, %v2868_v19  ;;  %v6342_v26 = vpop.f32.mrb[64].mxu0  ;;  %v6486_v27 = vpop.f32.mrb[64].mxu1 }
 0x15e   :  { %6013 = vst [vmem:[%s8056_s3 + $0xf8] sm:$0xff] %v5421_v22   ;;  %6085 = vst [vmem:[%s8056_s3 + $0x338] sm:$0xff] %v5781_v23   ;;  %v1778_v28 = vadd.f32 %v7600_v48, %v6342_v26  ;;  %v2354_v29 = vadd.f32 %v7600_v48, %v6486_v27  ;;  %v1769_v30 = vpop.f32.mrb[65].mxu0  ;;  %v2345_v31 = vpop.f32.mrb[65].mxu1 }
 0x15f   :  { %6012 = vst [vmem:[%s8056_s3 + $0xf0] sm:$0xff] %v5416_v24   ;;  %6084 = vst [vmem:[%s8056_s3 + $0x330] sm:$0xff] %v5776_v25   ;;  %v1770_v32 = vadd.f32 %v7600_v48, %v1769_v30  ;;  %v2346_v33 = vadd.f32 %v7600_v48, %v2345_v31  ;;  %v6343_v34 = vpop.f32.mrb[66].mxu0  ;;  %v6487_v35 = vpop.f32.mrb[66].mxu1 }
 0x160   :  { %v1781_v36 = vadd.f32 %v7600_v48, %v6343_v34  ;;  %v2357_v37 = vadd.f32 %v7600_v48, %v6487_v35  ;;  %v1772_v38 = vpop.f32.mrb[67].mxu0  ;;  %v2348_v39 = vpop.f32.mrb[67].mxu1  ;;  %v2730_v42 = vmax.f32 %v1778_v28, 0.0  ;;  %v2874_v43 = vmax.f32 %v2354_v29, 0.0 }
 0x161   :  { %v1773_v40 = vadd.f32 %v7600_v48, %v1772_v38  ;;  %v2349_v41 = vadd.f32 %v7600_v48, %v2348_v39  ;;  %v2728_v46 = vmax.f32 %v1770_v32, 0.0  ;;  %v2872_v47 = vmax.f32 %v2346_v33, 0.0 }
 0x162   :  { %v2731_v44 = vmax.f32 %v1781_v36, 0.0  ;;  %v2875_v45 = vmax.f32 %v2357_v37, 0.0 }
 0x163   :  { %v2729_v49 = vmax.f32 %v1773_v40, 0.0  ;;  %v2873_v50 = vmax.f32 %v2349_v41, 0.0 }
 0x164   :  { %v5431_v51 = vpack.c.bf16 %v2731_v44, %v2730_v42  ;;  %v5791_v52 = vpack.c.bf16 %v2875_v45, %v2874_v43 }
 0x165   :  { %v5426_v53 = vpack.c.bf16 %v2729_v49, %v2728_v46  ;;  %v5786_v54 = vpack.c.bf16 %v2873_v50, %v2872_v47  ;;  %v6346_v55 = vpop.f32.mrb[68].mxu0  ;;  %v6490_v56 = vpop.f32.mrb[68].mxu1 }
 0x166   :  { %6015 = vst [vmem:[%s8056_s3 + $0x108] sm:$0xff] %v5431_v51   ;;  %6087 = vst [vmem:[%s8056_s3 + $0x348] sm:$0xff] %v5791_v52   ;;  %v1794_v57 = vadd.f32 %v7600_v48, %v6346_v55  ;;  %v2370_v58 = vadd.f32 %v7600_v48, %v6490_v56  ;;  %v1785_v59 = vpop.f32.mrb[69].mxu0  ;;  %v2361_v60 = vpop.f32.mrb[69].mxu1 }
 0x167   :  { %6014 = vst [vmem:[%s8056_s3 + $0x100] sm:$0xff] %v5426_v53   ;;  %6086 = vst [vmem:[%s8056_s3 + $0x340] sm:$0xff] %v5786_v54   ;;  %v1786_v61 = vadd.f32 %v7600_v48, %v1785_v59  ;;  %v2362_v62 = vadd.f32 %v7600_v48, %v2361_v60  ;;  %v6347_v63 = vpop.f32.mrb[70].mxu0  ;;  %v6491_v0 = vpop.f32.mrb[70].mxu1 }
 0x168   :  { %v1797_v1 = vadd.f32 %v7600_v48, %v6347_v63  ;;  %v2373_v2 = vadd.f32 %v7600_v48, %v6491_v0  ;;  %v1788_v3 = vpop.f32.mrb[71].mxu0  ;;  %v2364_v4 = vpop.f32.mrb[71].mxu1  ;;  %v2734_v7 = vmax.f32 %v1794_v57, 0.0  ;;  %v2878_v8 = vmax.f32 %v2370_v58, 0.0 }
 0x169   :  { %v1789_v5 = vadd.f32 %v7600_v48, %v1788_v3  ;;  %v2365_v6 = vadd.f32 %v7600_v48, %v2364_v4  ;;  %v2732_v11 = vmax.f32 %v1786_v61, 0.0  ;;  %v2876_v12 = vmax.f32 %v2362_v62, 0.0 }
 0x16a   :  { %v2735_v9 = vmax.f32 %v1797_v1, 0.0  ;;  %v2879_v10 = vmax.f32 %v2373_v2, 0.0 }
 0x16b   :  { %v2733_v13 = vmax.f32 %v1789_v5, 0.0  ;;  %v2877_v14 = vmax.f32 %v2365_v6, 0.0 }
 0x16c   :  { %v5441_v15 = vpack.c.bf16 %v2735_v9, %v2734_v7  ;;  %v5801_v16 = vpack.c.bf16 %v2879_v10, %v2878_v8 }
 0x16d   :  { %v5436_v17 = vpack.c.bf16 %v2733_v13, %v2732_v11  ;;  %v5796_v18 = vpack.c.bf16 %v2877_v14, %v2876_v12  ;;  %v6350_v19 = vpop.f32.mrb[72].mxu0  ;;  %v6494_v20 = vpop.f32.mrb[72].mxu1 }
 0x16e   :  { %6017 = vst [vmem:[%s8056_s3 + $0x118] sm:$0xff] %v5441_v15   ;;  %6089 = vst [vmem:[%s8056_s3 + $0x358] sm:$0xff] %v5801_v16   ;;  %v1810_v21 = vadd.f32 %v7600_v48, %v6350_v19  ;;  %v2386_v22 = vadd.f32 %v7600_v48, %v6494_v20  ;;  %v1801_v23 = vpop.f32.mrb[73].mxu0  ;;  %v2377_v24 = vpop.f32.mrb[73].mxu1 }
 0x16f   :  { %6016 = vst [vmem:[%s8056_s3 + $0x110] sm:$0xff] %v5436_v17   ;;  %6088 = vst [vmem:[%s8056_s3 + $0x350] sm:$0xff] %v5796_v18   ;;  %v1802_v25 = vadd.f32 %v7600_v48, %v1801_v23  ;;  %v2378_v26 = vadd.f32 %v7600_v48, %v2377_v24  ;;  %v6351_v27 = vpop.f32.mrb[74].mxu0  ;;  %v6495_v28 = vpop.f32.mrb[74].mxu1 }
 0x170   :  { %v1813_v29 = vadd.f32 %v7600_v48, %v6351_v27  ;;  %v2389_v30 = vadd.f32 %v7600_v48, %v6495_v28  ;;  %v1804_v31 = vpop.f32.mrb[75].mxu0  ;;  %v2380_v32 = vpop.f32.mrb[75].mxu1  ;;  %v2738_v35 = vmax.f32 %v1810_v21, 0.0  ;;  %v2882_v36 = vmax.f32 %v2386_v22, 0.0 }
 0x171   :  { %v1805_v33 = vadd.f32 %v7600_v48, %v1804_v31  ;;  %v2381_v34 = vadd.f32 %v7600_v48, %v2380_v32  ;;  %v2736_v39 = vmax.f32 %v1802_v25, 0.0  ;;  %v2880_v40 = vmax.f32 %v2378_v26, 0.0 }
 0x172   :  { %v2739_v37 = vmax.f32 %v1813_v29, 0.0  ;;  %v2883_v38 = vmax.f32 %v2389_v30, 0.0 }
 0x173   :  { %v2737_v41 = vmax.f32 %v1805_v33, 0.0  ;;  %v2881_v42 = vmax.f32 %v2381_v34, 0.0 }
 0x174   :  { %v5451_v43 = vpack.c.bf16 %v2739_v37, %v2738_v35  ;;  %v5811_v44 = vpack.c.bf16 %v2883_v38, %v2882_v36 }
 0x175   :  { %v5446_v45 = vpack.c.bf16 %v2737_v41, %v2736_v39  ;;  %v5806_v46 = vpack.c.bf16 %v2881_v42, %v2880_v40  ;;  %v6354_v47 = vpop.f32.mrb[76].mxu0  ;;  %v6498_v49 = vpop.f32.mrb[76].mxu1 }
 0x176   :  { %6019 = vst [vmem:[%s8056_s3 + $0x128] sm:$0xff] %v5451_v43   ;;  %6091 = vst [vmem:[%s8056_s3 + $0x368] sm:$0xff] %v5811_v44   ;;  %v1826_v50 = vadd.f32 %v7600_v48, %v6354_v47  ;;  %v2402_v51 = vadd.f32 %v7600_v48, %v6498_v49  ;;  %v1817_v52 = vpop.f32.mrb[77].mxu0  ;;  %v2393_v53 = vpop.f32.mrb[77].mxu1 }
 0x177   :  { %6018 = vst [vmem:[%s8056_s3 + $0x120] sm:$0xff] %v5446_v45   ;;  %6090 = vst [vmem:[%s8056_s3 + $0x360] sm:$0xff] %v5806_v46   ;;  %v1818_v54 = vadd.f32 %v7600_v48, %v1817_v52  ;;  %v2394_v55 = vadd.f32 %v7600_v48, %v2393_v53  ;;  %v6355_v56 = vpop.f32.mrb[78].mxu0  ;;  %v6499_v57 = vpop.f32.mrb[78].mxu1 }
 0x178   :  { %v1829_v58 = vadd.f32 %v7600_v48, %v6355_v56  ;;  %v2405_v59 = vadd.f32 %v7600_v48, %v6499_v57  ;;  %v1820_v60 = vpop.f32.mrb[79].mxu0  ;;  %v2396_v61 = vpop.f32.mrb[79].mxu1  ;;  %v2742_v0 = vmax.f32 %v1826_v50, 0.0  ;;  %v2886_v1 = vmax.f32 %v2402_v51, 0.0 }
 0x179   :  { %v1821_v62 = vadd.f32 %v7600_v48, %v1820_v60  ;;  %v2397_v63 = vadd.f32 %v7600_v48, %v2396_v61  ;;  %v2740_v4 = vmax.f32 %v1818_v54, 0.0  ;;  %v2884_v5 = vmax.f32 %v2394_v55, 0.0 }
 0x17a   :  { %v2743_v2 = vmax.f32 %v1829_v58, 0.0  ;;  %v2887_v3 = vmax.f32 %v2405_v59, 0.0 }
 0x17b   :  { %v2741_v6 = vmax.f32 %v1821_v62, 0.0  ;;  %v2885_v7 = vmax.f32 %v2397_v63, 0.0 }
 0x17c   :  { %v5461_v8 = vpack.c.bf16 %v2743_v2, %v2742_v0  ;;  %v5821_v9 = vpack.c.bf16 %v2887_v3, %v2886_v1 }
 0x17d   :  { %v5456_v10 = vpack.c.bf16 %v2741_v6, %v2740_v4  ;;  %v5816_v11 = vpack.c.bf16 %v2885_v7, %v2884_v5  ;;  %v6358_v12 = vpop.f32.mrb[80].mxu0  ;;  %v6502_v13 = vpop.f32.mrb[80].mxu1 }
 0x17e   :  { %6021 = vst [vmem:[%s8056_s3 + $0x138] sm:$0xff] %v5461_v8   ;;  %6093 = vst [vmem:[%s8056_s3 + $0x378] sm:$0xff] %v5821_v9   ;;  %v1842_v14 = vadd.f32 %v7600_v48, %v6358_v12  ;;  %v2418_v15 = vadd.f32 %v7600_v48, %v6502_v13  ;;  %v1833_v16 = vpop.f32.mrb[81].mxu0  ;;  %v2409_v17 = vpop.f32.mrb[81].mxu1 }
 0x17f   :  { %6020 = vst [vmem:[%s8056_s3 + $0x130] sm:$0xff] %v5456_v10   ;;  %6092 = vst [vmem:[%s8056_s3 + $0x370] sm:$0xff] %v5816_v11   ;;  %v1834_v18 = vadd.f32 %v7600_v48, %v1833_v16  ;;  %v2410_v19 = vadd.f32 %v7600_v48, %v2409_v17  ;;  %v6359_v20 = vpop.f32.mrb[82].mxu0  ;;  %v6503_v21 = vpop.f32.mrb[82].mxu1 }
 0x180   :  { %v1845_v22 = vadd.f32 %v7600_v48, %v6359_v20  ;;  %v2421_v23 = vadd.f32 %v7600_v48, %v6503_v21  ;;  %v1836_v24 = vpop.f32.mrb[83].mxu0  ;;  %v2412_v25 = vpop.f32.mrb[83].mxu1  ;;  %v2746_v28 = vmax.f32 %v1842_v14, 0.0  ;;  %v2890_v29 = vmax.f32 %v2418_v15, 0.0 }
 0x181   :  { %v1837_v26 = vadd.f32 %v7600_v48, %v1836_v24  ;;  %v2413_v27 = vadd.f32 %v7600_v48, %v2412_v25  ;;  %v2744_v32 = vmax.f32 %v1834_v18, 0.0  ;;  %v2888_v33 = vmax.f32 %v2410_v19, 0.0 }
 0x182   :  { %v2747_v30 = vmax.f32 %v1845_v22, 0.0  ;;  %v2891_v31 = vmax.f32 %v2421_v23, 0.0 }
 0x183   :  { %v2745_v34 = vmax.f32 %v1837_v26, 0.0  ;;  %v2889_v35 = vmax.f32 %v2413_v27, 0.0 }
 0x184   :  { %v5471_v36 = vpack.c.bf16 %v2747_v30, %v2746_v28  ;;  %v5831_v37 = vpack.c.bf16 %v2891_v31, %v2890_v29 }
 0x185   :  { %v5466_v38 = vpack.c.bf16 %v2745_v34, %v2744_v32  ;;  %v5826_v39 = vpack.c.bf16 %v2889_v35, %v2888_v33  ;;  %v6362_v40 = vpop.f32.mrb[84].mxu0  ;;  %v6506_v41 = vpop.f32.mrb[84].mxu1 }
 0x186   :  { %6023 = vst [vmem:[%s8056_s3 + $0x148] sm:$0xff] %v5471_v36   ;;  %6095 = vst [vmem:[%s8056_s3 + $0x388] sm:$0xff] %v5831_v37   ;;  %v1858_v42 = vadd.f32 %v7600_v48, %v6362_v40  ;;  %v2434_v43 = vadd.f32 %v7600_v48, %v6506_v41  ;;  %v1849_v44 = vpop.f32.mrb[85].mxu0  ;;  %v2425_v45 = vpop.f32.mrb[85].mxu1 }
 0x187   :  { %6022 = vst [vmem:[%s8056_s3 + $0x140] sm:$0xff] %v5466_v38   ;;  %6094 = vst [vmem:[%s8056_s3 + $0x380] sm:$0xff] %v5826_v39   ;;  %v1850_v46 = vadd.f32 %v7600_v48, %v1849_v44  ;;  %v2426_v47 = vadd.f32 %v7600_v48, %v2425_v45  ;;  %v6363_v49 = vpop.f32.mrb[86].mxu0  ;;  %v6507_v50 = vpop.f32.mrb[86].mxu1 }
 0x188   :  { %v1861_v51 = vadd.f32 %v7600_v48, %v6363_v49  ;;  %v2437_v52 = vadd.f32 %v7600_v48, %v6507_v50  ;;  %v1852_v53 = vpop.f32.mrb[87].mxu0  ;;  %v2428_v54 = vpop.f32.mrb[87].mxu1  ;;  %v2750_v57 = vmax.f32 %v1858_v42, 0.0  ;;  %v2894_v58 = vmax.f32 %v2434_v43, 0.0 }
 0x189   :  { %v1853_v55 = vadd.f32 %v7600_v48, %v1852_v53  ;;  %v2429_v56 = vadd.f32 %v7600_v48, %v2428_v54  ;;  %v2748_v61 = vmax.f32 %v1850_v46, 0.0  ;;  %v2892_v62 = vmax.f32 %v2426_v47, 0.0 }
 0x18a   :  { %v2751_v59 = vmax.f32 %v1861_v51, 0.0  ;;  %v2895_v60 = vmax.f32 %v2437_v52, 0.0 }
 0x18b   :  { %v2749_v63 = vmax.f32 %v1853_v55, 0.0  ;;  %v2893_v0 = vmax.f32 %v2429_v56, 0.0 }
 0x18c   :  { %v5481_v1 = vpack.c.bf16 %v2751_v59, %v2750_v57  ;;  %v5841_v2 = vpack.c.bf16 %v2895_v60, %v2894_v58 }
 0x18d   :  { %v5476_v3 = vpack.c.bf16 %v2749_v63, %v2748_v61  ;;  %v5836_v4 = vpack.c.bf16 %v2893_v0, %v2892_v62  ;;  %v6366_v5 = vpop.f32.mrb[88].mxu0  ;;  %v6510_v6 = vpop.f32.mrb[88].mxu1 }
 0x18e   :  { %6025 = vst [vmem:[%s8056_s3 + $0x158] sm:$0xff] %v5481_v1   ;;  %6097 = vst [vmem:[%s8056_s3 + $0x398] sm:$0xff] %v5841_v2   ;;  %v1874_v7 = vadd.f32 %v7600_v48, %v6366_v5  ;;  %v2450_v8 = vadd.f32 %v7600_v48, %v6510_v6  ;;  %v1865_v9 = vpop.f32.mrb[89].mxu0  ;;  %v2441_v10 = vpop.f32.mrb[89].mxu1 }
 0x18f   :  { %6024 = vst [vmem:[%s8056_s3 + $0x150] sm:$0xff] %v5476_v3   ;;  %6096 = vst [vmem:[%s8056_s3 + $0x390] sm:$0xff] %v5836_v4   ;;  %v1866_v11 = vadd.f32 %v7600_v48, %v1865_v9  ;;  %v2442_v12 = vadd.f32 %v7600_v48, %v2441_v10  ;;  %v6367_v13 = vpop.f32.mrb[90].mxu0  ;;  %v6511_v14 = vpop.f32.mrb[90].mxu1 }
 0x190   :  { %v1877_v15 = vadd.f32 %v7600_v48, %v6367_v13  ;;  %v2453_v16 = vadd.f32 %v7600_v48, %v6511_v14  ;;  %v1868_v17 = vpop.f32.mrb[91].mxu0  ;;  %v2444_v18 = vpop.f32.mrb[91].mxu1  ;;  %v2754_v21 = vmax.f32 %v1874_v7, 0.0  ;;  %v2898_v22 = vmax.f32 %v2450_v8, 0.0 }
 0x191   :  { %v1869_v19 = vadd.f32 %v7600_v48, %v1868_v17  ;;  %v2445_v20 = vadd.f32 %v7600_v48, %v2444_v18  ;;  %v2752_v25 = vmax.f32 %v1866_v11, 0.0  ;;  %v2896_v26 = vmax.f32 %v2442_v12, 0.0 }
 0x192   :  { %v2755_v23 = vmax.f32 %v1877_v15, 0.0  ;;  %v2899_v24 = vmax.f32 %v2453_v16, 0.0 }
 0x193   :  { %v2753_v27 = vmax.f32 %v1869_v19, 0.0  ;;  %v2897_v28 = vmax.f32 %v2445_v20, 0.0 }
 0x194   :  { %v5491_v29 = vpack.c.bf16 %v2755_v23, %v2754_v21  ;;  %v5851_v30 = vpack.c.bf16 %v2899_v24, %v2898_v22 }
 0x195   :  { %v5486_v31 = vpack.c.bf16 %v2753_v27, %v2752_v25  ;;  %v5846_v32 = vpack.c.bf16 %v2897_v28, %v2896_v26  ;;  %v6370_v33 = vpop.f32.mrb[92].mxu0  ;;  %v6514_v34 = vpop.f32.mrb[92].mxu1 }
 0x196   :  { %6027 = vst [vmem:[%s8056_s3 + $0x168] sm:$0xff] %v5491_v29   ;;  %6099 = vst [vmem:[%s8056_s3 + $0x3a8] sm:$0xff] %v5851_v30   ;;  %v1890_v35 = vadd.f32 %v7600_v48, %v6370_v33  ;;  %v2466_v36 = vadd.f32 %v7600_v48, %v6514_v34  ;;  %v1881_v37 = vpop.f32.mrb[93].mxu0  ;;  %v2457_v38 = vpop.f32.mrb[93].mxu1 }
 0x197   :  { %6026 = vst [vmem:[%s8056_s3 + $0x160] sm:$0xff] %v5486_v31   ;;  %6098 = vst [vmem:[%s8056_s3 + $0x3a0] sm:$0xff] %v5846_v32   ;;  %v1882_v39 = vadd.f32 %v7600_v48, %v1881_v37  ;;  %v2458_v40 = vadd.f32 %v7600_v48, %v2457_v38  ;;  %v6371_v41 = vpop.f32.mrb[94].mxu0  ;;  %v6515_v42 = vpop.f32.mrb[94].mxu1 }
 0x198   :  { %v1893_v43 = vadd.f32 %v7600_v48, %v6371_v41  ;;  %v2469_v44 = vadd.f32 %v7600_v48, %v6515_v42  ;;  %v1884_v45 = vpop.f32.mrb[95].mxu0  ;;  %v2460_v46 = vpop.f32.mrb[95].mxu1  ;;  %v2758_v50 = vmax.f32 %v1890_v35, 0.0  ;;  %v2902_v51 = vmax.f32 %v2466_v36, 0.0 }
 0x199   :  { %v1885_v47 = vadd.f32 %v7600_v48, %v1884_v45  ;;  %v2461_v49 = vadd.f32 %v7600_v48, %v2460_v46  ;;  %v2756_v54 = vmax.f32 %v1882_v39, 0.0  ;;  %v2900_v55 = vmax.f32 %v2458_v40, 0.0 }
 0x19a   :  { %v2759_v52 = vmax.f32 %v1893_v43, 0.0  ;;  %v2903_v53 = vmax.f32 %v2469_v44, 0.0 }
 0x19b   :  { %v2757_v56 = vmax.f32 %v1885_v47, 0.0  ;;  %v2901_v57 = vmax.f32 %v2461_v49, 0.0 }
 0x19c   :  { %v5501_v58 = vpack.c.bf16 %v2759_v52, %v2758_v50  ;;  %v5861_v59 = vpack.c.bf16 %v2903_v53, %v2902_v51 }
 0x19d   :  { %v5496_v60 = vpack.c.bf16 %v2757_v56, %v2756_v54  ;;  %v5856_v61 = vpack.c.bf16 %v2901_v57, %v2900_v55  ;;  %v6374_v62 = vpop.f32.mrb[96].mxu0  ;;  %v6518_v63 = vpop.f32.mrb[96].mxu1 }
 0x19e   :  { %6029 = vst [vmem:[%s8056_s3 + $0x178] sm:$0xff] %v5501_v58   ;;  %6101 = vst [vmem:[%s8056_s3 + $0x3b8] sm:$0xff] %v5861_v59   ;;  %v1906_v0 = vadd.f32 %v7600_v48, %v6374_v62  ;;  %v2482_v1 = vadd.f32 %v7600_v48, %v6518_v63  ;;  %v1897_v2 = vpop.f32.mrb[97].mxu0  ;;  %v2473_v3 = vpop.f32.mrb[97].mxu1 }
 0x19f   :  { %6028 = vst [vmem:[%s8056_s3 + $0x170] sm:$0xff] %v5496_v60   ;;  %6100 = vst [vmem:[%s8056_s3 + $0x3b0] sm:$0xff] %v5856_v61   ;;  %v1898_v4 = vadd.f32 %v7600_v48, %v1897_v2  ;;  %v2474_v5 = vadd.f32 %v7600_v48, %v2473_v3  ;;  %v6375_v6 = vpop.f32.mrb[98].mxu0  ;;  %v6519_v7 = vpop.f32.mrb[98].mxu1 }
 0x1a0   :  { %v1909_v8 = vadd.f32 %v7600_v48, %v6375_v6  ;;  %v2485_v9 = vadd.f32 %v7600_v48, %v6519_v7  ;;  %v1900_v10 = vpop.f32.mrb[99].mxu0  ;;  %v2476_v11 = vpop.f32.mrb[99].mxu1  ;;  %v2762_v14 = vmax.f32 %v1906_v0, 0.0  ;;  %v2906_v15 = vmax.f32 %v2482_v1, 0.0 }
 0x1a1   :  { %v1901_v12 = vadd.f32 %v7600_v48, %v1900_v10  ;;  %v2477_v13 = vadd.f32 %v7600_v48, %v2476_v11  ;;  %v2760_v18 = vmax.f32 %v1898_v4, 0.0  ;;  %v2904_v19 = vmax.f32 %v2474_v5, 0.0 }
 0x1a2   :  { %v2763_v16 = vmax.f32 %v1909_v8, 0.0  ;;  %v2907_v17 = vmax.f32 %v2485_v9, 0.0 }
 0x1a3   :  { %v2761_v20 = vmax.f32 %v1901_v12, 0.0  ;;  %v2905_v21 = vmax.f32 %v2477_v13, 0.0 }
 0x1a4   :  { %v5511_v22 = vpack.c.bf16 %v2763_v16, %v2762_v14  ;;  %v5871_v23 = vpack.c.bf16 %v2907_v17, %v2906_v15 }
 0x1a5   :  { %v5506_v24 = vpack.c.bf16 %v2761_v20, %v2760_v18  ;;  %v5866_v25 = vpack.c.bf16 %v2905_v21, %v2904_v19  ;;  %v6378_v26 = vpop.f32.mrb[100].mxu0  ;;  %v6522_v27 = vpop.f32.mrb[100].mxu1 }
 0x1a6   :  { %6031 = vst [vmem:[%s8056_s3 + $0x188] sm:$0xff] %v5511_v22   ;;  %6103 = vst [vmem:[%s8056_s3 + $0x3c8] sm:$0xff] %v5871_v23   ;;  %v1922_v28 = vadd.f32 %v7600_v48, %v6378_v26  ;;  %v2498_v29 = vadd.f32 %v7600_v48, %v6522_v27  ;;  %v1913_v30 = vpop.f32.mrb[101].mxu0  ;;  %v2489_v31 = vpop.f32.mrb[101].mxu1 }
 0x1a7   :  { %6030 = vst [vmem:[%s8056_s3 + $0x180] sm:$0xff] %v5506_v24   ;;  %6102 = vst [vmem:[%s8056_s3 + $0x3c0] sm:$0xff] %v5866_v25   ;;  %v1914_v32 = vadd.f32 %v7600_v48, %v1913_v30  ;;  %v2490_v33 = vadd.f32 %v7600_v48, %v2489_v31  ;;  %v6379_v34 = vpop.f32.mrb[102].mxu0  ;;  %v6523_v35 = vpop.f32.mrb[102].mxu1 }
 0x1a8   :  { %v1925_v36 = vadd.f32 %v7600_v48, %v6379_v34  ;;  %v2501_v37 = vadd.f32 %v7600_v48, %v6523_v35  ;;  %v1916_v38 = vpop.f32.mrb[103].mxu0  ;;  %v2492_v39 = vpop.f32.mrb[103].mxu1  ;;  %v2766_v42 = vmax.f32 %v1922_v28, 0.0  ;;  %v2910_v43 = vmax.f32 %v2498_v29, 0.0 }
 0x1a9   :  { %v1917_v40 = vadd.f32 %v7600_v48, %v1916_v38  ;;  %v2493_v41 = vadd.f32 %v7600_v48, %v2492_v39  ;;  %v2764_v46 = vmax.f32 %v1914_v32, 0.0  ;;  %v2908_v47 = vmax.f32 %v2490_v33, 0.0 }
 0x1aa   :  { %v2767_v44 = vmax.f32 %v1925_v36, 0.0  ;;  %v2911_v45 = vmax.f32 %v2501_v37, 0.0 }
 0x1ab   :  { %v2765_v49 = vmax.f32 %v1917_v40, 0.0  ;;  %v2909_v50 = vmax.f32 %v2493_v41, 0.0 }
 0x1ac   :  { %v5521_v51 = vpack.c.bf16 %v2767_v44, %v2766_v42  ;;  %v5881_v52 = vpack.c.bf16 %v2911_v45, %v2910_v43 }
 0x1ad   :  { %v5516_v53 = vpack.c.bf16 %v2765_v49, %v2764_v46  ;;  %v5876_v54 = vpack.c.bf16 %v2909_v50, %v2908_v47  ;;  %v6382_v55 = vpop.f32.mrb[104].mxu0  ;;  %v6526_v56 = vpop.f32.mrb[104].mxu1 }
 0x1ae   :  { %6033 = vst [vmem:[%s8056_s3 + $0x198] sm:$0xff] %v5521_v51   ;;  %6105 = vst [vmem:[%s8056_s3 + $0x3d8] sm:$0xff] %v5881_v52   ;;  %v1938_v57 = vadd.f32 %v7600_v48, %v6382_v55  ;;  %v2514_v58 = vadd.f32 %v7600_v48, %v6526_v56  ;;  %v1929_v59 = vpop.f32.mrb[105].mxu0  ;;  %v2505_v60 = vpop.f32.mrb[105].mxu1 }
 0x1af   :  { %6032 = vst [vmem:[%s8056_s3 + $0x190] sm:$0xff] %v5516_v53   ;;  %6104 = vst [vmem:[%s8056_s3 + $0x3d0] sm:$0xff] %v5876_v54   ;;  %v1930_v61 = vadd.f32 %v7600_v48, %v1929_v59  ;;  %v2506_v62 = vadd.f32 %v7600_v48, %v2505_v60  ;;  %v6383_v63 = vpop.f32.mrb[106].mxu0  ;;  %v6527_v0 = vpop.f32.mrb[106].mxu1 }
 0x1b0   :  { %v1941_v1 = vadd.f32 %v7600_v48, %v6383_v63  ;;  %v2517_v2 = vadd.f32 %v7600_v48, %v6527_v0  ;;  %v1932_v3 = vpop.f32.mrb[107].mxu0  ;;  %v2508_v4 = vpop.f32.mrb[107].mxu1  ;;  %v2770_v7 = vmax.f32 %v1938_v57, 0.0  ;;  %v2914_v8 = vmax.f32 %v2514_v58, 0.0 }
 0x1b1   :  { %v1933_v5 = vadd.f32 %v7600_v48, %v1932_v3  ;;  %v2509_v6 = vadd.f32 %v7600_v48, %v2508_v4  ;;  %v2768_v11 = vmax.f32 %v1930_v61, 0.0  ;;  %v2912_v12 = vmax.f32 %v2506_v62, 0.0 }
 0x1b2   :  { %v2771_v9 = vmax.f32 %v1941_v1, 0.0  ;;  %v2915_v10 = vmax.f32 %v2517_v2, 0.0 }
 0x1b3   :  { %v2769_v13 = vmax.f32 %v1933_v5, 0.0  ;;  %v2913_v14 = vmax.f32 %v2509_v6, 0.0 }
 0x1b4   :  { %v5531_v15 = vpack.c.bf16 %v2771_v9, %v2770_v7  ;;  %v5891_v16 = vpack.c.bf16 %v2915_v10, %v2914_v8 }
 0x1b5   :  { %v5526_v17 = vpack.c.bf16 %v2769_v13, %v2768_v11  ;;  %v5886_v18 = vpack.c.bf16 %v2913_v14, %v2912_v12  ;;  %v6386_v19 = vpop.f32.mrb[108].mxu0  ;;  %v6530_v20 = vpop.f32.mrb[108].mxu1 }
 0x1b6   :  { %6035 = vst [vmem:[%s8056_s3 + $0x1a8] sm:$0xff] %v5531_v15   ;;  %6107 = vst [vmem:[%s8056_s3 + $0x3e8] sm:$0xff] %v5891_v16   ;;  %v1954_v21 = vadd.f32 %v7600_v48, %v6386_v19  ;;  %v2530_v22 = vadd.f32 %v7600_v48, %v6530_v20  ;;  %v1945_v23 = vpop.f32.mrb[109].mxu0  ;;  %v2521_v24 = vpop.f32.mrb[109].mxu1 }
 0x1b7   :  { %6034 = vst [vmem:[%s8056_s3 + $0x1a0] sm:$0xff] %v5526_v17   ;;  %6106 = vst [vmem:[%s8056_s3 + $0x3e0] sm:$0xff] %v5886_v18   ;;  %v1946_v25 = vadd.f32 %v7600_v48, %v1945_v23  ;;  %v2522_v26 = vadd.f32 %v7600_v48, %v2521_v24  ;;  %v6387_v27 = vpop.f32.mrb[110].mxu0  ;;  %v6531_v28 = vpop.f32.mrb[110].mxu1 }
 0x1b8   :  { %v1957_v29 = vadd.f32 %v7600_v48, %v6387_v27  ;;  %v2533_v30 = vadd.f32 %v7600_v48, %v6531_v28  ;;  %v1948_v31 = vpop.f32.mrb[111].mxu0  ;;  %v2524_v32 = vpop.f32.mrb[111].mxu1  ;;  %v2774_v35 = vmax.f32 %v1954_v21, 0.0  ;;  %v2918_v36 = vmax.f32 %v2530_v22, 0.0 }
 0x1b9   :  { %v1949_v33 = vadd.f32 %v7600_v48, %v1948_v31  ;;  %v2525_v34 = vadd.f32 %v7600_v48, %v2524_v32  ;;  %v2772_v39 = vmax.f32 %v1946_v25, 0.0  ;;  %v2916_v40 = vmax.f32 %v2522_v26, 0.0 }
 0x1ba   :  { %v2775_v37 = vmax.f32 %v1957_v29, 0.0  ;;  %v2919_v38 = vmax.f32 %v2533_v30, 0.0 }
 0x1bb   :  { %v2773_v41 = vmax.f32 %v1949_v33, 0.0  ;;  %v2917_v42 = vmax.f32 %v2525_v34, 0.0 }
 0x1bc   :  { %v5541_v43 = vpack.c.bf16 %v2775_v37, %v2774_v35  ;;  %v5901_v44 = vpack.c.bf16 %v2919_v38, %v2918_v36 }
 0x1bd   :  { %v5536_v45 = vpack.c.bf16 %v2773_v41, %v2772_v39  ;;  %v5896_v46 = vpack.c.bf16 %v2917_v42, %v2916_v40  ;;  %v6390_v47 = vpop.f32.mrb[112].mxu0  ;;  %v6534_v49 = vpop.f32.mrb[112].mxu1 }
 0x1be   :  { %6037 = vst [vmem:[%s8056_s3 + $0x1b8] sm:$0xff] %v5541_v43   ;;  %6109 = vst [vmem:[%s8056_s3 + $0x3f8] sm:$0xff] %v5901_v44   ;;  %v1970_v50 = vadd.f32 %v7600_v48, %v6390_v47  ;;  %v2546_v51 = vadd.f32 %v7600_v48, %v6534_v49  ;;  %v1961_v52 = vpop.f32.mrb[113].mxu0  ;;  %v2537_v53 = vpop.f32.mrb[113].mxu1 }
 0x1bf   :  { %6036 = vst [vmem:[%s8056_s3 + $0x1b0] sm:$0xff] %v5536_v45   ;;  %6108 = vst [vmem:[%s8056_s3 + $0x3f0] sm:$0xff] %v5896_v46   ;;  %v1962_v54 = vadd.f32 %v7600_v48, %v1961_v52  ;;  %v2538_v55 = vadd.f32 %v7600_v48, %v2537_v53  ;;  %v6391_v56 = vpop.f32.mrb[114].mxu0  ;;  %v6535_v57 = vpop.f32.mrb[114].mxu1 }
 0x1c0   :  { %v1973_v58 = vadd.f32 %v7600_v48, %v6391_v56  ;;  %v2549_v59 = vadd.f32 %v7600_v48, %v6535_v57  ;;  %v1964_v60 = vpop.f32.mrb[115].mxu0  ;;  %v2540_v61 = vpop.f32.mrb[115].mxu1  ;;  %v2778_v0 = vmax.f32 %v1970_v50, 0.0  ;;  %v2922_v1 = vmax.f32 %v2546_v51, 0.0 }
 0x1c1   :  { %v1965_v62 = vadd.f32 %v7600_v48, %v1964_v60  ;;  %v2541_v63 = vadd.f32 %v7600_v48, %v2540_v61  ;;  %v2776_v4 = vmax.f32 %v1962_v54, 0.0  ;;  %v2920_v5 = vmax.f32 %v2538_v55, 0.0 }
 0x1c2   :  { %v2779_v2 = vmax.f32 %v1973_v58, 0.0  ;;  %v2923_v3 = vmax.f32 %v2549_v59, 0.0 }
 0x1c3   :  { %v2777_v6 = vmax.f32 %v1965_v62, 0.0  ;;  %v2921_v7 = vmax.f32 %v2541_v63, 0.0 }
 0x1c4   :  { %v5551_v8 = vpack.c.bf16 %v2779_v2, %v2778_v0  ;;  %v5911_v9 = vpack.c.bf16 %v2923_v3, %v2922_v1 }
 0x1c5   :  { %v5546_v10 = vpack.c.bf16 %v2777_v6, %v2776_v4  ;;  %v5906_v11 = vpack.c.bf16 %v2921_v7, %v2920_v5  ;;  %v6394_v12 = vpop.f32.mrb[116].mxu0  ;;  %v6538_v13 = vpop.f32.mrb[116].mxu1 }
 0x1c6   :  { %6039 = vst [vmem:[%s8056_s3 + $0x1c8] sm:$0xff] %v5551_v8   ;;  %6111 = vst [vmem:[%s8056_s3 + $0x408] sm:$0xff] %v5911_v9   ;;  %v1986_v14 = vadd.f32 %v7600_v48, %v6394_v12  ;;  %v2562_v15 = vadd.f32 %v7600_v48, %v6538_v13  ;;  %v1977_v16 = vpop.f32.mrb[117].mxu0  ;;  %v2553_v17 = vpop.f32.mrb[117].mxu1 }
 0x1c7   :  { %6038 = vst [vmem:[%s8056_s3 + $0x1c0] sm:$0xff] %v5546_v10   ;;  %6110 = vst [vmem:[%s8056_s3 + $0x400] sm:$0xff] %v5906_v11   ;;  %v1978_v18 = vadd.f32 %v7600_v48, %v1977_v16  ;;  %v2554_v19 = vadd.f32 %v7600_v48, %v2553_v17  ;;  %v6395_v20 = vpop.f32.mrb[118].mxu0  ;;  %v6539_v21 = vpop.f32.mrb[118].mxu1 }
 0x1c8   :  { %v1989_v22 = vadd.f32 %v7600_v48, %v6395_v20  ;;  %v2565_v23 = vadd.f32 %v7600_v48, %v6539_v21  ;;  %v1980_v24 = vpop.f32.mrb[119].mxu0  ;;  %v2556_v25 = vpop.f32.mrb[119].mxu1  ;;  %v2782_v28 = vmax.f32 %v1986_v14, 0.0  ;;  %v2926_v29 = vmax.f32 %v2562_v15, 0.0 }
 0x1c9   :  { %v1981_v26 = vadd.f32 %v7600_v48, %v1980_v24  ;;  %v2557_v27 = vadd.f32 %v7600_v48, %v2556_v25  ;;  %v2780_v32 = vmax.f32 %v1978_v18, 0.0  ;;  %v2924_v33 = vmax.f32 %v2554_v19, 0.0  ;;  %v7925_v48 = vld [vmem:[%s8055_s2] ss:$0 sm:$0xff] }
 0x1ca   :  { %v2783_v30 = vmax.f32 %v1989_v22, 0.0  ;;  %v2927_v31 = vmax.f32 %v2565_v23, 0.0 }
 0x1cb   :  { %v2781_v34 = vmax.f32 %v1981_v26, 0.0  ;;  %v2925_v35 = vmax.f32 %v2557_v27, 0.0 }
 0x1cc   :  { %v5561_v36 = vpack.c.bf16 %v2783_v30, %v2782_v28  ;;  %v5921_v37 = vpack.c.bf16 %v2927_v31, %v2926_v29 }
 0x1cd   :  { %v5556_v38 = vpack.c.bf16 %v2781_v34, %v2780_v32  ;;  %v5916_v39 = vpack.c.bf16 %v2925_v35, %v2924_v33  ;;  %v6398_v40 = vpop.f32.mrb[120].mxu0  ;;  %v6542_v41 = vpop.f32.mrb[120].mxu1 }
 0x1ce   :  { %6041 = vst [vmem:[%s8056_s3 + $0x1d8] sm:$0xff] %v5561_v36   ;;  %6113 = vst [vmem:[%s8056_s3 + $0x418] sm:$0xff] %v5921_v37   ;;  %v2002_v42 = vadd.f32 %v7925_v48, %v6398_v40  ;;  %v2578_v43 = vadd.f32 %v7925_v48, %v6542_v41  ;;  %v1993_v44 = vpop.f32.mrb[121].mxu0  ;;  %v2569_v45 = vpop.f32.mrb[121].mxu1 }
 0x1cf   :  { %6040 = vst [vmem:[%s8056_s3 + $0x1d0] sm:$0xff] %v5556_v38   ;;  %6112 = vst [vmem:[%s8056_s3 + $0x410] sm:$0xff] %v5916_v39   ;;  %v1994_v46 = vadd.f32 %v7925_v48, %v1993_v44  ;;  %v2570_v47 = vadd.f32 %v7925_v48, %v2569_v45  ;;  %v6399_v49 = vpop.f32.mrb[122].mxu0  ;;  %v6543_v50 = vpop.f32.mrb[122].mxu1 }
 0x1d0   :  { %v2005_v51 = vadd.f32 %v7925_v48, %v6399_v49  ;;  %v2581_v52 = vadd.f32 %v7925_v48, %v6543_v50  ;;  %v1996_v53 = vpop.f32.mrb[123].mxu0  ;;  %v2572_v54 = vpop.f32.mrb[123].mxu1  ;;  %v2786_v57 = vmax.f32 %v2002_v42, 0.0  ;;  %v2930_v58 = vmax.f32 %v2578_v43, 0.0 }
 0x1d1   :  { %v1997_v55 = vadd.f32 %v7925_v48, %v1996_v53  ;;  %v2573_v56 = vadd.f32 %v7925_v48, %v2572_v54  ;;  %v2784_v61 = vmax.f32 %v1994_v46, 0.0  ;;  %v2928_v62 = vmax.f32 %v2570_v47, 0.0 }
 0x1d2   :  { %v2787_v59 = vmax.f32 %v2005_v51, 0.0  ;;  %v2931_v60 = vmax.f32 %v2581_v52, 0.0 }
 0x1d3   :  { %v2785_v63 = vmax.f32 %v1997_v55, 0.0  ;;  %v2929_v0 = vmax.f32 %v2573_v56, 0.0 }
 0x1d4   :  { %v5571_v1 = vpack.c.bf16 %v2787_v59, %v2786_v57  ;;  %v5931_v2 = vpack.c.bf16 %v2931_v60, %v2930_v58 }
 0x1d5   :  { %v5566_v3 = vpack.c.bf16 %v2785_v63, %v2784_v61  ;;  %v5926_v4 = vpack.c.bf16 %v2929_v0, %v2928_v62  ;;  %v6402_v5 = vpop.f32.mrb[124].mxu0  ;;  %v6546_v6 = vpop.f32.mrb[124].mxu1 }
 0x1d6   :  { %6043 = vst [vmem:[%s8056_s3 + $0x1e8] sm:$0xff] %v5571_v1   ;;  %6115 = vst [vmem:[%s8056_s3 + $0x428] sm:$0xff] %v5931_v2   ;;  %v2018_v7 = vadd.f32 %v7925_v48, %v6402_v5  ;;  %v2594_v8 = vadd.f32 %v7925_v48, %v6546_v6  ;;  %v2009_v9 = vpop.f32.mrb[125].mxu0  ;;  %v2585_v10 = vpop.f32.mrb[125].mxu1 }
 0x1d7   :  { %6042 = vst [vmem:[%s8056_s3 + $0x1e0] sm:$0xff] %v5566_v3   ;;  %6114 = vst [vmem:[%s8056_s3 + $0x420] sm:$0xff] %v5926_v4   ;;  %v2010_v11 = vadd.f32 %v7925_v48, %v2009_v9  ;;  %v2586_v12 = vadd.f32 %v7925_v48, %v2585_v10  ;;  %v6403_v13 = vpop.f32.mrb[126].mxu0  ;;  %v6547_v14 = vpop.f32.mrb[126].mxu1 }
 0x1d8   :  { %v2021_v15 = vadd.f32 %v7925_v48, %v6403_v13  ;;  %v2597_v16 = vadd.f32 %v7925_v48, %v6547_v14  ;;  %v2012_v17 = vpop.f32.mrb[127].mxu0  ;;  %v2588_v18 = vpop.f32.mrb[127].mxu1  ;;  %v2790_v21 = vmax.f32 %v2018_v7, 0.0  ;;  %v2934_v22 = vmax.f32 %v2594_v8, 0.0 }
 0x1d9   :  { %v2013_v19 = vadd.f32 %v7925_v48, %v2012_v17  ;;  %v2589_v20 = vadd.f32 %v7925_v48, %v2588_v18  ;;  %v2788_v25 = vmax.f32 %v2010_v11, 0.0  ;;  %v2932_v26 = vmax.f32 %v2586_v12, 0.0 }
 0x1da   :  { %v2791_v23 = vmax.f32 %v2021_v15, 0.0  ;;  %v2935_v24 = vmax.f32 %v2597_v16, 0.0 }
 0x1db   :  { %v2789_v27 = vmax.f32 %v2013_v19, 0.0  ;;  %v2933_v28 = vmax.f32 %v2589_v20, 0.0 }
 0x1dc   :  { %v5581_v29 = vpack.c.bf16 %v2791_v23, %v2790_v21  ;;  %v5941_v30 = vpack.c.bf16 %v2935_v24, %v2934_v22 }
 0x1dd   :  { %v5576_v31 = vpack.c.bf16 %v2789_v27, %v2788_v25  ;;  %v5936_v32 = vpack.c.bf16 %v2933_v28, %v2932_v26  ;;  %v6406_v33 = vpop.f32.mrb[128].mxu0  ;;  %v6550_v34 = vpop.f32.mrb[128].mxu1 }
 0x1de   :  { %6045 = vst [vmem:[%s8056_s3 + $0x1f8] sm:$0xff] %v5581_v29   ;;  %6117 = vst [vmem:[%s8056_s3 + $0x438] sm:$0xff] %v5941_v30   ;;  %v2034_v35 = vadd.f32 %v7925_v48, %v6406_v33  ;;  %v2610_v36 = vadd.f32 %v7925_v48, %v6550_v34  ;;  %v2025_v37 = vpop.f32.mrb[129].mxu0  ;;  %v2601_v38 = vpop.f32.mrb[129].mxu1 }
 0x1df   :  { %6044 = vst [vmem:[%s8056_s3 + $0x1f0] sm:$0xff] %v5576_v31   ;;  %6116 = vst [vmem:[%s8056_s3 + $0x430] sm:$0xff] %v5936_v32   ;;  %v2026_v39 = vadd.f32 %v7925_v48, %v2025_v37  ;;  %v2602_v40 = vadd.f32 %v7925_v48, %v2601_v38  ;;  %v6407_v41 = vpop.f32.mrb[130].mxu0  ;;  %v6551_v42 = vpop.f32.mrb[130].mxu1 }
 0x1e0   :  { %v2037_v43 = vadd.f32 %v7925_v48, %v6407_v41  ;;  %v2613_v44 = vadd.f32 %v7925_v48, %v6551_v42  ;;  %v2028_v45 = vpop.f32.mrb[131].mxu0  ;;  %v2604_v46 = vpop.f32.mrb[131].mxu1  ;;  %v2794_v50 = vmax.f32 %v2034_v35, 0.0  ;;  %v2938_v51 = vmax.f32 %v2610_v36, 0.0 }
 0x1e1   :  { %v2029_v47 = vadd.f32 %v7925_v48, %v2028_v45  ;;  %v2605_v49 = vadd.f32 %v7925_v48, %v2604_v46  ;;  %v2792_v54 = vmax.f32 %v2026_v39, 0.0  ;;  %v2936_v55 = vmax.f32 %v2602_v40, 0.0 }
 0x1e2   :  { %v2795_v52 = vmax.f32 %v2037_v43, 0.0  ;;  %v2939_v53 = vmax.f32 %v2613_v44, 0.0 }
 0x1e3   :  { %v2793_v56 = vmax.f32 %v2029_v47, 0.0  ;;  %v2937_v57 = vmax.f32 %v2605_v49, 0.0 }
 0x1e4   :  { %v5591_v58 = vpack.c.bf16 %v2795_v52, %v2794_v50  ;;  %v5951_v59 = vpack.c.bf16 %v2939_v53, %v2938_v51 }
 0x1e5   :  { %v5586_v60 = vpack.c.bf16 %v2793_v56, %v2792_v54  ;;  %v5946_v61 = vpack.c.bf16 %v2937_v57, %v2936_v55  ;;  %v6410_v62 = vpop.f32.mrb[132].mxu0  ;;  %v6554_v63 = vpop.f32.mrb[132].mxu1 }
 0x1e6   :  { %6047 = vst [vmem:[%s8056_s3 + $0x208] sm:$0xff] %v5591_v58   ;;  %6119 = vst [vmem:[%s8056_s3 + $0x448] sm:$0xff] %v5951_v59   ;;  %v2050_v0 = vadd.f32 %v7925_v48, %v6410_v62  ;;  %v2626_v1 = vadd.f32 %v7925_v48, %v6554_v63  ;;  %v2041_v2 = vpop.f32.mrb[133].mxu0  ;;  %v2617_v3 = vpop.f32.mrb[133].mxu1 }
 0x1e7   :  { %6046 = vst [vmem:[%s8056_s3 + $0x200] sm:$0xff] %v5586_v60   ;;  %6118 = vst [vmem:[%s8056_s3 + $0x440] sm:$0xff] %v5946_v61   ;;  %v2042_v4 = vadd.f32 %v7925_v48, %v2041_v2  ;;  %v2618_v5 = vadd.f32 %v7925_v48, %v2617_v3  ;;  %v6411_v6 = vpop.f32.mrb[134].mxu0  ;;  %v6555_v7 = vpop.f32.mrb[134].mxu1 }
 0x1e8   :  { %v2053_v8 = vadd.f32 %v7925_v48, %v6411_v6  ;;  %v2629_v9 = vadd.f32 %v7925_v48, %v6555_v7  ;;  %v2044_v10 = vpop.f32.mrb[135].mxu0  ;;  %v2620_v11 = vpop.f32.mrb[135].mxu1  ;;  %v2798_v14 = vmax.f32 %v2050_v0, 0.0  ;;  %v2942_v15 = vmax.f32 %v2626_v1, 0.0 }
 0x1e9   :  { %v2045_v12 = vadd.f32 %v7925_v48, %v2044_v10  ;;  %v2621_v13 = vadd.f32 %v7925_v48, %v2620_v11  ;;  %v2796_v18 = vmax.f32 %v2042_v4, 0.0  ;;  %v2940_v19 = vmax.f32 %v2618_v5, 0.0 }
 0x1ea   :  { %v2799_v16 = vmax.f32 %v2053_v8, 0.0  ;;  %v2943_v17 = vmax.f32 %v2629_v9, 0.0 }
 0x1eb   :  { %v2797_v20 = vmax.f32 %v2045_v12, 0.0  ;;  %v2941_v21 = vmax.f32 %v2621_v13, 0.0 }
 0x1ec   :  { %v5601_v22 = vpack.c.bf16 %v2799_v16, %v2798_v14  ;;  %v5961_v23 = vpack.c.bf16 %v2943_v17, %v2942_v15 }
 0x1ed   :  { %v5596_v24 = vpack.c.bf16 %v2797_v20, %v2796_v18  ;;  %v5956_v25 = vpack.c.bf16 %v2941_v21, %v2940_v19  ;;  %v6414_v26 = vpop.f32.mrb[136].mxu0  ;;  %v6558_v27 = vpop.f32.mrb[136].mxu1 }
 0x1ee   :  { %6049 = vst [vmem:[%s8056_s3 + $0x218] sm:$0xff] %v5601_v22   ;;  %6121 = vst [vmem:[%s8056_s3 + $0x458] sm:$0xff] %v5961_v23   ;;  %v2066_v28 = vadd.f32 %v7925_v48, %v6414_v26  ;;  %v2642_v29 = vadd.f32 %v7925_v48, %v6558_v27  ;;  %v2057_v30 = vpop.f32.mrb[137].mxu0  ;;  %v2633_v31 = vpop.f32.mrb[137].mxu1 }
 0x1ef   :  { %6048 = vst [vmem:[%s8056_s3 + $0x210] sm:$0xff] %v5596_v24   ;;  %6120 = vst [vmem:[%s8056_s3 + $0x450] sm:$0xff] %v5956_v25   ;;  %v2058_v32 = vadd.f32 %v7925_v48, %v2057_v30  ;;  %v2634_v33 = vadd.f32 %v7925_v48, %v2633_v31  ;;  %v6415_v34 = vpop.f32.mrb[138].mxu0  ;;  %v6559_v35 = vpop.f32.mrb[138].mxu1 }
 0x1f0   :  { %v2069_v36 = vadd.f32 %v7925_v48, %v6415_v34  ;;  %v2645_v37 = vadd.f32 %v7925_v48, %v6559_v35  ;;  %v2060_v38 = vpop.f32.mrb[139].mxu0  ;;  %v2636_v39 = vpop.f32.mrb[139].mxu1  ;;  %v2802_v42 = vmax.f32 %v2066_v28, 0.0  ;;  %v2946_v43 = vmax.f32 %v2642_v29, 0.0 }
 0x1f1   :  { %v2061_v40 = vadd.f32 %v7925_v48, %v2060_v38  ;;  %v2637_v41 = vadd.f32 %v7925_v48, %v2636_v39  ;;  %v2800_v46 = vmax.f32 %v2058_v32, 0.0  ;;  %v2944_v47 = vmax.f32 %v2634_v33, 0.0 }
 0x1f2   :  { %v2803_v44 = vmax.f32 %v2069_v36, 0.0  ;;  %v2947_v45 = vmax.f32 %v2645_v37, 0.0 }
 0x1f3   :  { %v2801_v49 = vmax.f32 %v2061_v40, 0.0  ;;  %v2945_v50 = vmax.f32 %v2637_v41, 0.0 }
 0x1f4   :  { %v5611_v51 = vpack.c.bf16 %v2803_v44, %v2802_v42  ;;  %v5971_v52 = vpack.c.bf16 %v2947_v45, %v2946_v43 }
 0x1f5   :  { %v5606_v53 = vpack.c.bf16 %v2801_v49, %v2800_v46  ;;  %v5966_v54 = vpack.c.bf16 %v2945_v50, %v2944_v47  ;;  %v6418_v55 = vpop.f32.mrb[140].mxu0  ;;  %v6562_v56 = vpop.f32.mrb[140].mxu1 }
 0x1f6   :  { %6051 = vst [vmem:[%s8056_s3 + $0x228] sm:$0xff] %v5611_v51   ;;  %6123 = vst [vmem:[%s8056_s3 + $0x468] sm:$0xff] %v5971_v52   ;;  %v2082_v57 = vadd.f32 %v7925_v48, %v6418_v55  ;;  %v2658_v58 = vadd.f32 %v7925_v48, %v6562_v56  ;;  %v2073_v59 = vpop.f32.mrb[141].mxu0  ;;  %v2649_v60 = vpop.f32.mrb[141].mxu1 }
 0x1f7   :  { %6050 = vst [vmem:[%s8056_s3 + $0x220] sm:$0xff] %v5606_v53   ;;  %6122 = vst [vmem:[%s8056_s3 + $0x460] sm:$0xff] %v5966_v54   ;;  %v2074_v61 = vadd.f32 %v7925_v48, %v2073_v59  ;;  %v2650_v62 = vadd.f32 %v7925_v48, %v2649_v60  ;;  %v6419_v63 = vpop.f32.mrb[142].mxu0  ;;  %v6563_v0 = vpop.f32.mrb[142].mxu1 }
 0x1f8   :  { %v2085_v1 = vadd.f32 %v7925_v48, %v6419_v63  ;;  %v2661_v2 = vadd.f32 %v7925_v48, %v6563_v0  ;;  %v2076_v3 = vpop.f32.mrb[143].mxu0  ;;  %v2652_v4 = vpop.f32.mrb[143].mxu1  ;;  %v2806_v7 = vmax.f32 %v2082_v57, 0.0  ;;  %v2950_v8 = vmax.f32 %v2658_v58, 0.0 }
 0x1f9   :  { %v2077_v5 = vadd.f32 %v7925_v48, %v2076_v3  ;;  %v2653_v6 = vadd.f32 %v7925_v48, %v2652_v4  ;;  %v2804_v11 = vmax.f32 %v2074_v61, 0.0  ;;  %v2948_v12 = vmax.f32 %v2650_v62, 0.0 }
 0x1fa   :  { %v2807_v9 = vmax.f32 %v2085_v1, 0.0  ;;  %v2951_v10 = vmax.f32 %v2661_v2, 0.0 }
 0x1fb   :  { %v2805_v13 = vmax.f32 %v2077_v5, 0.0  ;;  %v2949_v14 = vmax.f32 %v2653_v6, 0.0 }
 0x1fc   :  { %v5621_v15 = vpack.c.bf16 %v2807_v9, %v2806_v7  ;;  %v5981_v16 = vpack.c.bf16 %v2951_v10, %v2950_v8 }
 0x1fd   :  { %v5616_v17 = vpack.c.bf16 %v2805_v13, %v2804_v11  ;;  %v5976_v18 = vpack.c.bf16 %v2949_v14, %v2948_v12 }
 0x1fe   :  { %6053 = vst [vmem:[%s8056_s3 + $0x238] sm:$0xff] %v5621_v15   ;;  %6125 = vst [vmem:[%s8056_s3 + $0x478] sm:$0xff] %v5981_v16  }
 0x1ff   :  { %6052 = vst [vmem:[%s8056_s3 + $0x230] sm:$0xff] %v5616_v17   ;;  %6124 = vst [vmem:[%s8056_s3 + $0x470] sm:$0xff] %v5976_v18  }

// kernel: _lambda_.3
= control target key start
LH: loop header
LB: loop body
LE: loop exit
PB: predicated region body
PF: predicated region fallthrough
CT: control target
= control target key end

     0   :  { %s12197_s0 = inlined_call_operand.vmem [shape: bf16[4,128,512], index: 0, kind: input, shape index: {}]   ;;  %s12198_s1 = inlined_call_operand.vmem [shape: bf16[512,128], index: 1, kind: input, shape index: {}]   ;;  %s12199_s2 = inlined_call_operand.vmem [shape: f32[1,128], index: 2, kind: input, shape index: {}]   ;;  %s12200_s3 = inlined_call_operand.vmem [shape: bf16[16,128,512], index: 3, kind: input, shape index: {}]   ;;  %s12201_s4 = inlined_call_operand.vmem [shape: f32[1,512], index: 4, kind: input, shape index: {}]   ;;  %s12202_s5 = inlined_call_operand.vmem [shape: f32[1,512], index: 5, kind: input, shape index: {}]   ;;  %s12203_s6 = inlined_call_operand.<no memory space> [shape: f32[1,1], index: 6, kind: input, shape index: {}]   ;;  %s12204_s7 = inlined_call_operand.vmem [shape: f32[1,512], index: 7, kind: input, shape index: {}]   ;;  %s12205_s9 = inlined_call_operand.hbm [shape: f32[1,1], index: 9, kind: output, shape index: {}]   ;;  %s12206_s8 = inlined_call_operand.<no memory space> [shape: f32[1,1], index: 8, kind: input, shape index: {}]  }
   0x1   :  { %v14_v0 = vstv %s12203_s6  ;;  %v16_v1 = vstv %s12206_s8 }
   0x2   :  { %15 = vst [vmem:[#allocation2] sm:$0x1] %v14_v0  ;;  %17 = vst [vmem:[#allocation3] sm:$0x1] %v16_v1 }
   0x3   :  { %v9504_v2 = vld [vmem:[%s12198_s1 + $0x40] sm:$0xff]   ;;  %v9527_v6 = vld [vmem:[%s12198_s1 + $0x48] sm:$0xff]   ;;  %v9551_v10 = vld [vmem:[%s12198_s1 + $0x50] sm:$0xff]  }
   0x4   :  { %v9509_v3 = vld [vmem:[%s12198_s1 + $0xc0] sm:$0xff]   ;;  %7877 = vmatprep.subr.bf16.mxu0 %v9504_v2  ;;  %v9533_v7 = vld [vmem:[%s12198_s1 + $0xc8] sm:$0xff]   ;;  %v9557_v11 = vld [vmem:[%s12198_s1 + $0xd0] sm:$0xff]  }
   0x5   :  { %v9515_v4 = vld [vmem:[%s12198_s1] sm:$0xff]   ;;  %7941 = vmatprep.subr.bf16.mxu1 %v9509_v3  ;;  %v9539_v8 = vld [vmem:[%s12198_s1 + $0x8] sm:$0xff]   ;;  %v9563_v12 = vld [vmem:[%s12198_s1 + $0x10] sm:$0xff]  }
   0x6   :  { %v9521_v5 = vld [vmem:[%s12198_s1 + $0x80] sm:$0xff]   ;;  %7878 = vmatpush3.bf16.msra.mxu0 %v9515_v4  ;;  %v9545_v9 = vld [vmem:[%s12198_s1 + $0x88] sm:$0xff]   ;;  %v9569_v13 = vld [vmem:[%s12198_s1 + $0x90] sm:$0xff]  }
   0x7   :  { %7942 = vmatpush3.bf16.msra.mxu1 %v9521_v5  ;;  %7879 = vmatprep.subr.bf16.mxu0 %v9527_v6  ;;  %v9575_v14 = vld [vmem:[%s12198_s1 + $0x58] sm:$0xff]   ;;  %v9599_v18 = vld [vmem:[%s12198_s1 + $0x60] sm:$0xff]   ;;  %v9623_v22 = vld [vmem:[%s12198_s1 + $0x68] sm:$0xff]  }
   0x8   :  { %7943 = vmatprep.subr.bf16.mxu1 %v9533_v7  ;;  %v9581_v15 = vld [vmem:[%s12198_s1 + $0xd8] sm:$0xff]   ;;  %v9605_v19 = vld [vmem:[%s12198_s1 + $0xe0] sm:$0xff]   ;;  %v9629_v23 = vld [vmem:[%s12198_s1 + $0xe8] sm:$0xff]  }
   0x9   :  { %v9587_v16 = vld [vmem:[%s12198_s1 + $0x18] sm:$0xff]   ;;  %v9611_v20 = vld [vmem:[%s12198_s1 + $0x20] sm:$0xff]   ;;  %v9635_v24 = vld [vmem:[%s12198_s1 + $0x28] sm:$0xff]  }
   0xa   :  { %7880 = vmatpush3.bf16.msra.mxu0 %v9539_v8  ;;  %v9593_v17 = vld [vmem:[%s12198_s1 + $0x98] sm:$0xff]   ;;  %v9617_v21 = vld [vmem:[%s12198_s1 + $0xa0] sm:$0xff]   ;;  %v9641_v25 = vld [vmem:[%s12198_s1 + $0xa8] sm:$0xff]  }
   0xb   :  { %7944 = vmatpush3.bf16.msra.mxu1 %v9545_v9  ;;  %7881 = vmatprep.subr.bf16.mxu0 %v9551_v10  ;;  %v9647_v26 = vld [vmem:[%s12198_s1 + $0x70] sm:$0xff]   ;;  %v9671_v30 = vld [vmem:[%s12198_s1 + $0x78] sm:$0xff]  }
   0xc   :  { %7945 = vmatprep.subr.bf16.mxu1 %v9557_v11  ;;  %v9653_v27 = vld [vmem:[%s12198_s1 + $0xf0] sm:$0xff]   ;;  %v9677_v31 = vld [vmem:[%s12198_s1 + $0xf8] sm:$0xff]  }
   0xd   :  { %v9659_v28 = vld [vmem:[%s12198_s1 + $0x30] sm:$0xff]   ;;  %v9683_v32 = vld [vmem:[%s12198_s1 + $0x38] sm:$0xff]  }
   0xe   :  { %7882 = vmatpush3.bf16.msra.mxu0 %v9563_v12  ;;  %v9665_v29 = vld [vmem:[%s12198_s1 + $0xb0] sm:$0xff]   ;;  %v9689_v33 = vld [vmem:[%s12198_s1 + $0xb8] sm:$0xff]  }
   0xf   :  { %7946 = vmatpush3.bf16.msra.mxu1 %v9569_v13  ;;  %7883 = vmatprep.subr.bf16.mxu0 %v9575_v14  ;;  %v8424_v34 = vld [vmem:[%s12197_s0] ss:$16 sps:$4 sm:$0xff]   ;;  %v8426_v35 = vld [vmem:[%s12197_s0 + $0x4] ss:$16 sps:$4 sm:$0xff]   ;;  %v8427_v36 = vld [vmem:[%s12197_s0 + $0x8] ss:$16 sps:$4 sm:$0xff]  }
  0x10   :  { %7947 = vmatprep.subr.bf16.mxu1 %v9581_v15  ;;  %v8429_v37 = vld [vmem:[%s12197_s0 + $0xc] ss:$16 sps:$4 sm:$0xff]   ;;  %525 = vmatprep.mubr.bf16.mxu0 %v8426_v35  ;;  %v8430_v38 = vld [vmem:[%s12197_s0 + $0x24] ss:$16 sps:$4 sm:$0xff]   ;;  %v8434_v40 = vld [vmem:[%s12197_s0 + $0x20] ss:$16 sps:$4 sm:$0xff]  }
  0x11   :  { %622 = vmatprep.mubr.bf16.mxu1 %v8429_v37  ;;  %v8432_v39 = vld [vmem:[%s12197_s0 + $0x2c] ss:$16 sps:$4 sm:$0xff]   ;;  %v8435_v41 = vld [vmem:[%s12197_s0 + $0x28] ss:$16 sps:$4 sm:$0xff]   ;;  %v8436_v42 = vld [vmem:[%s12197_s0 + $0x44] ss:$16 sps:$4 sm:$0xff]  }
  0x12   :  { %7884 = vmatpush3.bf16.msra.mxu0 %v9587_v16  ;;  %v8438_v43 = vld [vmem:[%s12197_s0 + $0x4c] ss:$16 sps:$4 sm:$0xff]   ;;  %v8440_v44 = vld [vmem:[%s12197_s0 + $0x40] ss:$16 sps:$4 sm:$0xff]   ;;  %v8441_v45 = vld [vmem:[%s12197_s0 + $0x48] ss:$16 sps:$4 sm:$0xff]  }
  0x13   :  { %7948 = vmatpush3.bf16.msra.mxu1 %v9593_v17  ;;  %7885 = vmatprep.subr.bf16.mxu0 %v9599_v18  ;;  %v8442_v46 = vld [vmem:[%s12197_s0 + $0x64] ss:$16 sps:$4 sm:$0xff]   ;;  %v8444_v47 = vld [vmem:[%s12197_s0 + $0x6c] ss:$16 sps:$4 sm:$0xff]   ;;  %v8446_v48 = vld [vmem:[%s12197_s0 + $0x60] ss:$16 sps:$4 sm:$0xff]  }
  0x14   :  { %7949 = vmatprep.subr.bf16.mxu1 %v9605_v19  ;;  %v8447_v49 = vld [vmem:[%s12197_s0 + $0x68] ss:$16 sps:$4 sm:$0xff]   ;;  %v8448_v50 = vld [vmem:[%s12197_s0 + $0x84] ss:$16 sps:$4 sm:$0xff]   ;;  %v8450_v51 = vld [vmem:[%s12197_s0 + $0x8c] ss:$16 sps:$4 sm:$0xff]  }
  0x15   :  { %v8452_v52 = vld [vmem:[%s12197_s0 + $0x80] ss:$16 sps:$4 sm:$0xff]   ;;  %v8453_v53 = vld [vmem:[%s12197_s0 + $0x88] ss:$16 sps:$4 sm:$0xff]   ;;  %v8454_v54 = vld [vmem:[%s12197_s0 + $0xa4] ss:$16 sps:$4 sm:$0xff]  }
  0x16   :  { %7886 = vmatpush3.bf16.msra.mxu0 %v9611_v20  ;;  %v8456_v55 = vld [vmem:[%s12197_s0 + $0xac] ss:$16 sps:$4 sm:$0xff]   ;;  %v8458_v56 = vld [vmem:[%s12197_s0 + $0xa0] ss:$16 sps:$4 sm:$0xff]   ;;  %v8459_v57 = vld [vmem:[%s12197_s0 + $0xa8] ss:$16 sps:$4 sm:$0xff]  }
  0x17   :  { %7950 = vmatpush3.bf16.msra.mxu1 %v9617_v21  ;;  %7887 = vmatprep.subr.bf16.mxu0 %v9623_v22  ;;  %v8460_v58 = vld [vmem:[%s12197_s0 + $0xc4] ss:$16 sps:$4 sm:$0xff]   ;;  %v8462_v59 = vld [vmem:[%s12197_s0 + $0xcc] ss:$16 sps:$4 sm:$0xff]   ;;  %v8464_v60 = vld [vmem:[%s12197_s0 + $0xc0] ss:$16 sps:$4 sm:$0xff]  }
  0x18   :  { %7951 = vmatprep.subr.bf16.mxu1 %v9629_v23  ;;  %v8465_v61 = vld [vmem:[%s12197_s0 + $0xc8] ss:$16 sps:$4 sm:$0xff]   ;;  %v8466_v62 = vld [vmem:[%s12197_s0 + $0xe4] ss:$16 sps:$4 sm:$0xff]   ;;  %v8468_v63 = vld [vmem:[%s12197_s0 + $0xec] ss:$16 sps:$4 sm:$0xff]  }
  0x19   :  { %v8470_v0 = vld [vmem:[%s12197_s0 + $0xe0] ss:$16 sps:$4 sm:$0xff]   ;;  %v8471_v1 = vld [vmem:[%s12197_s0 + $0xe8] ss:$16 sps:$4 sm:$0xff]   ;;  %v8477_v35 = vld [vmem:[%s12197_s0 + $0x10c] ss:$16 sps:$4 sm:$0xff]  }
  0x1a   :  { %7888 = vmatpush3.bf16.msra.mxu0 %v9635_v24  ;;  %v8475_v37 = vld [vmem:[%s12197_s0 + $0x108] ss:$16 sps:$4 sm:$0xff]  }
  0x1b   :  { %7952 = vmatpush3.bf16.msra.mxu1 %v9641_v25  ;;  %7889 = vmatprep.subr.bf16.mxu0 %v9647_v26 }
  0x1c   :  { %7953 = vmatprep.subr.bf16.mxu1 %v9653_v27 }
  0x1e   :  { %7890 = vmatpush3.bf16.msra.mxu0 %v9659_v28 }
  0x1f   :  { %7954 = vmatpush3.bf16.msra.mxu1 %v9665_v29  ;;  %7891 = vmatprep.subr.bf16.mxu0 %v9671_v30 }
  0x20   :  { %7955 = vmatprep.subr.bf16.mxu1 %v9677_v31 }
  0x22   :  { %7892 = vmatpush3.bf16.msra.mxu0 %v9683_v32 }
  0x23   :  { %7956 = vmatpush3.bf16.msra.mxu1 %v9689_v33  ;;  %8005 = vmatprep.subr.bf16.mxu0 %v9504_v2 }
  0x24   :  { %8069 = vmatprep.subr.bf16.mxu1 %v9509_v3 }
  0x25   :  { %526 = vmatmul.mubr.bf16.vlgmr.msra.gmra.mrb[0].mxu0 %v8424_v34  ;;  %v8474_v34 = vld [vmem:[%s12197_s0 + $0x104] ss:$16 sps:$4 sm:$0xff]  }
  0x26   :  { %623 = vmatmul.mubr.bf16.vlgmr.msra.gmra.mrb[0].mxu1 %v8427_v36  ;;  %8006 = vmatpush3.bf16.msra.mxu0 %v9515_v4  ;;  %v8472_v36 = vld [vmem:[%s12197_s0 + $0x100] ss:$16 sps:$4 sm:$0xff]  }
  0x27   :  { %8070 = vmatpush3.bf16.msra.mxu1 %v9521_v5  ;;  %533 = vmatprep.mubr.bf16.mxu0 %v8430_v38  ;;  %v8478_v38 = vld [vmem:[%s12197_s0 + $0x124] ss:$16 sps:$4 sm:$0xff]  }
  0x28   :  { %630 = vmatprep.mubr.bf16.mxu1 %v8432_v39  ;;  %8007 = vmatprep.subr.bf16.mxu0 %v9527_v6  ;;  %v8480_v39 = vld [vmem:[%s12197_s0 + $0x12c] ss:$16 sps:$4 sm:$0xff]  }
  0x29   :  { %8071 = vmatprep.subr.bf16.mxu1 %v9533_v7 }
  0x2a   :  { %8008 = vmatpush3.bf16.msra.mxu0 %v9539_v8 }
  0x2b   :  { %8072 = vmatpush3.bf16.msra.mxu1 %v9545_v9  ;;  %8009 = vmatprep.subr.bf16.mxu0 %v9551_v10 }
  0x2c   :  { %8073 = vmatprep.subr.bf16.mxu1 %v9557_v11 }
  0x2d   :  { %534 = vmatmul.mubr.bf16.gmra.mrb[4].mxu0 %v8434_v40  ;;  %v8482_v40 = vld [vmem:[%s12197_s0 + $0x120] ss:$16 sps:$4 sm:$0xff]  }
  0x2e   :  { %631 = vmatmul.mubr.bf16.gmra.mrb[4].mxu1 %v8435_v41  ;;  %541 = vmatprep.mubr.bf16.mxu0 %v8436_v42  ;;  %v8483_v41 = vld [vmem:[%s12197_s0 + $0x128] ss:$16 sps:$4 sm:$0xff]   ;;  %v8484_v42 = vld [vmem:[%s12197_s0 + $0x144] ss:$16 sps:$4 sm:$0xff]  }
  0x2f   :  { %638 = vmatprep.mubr.bf16.mxu1 %v8438_v43  ;;  %8010 = vmatpush3.bf16.msra.mxu0 %v9563_v12  ;;  %v8531_v43 = vld [vmem:[%s12197_s0 + $0x228] ss:$16 sps:$4 sm:$0xff]  }
  0x30   :  { %8074 = vmatpush3.bf16.msra.mxu1 %v9569_v13  ;;  %8011 = vmatprep.subr.bf16.mxu0 %v9575_v14 }
  0x31   :  { %8075 = vmatprep.subr.bf16.mxu1 %v9581_v15 }
  0x33   :  { %8012 = vmatpush3.bf16.msra.mxu0 %v9587_v16 }
  0x34   :  { %8076 = vmatpush3.bf16.msra.mxu1 %v9593_v17  ;;  %8013 = vmatprep.subr.bf16.mxu0 %v9599_v18 }
  0x35   :  { %542 = vmatmul.mubr.bf16.gmra.mrb[8].mxu0 %v8440_v44  ;;  %8077 = vmatprep.subr.bf16.mxu1 %v9605_v19  ;;  %v9390_v44 = vld [vmem:[%s12198_s1 + $0x48] sm:$0xff]  }
  0x36   :  { %639 = vmatmul.mubr.bf16.gmra.mrb[8].mxu1 %v8441_v45  ;;  %549 = vmatprep.mubr.bf16.mxu0 %v8442_v46  ;;  %v8532_v45 = vld [vmem:[%s12197_s0 + $0x244] ss:$16 sps:$4 sm:$0xff]   ;;  %v9391_v46 = vld [vmem:[%s12198_s1 + $0xc8] sm:$0xff]  }
  0x37   :  { %646 = vmatprep.mubr.bf16.mxu1 %v8444_v47  ;;  %8014 = vmatpush3.bf16.msra.mxu0 %v9611_v20  ;;  %v8534_v47 = vld [vmem:[%s12197_s0 + $0x24c] ss:$16 sps:$4 sm:$0xff]  }
  0x38   :  { %8078 = vmatpush3.bf16.msra.mxu1 %v9617_v21  ;;  %8015 = vmatprep.subr.bf16.mxu0 %v9623_v22 }
  0x39   :  { %8079 = vmatprep.subr.bf16.mxu1 %v9629_v23 }
  0x3b   :  { %8016 = vmatpush3.bf16.msra.mxu0 %v9635_v24 }
  0x3c   :  { %8080 = vmatpush3.bf16.msra.mxu1 %v9641_v25  ;;  %8017 = vmatprep.subr.bf16.mxu0 %v9647_v26 }
  0x3d   :  { %550 = vmatmul.mubr.bf16.gmra.mrb[12].mxu0 %v8446_v48  ;;  %8081 = vmatprep.subr.bf16.mxu1 %v9653_v27  ;;  %v9392_v48 = vld [vmem:[%s12198_s1 + $0x8] sm:$0xff]  }
  0x3e   :  { %647 = vmatmul.mubr.bf16.gmra.mrb[12].mxu1 %v8447_v49  ;;  %557 = vmatprep.mubr.bf16.mxu0 %v8448_v50  ;;  %v9393_v49 = vld [vmem:[%s12198_s1 + $0x88] sm:$0xff]   ;;  %v9394_v50 = vld [vmem:[%s12198_s1 + $0x50] sm:$0xff]  }
  0x3f   :  { %654 = vmatprep.mubr.bf16.mxu1 %v8450_v51  ;;  %8018 = vmatpush3.bf16.msra.mxu0 %v9659_v28  ;;  %v9395_v51 = vld [vmem:[%s12198_s1 + $0xd0] sm:$0xff]  }
  0x40   :  { %8082 = vmatpush3.bf16.msra.mxu1 %v9665_v29  ;;  %8019 = vmatprep.subr.bf16.mxu0 %v9671_v30 }
  0x41   :  { %8083 = vmatprep.subr.bf16.mxu1 %v9677_v31 }
  0x43   :  { %8020 = vmatpush3.bf16.msra.mxu0 %v9683_v32 }
  0x44   :  { %8084 = vmatpush3.bf16.msra.mxu1 %v9689_v33  ;;  %8133 = vmatprep.subr.bf16.mxu0 %v9504_v2 }
  0x45   :  { %558 = vmatmul.mubr.bf16.gmra.mrb[16].mxu0 %v8452_v52  ;;  %8197 = vmatprep.subr.bf16.mxu1 %v9509_v3  ;;  %v8536_v52 = vld [vmem:[%s12197_s0 + $0x240] ss:$16 sps:$4 sm:$0xff]  }
  0x46   :  { %655 = vmatmul.mubr.bf16.gmra.mrb[16].mxu1 %v8453_v53  ;;  %565 = vmatprep.mubr.bf16.mxu0 %v8454_v54  ;;  %v9396_v53 = vld [vmem:[%s12198_s1 + $0x10] sm:$0xff]   ;;  %v8537_v54 = vld [vmem:[%s12197_s0 + $0x248] ss:$16 sps:$4 sm:$0xff]  }
  0x47   :  { %662 = vmatprep.mubr.bf16.mxu1 %v8456_v55  ;;  %v9397_v55 = vld [vmem:[%s12198_s1 + $0x90] sm:$0xff]  }
  0x4d   :  { %566 = vmatmul.mubr.bf16.gmra.mrb[20].mxu0 %v8458_v56  ;;  %v8538_v56 = vld [vmem:[%s12197_s0 + $0x264] ss:$16 sps:$4 sm:$0xff]  }
  0x4e   :  { %663 = vmatmul.mubr.bf16.gmra.mrb[20].mxu1 %v8459_v57  ;;  %573 = vmatprep.mubr.bf16.mxu0 %v8460_v58  ;;  %v9398_v57 = vld [vmem:[%s12198_s1 + $0x58] sm:$0xff]  }
  0x4f   :  { %670 = vmatprep.mubr.bf16.mxu1 %v8462_v59  ;;  %v8540_v58 = vld [vmem:[%s12197_s0 + $0x26c] ss:$16 sps:$4 sm:$0xff]  }
  0x50   :  { %v9399_v59 = vld [vmem:[%s12198_s1 + $0xd8] sm:$0xff]  }
  0x55   :  { %574 = vmatmul.mubr.bf16.gmra.mrb[24].mxu0 %v8464_v60  ;;  %v9400_v60 = vld [vmem:[%s12198_s1 + $0x18] sm:$0xff]  }
  0x56   :  { %671 = vmatmul.mubr.bf16.gmra.mrb[24].mxu1 %v8465_v61  ;;  %581 = vmatprep.mubr.bf16.mxu0 %v8466_v62  ;;  %v9401_v61 = vld [vmem:[%s12198_s1 + $0x98] sm:$0xff]   ;;  %v9402_v62 = vld [vmem:[%s12198_s1 + $0x60] sm:$0xff]  }
  0x57   :  { %678 = vmatprep.mubr.bf16.mxu1 %v8468_v63  ;;  %v9403_v63 = vld [vmem:[%s12198_s1 + $0xe0] sm:$0xff]  }
  0x5d   :  { %582 = vmatmul.mubr.bf16.gmra.mrb[28].mxu0 %v8470_v0  ;;  %v8542_v0 = vld [vmem:[%s12197_s0 + $0x260] ss:$16 sps:$4 sm:$0xff]  }
  0x5e   :  { %679 = vmatmul.mubr.bf16.gmra.mrb[28].mxu1 %v8471_v1  ;;  %928 = vmatprep.mubr.bf16.mxu0 %v8474_v34  ;;  %v9404_v1 = vld [vmem:[%s12198_s1 + $0x20] sm:$0xff]   ;;  %v8543_v34 = vld [vmem:[%s12197_s0 + $0x268] ss:$16 sps:$4 sm:$0xff]  }
  0x5f   :  { %1025 = vmatprep.mubr.bf16.mxu1 %v8477_v35  ;;  %v8544_v35 = vld [vmem:[%s12197_s0 + $0x284] ss:$16 sps:$4 sm:$0xff]  }
  0x65   :  { %929 = vmatmul.mubr.bf16.vlgmr.msra.gmra.mrb[32].mxu0 %v8472_v36  ;;  %v9405_v36 = vld [vmem:[%s12198_s1 + $0xa0] sm:$0xff]  }
  0x66   :  { %1026 = vmatmul.mubr.bf16.vlgmr.msra.gmra.mrb[32].mxu1 %v8475_v37  ;;  %8134 = vmatpush3.bf16.msra.mxu0 %v9515_v4  ;;  %v8486_v4 = vld [vmem:[%s12197_s0 + $0x14c] ss:$16 sps:$4 sm:$0xff]  }
  0x67   :  { %8198 = vmatpush3.bf16.msra.mxu1 %v9521_v5  ;;  %936 = vmatprep.mubr.bf16.mxu0 %v8478_v38  ;;  %v8488_v5 = vld [vmem:[%s12197_s0 + $0x140] ss:$16 sps:$4 sm:$0xff]   ;;  %v9406_v37 = vld [vmem:[%s12198_s1 + $0x68] sm:$0xff]  }
  0x68   :  { %1033 = vmatprep.mubr.bf16.mxu1 %v8480_v39  ;;  %8135 = vmatprep.subr.bf16.mxu0 %v9527_v6  ;;  %v8489_v6 = vld [vmem:[%s12197_s0 + $0x148] ss:$16 sps:$4 sm:$0xff]   ;;  %v8546_v38 = vld [vmem:[%s12197_s0 + $0x28c] ss:$16 sps:$4 sm:$0xff]  }
  0x69   :  { %8199 = vmatprep.subr.bf16.mxu1 %v9533_v7  ;;  %v8490_v7 = vld [vmem:[%s12197_s0 + $0x164] ss:$16 sps:$4 sm:$0xff]   ;;  %v9407_v39 = vld [vmem:[%s12198_s1 + $0xe8] sm:$0xff]  }
  0x6a   :  { %8136 = vmatpush3.bf16.msra.mxu0 %v9539_v8  ;;  %v8492_v8 = vld [vmem:[%s12197_s0 + $0x16c] ss:$16 sps:$4 sm:$0xff]  }
  0x6b   :  { %8200 = vmatpush3.bf16.msra.mxu1 %v9545_v9  ;;  %8137 = vmatprep.subr.bf16.mxu0 %v9551_v10  ;;  %v8494_v9 = vld [vmem:[%s12197_s0 + $0x160] ss:$16 sps:$4 sm:$0xff]   ;;  %v8495_v10 = vld [vmem:[%s12197_s0 + $0x168] ss:$16 sps:$4 sm:$0xff]  }
  0x6c   :  { %8201 = vmatprep.subr.bf16.mxu1 %v9557_v11  ;;  %v8496_v11 = vld [vmem:[%s12197_s0 + $0x184] ss:$16 sps:$4 sm:$0xff]  }
  0x6d   :  { %937 = vmatmul.mubr.bf16.gmra.mrb[36].mxu0 %v8482_v40  ;;  %v9408_v40 = vld [vmem:[%s12198_s1 + $0x28] sm:$0xff]  }
  0x6e   :  { %1034 = vmatmul.mubr.bf16.gmra.mrb[36].mxu1 %v8483_v41  ;;  %944 = vmatprep.mubr.bf16.mxu0 %v8484_v42  ;;  %v9409_v41 = vld [vmem:[%s12198_s1 + $0xa8] sm:$0xff]   ;;  %v9410_v42 = vld [vmem:[%s12198_s1 + $0x70] sm:$0xff]  }
  0x6f   :  { %1041 = vmatprep.mubr.bf16.mxu1 %v8486_v4  ;;  %8138 = vmatpush3.bf16.msra.mxu0 %v9563_v12  ;;  %v8498_v12 = vld [vmem:[%s12197_s0 + $0x18c] ss:$16 sps:$4 sm:$0xff]   ;;  %v9411_v4 = vld [vmem:[%s12198_s1 + $0xf0] sm:$0xff]  }
  0x70   :  { %8202 = vmatpush3.bf16.msra.mxu1 %v9569_v13  ;;  %8139 = vmatprep.subr.bf16.mxu0 %v9575_v14  ;;  %v8500_v13 = vld [vmem:[%s12197_s0 + $0x180] ss:$16 sps:$4 sm:$0xff]   ;;  %v8501_v14 = vld [vmem:[%s12197_s0 + $0x188] ss:$16 sps:$4 sm:$0xff]  }
  0x71   :  { %8203 = vmatprep.subr.bf16.mxu1 %v9581_v15  ;;  %v8502_v15 = vld [vmem:[%s12197_s0 + $0x1a4] ss:$16 sps:$4 sm:$0xff]  }
  0x73   :  { %8140 = vmatpush3.bf16.msra.mxu0 %v9587_v16  ;;  %v8504_v16 = vld [vmem:[%s12197_s0 + $0x1ac] ss:$16 sps:$4 sm:$0xff]  }
  0x74   :  { %8204 = vmatpush3.bf16.msra.mxu1 %v9593_v17  ;;  %8141 = vmatprep.subr.bf16.mxu0 %v9599_v18  ;;  %v8506_v17 = vld [vmem:[%s12197_s0 + $0x1a0] ss:$16 sps:$4 sm:$0xff]   ;;  %v8507_v18 = vld [vmem:[%s12197_s0 + $0x1a8] ss:$16 sps:$4 sm:$0xff]  }
  0x75   :  { %945 = vmatmul.mubr.bf16.gmra.mrb[40].mxu0 %v8488_v5  ;;  %8205 = vmatprep.subr.bf16.mxu1 %v9605_v19  ;;  %v8508_v19 = vld [vmem:[%s12197_s0 + $0x1c4] ss:$16 sps:$4 sm:$0xff]   ;;  %v8548_v5 = vld [vmem:[%s12197_s0 + $0x280] ss:$16 sps:$4 sm:$0xff]  }
  0x76   :  { %1042 = vmatmul.mubr.bf16.gmra.mrb[40].mxu1 %v8489_v6  ;;  %952 = vmatprep.mubr.bf16.mxu0 %v8490_v7  ;;  %v9412_v6 = vld [vmem:[%s12198_s1 + $0x30] sm:$0xff]   ;;  %v8549_v7 = vld [vmem:[%s12197_s0 + $0x288] ss:$16 sps:$4 sm:$0xff]  }
  0x77   :  { %1049 = vmatprep.mubr.bf16.mxu1 %v8492_v8  ;;  %8142 = vmatpush3.bf16.msra.mxu0 %v9611_v20  ;;  %v8513_v20 = vld [vmem:[%s12197_s0 + $0x1c8] ss:$16 sps:$4 sm:$0xff]   ;;  %v8550_v8 = vld [vmem:[%s12197_s0 + $0x2a4] ss:$16 sps:$4 sm:$0xff]  }
  0x78   :  { %8206 = vmatpush3.bf16.msra.mxu1 %v9617_v21  ;;  %8143 = vmatprep.subr.bf16.mxu0 %v9623_v22  ;;  %v8514_v21 = vld [vmem:[%s12197_s0 + $0x1e4] ss:$16 sps:$4 sm:$0xff]   ;;  %v8516_v22 = vld [vmem:[%s12197_s0 + $0x1ec] ss:$16 sps:$4 sm:$0xff]  }
  0x79   :  { %8207 = vmatprep.subr.bf16.mxu1 %v9629_v23  ;;  %v8518_v23 = vld [vmem:[%s12197_s0 + $0x1e0] ss:$16 sps:$4 sm:$0xff]  }
  0x7b   :  { %8144 = vmatpush3.bf16.msra.mxu0 %v9635_v24  ;;  %v8519_v24 = vld [vmem:[%s12197_s0 + $0x1e8] ss:$16 sps:$4 sm:$0xff]  }
  0x7c   :  { %8208 = vmatpush3.bf16.msra.mxu1 %v9641_v25  ;;  %8145 = vmatprep.subr.bf16.mxu0 %v9647_v26  ;;  %v8522_v25 = vld [vmem:[%s12197_s0 + $0x204] ss:$16 sps:$4 sm:$0xff]   ;;  %v8525_v26 = vld [vmem:[%s12197_s0 + $0x20c] ss:$16 sps:$4 sm:$0xff]  }
  0x7d   :  { %953 = vmatmul.mubr.bf16.gmra.mrb[44].mxu0 %v8494_v9  ;;  %8209 = vmatprep.subr.bf16.mxu1 %v9653_v27  ;;  %v8520_v27 = vld [vmem:[%s12197_s0 + $0x200] ss:$16 sps:$4 sm:$0xff]  }
  0x7e   :  { %1050 = vmatmul.mubr.bf16.gmra.mrb[44].mxu1 %v8495_v10  ;;  %960 = vmatprep.mubr.bf16.mxu0 %v8496_v11  ;;  %v9413_v9 = vld [vmem:[%s12198_s1 + $0xb0] sm:$0xff]   ;;  %v9414_v10 = vld [vmem:[%s12198_s1 + $0x78] sm:$0xff]  }
  0x7f   :  { %1057 = vmatprep.mubr.bf16.mxu1 %v8498_v12  ;;  %8146 = vmatpush3.bf16.msra.mxu0 %v9659_v28  ;;  %v8523_v28 = vld [vmem:[%s12197_s0 + $0x208] ss:$16 sps:$4 sm:$0xff]   ;;  %v8552_v11 = vld [vmem:[%s12197_s0 + $0x2ac] ss:$16 sps:$4 sm:$0xff]  }
  0x80   :  { %8210 = vmatpush3.bf16.msra.mxu1 %v9665_v29  ;;  %8147 = vmatprep.subr.bf16.mxu0 %v9671_v30  ;;  %v8526_v29 = vld [vmem:[%s12197_s0 + $0x224] ss:$16 sps:$4 sm:$0xff]   ;;  %v8528_v30 = vld [vmem:[%s12197_s0 + $0x22c] ss:$16 sps:$4 sm:$0xff]  }
  0x81   :  { %8211 = vmatprep.subr.bf16.mxu1 %v9677_v31  ;;  %v9388_v31 = vld [vmem:[%s12198_s1] sm:$0xff]   ;;  %v9415_v12 = vld [vmem:[%s12198_s1 + $0xf8] sm:$0xff]  }
  0x83   :  { %8148 = vmatpush3.bf16.msra.mxu0 %v9683_v32  ;;  %v9389_v32 = vld [vmem:[%s12198_s1 + $0x80] sm:$0xff]  }
  0x84   :  { %8212 = vmatpush3.bf16.msra.mxu1 %v9689_v33  ;;  %8261 = vmatprep.subr.bf16.mxu0 %v9504_v2  ;;  %v8510_v2 = vld [vmem:[%s12197_s0 + $0x1cc] ss:$16 sps:$4 sm:$0xff]   ;;  %v8530_v33 = vld [vmem:[%s12197_s0 + $0x220] ss:$16 sps:$4 sm:$0xff]  }
  0x85   :  { %961 = vmatmul.mubr.bf16.gmra.mrb[48].mxu0 %v8500_v13  ;;  %8325 = vmatprep.subr.bf16.mxu1 %v9509_v3  ;;  %v8512_v3 = vld [vmem:[%s12197_s0 + $0x1c0] ss:$16 sps:$4 sm:$0xff]   ;;  %v9416_v13 = vld [vmem:[%s12198_s1 + $0x38] sm:$0xff]  }
  0x86   :  { %1058 = vmatmul.mubr.bf16.gmra.mrb[48].mxu1 %v8501_v14  ;;  %968 = vmatprep.mubr.bf16.mxu0 %v8502_v15  ;;  %v9417_v14 = vld [vmem:[%s12198_s1 + $0xb8] sm:$0xff]   ;;  %v8554_v15 = vld [vmem:[%s12197_s0 + $0x2a0] ss:$16 sps:$4 sm:$0xff]  }
  0x87   :  { %1065 = vmatprep.mubr.bf16.mxu1 %v8504_v16  ;;  %v8555_v16 = vld [vmem:[%s12197_s0 + $0x2a8] ss:$16 sps:$4 sm:$0xff]  }
  0x8d   :  { %969 = vmatmul.mubr.bf16.gmra.mrb[52].mxu0 %v8506_v17  ;;  %v8556_v17 = vld [vmem:[%s12197_s0 + $0x2c4] ss:$16 sps:$4 sm:$0xff]  }
  0x8e   :  { %1066 = vmatmul.mubr.bf16.gmra.mrb[52].mxu1 %v8507_v18  ;;  %976 = vmatprep.mubr.bf16.mxu0 %v8508_v19  ;;  %v8558_v18 = vld [vmem:[%s12197_s0 + $0x2cc] ss:$16 sps:$4 sm:$0xff]   ;;  %v8560_v19 = vld [vmem:[%s12197_s0 + $0x2c0] ss:$16 sps:$4 sm:$0xff]  }
  0x8f   :  { %1073 = vmatprep.mubr.bf16.mxu1 %v8510_v2  ;;  %v8561_v2 = vld [vmem:[%s12197_s0 + $0x2c8] ss:$16 sps:$4 sm:$0xff]  }
  0x95   :  { %977 = vmatmul.mubr.bf16.gmra.mrb[56].mxu0 %v8512_v3  ;;  %v8562_v3 = vld [vmem:[%s12197_s0 + $0x2e4] ss:$16 sps:$4 sm:$0xff]  }
  0x96   :  { %1074 = vmatmul.mubr.bf16.gmra.mrb[56].mxu1 %v8513_v20  ;;  %984 = vmatprep.mubr.bf16.mxu0 %v8514_v21  ;;  %v8564_v20 = vld [vmem:[%s12197_s0 + $0x2ec] ss:$16 sps:$4 sm:$0xff]   ;;  %v8566_v21 = vld [vmem:[%s12197_s0 + $0x2e0] ss:$16 sps:$4 sm:$0xff]  }
  0x97   :  { %1081 = vmatprep.mubr.bf16.mxu1 %v8516_v22  ;;  %v8567_v22 = vld [vmem:[%s12197_s0 + $0x2e8] ss:$16 sps:$4 sm:$0xff]  }
  0x9d   :  { %985 = vmatmul.mubr.bf16.gmra.mrb[60].mxu0 %v8518_v23  ;;  %v8570_v23 = vld [vmem:[%s12197_s0 + $0x304] ss:$16 sps:$4 sm:$0xff]  }
  0x9e   :  { %1082 = vmatmul.mubr.bf16.gmra.mrb[60].mxu1 %v8519_v24  ;;  %1347 = vmatprep.mubr.bf16.mxu0 %v8522_v25  ;;  %v8573_v24 = vld [vmem:[%s12197_s0 + $0x30c] ss:$16 sps:$4 sm:$0xff]   ;;  %v8568_v25 = vld [vmem:[%s12197_s0 + $0x300] ss:$16 sps:$4 sm:$0xff]  }
  0x9f   :  { %1444 = vmatprep.mubr.bf16.mxu1 %v8525_v26  ;;  %v8571_v26 = vld [vmem:[%s12197_s0 + $0x308] ss:$16 sps:$4 sm:$0xff]  }
  0xa5   :  { %1348 = vmatmul.mubr.bf16.vlgmr.msra.gmra.mrb[64].mxu0 %v8520_v27  ;;  %v8574_v27 = vld [vmem:[%s12197_s0 + $0x324] ss:$16 sps:$4 sm:$0xff]  }
  0xa6   :  { %1445 = vmatmul.mubr.bf16.vlgmr.msra.gmra.mrb[64].mxu1 %v8523_v28  ;;  %8262 = vmatpush3.bf16.msra.mxu0 %v9388_v31  ;;  %v8577_v28 = vld [vmem:[%s12197_s0 + $0x32c] ss:$16 sps:$4 sm:$0xff]   ;;  %v8580_v31 = vld [vmem:[%s12197_s0 + $0x344] ss:$16 sps:$4 sm:$0xff]  }
  0xa7   :  { %8326 = vmatpush3.bf16.msra.mxu1 %v9389_v32  ;;  %1355 = vmatprep.mubr.bf16.mxu0 %v8526_v29  ;;  %v8576_v29 = vld [vmem:[%s12197_s0 + $0x320] ss:$16 sps:$4 sm:$0xff]   ;;  %v8583_v32 = vld [vmem:[%s12197_s0 + $0x34c] ss:$16 sps:$4 sm:$0xff]  }
  0xa8   :  { %1452 = vmatprep.mubr.bf16.mxu1 %v8528_v30  ;;  %8263 = vmatprep.subr.bf16.mxu0 %v9390_v44  ;;  %v8579_v30 = vld [vmem:[%s12197_s0 + $0x328] ss:$16 sps:$4 sm:$0xff]   ;;  %v8586_v44 = vld [vmem:[%s12197_s0 + $0x364] ss:$16 sps:$4 sm:$0xff]  }
  0xa9   :  { %8327 = vmatprep.subr.bf16.mxu1 %v9391_v46  ;;  %v10182_v46 = vld [vmem:[%s12199_s2] ss:$0 sm:$0xff] }
  0xaa   :  { %8264 = vmatpush3.bf16.msra.mxu0 %v9392_v48 }
  0xab   :  { %8328 = vmatpush3.bf16.msra.mxu1 %v9393_v49  ;;  %8265 = vmatprep.subr.bf16.mxu0 %v9394_v50  ;;  %v8591_v49 = vld [vmem:[%s12197_s0 + $0x368] ss:$16 sps:$4 sm:$0xff]   ;;  %v8592_v50 = vld [vmem:[%s12197_s0 + $0x384] ss:$16 sps:$4 sm:$0xff]  }
  0xac   :  { %8329 = vmatprep.subr.bf16.mxu1 %v9395_v51 }
  0xad   :  { %1356 = vmatmul.mubr.bf16.gmra.mrb[68].mxu0 %v8530_v33  ;;  %v8582_v33 = vld [vmem:[%s12197_s0 + $0x340] ss:$16 sps:$4 sm:$0xff]  }
  0xae   :  { %1453 = vmatmul.mubr.bf16.gmra.mrb[68].mxu1 %v8531_v43  ;;  %1363 = vmatprep.mubr.bf16.mxu0 %v8532_v45  ;;  %v8585_v43 = vld [vmem:[%s12197_s0 + $0x348] ss:$16 sps:$4 sm:$0xff]   ;;  %v8589_v45 = vld [vmem:[%s12197_s0 + $0x36c] ss:$16 sps:$4 sm:$0xff]  }
  0xaf   :  { %1460 = vmatprep.mubr.bf16.mxu1 %v8534_v47  ;;  %8266 = vmatpush3.bf16.msra.mxu0 %v9396_v53  ;;  %v8588_v47 = vld [vmem:[%s12197_s0 + $0x360] ss:$16 sps:$4 sm:$0xff]   ;;  %v8595_v53 = vld [vmem:[%s12197_s0 + $0x38c] ss:$16 sps:$4 sm:$0xff]  }
  0xb0   :  { %8330 = vmatpush3.bf16.msra.mxu1 %v9397_v55  ;;  %8267 = vmatprep.subr.bf16.mxu0 %v9398_v57 }
  0xb1   :  { %8331 = vmatprep.subr.bf16.mxu1 %v9399_v59 }
  0xb3   :  { %8268 = vmatpush3.bf16.msra.mxu0 %v9400_v60 }
  0xb4   :  { %8332 = vmatpush3.bf16.msra.mxu1 %v9401_v61  ;;  %8269 = vmatprep.subr.bf16.mxu0 %v9402_v62 }
  0xb5   :  { %1364 = vmatmul.mubr.bf16.gmra.mrb[72].mxu0 %v8536_v52  ;;  %8333 = vmatprep.subr.bf16.mxu1 %v9403_v63 }
  0xb6   :  { %1461 = vmatmul.mubr.bf16.gmra.mrb[72].mxu1 %v8537_v54  ;;  %1371 = vmatprep.mubr.bf16.mxu0 %v8538_v56 }
  0xb7   :  { %1468 = vmatprep.mubr.bf16.mxu1 %v8540_v58  ;;  %8270 = vmatpush3.bf16.msra.mxu0 %v9404_v1 }
  0xb8   :  { %8334 = vmatpush3.bf16.msra.mxu1 %v9405_v36  ;;  %8271 = vmatprep.subr.bf16.mxu0 %v9406_v37  ;;  %v8597_v37 = vld [vmem:[%s12197_s0 + $0x388] ss:$16 sps:$4 sm:$0xff]  }
  0xb9   :  { %8335 = vmatprep.subr.bf16.mxu1 %v9407_v39 }
  0xbb   :  { %8272 = vmatpush3.bf16.msra.mxu0 %v9408_v40 }
  0xbc   :  { %8336 = vmatpush3.bf16.msra.mxu1 %v9409_v41  ;;  %8273 = vmatprep.subr.bf16.mxu0 %v9410_v42  ;;  %v8601_v41 = vld [vmem:[%s12197_s0 + $0x3ac] ss:$16 sps:$4 sm:$0xff]  }
  0xbd   :  { %1372 = vmatmul.mubr.bf16.gmra.mrb[76].mxu0 %v8542_v0  ;;  %8337 = vmatprep.subr.bf16.mxu1 %v9411_v4 }
  0xbe   :  { %1469 = vmatmul.mubr.bf16.gmra.mrb[76].mxu1 %v8543_v34  ;;  %1379 = vmatprep.mubr.bf16.mxu0 %v8544_v35  ;;  %v8594_v34 = vld [vmem:[%s12197_s0 + $0x380] ss:$16 sps:$4 sm:$0xff]  }
  0xbf   :  { %1476 = vmatprep.mubr.bf16.mxu1 %v8546_v38  ;;  %8274 = vmatpush3.bf16.msra.mxu0 %v9412_v6  ;;  %v8598_v38 = vld [vmem:[%s12197_s0 + $0x3a4] ss:$16 sps:$4 sm:$0xff]  }
  0xc0   :  { %8338 = vmatpush3.bf16.msra.mxu1 %v9413_v9  ;;  %8275 = vmatprep.subr.bf16.mxu0 %v9414_v10 }
  0xc1   :  { %8339 = vmatprep.subr.bf16.mxu1 %v9415_v12 }
  0xc3   :  { %8276 = vmatpush3.bf16.msra.mxu0 %v9416_v13 }
  0xc4   :  { %8340 = vmatpush3.bf16.msra.mxu1 %v9417_v14 }
  0xc5   :  { %1380 = vmatmul.mubr.bf16.gmra.mrb[80].mxu0 %v8548_v5 }
  0xc6   :  { %1477 = vmatmul.mubr.bf16.gmra.mrb[80].mxu1 %v8549_v7  ;;  %1387 = vmatprep.mubr.bf16.mxu0 %v8550_v8 }
  0xc7   :  { %1484 = vmatprep.mubr.bf16.mxu1 %v8552_v11 }
  0xcd   :  { %1388 = vmatmul.mubr.bf16.gmra.mrb[84].mxu0 %v8554_v15  ;;  %v8600_v15 = vld [vmem:[%s12197_s0 + $0x3a0] ss:$16 sps:$4 sm:$0xff]  }
  0xce   :  { %1485 = vmatmul.mubr.bf16.gmra.mrb[84].mxu1 %v8555_v16  ;;  %1395 = vmatprep.mubr.bf16.mxu0 %v8556_v17 }
  0xcf   :  { %1492 = vmatprep.mubr.bf16.mxu1 %v8558_v18  ;;  %v8603_v18 = vld [vmem:[%s12197_s0 + $0x3a8] ss:$16 sps:$4 sm:$0xff]  }
  0xd5   :  { %1396 = vmatmul.mubr.bf16.gmra.mrb[88].mxu0 %v8560_v19  ;;  %v8604_v19 = vld [vmem:[%s12197_s0 + $0x3c4] ss:$16 sps:$4 sm:$0xff]  }
  0xd6   :  { %1493 = vmatmul.mubr.bf16.gmra.mrb[88].mxu1 %v8561_v2  ;;  %1403 = vmatprep.mubr.bf16.mxu0 %v8562_v3 }
  0xd7   :  { %1500 = vmatprep.mubr.bf16.mxu1 %v8564_v20  ;;  %v8607_v20 = vld [vmem:[%s12197_s0 + $0x3cc] ss:$16 sps:$4 sm:$0xff]  }
  0xdd   :  { %1404 = vmatmul.mubr.bf16.gmra.mrb[92].mxu0 %v8566_v21 }
  0xde   :  { %1501 = vmatmul.mubr.bf16.gmra.mrb[92].mxu1 %v8567_v22  ;;  %1766 = vmatprep.mubr.bf16.mxu0 %v8570_v23 }
  0xdf   :  { %1863 = vmatprep.mubr.bf16.mxu1 %v8573_v24 }
  0xe5   :  { %1767 = vmatmul.mubr.bf16.vlgmr.msra.gmra.mrb[96].mxu0 %v8568_v25 }
  0xe6   :  { %1864 = vmatmul.mubr.bf16.vlgmr.msra.gmra.mrb[96].mxu1 %v8571_v26  ;;  %1774 = vmatprep.mubr.bf16.mxu0 %v8574_v27 }
  0xe7   :  { %1871 = vmatprep.mubr.bf16.mxu1 %v8577_v28 }
  0xed   :  { %1775 = vmatmul.mubr.bf16.gmra.mrb[100].mxu0 %v8576_v29 }
  0xee   :  { %1872 = vmatmul.mubr.bf16.gmra.mrb[100].mxu1 %v8579_v30  ;;  %1782 = vmatprep.mubr.bf16.mxu0 %v8580_v31 }
  0xef   :  { %1879 = vmatprep.mubr.bf16.mxu1 %v8583_v32 }
  0xf5   :  { %1783 = vmatmul.mubr.bf16.gmra.mrb[104].mxu0 %v8582_v33  ;;  %v8606_v33 = vld [vmem:[%s12197_s0 + $0x3c0] ss:$16 sps:$4 sm:$0xff]  }
  0xf6   :  { %1880 = vmatmul.mubr.bf16.gmra.mrb[104].mxu1 %v8585_v43  ;;  %1790 = vmatprep.mubr.bf16.mxu0 %v8586_v44 }
  0xf7   :  { %1887 = vmatprep.mubr.bf16.mxu1 %v8589_v45  ;;  %v8609_v45 = vld [vmem:[%s12197_s0 + $0x3c8] ss:$16 sps:$4 sm:$0xff]  }
  0xf8   :  { %v7893_v48 = vpop.f32.mrb[0].mxu0 }
  0xf9   :  { %v7957_v51 = vpop.f32.mrb[0].mxu1  ;;  %v7894_v52 = vpop.f32.mrb[1].mxu0 }
  0xfa   :  { %v7895_v54 = vadd.f32 %v7894_v52, %v7893_v48  ;;  %v7958_v55 = vpop.f32.mrb[1].mxu1  ;;  %v7896_v56 = vpop.f32.mrb[2].mxu0 }
  0xfb   :  { %v7959_v57 = vadd.f32 %v7958_v55, %v7957_v51  ;;  %v7960_v58 = vpop.f32.mrb[2].mxu1  ;;  %v7897_v59 = vpop.f32.mrb[3].mxu0 }
  0xfc   :  { %v528_v60 = vadd.f32 %v7895_v54, %v10182_v46  ;;  %v7898_v61 = vadd.f32 %v7897_v59, %v7896_v56  ;;  %v7961_v62 = vpop.f32.mrb[3].mxu1  ;;  %v8616_v54 = vld [vmem:[%s12200_s3 + $0x100] ss:$16 sps:$4 sm:$0xff]  }
  0xfd   :  { %v7962_v63 = vadd.f32 %v7961_v62, %v7960_v58  ;;  %1791 = vmatmul.mubr.bf16.gmra.mrb[108].mxu0 %v8588_v47  ;;  %v8610_v47 = vld [vmem:[%s12197_s0 + $0x3e4] ss:$16 sps:$4 sm:$0xff]   ;;  %v8619_v62 = vld [vmem:[%s12200_s3 + $0x108] ss:$16 sps:$4 sm:$0xff]  }
  0xfe   :  { %v10197_v0 = vadd.f32 %v7959_v57, %v528_v60  ;;  %v531_v1 = vadd.f32 %v7898_v61, %v10182_v46  ;;  %1888 = vmatmul.mubr.bf16.gmra.mrb[108].mxu1 %v8591_v49  ;;  %1798 = vmatprep.mubr.bf16.mxu0 %v8592_v50  ;;  %v8613_v50 = vld [vmem:[%s12197_s0 + $0x3ec] ss:$16 sps:$4 sm:$0xff]   ;;  %v8618_v58 = vld [vmem:[%s12200_s3 + $0x104] ss:$16 sps:$4 sm:$0xff]  }
  0xff   :  { %1895 = vmatprep.mubr.bf16.mxu1 %v8595_v53  ;;  %2196 = vmatprep.subr.bf16.mxu0 %v8618_v58 }
 0x100   :  { %v10203_v35 = vadd.f32 %v7962_v63, %v531_v1  ;;  %v7899_v36 = vpop.f32.mrb[4].mxu0  ;;  %v8621_v63 = vld [vmem:[%s12200_s3 + $0x10c] ss:$16 sps:$4 sm:$0xff]   ;;  %2197 = vmatpush1.bf16.msra.mxu0 %v8616_v54 }
 0x101   :  { %v7963_v39 = vpop.f32.mrb[4].mxu1  ;;  %v7900_v40 = vpop.f32.mrb[5].mxu0  ;;  %2237 = vmatprep.subr.bf16.mxu1 %v8621_v63 }
 0x102   :  { %v7901_v42 = vadd.f32 %v7900_v40, %v7899_v36  ;;  %v7964_v4 = vpop.f32.mrb[5].mxu1  ;;  %v7902_v5 = vpop.f32.mrb[6].mxu0  ;;  %v8615_v40 = vld [vmem:[%s12197_s0 + $0x3e8] ss:$16 sps:$4 sm:$0xff]   ;;  %2238 = vmatpush1.bf16.msra.mxu1 %v8619_v62 }
 0x103   :  { %v7965_v6 = vadd.f32 %v7964_v4, %v7963_v39  ;;  %v7966_v7 = vpop.f32.mrb[6].mxu1  ;;  %v7903_v8 = vpop.f32.mrb[7].mxu0 }
 0x104   :  { %v536_v9 = vadd.f32 %v7901_v42, %v10182_v46  ;;  %v7904_v10 = vadd.f32 %v7903_v8, %v7902_v5  ;;  %v7967_v11 = vpop.f32.mrb[7].mxu1 }
 0x105   :  { %v7968_v12 = vadd.f32 %v7967_v11, %v7966_v7  ;;  %1799 = vmatmul.mubr.bf16.gmra.mrb[112].mxu0 %v8594_v34  ;;  %v8622_v7 = vld [vmem:[%s12200_s3 + $0x120] ss:$16 sps:$4 sm:$0xff]   ;;  %v8624_v11 = vld [vmem:[%s12200_s3 + $0x124] ss:$16 sps:$4 sm:$0xff]  }
 0x106   :  { %v10215_v13 = vadd.f32 %v7965_v6, %v536_v9  ;;  %v539_v14 = vadd.f32 %v7904_v10, %v10182_v46  ;;  %1896 = vmatmul.mubr.bf16.gmra.mrb[112].mxu1 %v8597_v37  ;;  %1806 = vmatprep.mubr.bf16.mxu0 %v8598_v38  ;;  %v8612_v37 = vld [vmem:[%s12197_s0 + $0x3e0] ss:$16 sps:$4 sm:$0xff]  }
 0x107   :  { %1903 = vmatprep.mubr.bf16.mxu1 %v8601_v41  ;;  %2198 = vmatprep.subr.bf16.mxu0 %v8624_v11 }
 0x108   :  { %v10221_v16 = vadd.f32 %v7968_v12, %v539_v14  ;;  %v7905_v17 = vpop.f32.mrb[8].mxu0  ;;  %2199 = vmatpush1.bf16.msra.mxu0 %v8622_v7 }
 0x109   :  { %v7969_v2 = vpop.f32.mrb[8].mxu1  ;;  %v7906_v3 = vpop.f32.mrb[9].mxu0 }
 0x10a   :  { %v7907_v21 = vadd.f32 %v7906_v3, %v7905_v17  ;;  %v7970_v22 = vpop.f32.mrb[9].mxu1  ;;  %v7908_v23 = vpop.f32.mrb[10].mxu0  ;;  %v8625_v17 = vld [vmem:[%s12200_s3 + $0x128] ss:$16 sps:$4 sm:$0xff]  }
 0x10b   :  { %v7971_v24 = vadd.f32 %v7970_v22, %v7969_v2  ;;  %v7972_v25 = vpop.f32.mrb[10].mxu1  ;;  %v7909_v26 = vpop.f32.mrb[11].mxu0 }
 0x10c   :  { %v544_v27 = vadd.f32 %v7907_v21, %v10182_v46  ;;  %v7910_v28 = vadd.f32 %v7909_v26, %v7908_v23  ;;  %v7973_v29 = vpop.f32.mrb[11].mxu1 }
 0x10d   :  { %v7974_v30 = vadd.f32 %v7973_v29, %v7972_v25  ;;  %1807 = vmatmul.mubr.bf16.gmra.mrb[116].mxu0 %v8600_v15 }
 0x10e   :  { %v10233_v31 = vadd.f32 %v7971_v24, %v544_v27  ;;  %v547_v32 = vadd.f32 %v7910_v28, %v10182_v46  ;;  %1904 = vmatmul.mubr.bf16.gmra.mrb[116].mxu1 %v8603_v18  ;;  %1814 = vmatprep.mubr.bf16.mxu0 %v8604_v19  ;;  %v8627_v18 = vld [vmem:[%s12200_s3 + $0x12c] ss:$16 sps:$4 sm:$0xff]   ;;  %v8628_v27 = vld [vmem:[%s12200_s3 + $0x140] ss:$16 sps:$4 sm:$0xff]  }
 0x10f   :  { %1911 = vmatprep.mubr.bf16.mxu1 %v8607_v20  ;;  %2239 = vmatprep.subr.bf16.mxu1 %v8627_v18 }
 0x110   :  { %v10239_v43 = vadd.f32 %v7974_v30, %v547_v32  ;;  %v7911_v44 = vpop.f32.mrb[12].mxu0  ;;  %2240 = vmatpush1.bf16.msra.mxu1 %v8625_v17  ;;  %v8630_v32 = vld [vmem:[%s12200_s3 + $0x144] ss:$16 sps:$4 sm:$0xff]  }
 0x111   :  { %v7975_v48 = vpop.f32.mrb[12].mxu1  ;;  %v7912_v49 = vpop.f32.mrb[13].mxu0  ;;  %2200 = vmatprep.subr.bf16.mxu0 %v8630_v32 }
 0x112   :  { %v7913_v51 = vadd.f32 %v7912_v49, %v7911_v44  ;;  %v7976_v52 = vpop.f32.mrb[13].mxu1  ;;  %v7914_v53 = vpop.f32.mrb[14].mxu0  ;;  %2201 = vmatpush1.bf16.msra.mxu0 %v8628_v27 }
 0x113   :  { %v7977_v55 = vadd.f32 %v7976_v52, %v7975_v48  ;;  %v7978_v56 = vpop.f32.mrb[14].mxu1  ;;  %v7915_v57 = vpop.f32.mrb[15].mxu0  ;;  %v8633_v48 = vld [vmem:[%s12200_s3 + $0x14c] ss:$16 sps:$4 sm:$0xff]  }
 0x114   :  { %v552_v59 = vadd.f32 %v7913_v51, %v10182_v46  ;;  %v7916_v60 = vadd.f32 %v7915_v57, %v7914_v53  ;;  %v7979_v61 = vpop.f32.mrb[15].mxu1  ;;  %2241 = vmatprep.subr.bf16.mxu1 %v8633_v48 }
 0x115   :  { %v7980_v1 = vadd.f32 %v7979_v61, %v7978_v56  ;;  %1815 = vmatmul.mubr.bf16.gmra.mrb[120].mxu0 %v8606_v33 }
 0x116   :  { %v10263_v34 = vadd.f32 %v7977_v55, %v552_v59  ;;  %v555_v36 = vadd.f32 %v7916_v60, %v10182_v46  ;;  %1912 = vmatmul.mubr.bf16.gmra.mrb[120].mxu1 %v8609_v45  ;;  %1822 = vmatprep.mubr.bf16.mxu0 %v8610_v47  ;;  %v8631_v47 = vld [vmem:[%s12200_s3 + $0x148] ss:$16 sps:$4 sm:$0xff]  }
 0x117   :  { %1919 = vmatprep.mubr.bf16.mxu1 %v8613_v50 }
 0x118   :  { %v10269_v38 = vadd.f32 %v7980_v1, %v555_v36  ;;  %v7917_v39 = vpop.f32.mrb[16].mxu0 }
 0x119   :  { %v7981_v41 = vpop.f32.mrb[16].mxu1  ;;  %v7918_v42 = vpop.f32.mrb[17].mxu0 }
 0x11a   :  { %v7919_v4 = vadd.f32 %v7918_v42, %v7917_v39  ;;  %v7982_v5 = vpop.f32.mrb[17].mxu1  ;;  %v7920_v6 = vpop.f32.mrb[18].mxu0 }
 0x11b   :  { %v7983_v8 = vadd.f32 %v7982_v5, %v7981_v41  ;;  %v7984_v9 = vpop.f32.mrb[18].mxu1  ;;  %v7921_v10 = vpop.f32.mrb[19].mxu0 }
 0x11c   :  { %v560_v12 = vadd.f32 %v7919_v4, %v10182_v46  ;;  %v7922_v14 = vadd.f32 %v7921_v10, %v7920_v6  ;;  %v7985_v15 = vpop.f32.mrb[19].mxu1 }
 0x11d   :  { %v7986_v19 = vadd.f32 %v7985_v15, %v7984_v9  ;;  %1823 = vmatmul.mubr.bf16.gmra.mrb[124].mxu0 %v8612_v37 }
 0x11e   :  { %v10287_v2 = vadd.f32 %v7983_v8, %v560_v12  ;;  %v563_v3 = vadd.f32 %v7922_v14, %v10182_v46  ;;  %1920 = vmatmul.mubr.bf16.gmra.mrb[124].mxu1 %v8615_v40 }
 0x120   :  { %v10290_v20 = vadd.f32 %v7986_v19, %v563_v3  ;;  %v7923_v21 = vpop.f32.mrb[20].mxu0 }
 0x121   :  { %v7987_v22 = vpop.f32.mrb[20].mxu1  ;;  %v7924_v23 = vpop.f32.mrb[21].mxu0 }
 0x122   :  { %v7925_v24 = vadd.f32 %v7924_v23, %v7923_v21  ;;  %v7988_v25 = vpop.f32.mrb[21].mxu1  ;;  %v7926_v26 = vpop.f32.mrb[22].mxu0 }
 0x123   :  { %v7989_v28 = vadd.f32 %v7988_v25, %v7987_v22  ;;  %v7990_v29 = vpop.f32.mrb[22].mxu1  ;;  %v7927_v30 = vpop.f32.mrb[23].mxu0 }
 0x124   :  { %v568_v33 = vadd.f32 %v7925_v24, %v10182_v46  ;;  %v7928_v44 = vadd.f32 %v7927_v30, %v7926_v26  ;;  %v7991_v45 = vpop.f32.mrb[23].mxu1 }
 0x125   :  { %v7992_v49 = vadd.f32 %v7991_v45, %v7990_v29 }
 0x126   :  { %v10305_v50 = vadd.f32 %v7989_v28, %v568_v33  ;;  %v571_v51 = vadd.f32 %v7928_v44, %v10182_v46 }
 0x127   :  { %18 = vsyncpa [#allocation5], 0  ;;  %2242 = vmatpush1.bf16.msra.mxu1 %v8631_v47  ;;  %v8634_v59 = vld [vmem:[%s12200_s3 + $0x160] ss:$16 sps:$4 sm:$0xff]   ;;  %v8636_v63 = vld [vmem:[%s12200_s3 + $0x164] ss:$16 sps:$4 sm:$0xff]  }
 0x128   :  { %v10308_v52 = vadd.f32 %v7992_v49, %v571_v51  ;;  %v7929_v53 = vpop.f32.mrb[24].mxu0  ;;  %v8637_v39 = vld [vmem:[%s12200_s3 + $0x168] ss:$16 sps:$4 sm:$0xff]   ;;  %v8639_v40 = vld [vmem:[%s12200_s3 + $0x16c] ss:$16 sps:$4 sm:$0xff]   ;;  %2202 = vmatprep.subr.bf16.mxu0 %v8636_v63  ;;  %vm6520_vm1 = vcmask 7168  }
 0x129   :  { %v7993_v54 = vpop.f32.mrb[24].mxu1  ;;  %v7930_v55 = vpop.f32.mrb[25].mxu0  ;;  %2203 = vmatpush1.bf16.msra.mxu0 %v8634_v59  ;;  %2243 = vmatprep.subr.bf16.mxu1 %v8639_v40  ;;  %v8640_v12 = vld [vmem:[%s12200_s3 + $0x180] ss:$16 sps:$4 sm:$0xff]   ;;  %v8642_v18 = vld [vmem:[%s12200_s3 + $0x184] ss:$16 sps:$4 sm:$0xff]  }
 0x12a   :  { %v7931_v56 = vadd.f32 %v7930_v55, %v7929_v53  ;;  %v7994_v57 = vpop.f32.mrb[25].mxu1  ;;  %v7932_v58 = vpop.f32.mrb[26].mxu0  ;;  %v8643_v22 = vld [vmem:[%s12200_s3 + $0x188] ss:$16 sps:$4 sm:$0xff]   ;;  %v8645_v23 = vld [vmem:[%s12200_s3 + $0x18c] ss:$16 sps:$4 sm:$0xff]   ;;  %2204 = vmatprep.subr.bf16.mxu0 %v8642_v18 }
 0x12b   :  { %v7995_v60 = vadd.f32 %v7994_v57, %v7993_v54  ;;  %v7996_v61 = vpop.f32.mrb[26].mxu1  ;;  %v7933_v62 = vpop.f32.mrb[27].mxu0  ;;  %2244 = vmatpush1.bf16.msra.mxu1 %v8637_v39  ;;  %v8646_v45 = vld [vmem:[%s12200_s3 + $0x1a0] ss:$16 sps:$4 sm:$0xff]   ;;  %v8648_v51 = vld [vmem:[%s12200_s3 + $0x1a4] ss:$16 sps:$4 sm:$0xff]  }
 0x12c   :  { %v576_v1 = vadd.f32 %v7931_v56, %v10182_v46  ;;  %v7934_v36 = vadd.f32 %v7933_v62, %v7932_v58  ;;  %v7997_v37 = vpop.f32.mrb[27].mxu1  ;;  %2245 = vmatprep.subr.bf16.mxu1 %v8645_v23  ;;  %v8649_v56 = vld [vmem:[%s12200_s3 + $0x1a8] ss:$16 sps:$4 sm:$0xff]   ;;  %v8651_v57 = vld [vmem:[%s12200_s3 + $0x1ac] ss:$16 sps:$4 sm:$0xff]   ;;  %vm6599_vm2 = vcmask 1040384  }
 0x12d   :  { %v7998_v41 = vadd.f32 %v7997_v37, %v7996_v61  ;;  %2205 = vmatpush1.bf16.msra.mxu0 %v8640_v12  ;;  %v687_v61 = vmax.f32 %v10197_v0, 0.0  ;;  %v8657_v37 = vld [vmem:[%s12200_s3 + $0x1cc] ss:$16 sps:$4 sm:$0xff]   ;;  %v8655_v0 = vld [vmem:[%s12200_s3 + $0x1c8] ss:$16 sps:$4 sm:$0xff]   ;;  %vm6611_vm3 = vcmask 0  }
 0x12e   :  { %v10323_v42 = vadd.f32 %v7995_v60, %v576_v1  ;;  %v579_v4 = vadd.f32 %v7934_v36, %v10182_v46  ;;  %2206 = vmatprep.subr.bf16.mxu0 %v8648_v51  ;;  %v8654_v36 = vld [vmem:[%s12200_s3 + $0x1c4] ss:$16 sps:$4 sm:$0xff]   ;;  %v8661_v23 = vld [vmem:[%s12200_s3 + $0x1e8] ss:$16 sps:$4 sm:$0xff]  }
 0x12f   :  { %2246 = vmatpush1.bf16.msra.mxu1 %v8643_v22  ;;  %v8658_v22 = vld [vmem:[%s12200_s3 + $0x1e0] ss:$16 sps:$4 sm:$0xff]  }
 0x130   :  { %v10326_v5 = vadd.f32 %v7998_v41, %v579_v4  ;;  %v7935_v6 = vpop.f32.mrb[28].mxu0  ;;  %2247 = vmatprep.subr.bf16.mxu1 %v8651_v57  ;;  %v8652_v41 = vld [vmem:[%s12200_s3 + $0x1c0] ss:$16 sps:$4 sm:$0xff]   ;;  %v688_v4 = vmax.f32 %v10203_v35, 0.0  ;;  %v8660_v35 = vld [vmem:[%s12200_s3 + $0x1e4] ss:$16 sps:$4 sm:$0xff]  }
 0x131   :  { %v7999_v7 = vpop.f32.mrb[28].mxu1  ;;  %v7936_v8 = vpop.f32.mrb[29].mxu0  ;;  %2207 = vmatpush1.bf16.msra.mxu0 %v8646_v45 }
 0x132   :  { %v7937_v9 = vadd.f32 %v7936_v8, %v7935_v6  ;;  %v8000_v10 = vpop.f32.mrb[29].mxu1  ;;  %v7938_v11 = vpop.f32.mrb[30].mxu0  ;;  %2208 = vmatprep.subr.bf16.mxu0 %v8654_v36  ;;  %v691_v36 = vmax.f32 %v10233_v31, 0.0 }
 0x133   :  { %v8001_v14 = vadd.f32 %v8000_v10, %v7999_v7  ;;  %v8002_v15 = vpop.f32.mrb[30].mxu1  ;;  %v7939_v17 = vpop.f32.mrb[31].mxu0  ;;  %2248 = vmatpush1.bf16.msra.mxu1 %v8649_v56 }
 0x134   :  { %v584_v19 = vadd.f32 %v7937_v9, %v10182_v46  ;;  %v7940_v3 = vadd.f32 %v7939_v17, %v7938_v11  ;;  %v8003_v21 = vpop.f32.mrb[31].mxu1  ;;  %2249 = vmatprep.subr.bf16.mxu1 %v8657_v37 }
 0x135   :  { %v8004_v24 = vadd.f32 %v8003_v21, %v8002_v15  ;;  %2209 = vmatpush1.bf16.msra.mxu0 %v8652_v41 }
 0x136   :  { %v10341_v25 = vadd.f32 %v8001_v14, %v584_v19  ;;  %v587_v26 = vadd.f32 %v7940_v3, %v10182_v46  ;;  %v8663_v3 = vld [vmem:[%s12200_s3 + $0x1ec] ss:$16 sps:$4 sm:$0xff]   ;;  %2210 = vmatprep.subr.bf16.mxu0 %v8660_v35 }
 0x137   :  { %2250 = vmatpush1.bf16.msra.mxu1 %v8655_v0 }
 0x138   :  { %v10344_v27 = vadd.f32 %v8004_v24, %v587_v26  ;;  %v8021_v28 = vpop.f32.mrb[32].mxu0  ;;  %2251 = vmatprep.subr.bf16.mxu1 %v8663_v3 }
 0x139   :  { %v8085_v29 = vpop.f32.mrb[32].mxu1  ;;  %v8022_v30 = vpop.f32.mrb[33].mxu0  ;;  %2211 = vmatpush1.bf16.msra.mxu0 %v8658_v22 }
 0x13a   :  { %v8023_v32 = vadd.f32 %v8022_v30, %v8021_v28  ;;  %v8086_v33 = vpop.f32.mrb[33].mxu1  ;;  %v8024_v44 = vpop.f32.mrb[34].mxu0  ;;  %v689_v28 = vmax.f32 %v10215_v13, 0.0 }
 0x13b   :  { %v8087_v47 = vadd.f32 %v8086_v33, %v8085_v29  ;;  %v8088_v48 = vpop.f32.mrb[34].mxu1  ;;  %v8025_v49 = vpop.f32.mrb[35].mxu0  ;;  %2252 = vmatpush1.bf16.msra.mxu1 %v8661_v23  ;;  %v8666_v33 = vld [vmem:[%s12200_s3 + $0x4] ss:$16 sps:$4 sm:$0xff]  }
 0x13c   :  { %v931_v53 = vadd.f32 %v8023_v32, %v10182_v46  ;;  %v8026_v54 = vadd.f32 %v8025_v49, %v8024_v44  ;;  %v8089_v55 = vpop.f32.mrb[35].mxu1  ;;  %v8669_v44 = vld [vmem:[%s12200_s3 + $0xc] ss:$16 sps:$4 sm:$0xff]   ;;  %2438 = vmatprep.subr.bf16.mxu0 %v8666_v33 }
 0x13d   :  { %v8090_v58 = vadd.f32 %v8089_v55, %v8088_v48  ;;  %v690_v48 = vmax.f32 %v10221_v16, 0.0  ;;  %v9443_v55 = vmov 0   ;;  %2479 = vmatprep.subr.bf16.mxu1 %v8669_v44 }
 0x13e   :  { %v1028_v59 = vadd.f32 %v8087_v47, %v931_v53  ;;  %v934_v60 = vadd.f32 %v8026_v54, %v10182_v46  ;;  %2228 = vmatprep.mubr.bf16.mxu0 %v9443_v55  ;;  %2269 = vmatprep.mubr.bf16.mxu1 %v9443_v55 }
 0x13f   :  { %8391 = vset.pattern.permute.xlu0 %v9443_v55 }
 0x140   :  { %v1090_v62 = vmax.f32 %v1028_v59, 0.0  ;;  %v1031_v63 = vadd.f32 %v8090_v58, %v934_v60  ;;  %v8027_v1 = vpop.f32.mrb[36].mxu0 }
 0x141   :  { %v8091_v39 = vpop.f32.mrb[36].mxu1  ;;  %v8028_v40 = vpop.f32.mrb[37].mxu0 }
 0x142   :  { %v10374_v6 = vmax.f32 %v687_v61, %v1090_v62  ;;  %v1091_v7 = vmax.f32 %v1031_v63, 0.0  ;;  %v8029_v8 = vadd.f32 %v8028_v40, %v8027_v1  ;;  %v8092_v9 = vpop.f32.mrb[37].mxu1  ;;  %v8030_v10 = vpop.f32.mrb[38].mxu0 }
 0x143   :  { %v8093_v11 = vadd.f32 %v8092_v9, %v8091_v39  ;;  %v8094_v12 = vpop.f32.mrb[38].mxu1  ;;  %v8031_v14 = vpop.f32.mrb[39].mxu0 }
 0x144   :  { %v10376_v15 = vmax.f32 %v688_v4, %v1091_v7  ;;  %v939_v17 = vadd.f32 %v8029_v8, %v10182_v46  ;;  %v8032_v18 = vadd.f32 %v8031_v14, %v8030_v10  ;;  %v8095_v19 = vpop.f32.mrb[39].mxu1  ;;  %v692_v4 = vmax.f32 %v10239_v43, 0.0 }
 0x145   :  { %v8096_v21 = vadd.f32 %v8095_v19, %v8094_v12  ;;  %v693_v43 = vmax.f32 %v10263_v34, 0.0 }
 0x146   :  { %v1036_v24 = vadd.f32 %v8093_v11, %v939_v17  ;;  %v942_v26 = vadd.f32 %v8032_v18, %v10182_v46 }
 0x148   :  { %v1092_v29 = vmax.f32 %v1036_v24, 0.0  ;;  %v1039_v30 = vadd.f32 %v8096_v21, %v942_v26  ;;  %v8033_v32 = vpop.f32.mrb[40].mxu0 }
 0x149   :  { %v8097_v45 = vpop.f32.mrb[40].mxu1  ;;  %v8034_v47 = vpop.f32.mrb[41].mxu0 }
 0x14a   :  { %v10400_v49 = vmax.f32 %v689_v28, %v1092_v29  ;;  %v1093_v13 = vmax.f32 %v1039_v30, 0.0  ;;  %v8035_v51 = vadd.f32 %v8034_v47, %v8033_v32  ;;  %v8098_v53 = vpop.f32.mrb[41].mxu1  ;;  %v8036_v54 = vpop.f32.mrb[42].mxu0  ;;  %v694_v30 = vmax.f32 %v10269_v38, 0.0 }
 0x14b   :  { %v8099_v56 = vadd.f32 %v8098_v53, %v8097_v45  ;;  %v8100_v57 = vpop.f32.mrb[42].mxu1  ;;  %v8037_v58 = vpop.f32.mrb[43].mxu0  ;;  %v695_v38 = vmax.f32 %v10287_v2, 0.0 }
 0x14c   :  { %v10404_v59 = vmax.f32 %v690_v48, %v1093_v13  ;;  %v947_v16 = vadd.f32 %v8035_v51, %v10182_v46  ;;  %v8038_v60 = vadd.f32 %v8037_v58, %v8036_v54  ;;  %v8101_v61 = vpop.f32.mrb[43].mxu1 }
 0x14d   :  { %v8102_v62 = vadd.f32 %v8101_v61, %v8100_v57 }
 0x14e   :  { %v1044_v63 = vadd.f32 %v8099_v56, %v947_v16  ;;  %v950_v1 = vadd.f32 %v8038_v60, %v10182_v46 }
 0x150   :  { %v1094_v37 = vmax.f32 %v1044_v63, 0.0  ;;  %v1047_v39 = vadd.f32 %v8102_v62, %v950_v1  ;;  %v8039_v40 = vpop.f32.mrb[44].mxu0 }
 0x151   :  { %v8103_v41 = vpop.f32.mrb[44].mxu1  ;;  %v8040_v0 = vpop.f32.mrb[45].mxu0 }
 0x152   :  { %v10411_v7 = vmax.f32 %v691_v36, %v1094_v37  ;;  %v1095_v8 = vmax.f32 %v1047_v39, 0.0  ;;  %v8041_v9 = vadd.f32 %v8040_v0, %v8039_v40  ;;  %v8104_v10 = vpop.f32.mrb[45].mxu1  ;;  %v8042_v11 = vpop.f32.mrb[46].mxu0  ;;  %v696_v36 = vmax.f32 %v10290_v20, 0.0 }
 0x153   :  { %v8105_v12 = vadd.f32 %v8104_v10, %v8103_v41  ;;  %v8106_v14 = vpop.f32.mrb[46].mxu1  ;;  %v8043_v17 = vpop.f32.mrb[47].mxu0  ;;  %v697_v20 = vmax.f32 %v10305_v50, 0.0 }
 0x154   :  { %v10413_v18 = vmax.f32 %v692_v4, %v1095_v8  ;;  %v955_v31 = vadd.f32 %v8041_v9, %v10182_v46  ;;  %v8044_v19 = vadd.f32 %v8043_v17, %v8042_v11  ;;  %v8107_v35 = vpop.f32.mrb[47].mxu1 }
 0x155   :  { %v8108_v3 = vadd.f32 %v8107_v35, %v8106_v14 }
 0x156   :  { %v1052_v21 = vadd.f32 %v8105_v12, %v955_v31  ;;  %v958_v22 = vadd.f32 %v8044_v19, %v10182_v46 }
 0x158   :  { %v1096_v23 = vmax.f32 %v1052_v21, 0.0  ;;  %v1055_v24 = vadd.f32 %v8108_v3, %v958_v22  ;;  %v8045_v26 = vpop.f32.mrb[48].mxu0 }
 0x159   :  { %v8109_v28 = vpop.f32.mrb[48].mxu1  ;;  %v8046_v29 = vpop.f32.mrb[49].mxu0 }
 0x15a   :  { %v10419_v32 = vmax.f32 %v693_v43, %v1096_v23  ;;  %v1097_v33 = vmax.f32 %v1055_v24, 0.0  ;;  %v8047_v44 = vadd.f32 %v8046_v29, %v8045_v26  ;;  %v8110_v45 = vpop.f32.mrb[49].mxu1  ;;  %v8048_v47 = vpop.f32.mrb[50].mxu0  ;;  %v698_v43 = vmax.f32 %v10308_v52, 0.0  ;;  %v10443_v52 = vld [vmem:[%s12199_s2] ss:$0 sm:$0xff] }
 0x15b   :  { %v8111_v48 = vadd.f32 %v8110_v45, %v8109_v28  ;;  %v8112_v13 = vpop.f32.mrb[50].mxu1  ;;  %v8049_v51 = vpop.f32.mrb[51].mxu0 }
 0x15c   :  { %v10421_v53 = vmax.f32 %v694_v30, %v1097_v33  ;;  %v963_v34 = vadd.f32 %v8047_v44, %v10182_v46  ;;  %v8050_v54 = vadd.f32 %v8049_v51, %v8048_v47  ;;  %v8113_v56 = vpop.f32.mrb[51].mxu1 }
 0x15d   :  { %v8114_v57 = vadd.f32 %v8113_v56, %v8112_v13 }
 0x15e   :  { %v1060_v58 = vadd.f32 %v8111_v48, %v963_v34  ;;  %v966_v16 = vadd.f32 %v8050_v54, %v10182_v46  ;;  %v699_v54 = vmax.f32 %v10323_v42, 0.0 }
 0x160   :  { %v1098_v60 = vmax.f32 %v1060_v58, 0.0  ;;  %v1063_v61 = vadd.f32 %v8114_v57, %v966_v16  ;;  %v8051_v62 = vpop.f32.mrb[52].mxu0 }
 0x161   :  { %v8115_v63 = vpop.f32.mrb[52].mxu1  ;;  %v8052_v1 = vpop.f32.mrb[53].mxu0 }
 0x162   :  { %v10427_v37 = vmax.f32 %v695_v38, %v1098_v60  ;;  %v1099_v39 = vmax.f32 %v1063_v61, 0.0  ;;  %v8053_v40 = vadd.f32 %v8052_v1, %v8051_v62  ;;  %v8116_v41 = vpop.f32.mrb[53].mxu1  ;;  %v8054_v0 = vpop.f32.mrb[54].mxu0 }
 0x163   :  { %v8117_v4 = vadd.f32 %v8116_v41, %v8115_v63  ;;  %v8118_v8 = vpop.f32.mrb[54].mxu1  ;;  %v8055_v9 = vpop.f32.mrb[55].mxu0 }
 0x164   :  { %v10429_v10 = vmax.f32 %v696_v36, %v1099_v39  ;;  %v971_v2 = vadd.f32 %v8053_v40, %v10182_v46  ;;  %v8056_v11 = vadd.f32 %v8055_v9, %v8054_v0  ;;  %v8119_v12 = vpop.f32.mrb[55].mxu1 }
 0x165   :  { %v8120_v14 = vadd.f32 %v8119_v12, %v8118_v8 }
 0x166   :  { %v1068_v17 = vadd.f32 %v8117_v4, %v971_v2  ;;  %v974_v31 = vadd.f32 %v8056_v11, %v10182_v46 }
 0x168   :  { %v1100_v19 = vmax.f32 %v1068_v17, 0.0  ;;  %v1071_v35 = vadd.f32 %v8120_v14, %v974_v31  ;;  %v8057_v3 = vpop.f32.mrb[56].mxu0 }
 0x169   :  { %v8121_v21 = vpop.f32.mrb[56].mxu1  ;;  %v8058_v22 = vpop.f32.mrb[57].mxu0 }
 0x16a   :  { %v10435_v23 = vmax.f32 %v697_v20, %v1100_v19  ;;  %v1101_v24 = vmax.f32 %v1071_v35, 0.0  ;;  %v8059_v26 = vadd.f32 %v8058_v22, %v8057_v3  ;;  %v8122_v28 = vpop.f32.mrb[57].mxu1  ;;  %v8060_v29 = vpop.f32.mrb[58].mxu0  ;;  %v702_v20 = vmax.f32 %v10344_v27, 0.0 }
 0x16b   :  { %v8123_v30 = vadd.f32 %v8122_v28, %v8121_v21  ;;  %v8124_v33 = vpop.f32.mrb[58].mxu1  ;;  %v8061_v44 = vpop.f32.mrb[59].mxu0 }
 0x16c   :  { %v10437_v45 = vmax.f32 %v698_v43, %v1101_v24  ;;  %v979_v50 = vadd.f32 %v8059_v26, %v10182_v46  ;;  %v8062_v47 = vadd.f32 %v8061_v44, %v8060_v29  ;;  %v8125_v48 = vpop.f32.mrb[59].mxu1  ;;  %v700_v46 = vmax.f32 %v10326_v5, 0.0 }
 0x16d   :  { %v8126_v13 = vadd.f32 %v8125_v48, %v8124_v33  ;;  %v701_v5 = vmax.f32 %v10341_v25, 0.0 }
 0x16e   :  { %v1076_v51 = vadd.f32 %v8123_v30, %v979_v50  ;;  %v982_v34 = vadd.f32 %v10443_v52, %v8062_v47 }
 0x170   :  { %v1102_v56 = vmax.f32 %v1076_v51, 0.0  ;;  %v1079_v57 = vadd.f32 %v8126_v13, %v982_v34  ;;  %v8063_v58 = vpop.f32.mrb[60].mxu0 }
 0x171   :  { %v8127_v16 = vpop.f32.mrb[60].mxu1  ;;  %v8064_v38 = vpop.f32.mrb[61].mxu0 }
 0x172   :  { %v10448_v60 = vmax.f32 %v699_v54, %v1102_v56  ;;  %v1103_v61 = vmax.f32 %v1079_v57, 0.0  ;;  %v8065_v62 = vadd.f32 %v8064_v38, %v8063_v58  ;;  %v8128_v63 = vpop.f32.mrb[61].mxu1  ;;  %v8066_v1 = vpop.f32.mrb[62].mxu0 }
 0x173   :  { %v8129_v36 = vadd.f32 %v8128_v63, %v8127_v16  ;;  %v8130_v39 = vpop.f32.mrb[62].mxu1  ;;  %v8067_v40 = vpop.f32.mrb[63].mxu0 }
 0x174   :  { %v10450_v41 = vmax.f32 %v700_v46, %v1103_v61  ;;  %v987_v42 = vadd.f32 %v10443_v52, %v8065_v62  ;;  %v8068_v0 = vadd.f32 %v8067_v40, %v8066_v1  ;;  %v8131_v4 = vpop.f32.mrb[63].mxu1 }
 0x175   :  { %v8132_v8 = vadd.f32 %v8131_v4, %v8130_v39 }
 0x176   :  { %v1084_v9 = vadd.f32 %v8129_v36, %v987_v42  ;;  %v990_v2 = vadd.f32 %v10443_v52, %v8068_v0 }
 0x178   :  { %v1104_v11 = vmax.f32 %v1084_v9, 0.0  ;;  %v1087_v12 = vadd.f32 %v8132_v8, %v990_v2  ;;  %v8149_v14 = vpop.f32.mrb[64].mxu0 }
 0x179   :  { %v8213_v17 = vpop.f32.mrb[64].mxu1  ;;  %v8150_v31 = vpop.f32.mrb[65].mxu0 }
 0x17a   :  { %v10456_v19 = vmax.f32 %v701_v5, %v1104_v11  ;;  %v1105_v35 = vmax.f32 %v1087_v12, 0.0  ;;  %v8151_v3 = vadd.f32 %v8150_v31, %v8149_v14  ;;  %v8214_v21 = vpop.f32.mrb[65].mxu1  ;;  %v8152_v22 = vpop.f32.mrb[66].mxu0 }
 0x17b   :  { %v8215_v43 = vadd.f32 %v8214_v21, %v8213_v17  ;;  %v8216_v24 = vpop.f32.mrb[66].mxu1  ;;  %v8153_v26 = vpop.f32.mrb[67].mxu0 }
 0x17c   :  { %v10458_v28 = vmax.f32 %v702_v20, %v1105_v35  ;;  %v1350_v25 = vadd.f32 %v10443_v52, %v8151_v3  ;;  %v8154_v29 = vadd.f32 %v8153_v26, %v8152_v22  ;;  %v8217_v30 = vpop.f32.mrb[67].mxu1 }
 0x17d   :  { %v8218_v33 = vadd.f32 %v8217_v30, %v8216_v24 }
 0x17e   :  { %v1447_v44 = vadd.f32 %v8215_v43, %v1350_v25  ;;  %v1353_v50 = vadd.f32 %v10443_v52, %v8154_v29 }
 0x180   :  { %v1509_v27 = vmax.f32 %v1447_v44, 0.0  ;;  %v1450_v47 = vadd.f32 %v8218_v33, %v1353_v50  ;;  %v8155_v48 = vpop.f32.mrb[68].mxu0 }
 0x181   :  { %v8219_v13 = vpop.f32.mrb[68].mxu1  ;;  %v8156_v51 = vpop.f32.mrb[69].mxu0 }
 0x182   :  { %v10463_v34 = vmax.f32 %v10374_v6, %v1509_v27  ;;  %v1510_v54 = vmax.f32 %v1450_v47, 0.0  ;;  %v8157_v56 = vadd.f32 %v8156_v51, %v8155_v48  ;;  %v8220_v57 = vpop.f32.mrb[69].mxu1  ;;  %v8158_v58 = vpop.f32.mrb[70].mxu0 }
 0x183   :  { %v8221_v16 = vadd.f32 %v8220_v57, %v8219_v13  ;;  %v8222_v38 = vpop.f32.mrb[70].mxu1  ;;  %v8159_v46 = vpop.f32.mrb[71].mxu0 }
 0x184   :  { %v10466_v61 = vmax.f32 %v10376_v15, %v1510_v54  ;;  %v1358_v62 = vadd.f32 %v10443_v52, %v8157_v56  ;;  %v8160_v63 = vadd.f32 %v8159_v46, %v8158_v58  ;;  %v8223_v1 = vpop.f32.mrb[71].mxu1 }
 0x185   :  { %v8224_v36 = vadd.f32 %v8223_v1, %v8222_v38 }
 0x186   :  { %v1455_v39 = vadd.f32 %v8221_v16, %v1358_v62  ;;  %v1361_v40 = vadd.f32 %v10443_v52, %v8160_v63 }
 0x188   :  { %v1511_v6 = vmax.f32 %v1455_v39, 0.0  ;;  %v1458_v42 = vadd.f32 %v8224_v36, %v1361_v40  ;;  %v8161_v0 = vpop.f32.mrb[72].mxu0 }
 0x189   :  { %v8225_v4 = vpop.f32.mrb[72].mxu1  ;;  %v8162_v8 = vpop.f32.mrb[73].mxu0 }
 0x18a   :  { %v10471_v9 = vmax.f32 %v10400_v49, %v1511_v6  ;;  %v1512_v2 = vmax.f32 %v1458_v42, 0.0  ;;  %v8163_v5 = vadd.f32 %v8162_v8, %v8161_v0  ;;  %v8226_v15 = vpop.f32.mrb[73].mxu1  ;;  %v8164_v11 = vpop.f32.mrb[74].mxu0 }
 0x18b   :  { %v8227_v12 = vadd.f32 %v8226_v15, %v8225_v4  ;;  %v8228_v14 = vpop.f32.mrb[74].mxu1  ;;  %v8165_v17 = vpop.f32.mrb[75].mxu0 }
 0x18c   :  { %v10474_v31 = vmax.f32 %v10404_v59, %v1512_v2  ;;  %v1366_v20 = vadd.f32 %v10443_v52, %v8163_v5  ;;  %v8166_v35 = vadd.f32 %v8165_v17, %v8164_v11  ;;  %v8229_v3 = vpop.f32.mrb[75].mxu1 }
 0x18d   :  { %v8230_v21 = vadd.f32 %v8229_v3, %v8228_v14 }
 0x18e   :  { %v1463_v22 = vadd.f32 %v8227_v12, %v1366_v20  ;;  %v1369_v43 = vadd.f32 %v10443_v52, %v8166_v35 }
 0x190   :  { %v1513_v49 = vmax.f32 %v1463_v22, 0.0  ;;  %v1466_v24 = vadd.f32 %v8230_v21, %v1369_v43  ;;  %v8167_v26 = vpop.f32.mrb[76].mxu0 }
 0x191   :  { %v8231_v25 = vpop.f32.mrb[76].mxu1  ;;  %v8168_v29 = vpop.f32.mrb[77].mxu0 }
 0x192   :  { %v10479_v30 = vmax.f32 %v10411_v7, %v1513_v49  ;;  %v1514_v33 = vmax.f32 %v1466_v24, 0.0  ;;  %v8169_v44 = vadd.f32 %v8168_v29, %v8167_v26  ;;  %v8232_v59 = vpop.f32.mrb[77].mxu1  ;;  %v8170_v50 = vpop.f32.mrb[78].mxu0 }
 0x193   :  { %v8233_v27 = vadd.f32 %v8232_v59, %v8231_v25  ;;  %v8234_v47 = vpop.f32.mrb[78].mxu1  ;;  %v8171_v48 = vpop.f32.mrb[79].mxu0 }
 0x194   :  { %v10482_v13 = vmax.f32 %v10413_v18, %v1514_v33  ;;  %v1374_v51 = vadd.f32 %v10443_v52, %v8169_v44  ;;  %v8172_v54 = vadd.f32 %v8171_v48, %v8170_v50  ;;  %v8235_v56 = vpop.f32.mrb[79].mxu1 }
 0x195   :  { %v8236_v57 = vadd.f32 %v8235_v56, %v8234_v47 }
 0x196   :  { %v1471_v58 = vadd.f32 %v8233_v27, %v1374_v51  ;;  %v1377_v16 = vadd.f32 %v10443_v52, %v8172_v54 }
 0x198   :  { %v1515_v7 = vmax.f32 %v1471_v58, 0.0  ;;  %v1474_v38 = vadd.f32 %v8236_v57, %v1377_v16  ;;  %v8173_v46 = vpop.f32.mrb[80].mxu0 }
 0x199   :  { %v8237_v62 = vpop.f32.mrb[80].mxu1  ;;  %v8174_v63 = vpop.f32.mrb[81].mxu0 }
 0x19a   :  { %v10487_v1 = vmax.f32 %v10419_v32, %v1515_v7  ;;  %v1516_v36 = vmax.f32 %v1474_v38, 0.0  ;;  %v8175_v39 = vadd.f32 %v8174_v63, %v8173_v46  ;;  %v8238_v18 = vpop.f32.mrb[81].mxu1  ;;  %v8176_v40 = vpop.f32.mrb[82].mxu0 }
 0x19b   :  { %v8239_v6 = vadd.f32 %v8238_v18, %v8237_v62  ;;  %v8240_v42 = vpop.f32.mrb[82].mxu1  ;;  %v8177_v0 = vpop.f32.mrb[83].mxu0 }
 0x19c   :  { %v10490_v4 = vmax.f32 %v10421_v53, %v1516_v36  ;;  %v1382_v8 = vadd.f32 %v10443_v52, %v8175_v39  ;;  %v8178_v2 = vadd.f32 %v8177_v0, %v8176_v40  ;;  %v8241_v5 = vpop.f32.mrb[83].mxu1 }
 0x19d   :  { %v8242_v15 = vadd.f32 %v8241_v5, %v8240_v42 }
 0x19e   :  { %v1479_v11 = vadd.f32 %v8239_v6, %v1382_v8  ;;  %v1385_v12 = vadd.f32 %v10443_v52, %v8178_v2 }
 0x1a0   :  { %v1517_v32 = vmax.f32 %v1479_v11, 0.0  ;;  %v1482_v14 = vadd.f32 %v8242_v15, %v1385_v12  ;;  %v8179_v17 = vpop.f32.mrb[84].mxu0 }
 0x1a1   :  { %v8243_v20 = vpop.f32.mrb[84].mxu1  ;;  %v8180_v35 = vpop.f32.mrb[85].mxu0 }
 0x1a2   :  { %v10495_v3 = vmax.f32 %v10427_v37, %v1517_v32  ;;  %v1518_v21 = vmax.f32 %v1482_v14, 0.0  ;;  %v8181_v22 = vadd.f32 %v8180_v35, %v8179_v17  ;;  %v8244_v53 = vpop.f32.mrb[85].mxu1  ;;  %v8182_v43 = vpop.f32.mrb[86].mxu0 }
 0x1a3   :  { %v8245_v49 = vadd.f32 %v8244_v53, %v8243_v20  ;;  %v8246_v24 = vpop.f32.mrb[86].mxu1  ;;  %v8183_v26 = vpop.f32.mrb[87].mxu0 }
 0x1a4   :  { %v10498_v25 = vmax.f32 %v10429_v10, %v1518_v21  ;;  %v1390_v29 = vadd.f32 %v10443_v52, %v8181_v22  ;;  %v8184_v33 = vadd.f32 %v8183_v26, %v8182_v43  ;;  %v8247_v44 = vpop.f32.mrb[87].mxu1 }
 0x1a5   :  { %v8248_v59 = vadd.f32 %v8247_v44, %v8246_v24 }
 0x1a6   :  { %v1487_v50 = vadd.f32 %v8245_v49, %v1390_v29  ;;  %v1393_v27 = vadd.f32 %v10443_v52, %v8184_v33 }
 0x1a8   :  { %v1519_v37 = vmax.f32 %v1487_v50, 0.0  ;;  %v1490_v47 = vadd.f32 %v8248_v59, %v1393_v27  ;;  %v8185_v48 = vpop.f32.mrb[88].mxu0 }
 0x1a9   :  { %v8249_v51 = vpop.f32.mrb[88].mxu1  ;;  %v8186_v54 = vpop.f32.mrb[89].mxu0 }
 0x1aa   :  { %v10503_v56 = vmax.f32 %v10435_v23, %v1519_v37  ;;  %v1520_v57 = vmax.f32 %v1490_v47, 0.0  ;;  %v8187_v58 = vadd.f32 %v8186_v54, %v8185_v48  ;;  %v8250_v10 = vpop.f32.mrb[89].mxu1  ;;  %v8188_v16 = vpop.f32.mrb[90].mxu0 }
 0x1ab   :  { %v8251_v7 = vadd.f32 %v8250_v10, %v8249_v51  ;;  %v8252_v38 = vpop.f32.mrb[90].mxu1  ;;  %v8189_v46 = vpop.f32.mrb[91].mxu0 }
 0x1ac   :  { %v10506_v62 = vmax.f32 %v10437_v45, %v1520_v57  ;;  %v1398_v63 = vadd.f32 %v10443_v52, %v8187_v58  ;;  %v8190_v36 = vadd.f32 %v8189_v46, %v8188_v16  ;;  %v8253_v39 = vpop.f32.mrb[91].mxu1 }
 0x1ad   :  { %v8254_v18 = vadd.f32 %v8253_v39, %v8252_v38 }
 0x1ae   :  { %v1495_v40 = vadd.f32 %v8251_v7, %v1398_v63  ;;  %v1401_v6 = vadd.f32 %v10443_v52, %v8190_v36 }
 0x1b0   :  { %v1521_v23 = vmax.f32 %v1495_v40, 0.0  ;;  %v1498_v42 = vadd.f32 %v8254_v18, %v1401_v6  ;;  %v8191_v0 = vpop.f32.mrb[92].mxu0 }
 0x1b1   :  { %v8255_v8 = vpop.f32.mrb[92].mxu1  ;;  %v8192_v2 = vpop.f32.mrb[93].mxu0 }
 0x1b2   :  { %v10511_v5 = vmax.f32 %v10448_v60, %v1521_v23  ;;  %v1522_v15 = vmax.f32 %v1498_v42, 0.0  ;;  %v8193_v11 = vadd.f32 %v8192_v2, %v8191_v0  ;;  %v8256_v45 = vpop.f32.mrb[93].mxu1  ;;  %v8194_v12 = vpop.f32.mrb[94].mxu0 }
 0x1b3   :  { %v8257_v32 = vadd.f32 %v8256_v45, %v8255_v8  ;;  %v8258_v14 = vpop.f32.mrb[94].mxu1  ;;  %v8195_v17 = vpop.f32.mrb[95].mxu0 }
 0x1b4   :  { %v10514_v20 = vmax.f32 %v10450_v41, %v1522_v15  ;;  %v1406_v35 = vadd.f32 %v10443_v52, %v8193_v11  ;;  %v8196_v21 = vadd.f32 %v8195_v17, %v8194_v12  ;;  %v8259_v22 = vpop.f32.mrb[95].mxu1  ;;  %v8667_v17 = vld [vmem:[%s12200_s3 + $0x8] ss:$16 sps:$4 sm:$0xff]  }
 0x1b5   :  { %v8260_v53 = vadd.f32 %v8259_v22, %v8258_v14 }
 0x1b6   :  { %v1503_v43 = vadd.f32 %v8257_v32, %v1406_v35  ;;  %v1409_v49 = vadd.f32 %v10443_v52, %v8196_v21 }
 0x1b8   :  { %v1523_v60 = vmax.f32 %v1503_v43, 0.0  ;;  %v1506_v24 = vadd.f32 %v8260_v53, %v1409_v49  ;;  %v8277_v26 = vpop.f32.mrb[96].mxu0  ;;  %v8675_v43 = vld [vmem:[%s12200_s3 + $0x2c] ss:$16 sps:$4 sm:$0xff]  }
 0x1b9   :  { %v8341_v29 = vpop.f32.mrb[96].mxu1  ;;  %v8278_v33 = vpop.f32.mrb[97].mxu0 }
 0x1ba   :  { %v10519_v44 = vmax.f32 %v10456_v19, %v1523_v60  ;;  %v1524_v59 = vmax.f32 %v1506_v24, 0.0  ;;  %v8279_v50 = vadd.f32 %v8278_v33, %v8277_v26  ;;  %v8342_v41 = vpop.f32.mrb[97].mxu1  ;;  %v8280_v27 = vpop.f32.mrb[98].mxu0 }
 0x1bb   :  { %v8343_v37 = vadd.f32 %v8342_v41, %v8341_v29  ;;  %v8344_v47 = vpop.f32.mrb[98].mxu1  ;;  %v8281_v48 = vpop.f32.mrb[99].mxu0 }
 0x1bc   :  { %v10522_v51 = vmax.f32 %v10458_v28, %v1524_v59  ;;  %v1769_v54 = vadd.f32 %v10443_v52, %v8279_v50  ;;  %v8282_v57 = vadd.f32 %v8281_v48, %v8280_v27  ;;  %v8345_v58 = vpop.f32.mrb[99].mxu1 }
 0x1bd   :  { %v8346_v10 = vadd.f32 %v8345_v58, %v8344_v47  ;;  %v8673_v47 = vld [vmem:[%s12200_s3 + $0x28] ss:$16 sps:$4 sm:$0xff]   ;;  %v8678_v58 = vld [vmem:[%s12200_s3 + $0x44] ss:$16 sps:$4 sm:$0xff]  }
 0x1be   :  { %v1866_v16 = vadd.f32 %v8343_v37, %v1769_v54  ;;  %v1772_v7 = vadd.f32 %v10443_v52, %v8282_v57  ;;  %v8670_v37 = vld [vmem:[%s12200_s3 + $0x20] ss:$16 sps:$4 sm:$0xff]  }
 0x1c0   :  { %v1928_v19 = vmax.f32 %v1866_v16, 0.0  ;;  %v1869_v38 = vadd.f32 %v8346_v10, %v1772_v7  ;;  %v8283_v46 = vpop.f32.mrb[100].mxu0  ;;  %v8681_v10 = vld [vmem:[%s12200_s3 + $0x4c] ss:$16 sps:$4 sm:$0xff]  }
 0x1c1   :  { %v8284_v63 = vpop.f32.mrb[101].mxu0  ;;  %v8347_v36 = vpop.f32.mrb[100].mxu1 }
 0x1c2   :  { %v1944_v39 = vmax.f32 %v10463_v34, %v1928_v19  ;;  %v1929_v18 = vmax.f32 %v1869_v38, 0.0  ;;  %v8285_v40 = vadd.f32 %v8284_v63, %v8283_v46  ;;  %v8286_v6 = vpop.f32.mrb[102].mxu0  ;;  %v8348_v28 = vpop.f32.mrb[101].mxu1  ;;  %v8664_v34 = vld [vmem:[%s12200_s3] ss:$16 sps:$4 sm:$0xff]  }
 0x1c3   :  { %v8287_v23 = vpop.f32.mrb[103].mxu0  ;;  %v8349_v42 = vadd.f32 %v8348_v28, %v8347_v36  ;;  %v8350_v0 = vpop.f32.mrb[102].mxu1  ;;  %v8676_v38 = vld [vmem:[%s12200_s3 + $0x40] ss:$16 sps:$4 sm:$0xff]   ;;  %v8679_v46 = vld [vmem:[%s12200_s3 + $0x48] ss:$16 sps:$4 sm:$0xff]  }
 0x1c4   :  { %v1945_v8 = vmax.f32 %v10466_v61, %v1929_v18  ;;  %v1777_v2 = vadd.f32 %v10443_v52, %v8285_v40  ;;  %v8288_v15 = vadd.f32 %v8287_v23, %v8286_v6  ;;  %v8351_v11 = vpop.f32.mrb[103].mxu1  ;;  %v8672_v61 = vld [vmem:[%s12200_s3 + $0x24] ss:$16 sps:$4 sm:$0xff]   ;;  %v8687_v40 = vld [vmem:[%s12200_s3 + $0x6c] ss:$16 sps:$4 sm:$0xff]  }
 0x1c5   :  { %v8352_v45 = vadd.f32 %v8351_v11, %v8350_v0  ;;  %v8684_v18 = vld [vmem:[%s12200_s3 + $0x64] ss:$16 sps:$4 sm:$0xff]  }
 0x1c6   :  { %v10529_v12 = vpack.c.bf16 %v1945_v8, %v1944_v39  ;;  %v1780_v32 = vadd.f32 %v10443_v52, %v8288_v15  ;;  %v1874_v14 = vadd.f32 %v8349_v42, %v1777_v2 }
 0x1c8   :  { %v2034_v35 = vrot.slane %v10529_v12, 4  ;;  %v1930_v21 = vmax.f32 %v1874_v14, 0.0  ;;  %v1877_v22 = vadd.f32 %v8352_v45, %v1780_v32  ;;  %v8289_v53 = vpop.f32.mrb[104].mxu0  ;;  %v8682_v32 = vld [vmem:[%s12200_s3 + $0x60] ss:$16 sps:$4 sm:$0xff]  }
 0x1c9   :  { %v8290_v49 = vpop.f32.mrb[105].mxu0  ;;  %v8353_v60 = vpop.f32.mrb[104].mxu1  ;;  %v8685_v14 = vld [vmem:[%s12200_s3 + $0x68] ss:$16 sps:$4 sm:$0xff]  }
 0x1ca   :  { %v1946_v24 = vmax.f32 %v10471_v9, %v1930_v21  ;;  %v1931_v26 = vmax.f32 %v1877_v22, 0.0  ;;  %v8291_v29 = vadd.f32 %v8290_v49, %v8289_v53  ;;  %v8292_v33 = vpop.f32.mrb[106].mxu0  ;;  %2229 = vmatmul.mubr.bf16.vlgmr.msra.gmra.mrb[128].mxu0 %v2034_v35  ;;  %2270 = vmatmul.mubr.bf16.vlgmr.msra.gmra.mrb[128].mxu1 %v2034_v35  ;;  %v8354_v59 = vpop.f32.mrb[105].mxu1  ;;  %v8690_v35 = vld [vmem:[%s12200_s3 + $0x84] ss:$16 sps:$4 sm:$0xff]  }
 0x1cb   :  { %2439 = vmatpush1.bf16.msra.mxu0 %v8664_v34  ;;  %2480 = vmatpush1.bf16.msra.mxu1 %v8667_v17  ;;  %v8293_v50 = vpop.f32.mrb[107].mxu0  ;;  %v8355_v41 = vadd.f32 %v8354_v59, %v8353_v60  ;;  %v8356_v27 = vpop.f32.mrb[106].mxu1  ;;  %v8693_v21 = vld [vmem:[%s12200_s3 + $0x8c] ss:$16 sps:$4 sm:$0xff]   ;;  %v8688_v49 = vld [vmem:[%s12200_s3 + $0x80] ss:$16 sps:$4 sm:$0xff]  }
 0x1cc   :  { %v1947_v9 = vmax.f32 %v10474_v31, %v1931_v26  ;;  %v1785_v48 = vadd.f32 %v10443_v52, %v8291_v29  ;;  %v8294_v54 = vadd.f32 %v8293_v50, %v8292_v33  ;;  %v8357_v57 = vpop.f32.mrb[107].mxu1  ;;  %2440 = vmatprep.subr.bf16.mxu0 %v8672_v61  ;;  %2481 = vmatprep.subr.bf16.mxu1 %v8675_v43  ;;  %v8691_v60 = vld [vmem:[%s12200_s3 + $0x88] ss:$16 sps:$4 sm:$0xff]   ;;  %v8696_v33 = vld [vmem:[%s12200_s3 + $0xa4] ss:$16 sps:$4 sm:$0xff]  }
 0x1cd   :  { %v8358_v16 = vadd.f32 %v8357_v57, %v8356_v27  ;;  %2470 = vmatprep.mubr.bf16.mxu0 %v9443_v55  ;;  %2511 = vmatprep.mubr.bf16.mxu1 %v9443_v55  ;;  %v8699_v59 = vld [vmem:[%s12200_s3 + $0xac] ss:$16 sps:$4 sm:$0xff]  }
 0x1ce   :  { %v10562_v31 = vpack.c.bf16 %v1947_v9, %v1946_v24  ;;  %v1788_v7 = vadd.f32 %v10443_v52, %v8294_v54  ;;  %v1882_v19 = vadd.f32 %v8355_v41, %v1785_v48 }
 0x1cf   :  { %2441 = vmatpush1.bf16.msra.mxu0 %v8670_v37  ;;  %2482 = vmatpush1.bf16.msra.mxu1 %v8673_v47 }
 0x1d0   :  { %v1932_v63 = vmax.f32 %v1882_v19, 0.0  ;;  %v1885_v36 = vadd.f32 %v8358_v16, %v1788_v7  ;;  %v8295_v39 = vpop.f32.mrb[108].mxu0  ;;  %2442 = vmatprep.subr.bf16.mxu0 %v8678_v58  ;;  %2483 = vmatprep.subr.bf16.mxu1 %v8681_v10  ;;  %v8694_v10 = vld [vmem:[%s12200_s3 + $0xa0] ss:$16 sps:$4 sm:$0xff]   ;;  %v8697_v16 = vld [vmem:[%s12200_s3 + $0xa8] ss:$16 sps:$4 sm:$0xff]  }
 0x1d1   :  { %v8296_v6 = vpop.f32.mrb[109].mxu0  ;;  %v8359_v28 = vpop.f32.mrb[108].mxu1 }
 0x1d2   :  { %v1948_v23 = vmax.f32 %v10479_v30, %v1932_v63  ;;  %v1933_v42 = vmax.f32 %v1885_v36, 0.0  ;;  %v8297_v0 = vadd.f32 %v8296_v6, %v8295_v39  ;;  %v8298_v8 = vpop.f32.mrb[110].mxu0  ;;  %v8360_v2 = vpop.f32.mrb[109].mxu1  ;;  %v8705_v63 = vld [vmem:[%s12200_s3 + $0xcc] ss:$16 sps:$4 sm:$0xff]  }
 0x1d3   :  { %2443 = vmatpush1.bf16.msra.mxu0 %v8676_v38  ;;  %2484 = vmatpush1.bf16.msra.mxu1 %v8679_v46  ;;  %v8299_v15 = vpop.f32.mrb[111].mxu0  ;;  %v8361_v11 = vadd.f32 %v8360_v2, %v8359_v28  ;;  %v8362_v45 = vpop.f32.mrb[110].mxu1  ;;  %v8702_v46 = vld [vmem:[%s12200_s3 + $0xc4] ss:$16 sps:$4 sm:$0xff]   ;;  %v8703_v6 = vld [vmem:[%s12200_s3 + $0xc8] ss:$16 sps:$4 sm:$0xff]  }
 0x1d4   :  { %v1949_v34 = vmax.f32 %v10482_v13, %v1933_v42  ;;  %v1793_v30 = vadd.f32 %v10443_v52, %v8297_v0  ;;  %v8300_v17 = vadd.f32 %v8299_v15, %v8298_v8  ;;  %v8363_v61 = vpop.f32.mrb[111].mxu1  ;;  %2444 = vmatprep.subr.bf16.mxu0 %v8684_v18  ;;  %2485 = vmatprep.subr.bf16.mxu1 %v8687_v40  ;;  %v8700_v40 = vld [vmem:[%s12200_s3 + $0xc0] ss:$16 sps:$4 sm:$0xff]   ;;  %v8708_v0 = vld [vmem:[%s12200_s3 + $0xe4] ss:$16 sps:$4 sm:$0xff]  }
 0x1d5   :  { %v8364_v22 = vadd.f32 %v8363_v61, %v8362_v45  ;;  %v8711_v8 = vld [vmem:[%s12200_s3 + $0xec] ss:$16 sps:$4 sm:$0xff]  }
 0x1d6   :  { %v10592_v53 = vpack.c.bf16 %v1949_v34, %v1948_v23  ;;  %v1796_v43 = vadd.f32 %v10443_v52, %v8300_v17  ;;  %v1890_v13 = vadd.f32 %v8361_v11, %v1793_v30 }
 0x1d7   :  { %2445 = vmatpush1.bf16.msra.mxu0 %v8682_v32  ;;  %2486 = vmatpush1.bf16.msra.mxu1 %v8685_v14 }
 0x1d8   :  { %v1934_v24 = vmax.f32 %v1890_v13, 0.0  ;;  %v1893_v26 = vadd.f32 %v8364_v22, %v1796_v43  ;;  %v8301_v29 = vpop.f32.mrb[112].mxu0  ;;  %2446 = vmatprep.subr.bf16.mxu0 %v8690_v35  ;;  %2487 = vmatprep.subr.bf16.mxu1 %v8693_v21  ;;  %v8706_v35 = vld [vmem:[%s12200_s3 + $0xe0] ss:$16 sps:$4 sm:$0xff]   ;;  %v8709_v21 = vld [vmem:[%s12200_s3 + $0xe8] ss:$16 sps:$4 sm:$0xff]  }
 0x1d9   :  { %v8302_v50 = vpop.f32.mrb[113].mxu0  ;;  %v8365_v41 = vpop.f32.mrb[112].mxu1 }
 0x1da   :  { %v1950_v27 = vmax.f32 %v10487_v1, %v1934_v24  ;;  %v1935_v37 = vmax.f32 %v1893_v26, 0.0  ;;  %v8303_v47 = vadd.f32 %v8302_v50, %v8301_v29  ;;  %v8304_v9 = vpop.f32.mrb[114].mxu0  ;;  %v8366_v48 = vpop.f32.mrb[113].mxu1 }
 0x1db   :  { %2447 = vmatpush1.bf16.msra.mxu0 %v8688_v49  ;;  %2488 = vmatpush1.bf16.msra.mxu1 %v8691_v60  ;;  %v8305_v54 = vpop.f32.mrb[115].mxu0  ;;  %v8367_v57 = vadd.f32 %v8366_v48, %v8365_v41  ;;  %v8368_v58 = vpop.f32.mrb[114].mxu1  ;;  %v8714_v49 = vld [vmem:[%s12200_s3 + $0x204] ss:$16 sps:$4 sm:$0xff]   ;;  %v8717_v60 = vld [vmem:[%s12200_s3 + $0x20c] ss:$16 sps:$4 sm:$0xff]  }
 0x1dc   :  { %v1951_v7 = vmax.f32 %v10490_v4, %v1935_v37  ;;  %v1801_v1 = vadd.f32 %v10443_v52, %v8303_v47  ;;  %v8306_v19 = vadd.f32 %v8305_v54, %v8304_v9  ;;  %v8369_v38 = vpop.f32.mrb[115].mxu1  ;;  %2448 = vmatprep.subr.bf16.mxu0 %v8696_v33  ;;  %2489 = vmatprep.subr.bf16.mxu1 %v8699_v59  ;;  %v8712_v33 = vld [vmem:[%s12200_s3 + $0x200] ss:$16 sps:$4 sm:$0xff]   ;;  %v8715_v59 = vld [vmem:[%s12200_s3 + $0x208] ss:$16 sps:$4 sm:$0xff]  }
 0x1dd   :  { %v8370_v36 = vadd.f32 %v8369_v38, %v8368_v58  ;;  %v8720_v37 = vld [vmem:[%s12200_s3 + $0x224] ss:$16 sps:$4 sm:$0xff]   ;;  %v8723_v47 = vld [vmem:[%s12200_s3 + $0x22c] ss:$16 sps:$4 sm:$0xff]   ;;  %v8718_v38 = vld [vmem:[%s12200_s3 + $0x220] ss:$16 sps:$4 sm:$0xff]  }
 0x1de   :  { %v10622_v39 = vpack.c.bf16 %v1951_v7, %v1950_v27  ;;  %v1804_v18 = vadd.f32 %v10443_v52, %v8306_v19  ;;  %v1898_v4 = vadd.f32 %v8367_v57, %v1801_v1 }
 0x1df   :  { %2449 = vmatpush1.bf16.msra.mxu0 %v8694_v10  ;;  %2490 = vmatpush1.bf16.msra.mxu1 %v8697_v16 }
 0x1e0   :  { %v1936_v28 = vmax.f32 %v1898_v4, 0.0  ;;  %v1901_v23 = vadd.f32 %v8370_v36, %v1804_v18  ;;  %v8307_v42 = vpop.f32.mrb[116].mxu0  ;;  %2450 = vmatprep.subr.bf16.mxu0 %v8702_v46  ;;  %2491 = vmatprep.subr.bf16.mxu1 %v8705_v63  ;;  %v8726_v18 = vld [vmem:[%s12200_s3 + $0x244] ss:$16 sps:$4 sm:$0xff]   ;;  %v8729_v4 = vld [vmem:[%s12200_s3 + $0x24c] ss:$16 sps:$4 sm:$0xff]  }
 0x1e1   :  { %v8308_v2 = vpop.f32.mrb[117].mxu0  ;;  %v8371_v15 = vpop.f32.mrb[116].mxu1 }
 0x1e2   :  { %v1952_v11 = vmax.f32 %v10495_v3, %v1936_v28  ;;  %v1937_v45 = vmax.f32 %v1901_v23, 0.0  ;;  %v8309_v32 = vadd.f32 %v8308_v2, %v8307_v42  ;;  %v8310_v14 = vpop.f32.mrb[118].mxu0  ;;  %v8372_v34 = vpop.f32.mrb[117].mxu1  ;;  %v8724_v23 = vld [vmem:[%s12200_s3 + $0x240] ss:$16 sps:$4 sm:$0xff]  }
 0x1e3   :  { %2451 = vmatpush1.bf16.msra.mxu0 %v8700_v40  ;;  %2492 = vmatpush1.bf16.msra.mxu1 %v8703_v6  ;;  %v8311_v30 = vpop.f32.mrb[119].mxu0  ;;  %v8373_v17 = vadd.f32 %v8372_v34, %v8371_v15  ;;  %v8374_v61 = vpop.f32.mrb[118].mxu1  ;;  %v8727_v42 = vld [vmem:[%s12200_s3 + $0x248] ss:$16 sps:$4 sm:$0xff]   ;;  %v8732_v15 = vld [vmem:[%s12200_s3 + $0x264] ss:$16 sps:$4 sm:$0xff]  }
 0x1e4   :  { %v1953_v22 = vmax.f32 %v10498_v25, %v1937_v45  ;;  %v1809_v3 = vadd.f32 %v10443_v52, %v8309_v32  ;;  %v8312_v43 = vadd.f32 %v8311_v30, %v8310_v14  ;;  %v8375_v13 = vpop.f32.mrb[119].mxu1  ;;  %2452 = vmatprep.subr.bf16.mxu0 %v8708_v0  ;;  %2493 = vmatprep.subr.bf16.mxu1 %v8711_v8 }
 0x1e5   :  { %v8376_v24 = vadd.f32 %v8375_v13, %v8374_v61 }
 0x1e6   :  { %v10652_v26 = vpack.c.bf16 %v1953_v22, %v1952_v11  ;;  %v1812_v29 = vadd.f32 %v10443_v52, %v8312_v43  ;;  %v1906_v25 = vadd.f32 %v8373_v17, %v1809_v3  ;;  %v8735_v11 = vld [vmem:[%s12200_s3 + $0x26c] ss:$16 sps:$4 sm:$0xff]   ;;  %v8730_v3 = vld [vmem:[%s12200_s3 + $0x260] ss:$16 sps:$4 sm:$0xff]   ;;  %v8733_v43 = vld [vmem:[%s12200_s3 + $0x268] ss:$16 sps:$4 sm:$0xff]  }
 0x1e7   :  { %2453 = vmatpush1.bf16.msra.mxu0 %v8706_v35  ;;  %2494 = vmatpush1.bf16.msra.mxu1 %v8709_v21 }
 0x1e8   :  { %v1938_v50 = vmax.f32 %v1906_v25, 0.0  ;;  %v1909_v41 = vadd.f32 %v8376_v24, %v1812_v29  ;;  %v8313_v27 = vpop.f32.mrb[120].mxu0  ;;  %2713 = vmatprep.subr.bf16.mxu0 %v8714_v49  ;;  %2754 = vmatprep.subr.bf16.mxu1 %v8717_v60  ;;  %v8738_v24 = vld [vmem:[%s12200_s3 + $0x284] ss:$16 sps:$4 sm:$0xff]   ;;  %v8741_v29 = vld [vmem:[%s12200_s3 + $0x28c] ss:$16 sps:$4 sm:$0xff]  }
 0x1e9   :  { %v8314_v9 = vpop.f32.mrb[121].mxu0  ;;  %v8377_v48 = vpop.f32.mrb[120].mxu1 }
 0x1ea   :  { %v1954_v54 = vmax.f32 %v10503_v56, %v1938_v50  ;;  %v1939_v57 = vmax.f32 %v1909_v41, 0.0  ;;  %v8315_v58 = vadd.f32 %v8314_v9, %v8313_v27  ;;  %2471 = vmatmul.mubr.bf16.vlgmr.msra.gmra.mrb[132].mxu0 %v10529_v12  ;;  %2512 = vmatmul.mubr.bf16.vlgmr.msra.gmra.mrb[132].mxu1 %v10529_v12  ;;  %v8316_v10 = vpop.f32.mrb[122].mxu0  ;;  %v8378_v16 = vpop.f32.mrb[121].mxu1  ;;  %v8721_v56 = vld [vmem:[%s12200_s3 + $0x228] ss:$16 sps:$4 sm:$0xff]  }
 0x1eb   :  { %2714 = vmatpush1.bf16.msra.mxu0 %v8712_v33  ;;  %2755 = vmatpush1.bf16.msra.mxu1 %v8715_v59  ;;  %v8317_v7 = vpop.f32.mrb[123].mxu0  ;;  %v8379_v1 = vadd.f32 %v8378_v16, %v8377_v48  ;;  %v8380_v19 = vpop.f32.mrb[122].mxu1  ;;  %v8736_v50 = vld [vmem:[%s12200_s3 + $0x280] ss:$16 sps:$4 sm:$0xff]   ;;  %v8739_v41 = vld [vmem:[%s12200_s3 + $0x288] ss:$16 sps:$4 sm:$0xff]  }
 0x1ec   :  { %v1955_v46 = vmax.f32 %v10506_v62, %v1939_v57  ;;  %v1817_v63 = vadd.f32 %v10443_v52, %v8315_v58  ;;  %v8318_v12 = vadd.f32 %v8317_v7, %v8316_v10  ;;  %v8381_v36 = vpop.f32.mrb[123].mxu1  ;;  %2715 = vmatprep.subr.bf16.mxu0 %v8720_v37  ;;  %2756 = vmatprep.subr.bf16.mxu1 %v8723_v47  ;;  %v8744_v47 = vld [vmem:[%s12200_s3 + $0x2a4] ss:$16 sps:$4 sm:$0xff]   ;;  %v8745_v57 = vld [vmem:[%s12200_s3 + $0x2a8] ss:$16 sps:$4 sm:$0xff]  }
 0x1ed   :  { %v8382_v40 = vadd.f32 %v8381_v36, %v8380_v19  ;;  %2745 = vmatprep.mubr.bf16.mxu0 %v9443_v55  ;;  %2786 = vmatprep.mubr.bf16.mxu1 %v9443_v55  ;;  %v8750_v10 = vld [vmem:[%s12200_s3 + $0x2c4] ss:$16 sps:$4 sm:$0xff]   ;;  %v8748_v7 = vld [vmem:[%s12200_s3 + $0x2c0] ss:$16 sps:$4 sm:$0xff]   ;;  %v8759_v19 = vld [vmem:[%s12200_s3 + $0x2ec] ss:$16 sps:$4 sm:$0xff]  }
 0x1ee   :  { %v10686_v62 = vpack.c.bf16 %v1955_v46, %v1954_v54  ;;  %v1820_v6 = vadd.f32 %v10443_v52, %v8318_v12  ;;  %v1914_v28 = vadd.f32 %v8379_v1, %v1817_v63  ;;  %v8742_v54 = vld [vmem:[%s12200_s3 + $0x2a0] ss:$16 sps:$4 sm:$0xff]   ;;  %v8756_v1 = vld [vmem:[%s12200_s3 + $0x2e4] ss:$16 sps:$4 sm:$0xff]   ;;  %v8765_v63 = vld [vmem:[%s12200_s3 + $0x30c] ss:$16 sps:$4 sm:$0xff]  }
 0x1ef   :  { %2716 = vmatpush1.bf16.msra.mxu0 %v8718_v38  ;;  %2757 = vmatpush1.bf16.msra.mxu1 %v8721_v56  ;;  %v8754_v38 = vld [vmem:[%s12200_s3 + $0x2e0] ss:$16 sps:$4 sm:$0xff]   ;;  %v8757_v56 = vld [vmem:[%s12200_s3 + $0x2e8] ss:$16 sps:$4 sm:$0xff]   ;;  %v8762_v46 = vld [vmem:[%s12200_s3 + $0x304] ss:$16 sps:$4 sm:$0xff]  }
 0x1f0   :  { %v1940_v0 = vmax.f32 %v1914_v28, 0.0  ;;  %v1917_v8 = vadd.f32 %v8382_v40, %v1820_v6  ;;  %v8319_v2 = vpop.f32.mrb[124].mxu0  ;;  %2717 = vmatprep.subr.bf16.mxu0 %v8726_v18  ;;  %2758 = vmatprep.subr.bf16.mxu1 %v8729_v4  ;;  %v8760_v12 = vld [vmem:[%s12200_s3 + $0x300] ss:$16 sps:$4 sm:$0xff]   ;;  %v8763_v36 = vld [vmem:[%s12200_s3 + $0x308] ss:$16 sps:$4 sm:$0xff]  }
 0x1f1   :  { %v8320_v45 = vpop.f32.mrb[125].mxu0  ;;  %v8383_v32 = vpop.f32.mrb[124].mxu1  ;;  %v8768_v18 = vld [vmem:[%s12200_s3 + $0x324] ss:$16 sps:$4 sm:$0xff]   ;;  %v8771_v4 = vld [vmem:[%s12200_s3 + $0x32c] ss:$16 sps:$4 sm:$0xff]  }
 0x1f2   :  { %v1956_v14 = vmax.f32 %v10511_v5, %v1940_v0  ;;  %v1941_v34 = vmax.f32 %v1917_v8, 0.0  ;;  %v8321_v30 = vadd.f32 %v8320_v45, %v8319_v2  ;;  %v8322_v17 = vpop.f32.mrb[126].mxu0  ;;  %v8384_v61 = vpop.f32.mrb[125].mxu1  ;;  %v8766_v40 = vld [vmem:[%s12200_s3 + $0x320] ss:$16 sps:$4 sm:$0xff]  }
 0x1f3   :  { %2718 = vmatpush1.bf16.msra.mxu0 %v8724_v23  ;;  %2759 = vmatpush1.bf16.msra.mxu1 %v8727_v42  ;;  %v8323_v35 = vpop.f32.mrb[127].mxu0  ;;  %v8385_v21 = vadd.f32 %v8384_v61, %v8383_v32  ;;  %v8386_v22 = vpop.f32.mrb[126].mxu1  ;;  %v8769_v6 = vld [vmem:[%s12200_s3 + $0x328] ss:$16 sps:$4 sm:$0xff]   ;;  %v8774_v28 = vld [vmem:[%s12200_s3 + $0x344] ss:$16 sps:$4 sm:$0xff]  }
 0x1f4   :  { %v1957_v13 = vmax.f32 %v10514_v20, %v1941_v34  ;;  %v1825_v5 = vadd.f32 %v10443_v52, %v8321_v30  ;;  %v8324_v49 = vadd.f32 %v8323_v35, %v8322_v17  ;;  %v8387_v60 = vpop.f32.mrb[127].mxu1  ;;  %2719 = vmatprep.subr.bf16.mxu0 %v8732_v15  ;;  %2760 = vmatprep.subr.bf16.mxu1 %v8735_v11  ;;  %v8777_v23 = vld [vmem:[%s12200_s3 + $0x34c] ss:$16 sps:$4 sm:$0xff]   ;;  %v8772_v42 = vld [vmem:[%s12200_s3 + $0x340] ss:$16 sps:$4 sm:$0xff]  }
 0x1f5   :  { %v8388_v25 = vadd.f32 %v8387_v60, %v8386_v22  ;;  %v8775_v0 = vld [vmem:[%s12200_s3 + $0x348] ss:$16 sps:$4 sm:$0xff]   ;;  %v8780_v8 = vld [vmem:[%s12200_s3 + $0x364] ss:$16 sps:$4 sm:$0xff]   ;;  %v8783_v2 = vld [vmem:[%s12200_s3 + $0x36c] ss:$16 sps:$4 sm:$0xff]  }
 0x1f6   :  { %v10716_v33 = vpack.c.bf16 %v1957_v13, %v1956_v14  ;;  %v1828_v59 = vadd.f32 %v10443_v52, %v8324_v49  ;;  %v1922_v20 = vadd.f32 %v8385_v21, %v1825_v5  ;;  %v8747_v52 = vld [vmem:[%s12200_s3 + $0x2ac] ss:$16 sps:$4 sm:$0xff]   ;;  %v8778_v15 = vld [vmem:[%s12200_s3 + $0x360] ss:$16 sps:$4 sm:$0xff]   ;;  %v8781_v11 = vld [vmem:[%s12200_s3 + $0x368] ss:$16 sps:$4 sm:$0xff]  }
 0x1f7   :  { %2720 = vmatpush1.bf16.msra.mxu0 %v8730_v3  ;;  %2761 = vmatpush1.bf16.msra.mxu1 %v8733_v43  ;;  %v8786_v45 = vld [vmem:[%s12200_s3 + $0x384] ss:$16 sps:$4 sm:$0xff]   ;;  %v8789_v32 = vld [vmem:[%s12200_s3 + $0x38c] ss:$16 sps:$4 sm:$0xff]   ;;  %v8784_v14 = vld [vmem:[%s12200_s3 + $0x380] ss:$16 sps:$4 sm:$0xff]  }
 0x1f8   :  { %v1942_v27 = vmax.f32 %v1922_v20, 0.0  ;;  %v1925_v37 = vadd.f32 %v8388_v25, %v1828_v59  ;;  %2721 = vmatprep.subr.bf16.mxu0 %v8738_v24  ;;  %2762 = vmatprep.subr.bf16.mxu1 %v8741_v29  ;;  %v8787_v34 = vld [vmem:[%s12200_s3 + $0x388] ss:$16 sps:$4 sm:$0xff]   ;;  %v8792_v30 = vld [vmem:[%s12200_s3 + $0x3a4] ss:$16 sps:$4 sm:$0xff]   ;;  %v2833_v20 = vrot.slane %v10562_v31, 4 }
 0x1f9   :  { %v8795_v17 = vld [vmem:[%s12200_s3 + $0x3ac] ss:$16 sps:$4 sm:$0xff]   ;;  %v8790_v61 = vld [vmem:[%s12200_s3 + $0x3a0] ss:$16 sps:$4 sm:$0xff]   ;;  %v8793_v35 = vld [vmem:[%s12200_s3 + $0x3a8] ss:$16 sps:$4 sm:$0xff]  }
 0x1fa   :  { %v1958_v9 = vmax.f32 %v10519_v44, %v1942_v27  ;;  %v1943_v48 = vmax.f32 %v1925_v37, 0.0  ;;  %v8753_v44 = vld [vmem:[%s12200_s3 + $0x2cc] ss:$16 sps:$4 sm:$0xff]   ;;  %v8798_v21 = vld [vmem:[%s12200_s3 + $0x3c4] ss:$16 sps:$4 sm:$0xff]  }
 0x1fb   :  { %2722 = vmatpush1.bf16.msra.mxu0 %v8736_v50  ;;  %2763 = vmatpush1.bf16.msra.mxu1 %v8739_v41  ;;  %v8801_v22 = vld [vmem:[%s12200_s3 + $0x3cc] ss:$16 sps:$4 sm:$0xff]   ;;  %v8796_v3 = vld [vmem:[%s12200_s3 + $0x3c0] ss:$16 sps:$4 sm:$0xff]   ;;  %v8799_v43 = vld [vmem:[%s12200_s3 + $0x3c8] ss:$16 sps:$4 sm:$0xff]  }
 0x1fc   :  { %v1959_v58 = vmax.f32 %v10522_v51, %v1943_v48  ;;  %2723 = vmatprep.subr.bf16.mxu0 %v8744_v47  ;;  %2764 = vmatprep.subr.bf16.mxu1 %v8747_v52  ;;  %v8751_v51 = vld [vmem:[%s12200_s3 + $0x2c8] ss:$16 sps:$4 sm:$0xff]   ;;  %v8804_v13 = vld [vmem:[%s12200_s3 + $0x3e4] ss:$16 sps:$4 sm:$0xff]   ;;  %v8807_v5 = vld [vmem:[%s12200_s3 + $0x3ec] ss:$16 sps:$4 sm:$0xff]  }
 0x1fd   :  { %v8802_v49 = vld [vmem:[%s12200_s3 + $0x3e0] ss:$16 sps:$4 sm:$0xff]   ;;  %v8805_v60 = vld [vmem:[%s12200_s3 + $0x3e8] ss:$16 sps:$4 sm:$0xff]   ;;  %v8810_v24 = vld [vmem:[%s12200_s3 + $0x404] ss:$16 sps:$4 sm:$0xff]  }
 0x1fe   :  { %v10745_v16 = vpack.c.bf16 %v1959_v58, %v1958_v9  ;;  %v8813_v29 = vld [vmem:[%s12200_s3 + $0x40c] ss:$16 sps:$4 sm:$0xff]   ;;  %v8808_v25 = vld [vmem:[%s12200_s3 + $0x400] ss:$16 sps:$4 sm:$0xff]   ;;  %v8811_v59 = vld [vmem:[%s12200_s3 + $0x408] ss:$16 sps:$4 sm:$0xff]  }
 0x1ff   :  { %2724 = vmatpush1.bf16.msra.mxu0 %v8742_v54  ;;  %2765 = vmatpush1.bf16.msra.mxu1 %v8745_v57  ;;  %v8816_v50 = vld [vmem:[%s12200_s3 + $0x424] ss:$16 sps:$4 sm:$0xff]   ;;  %v8819_v41 = vld [vmem:[%s12200_s3 + $0x42c] ss:$16 sps:$4 sm:$0xff]   ;;  %v8814_v27 = vld [vmem:[%s12200_s3 + $0x420] ss:$16 sps:$4 sm:$0xff]  }
 0x200   :  { %2725 = vmatprep.subr.bf16.mxu0 %v8750_v10  ;;  %2766 = vmatprep.subr.bf16.mxu1 %v8753_v44  ;;  %v8822_v37 = vld [vmem:[%s12200_s3 + $0x444] ss:$16 sps:$4 sm:$0xff]   ;;  %v8825_v47 = vld [vmem:[%s12200_s3 + $0x44c] ss:$16 sps:$4 sm:$0xff]   ;;  %v8820_v52 = vld [vmem:[%s12200_s3 + $0x440] ss:$16 sps:$4 sm:$0xff]  }
 0x201   :  { %v8823_v9 = vld [vmem:[%s12200_s3 + $0x448] ss:$16 sps:$4 sm:$0xff]   ;;  %v8828_v48 = vld [vmem:[%s12200_s3 + $0x464] ss:$16 sps:$4 sm:$0xff]   ;;  %v8831_v54 = vld [vmem:[%s12200_s3 + $0x46c] ss:$16 sps:$4 sm:$0xff]  }
 0x202   :  { %v8826_v57 = vld [vmem:[%s12200_s3 + $0x460] ss:$16 sps:$4 sm:$0xff]   ;;  %v8829_v58 = vld [vmem:[%s12200_s3 + $0x468] ss:$16 sps:$4 sm:$0xff]   ;;  %v8834_v10 = vld [vmem:[%s12200_s3 + $0x484] ss:$16 sps:$4 sm:$0xff]  }
 0x203   :  { %2726 = vmatpush1.bf16.msra.mxu0 %v8748_v7  ;;  %2767 = vmatpush1.bf16.msra.mxu1 %v8751_v51  ;;  %v8837_v44 = vld [vmem:[%s12200_s3 + $0x48c] ss:$16 sps:$4 sm:$0xff]   ;;  %v8832_v7 = vld [vmem:[%s12200_s3 + $0x480] ss:$16 sps:$4 sm:$0xff]   ;;  %v8835_v51 = vld [vmem:[%s12200_s3 + $0x488] ss:$16 sps:$4 sm:$0xff]  }
 0x204   :  { %2727 = vmatprep.subr.bf16.mxu0 %v8756_v1  ;;  %2768 = vmatprep.subr.bf16.mxu1 %v8759_v19  ;;  %v8840_v1 = vld [vmem:[%s12200_s3 + $0x4a4] ss:$16 sps:$4 sm:$0xff]   ;;  %v8843_v19 = vld [vmem:[%s12200_s3 + $0x4ac] ss:$16 sps:$4 sm:$0xff]  }
 0x207   :  { %2728 = vmatpush1.bf16.msra.mxu0 %v8754_v38  ;;  %2769 = vmatpush1.bf16.msra.mxu1 %v8757_v56  ;;  %v8838_v38 = vld [vmem:[%s12200_s3 + $0x4a0] ss:$16 sps:$4 sm:$0xff]   ;;  %v8841_v56 = vld [vmem:[%s12200_s3 + $0x4a8] ss:$16 sps:$4 sm:$0xff]  }
 0x208   :  { %2995 = vmatprep.subr.bf16.mxu0 %v8762_v46  ;;  %3036 = vmatprep.subr.bf16.mxu1 %v8765_v63  ;;  %v8846_v46 = vld [vmem:[%s12200_s3 + $0x4c4] ss:$16 sps:$4 sm:$0xff]   ;;  %v8849_v63 = vld [vmem:[%s12200_s3 + $0x4cc] ss:$16 sps:$4 sm:$0xff]  }
 0x20a   :  { %2746 = vmatmul.mubr.bf16.vlgmr.msra.gmra.mrb[136].mxu0 %v10562_v31  ;;  %2787 = vmatmul.mubr.bf16.vlgmr.msra.gmra.mrb[136].mxu1 %v10562_v31  ;;  %v8817_v31 = vld [vmem:[%s12200_s3 + $0x428] ss:$16 sps:$4 sm:$0xff]  }
 0x20b   :  { %2996 = vmatpush1.bf16.msra.mxu0 %v8760_v12  ;;  %3037 = vmatpush1.bf16.msra.mxu1 %v8763_v36  ;;  %v8844_v12 = vld [vmem:[%s12200_s3 + $0x4c0] ss:$16 sps:$4 sm:$0xff]   ;;  %v8847_v36 = vld [vmem:[%s12200_s3 + $0x4c8] ss:$16 sps:$4 sm:$0xff]  }
 0x20c   :  { %2997 = vmatprep.subr.bf16.mxu0 %v8768_v18  ;;  %3038 = vmatprep.subr.bf16.mxu1 %v8771_v4  ;;  %v8852_v18 = vld [vmem:[%s12200_s3 + $0x4e4] ss:$16 sps:$4 sm:$0xff]   ;;  %v8855_v4 = vld [vmem:[%s12200_s3 + $0x4ec] ss:$16 sps:$4 sm:$0xff]  }
 0x20d   :  { %3027 = vmatprep.mubr.bf16.mxu0 %v9443_v55  ;;  %3068 = vmatprep.mubr.bf16.mxu1 %v9443_v55 }
 0x20f   :  { %2998 = vmatpush1.bf16.msra.mxu0 %v8766_v40  ;;  %3039 = vmatpush1.bf16.msra.mxu1 %v8769_v6  ;;  %v8850_v40 = vld [vmem:[%s12200_s3 + $0x4e0] ss:$16 sps:$4 sm:$0xff]   ;;  %v8853_v6 = vld [vmem:[%s12200_s3 + $0x4e8] ss:$16 sps:$4 sm:$0xff]  }
 0x210   :  { %2999 = vmatprep.subr.bf16.mxu0 %v8774_v28  ;;  %3040 = vmatprep.subr.bf16.mxu1 %v8777_v23  ;;  %v8858_v28 = vld [vmem:[%s12200_s3 + $0x504] ss:$16 sps:$4 sm:$0xff]   ;;  %v8861_v23 = vld [vmem:[%s12200_s3 + $0x50c] ss:$16 sps:$4 sm:$0xff]  }
 0x213   :  { %3000 = vmatpush1.bf16.msra.mxu0 %v8772_v42  ;;  %3041 = vmatpush1.bf16.msra.mxu1 %v8775_v0  ;;  %v8856_v42 = vld [vmem:[%s12200_s3 + $0x500] ss:$16 sps:$4 sm:$0xff]   ;;  %v8859_v0 = vld [vmem:[%s12200_s3 + $0x508] ss:$16 sps:$4 sm:$0xff]  }
 0x214   :  { %3001 = vmatprep.subr.bf16.mxu0 %v8780_v8  ;;  %3042 = vmatprep.subr.bf16.mxu1 %v8783_v2  ;;  %v8864_v8 = vld [vmem:[%s12200_s3 + $0x524] ss:$16 sps:$4 sm:$0xff]   ;;  %v8867_v2 = vld [vmem:[%s12200_s3 + $0x52c] ss:$16 sps:$4 sm:$0xff]  }
 0x217   :  { %3002 = vmatpush1.bf16.msra.mxu0 %v8778_v15  ;;  %3043 = vmatpush1.bf16.msra.mxu1 %v8781_v11  ;;  %v8862_v15 = vld [vmem:[%s12200_s3 + $0x520] ss:$16 sps:$4 sm:$0xff]   ;;  %v8865_v11 = vld [vmem:[%s12200_s3 + $0x528] ss:$16 sps:$4 sm:$0xff]  }
 0x218   :  { %3003 = vmatprep.subr.bf16.mxu0 %v8786_v45  ;;  %3044 = vmatprep.subr.bf16.mxu1 %v8789_v32  ;;  %v8870_v45 = vld [vmem:[%s12200_s3 + $0x544] ss:$16 sps:$4 sm:$0xff]   ;;  %v8873_v32 = vld [vmem:[%s12200_s3 + $0x54c] ss:$16 sps:$4 sm:$0xff]  }
 0x21b   :  { %3004 = vmatpush1.bf16.msra.mxu0 %v8784_v14  ;;  %3045 = vmatpush1.bf16.msra.mxu1 %v8787_v34  ;;  %v8868_v14 = vld [vmem:[%s12200_s3 + $0x540] ss:$16 sps:$4 sm:$0xff]   ;;  %v8871_v34 = vld [vmem:[%s12200_s3 + $0x548] ss:$16 sps:$4 sm:$0xff]  }
 0x21c   :  { %3005 = vmatprep.subr.bf16.mxu0 %v8792_v30  ;;  %3046 = vmatprep.subr.bf16.mxu1 %v8795_v17  ;;  %v8876_v30 = vld [vmem:[%s12200_s3 + $0x564] ss:$16 sps:$4 sm:$0xff]   ;;  %v8879_v17 = vld [vmem:[%s12200_s3 + $0x56c] ss:$16 sps:$4 sm:$0xff]  }
 0x21f   :  { %3006 = vmatpush1.bf16.msra.mxu0 %v8790_v61  ;;  %3047 = vmatpush1.bf16.msra.mxu1 %v8793_v35  ;;  %v8874_v61 = vld [vmem:[%s12200_s3 + $0x560] ss:$16 sps:$4 sm:$0xff]   ;;  %v8877_v35 = vld [vmem:[%s12200_s3 + $0x568] ss:$16 sps:$4 sm:$0xff]  }
 0x220   :  { %3007 = vmatprep.subr.bf16.mxu0 %v8798_v21  ;;  %3048 = vmatprep.subr.bf16.mxu1 %v8801_v22  ;;  %v8882_v21 = vld [vmem:[%s12200_s3 + $0x584] ss:$16 sps:$4 sm:$0xff]   ;;  %v8885_v22 = vld [vmem:[%s12200_s3 + $0x58c] ss:$16 sps:$4 sm:$0xff]  }
 0x223   :  { %3008 = vmatpush1.bf16.msra.mxu0 %v8796_v3  ;;  %3049 = vmatpush1.bf16.msra.mxu1 %v8799_v43  ;;  %v8880_v3 = vld [vmem:[%s12200_s3 + $0x580] ss:$16 sps:$4 sm:$0xff]   ;;  %v8883_v43 = vld [vmem:[%s12200_s3 + $0x588] ss:$16 sps:$4 sm:$0xff]  }
 0x224   :  { %3009 = vmatprep.subr.bf16.mxu0 %v8804_v13  ;;  %3050 = vmatprep.subr.bf16.mxu1 %v8807_v5  ;;  %v8888_v13 = vld [vmem:[%s12200_s3 + $0x5a4] ss:$16 sps:$4 sm:$0xff]   ;;  %v8891_v5 = vld [vmem:[%s12200_s3 + $0x5ac] ss:$16 sps:$4 sm:$0xff]  }
 0x227   :  { %3010 = vmatpush1.bf16.msra.mxu0 %v8802_v49  ;;  %3051 = vmatpush1.bf16.msra.mxu1 %v8805_v60  ;;  %v8886_v49 = vld [vmem:[%s12200_s3 + $0x5a0] ss:$16 sps:$4 sm:$0xff]   ;;  %v8889_v60 = vld [vmem:[%s12200_s3 + $0x5a8] ss:$16 sps:$4 sm:$0xff]  }
 0x228   :  { %3274 = vmatprep.subr.bf16.mxu0 %v8810_v24  ;;  %3315 = vmatprep.subr.bf16.mxu1 %v8813_v29  ;;  %v8894_v24 = vld [vmem:[%s12200_s3 + $0x5c4] ss:$16 sps:$4 sm:$0xff]   ;;  %v8897_v29 = vld [vmem:[%s12200_s3 + $0x5cc] ss:$16 sps:$4 sm:$0xff]  }
 0x22a   :  { %3028 = vmatmul.mubr.bf16.vlgmr.msra.gmra.mrb[140].mxu0 %v2833_v20  ;;  %3069 = vmatmul.mubr.bf16.vlgmr.msra.gmra.mrb[140].mxu1 %v2833_v20  ;;  %v8900_v20 = vld [vmem:[%s12200_s3 + $0x5e4] ss:$16 sps:$4 sm:$0xff]  }
 0x22b   :  { %3275 = vmatpush1.bf16.msra.mxu0 %v8808_v25  ;;  %3316 = vmatpush1.bf16.msra.mxu1 %v8811_v59  ;;  %v8892_v25 = vld [vmem:[%s12200_s3 + $0x5c0] ss:$16 sps:$4 sm:$0xff]   ;;  %v8895_v59 = vld [vmem:[%s12200_s3 + $0x5c8] ss:$16 sps:$4 sm:$0xff]  }
 0x22c   :  { %3276 = vmatprep.subr.bf16.mxu0 %v8816_v50  ;;  %3317 = vmatprep.subr.bf16.mxu1 %v8819_v41  ;;  %v8903_v50 = vld [vmem:[%s12200_s3 + $0x5ec] ss:$16 sps:$4 sm:$0xff]   ;;  %v8898_v41 = vld [vmem:[%s12200_s3 + $0x5e0] ss:$16 sps:$4 sm:$0xff]  }
 0x22d   :  { %3306 = vmatprep.mubr.bf16.mxu0 %v9443_v55  ;;  %3347 = vmatprep.mubr.bf16.mxu1 %v9443_v55 }
 0x22f   :  { %3277 = vmatpush1.bf16.msra.mxu0 %v8814_v27  ;;  %3318 = vmatpush1.bf16.msra.mxu1 %v8817_v31  ;;  %v8901_v27 = vld [vmem:[%s12200_s3 + $0x5e8] ss:$16 sps:$4 sm:$0xff]   ;;  %v8906_v31 = vld [vmem:[%s12200_s3 + $0x604] ss:$16 sps:$4 sm:$0xff]  }
 0x230   :  { %3278 = vmatprep.subr.bf16.mxu0 %v8822_v37  ;;  %3319 = vmatprep.subr.bf16.mxu1 %v8825_v47  ;;  %v8909_v37 = vld [vmem:[%s12200_s3 + $0x60c] ss:$16 sps:$4 sm:$0xff]   ;;  %v8904_v47 = vld [vmem:[%s12200_s3 + $0x600] ss:$16 sps:$4 sm:$0xff]  }
 0x233   :  { %3279 = vmatpush1.bf16.msra.mxu0 %v8820_v52  ;;  %3320 = vmatpush1.bf16.msra.mxu1 %v8823_v9  ;;  %v8907_v52 = vld [vmem:[%s12200_s3 + $0x608] ss:$16 sps:$4 sm:$0xff]   ;;  %v3394_v9 = vrot.slane %v10592_v53, 4 }
 0x234   :  { %3280 = vmatprep.subr.bf16.mxu0 %v8828_v48  ;;  %3321 = vmatprep.subr.bf16.mxu1 %v8831_v54  ;;  %v8912_v48 = vld [vmem:[%s12200_s3 + $0x624] ss:$16 sps:$4 sm:$0xff]   ;;  %v8915_v54 = vld [vmem:[%s12200_s3 + $0x62c] ss:$16 sps:$4 sm:$0xff]  }
 0x237   :  { %3281 = vmatpush1.bf16.msra.mxu0 %v8826_v57  ;;  %3322 = vmatpush1.bf16.msra.mxu1 %v8829_v58  ;;  %v8910_v57 = vld [vmem:[%s12200_s3 + $0x620] ss:$16 sps:$4 sm:$0xff]   ;;  %v8918_v58 = vld [vmem:[%s12200_s3 + $0x644] ss:$16 sps:$4 sm:$0xff]  }
 0x238   :  { %3282 = vmatprep.subr.bf16.mxu0 %v8834_v10  ;;  %3323 = vmatprep.subr.bf16.mxu1 %v8837_v44  ;;  %v8921_v10 = vld [vmem:[%s12200_s3 + $0x64c] ss:$16 sps:$4 sm:$0xff]   ;;  %v8916_v44 = vld [vmem:[%s12200_s3 + $0x640] ss:$16 sps:$4 sm:$0xff]  }
 0x23b   :  { %3283 = vmatpush1.bf16.msra.mxu0 %v8832_v7  ;;  %3324 = vmatpush1.bf16.msra.mxu1 %v8835_v51  ;;  %v8919_v7 = vld [vmem:[%s12200_s3 + $0x648] ss:$16 sps:$4 sm:$0xff]   ;;  %v8924_v51 = vld [vmem:[%s12200_s3 + $0x664] ss:$16 sps:$4 sm:$0xff]  }
 0x23c   :  { %3284 = vmatprep.subr.bf16.mxu0 %v8840_v1  ;;  %3325 = vmatprep.subr.bf16.mxu1 %v8843_v19  ;;  %v8927_v1 = vld [vmem:[%s12200_s3 + $0x66c] ss:$16 sps:$4 sm:$0xff]   ;;  %v8922_v19 = vld [vmem:[%s12200_s3 + $0x660] ss:$16 sps:$4 sm:$0xff]  }
 0x23f   :  { %3285 = vmatpush1.bf16.msra.mxu0 %v8838_v38  ;;  %3326 = vmatpush1.bf16.msra.mxu1 %v8841_v56  ;;  %v8925_v38 = vld [vmem:[%s12200_s3 + $0x668] ss:$16 sps:$4 sm:$0xff]   ;;  %v8930_v56 = vld [vmem:[%s12200_s3 + $0x684] ss:$16 sps:$4 sm:$0xff]  }
 0x240   :  { %3286 = vmatprep.subr.bf16.mxu0 %v8846_v46  ;;  %3327 = vmatprep.subr.bf16.mxu1 %v8849_v63  ;;  %v8933_v46 = vld [vmem:[%s12200_s3 + $0x68c] ss:$16 sps:$4 sm:$0xff]   ;;  %v8928_v63 = vld [vmem:[%s12200_s3 + $0x680] ss:$16 sps:$4 sm:$0xff]  }
 0x243   :  { %3287 = vmatpush1.bf16.msra.mxu0 %v8844_v12  ;;  %3328 = vmatpush1.bf16.msra.mxu1 %v8847_v36  ;;  %v8931_v12 = vld [vmem:[%s12200_s3 + $0x688] ss:$16 sps:$4 sm:$0xff]   ;;  %v8936_v36 = vld [vmem:[%s12200_s3 + $0x6a4] ss:$16 sps:$4 sm:$0xff]  }
 0x244   :  { %3288 = vmatprep.subr.bf16.mxu0 %v8852_v18  ;;  %3329 = vmatprep.subr.bf16.mxu1 %v8855_v4  ;;  %v8939_v18 = vld [vmem:[%s12200_s3 + $0x6ac] ss:$16 sps:$4 sm:$0xff]   ;;  %v8934_v4 = vld [vmem:[%s12200_s3 + $0x6a0] ss:$16 sps:$4 sm:$0xff]  }
 0x247   :  { %3289 = vmatpush1.bf16.msra.mxu0 %v8850_v40  ;;  %3330 = vmatpush1.bf16.msra.mxu1 %v8853_v6  ;;  %v8937_v40 = vld [vmem:[%s12200_s3 + $0x6a8] ss:$16 sps:$4 sm:$0xff]   ;;  %v8942_v6 = vld [vmem:[%s12200_s3 + $0x6c4] ss:$16 sps:$4 sm:$0xff]  }
 0x248   :  { %3556 = vmatprep.subr.bf16.mxu0 %v8858_v28  ;;  %3597 = vmatprep.subr.bf16.mxu1 %v8861_v23  ;;  %v8945_v28 = vld [vmem:[%s12200_s3 + $0x6cc] ss:$16 sps:$4 sm:$0xff]   ;;  %v8940_v23 = vld [vmem:[%s12200_s3 + $0x6c0] ss:$16 sps:$4 sm:$0xff]  }
 0x24a   :  { %3307 = vmatmul.mubr.bf16.vlgmr.msra.gmra.mrb[144].mxu0 %v10592_v53  ;;  %3348 = vmatmul.mubr.bf16.vlgmr.msra.gmra.mrb[144].mxu1 %v10592_v53  ;;  %v8913_v53 = vld [vmem:[%s12200_s3 + $0x628] ss:$16 sps:$4 sm:$0xff]  }
 0x24b   :  { %3557 = vmatpush1.bf16.msra.mxu0 %v8856_v42  ;;  %3598 = vmatpush1.bf16.msra.mxu1 %v8859_v0  ;;  %v8943_v42 = vld [vmem:[%s12200_s3 + $0x6c8] ss:$16 sps:$4 sm:$0xff]   ;;  %v8948_v0 = vld [vmem:[%s12200_s3 + $0x6e4] ss:$16 sps:$4 sm:$0xff]  }
 0x24c   :  { %3558 = vmatprep.subr.bf16.mxu0 %v8864_v8  ;;  %3599 = vmatprep.subr.bf16.mxu1 %v8867_v2  ;;  %v8951_v8 = vld [vmem:[%s12200_s3 + $0x6ec] ss:$16 sps:$4 sm:$0xff]   ;;  %v8946_v2 = vld [vmem:[%s12200_s3 + $0x6e0] ss:$16 sps:$4 sm:$0xff]  }
 0x24d   :  { %3588 = vmatprep.mubr.bf16.mxu0 %v9443_v55  ;;  %3629 = vmatprep.mubr.bf16.mxu1 %v9443_v55 }
 0x24f   :  { %3559 = vmatpush1.bf16.msra.mxu0 %v8862_v15  ;;  %3600 = vmatpush1.bf16.msra.mxu1 %v8865_v11  ;;  %v8949_v15 = vld [vmem:[%s12200_s3 + $0x6e8] ss:$16 sps:$4 sm:$0xff]   ;;  %v8954_v11 = vld [vmem:[%s12200_s3 + $0x704] ss:$16 sps:$4 sm:$0xff]  }
 0x250   :  { %3560 = vmatprep.subr.bf16.mxu0 %v8870_v45  ;;  %3601 = vmatprep.subr.bf16.mxu1 %v8873_v32  ;;  %v8957_v45 = vld [vmem:[%s12200_s3 + $0x70c] ss:$16 sps:$4 sm:$0xff]   ;;  %v8952_v32 = vld [vmem:[%s12200_s3 + $0x700] ss:$16 sps:$4 sm:$0xff]  }
 0x253   :  { %3561 = vmatpush1.bf16.msra.mxu0 %v8868_v14  ;;  %3602 = vmatpush1.bf16.msra.mxu1 %v8871_v34  ;;  %v8955_v14 = vld [vmem:[%s12200_s3 + $0x708] ss:$16 sps:$4 sm:$0xff]   ;;  %v8960_v34 = vld [vmem:[%s12200_s3 + $0x724] ss:$16 sps:$4 sm:$0xff]  }
 0x254   :  { %3562 = vmatprep.subr.bf16.mxu0 %v8876_v30  ;;  %3603 = vmatprep.subr.bf16.mxu1 %v8879_v17  ;;  %v8963_v30 = vld [vmem:[%s12200_s3 + $0x72c] ss:$16 sps:$4 sm:$0xff]   ;;  %v8958_v17 = vld [vmem:[%s12200_s3 + $0x720] ss:$16 sps:$4 sm:$0xff]  }
 0x257   :  { %3563 = vmatpush1.bf16.msra.mxu0 %v8874_v61  ;;  %3604 = vmatpush1.bf16.msra.mxu1 %v8877_v35  ;;  %v8961_v61 = vld [vmem:[%s12200_s3 + $0x728] ss:$16 sps:$4 sm:$0xff]   ;;  %v8966_v35 = vld [vmem:[%s12200_s3 + $0x744] ss:$16 sps:$4 sm:$0xff]  }
 0x258   :  { %3564 = vmatprep.subr.bf16.mxu0 %v8882_v21  ;;  %3605 = vmatprep.subr.bf16.mxu1 %v8885_v22  ;;  %v8969_v21 = vld [vmem:[%s12200_s3 + $0x74c] ss:$16 sps:$4 sm:$0xff]   ;;  %v8964_v22 = vld [vmem:[%s12200_s3 + $0x740] ss:$16 sps:$4 sm:$0xff]  }
 0x25b   :  { %3565 = vmatpush1.bf16.msra.mxu0 %v8880_v3  ;;  %3606 = vmatpush1.bf16.msra.mxu1 %v8883_v43  ;;  %v8967_v3 = vld [vmem:[%s12200_s3 + $0x748] ss:$16 sps:$4 sm:$0xff]   ;;  %v8972_v43 = vld [vmem:[%s12200_s3 + $0x764] ss:$16 sps:$4 sm:$0xff]  }
 0x25c   :  { %3566 = vmatprep.subr.bf16.mxu0 %v8888_v13  ;;  %3607 = vmatprep.subr.bf16.mxu1 %v8891_v5  ;;  %v8975_v13 = vld [vmem:[%s12200_s3 + $0x76c] ss:$16 sps:$4 sm:$0xff]   ;;  %v8970_v5 = vld [vmem:[%s12200_s3 + $0x760] ss:$16 sps:$4 sm:$0xff]  }
 0x25f   :  { %3567 = vmatpush1.bf16.msra.mxu0 %v8886_v49  ;;  %3608 = vmatpush1.bf16.msra.mxu1 %v8889_v60  ;;  %v8973_v49 = vld [vmem:[%s12200_s3 + $0x768] ss:$16 sps:$4 sm:$0xff]   ;;  %v8978_v60 = vld [vmem:[%s12200_s3 + $0x784] ss:$16 sps:$4 sm:$0xff]  }
 0x260   :  { %3568 = vmatprep.subr.bf16.mxu0 %v8894_v24  ;;  %3609 = vmatprep.subr.bf16.mxu1 %v8897_v29  ;;  %v8981_v24 = vld [vmem:[%s12200_s3 + $0x78c] ss:$16 sps:$4 sm:$0xff]   ;;  %v8976_v29 = vld [vmem:[%s12200_s3 + $0x780] ss:$16 sps:$4 sm:$0xff]  }
 0x263   :  { %3569 = vmatpush1.bf16.msra.mxu0 %v8892_v25  ;;  %3610 = vmatpush1.bf16.msra.mxu1 %v8895_v59  ;;  %v8979_v25 = vld [vmem:[%s12200_s3 + $0x788] ss:$16 sps:$4 sm:$0xff]   ;;  %v8984_v59 = vld [vmem:[%s12200_s3 + $0x7a4] ss:$16 sps:$4 sm:$0xff]  }
 0x264   :  { %3570 = vmatprep.subr.bf16.mxu0 %v8900_v20  ;;  %3611 = vmatprep.subr.bf16.mxu1 %v8903_v50  ;;  %v8987_v20 = vld [vmem:[%s12200_s3 + $0x7ac] ss:$16 sps:$4 sm:$0xff]   ;;  %v8982_v50 = vld [vmem:[%s12200_s3 + $0x7a0] ss:$16 sps:$4 sm:$0xff]  }
 0x267   :  { %3571 = vmatpush1.bf16.msra.mxu0 %v8898_v41  ;;  %3612 = vmatpush1.bf16.msra.mxu1 %v8901_v27  ;;  %v8985_v41 = vld [vmem:[%s12200_s3 + $0x7a8] ss:$16 sps:$4 sm:$0xff]   ;;  %v8990_v27 = vld [vmem:[%s12200_s3 + $0x7c4] ss:$16 sps:$4 sm:$0xff]  }
 0x268   :  { %3835 = vmatprep.subr.bf16.mxu0 %v8906_v31  ;;  %3876 = vmatprep.subr.bf16.mxu1 %v8909_v37  ;;  %v8993_v31 = vld [vmem:[%s12200_s3 + $0x7cc] ss:$16 sps:$4 sm:$0xff]  }
 0x26a   :  { %3589 = vmatmul.mubr.bf16.vlgmr.msra.gmra.mrb[148].mxu0 %v3394_v9  ;;  %3630 = vmatmul.mubr.bf16.vlgmr.msra.gmra.mrb[148].mxu1 %v3394_v9 }
 0x26b   :  { %3836 = vmatpush1.bf16.msra.mxu0 %v8904_v47  ;;  %3877 = vmatpush1.bf16.msra.mxu1 %v8907_v52 }
 0x26c   :  { %3837 = vmatprep.subr.bf16.mxu0 %v8912_v48  ;;  %3878 = vmatprep.subr.bf16.mxu1 %v8915_v54 }
 0x26d   :  { %3867 = vmatprep.mubr.bf16.mxu0 %v9443_v55  ;;  %3908 = vmatprep.mubr.bf16.mxu1 %v9443_v55 }
 0x26f   :  { %3838 = vmatpush1.bf16.msra.mxu0 %v8910_v57  ;;  %3879 = vmatpush1.bf16.msra.mxu1 %v8913_v53  ;;  %v8988_v57 = vld [vmem:[%s12200_s3 + $0x7c0] ss:$16 sps:$4 sm:$0xff]   ;;  %v8991_v53 = vld [vmem:[%s12200_s3 + $0x7c8] ss:$16 sps:$4 sm:$0xff]  }
 0x270   :  { %3839 = vmatprep.subr.bf16.mxu0 %v8918_v58  ;;  %3880 = vmatprep.subr.bf16.mxu1 %v8921_v10 }
 0x273   :  { %3840 = vmatpush1.bf16.msra.mxu0 %v8916_v44  ;;  %3881 = vmatpush1.bf16.msra.mxu1 %v8919_v7  ;;  %v8996_v44 = vld [vmem:[%s12200_s3 + $0x7e4] ss:$16 sps:$4 sm:$0xff]   ;;  %v8999_v7 = vld [vmem:[%s12200_s3 + $0x7ec] ss:$16 sps:$4 sm:$0xff]  }
 0x274   :  { %3841 = vmatprep.subr.bf16.mxu0 %v8924_v51  ;;  %3882 = vmatprep.subr.bf16.mxu1 %v8927_v1  ;;  %v8994_v51 = vld [vmem:[%s12200_s3 + $0x7e0] ss:$16 sps:$4 sm:$0xff]   ;;  %v8997_v1 = vld [vmem:[%s12200_s3 + $0x7e8] ss:$16 sps:$4 sm:$0xff]  }
 0x277   :  { %3842 = vmatpush1.bf16.msra.mxu0 %v8922_v19  ;;  %3883 = vmatpush1.bf16.msra.mxu1 %v8925_v38  ;;  %v9002_v19 = vld [vmem:[%s12200_s3 + $0x804] ss:$16 sps:$4 sm:$0xff]   ;;  %v9005_v38 = vld [vmem:[%s12200_s3 + $0x80c] ss:$16 sps:$4 sm:$0xff]  }
 0x278   :  { %3843 = vmatprep.subr.bf16.mxu0 %v8930_v56  ;;  %3884 = vmatprep.subr.bf16.mxu1 %v8933_v46  ;;  %v9000_v56 = vld [vmem:[%s12200_s3 + $0x800] ss:$16 sps:$4 sm:$0xff]   ;;  %v9003_v46 = vld [vmem:[%s12200_s3 + $0x808] ss:$16 sps:$4 sm:$0xff]  }
 0x27b   :  { %3844 = vmatpush1.bf16.msra.mxu0 %v8928_v63  ;;  %3885 = vmatpush1.bf16.msra.mxu1 %v8931_v12  ;;  %v3955_v63 = vrot.slane %v10622_v39, 4  ;;  %v9008_v12 = vld [vmem:[%s12200_s3 + $0x824] ss:$16 sps:$4 sm:$0xff]  }
 0x27c   :  { %3845 = vmatprep.subr.bf16.mxu0 %v8936_v36  ;;  %3886 = vmatprep.subr.bf16.mxu1 %v8939_v18  ;;  %v9011_v36 = vld [vmem:[%s12200_s3 + $0x82c] ss:$16 sps:$4 sm:$0xff]   ;;  %v9006_v18 = vld [vmem:[%s12200_s3 + $0x820] ss:$16 sps:$4 sm:$0xff]  }
 0x27f   :  { %3846 = vmatpush1.bf16.msra.mxu0 %v8934_v4  ;;  %3887 = vmatpush1.bf16.msra.mxu1 %v8937_v40  ;;  %v9014_v4 = vld [vmem:[%s12200_s3 + $0x844] ss:$16 sps:$4 sm:$0xff]   ;;  %v9017_v40 = vld [vmem:[%s12200_s3 + $0x84c] ss:$16 sps:$4 sm:$0xff]  }
 0x280   :  { %3847 = vmatprep.subr.bf16.mxu0 %v8942_v6  ;;  %3888 = vmatprep.subr.bf16.mxu1 %v8945_v28  ;;  %v9012_v6 = vld [vmem:[%s12200_s3 + $0x840] ss:$16 sps:$4 sm:$0xff]   ;;  %v9015_v28 = vld [vmem:[%s12200_s3 + $0x848] ss:$16 sps:$4 sm:$0xff]  }
 0x283   :  { %3848 = vmatpush1.bf16.msra.mxu0 %v8940_v23  ;;  %3889 = vmatpush1.bf16.msra.mxu1 %v8943_v42  ;;  %v9020_v23 = vld [vmem:[%s12200_s3 + $0x864] ss:$16 sps:$4 sm:$0xff]   ;;  %v9023_v42 = vld [vmem:[%s12200_s3 + $0x86c] ss:$16 sps:$4 sm:$0xff]  }
 0x284   :  { %3849 = vmatprep.subr.bf16.mxu0 %v8948_v0  ;;  %3890 = vmatprep.subr.bf16.mxu1 %v8951_v8  ;;  %v9018_v0 = vld [vmem:[%s12200_s3 + $0x860] ss:$16 sps:$4 sm:$0xff]   ;;  %v9021_v8 = vld [vmem:[%s12200_s3 + $0x868] ss:$16 sps:$4 sm:$0xff]  }
 0x287   :  { %3850 = vmatpush1.bf16.msra.mxu0 %v8946_v2  ;;  %3891 = vmatpush1.bf16.msra.mxu1 %v8949_v15  ;;  %v9026_v2 = vld [vmem:[%s12200_s3 + $0x884] ss:$16 sps:$4 sm:$0xff]   ;;  %v9029_v15 = vld [vmem:[%s12200_s3 + $0x88c] ss:$16 sps:$4 sm:$0xff]  }
 0x288   :  { %4117 = vmatprep.subr.bf16.mxu0 %v8954_v11  ;;  %4158 = vmatprep.subr.bf16.mxu1 %v8957_v45  ;;  %v9024_v11 = vld [vmem:[%s12200_s3 + $0x880] ss:$16 sps:$4 sm:$0xff]   ;;  %v9027_v45 = vld [vmem:[%s12200_s3 + $0x888] ss:$16 sps:$4 sm:$0xff]  }
 0x28a   :  { %3868 = vmatmul.mubr.bf16.vlgmr.msra.gmra.mrb[152].mxu0 %v10622_v39  ;;  %3909 = vmatmul.mubr.bf16.vlgmr.msra.gmra.mrb[152].mxu1 %v10622_v39  ;;  %v9009_v39 = vld [vmem:[%s12200_s3 + $0x828] ss:$16 sps:$4 sm:$0xff]  }
 0x28b   :  { %4118 = vmatpush1.bf16.msra.mxu0 %v8952_v32  ;;  %4159 = vmatpush1.bf16.msra.mxu1 %v8955_v14  ;;  %v9032_v32 = vld [vmem:[%s12200_s3 + $0x8a4] ss:$16 sps:$4 sm:$0xff]   ;;  %v9035_v14 = vld [vmem:[%s12200_s3 + $0x8ac] ss:$16 sps:$4 sm:$0xff]  }
 0x28c   :  { %4119 = vmatprep.subr.bf16.mxu0 %v8960_v34  ;;  %4160 = vmatprep.subr.bf16.mxu1 %v8963_v30  ;;  %v9030_v34 = vld [vmem:[%s12200_s3 + $0x8a0] ss:$16 sps:$4 sm:$0xff]   ;;  %v9033_v30 = vld [vmem:[%s12200_s3 + $0x8a8] ss:$16 sps:$4 sm:$0xff]  }
 0x28d   :  { %4149 = vmatprep.mubr.bf16.mxu0 %v9443_v55  ;;  %4190 = vmatprep.mubr.bf16.mxu1 %v9443_v55 }
 0x28f   :  { %4120 = vmatpush1.bf16.msra.mxu0 %v8958_v17  ;;  %4161 = vmatpush1.bf16.msra.mxu1 %v8961_v61  ;;  %v9038_v17 = vld [vmem:[%s12200_s3 + $0x8c4] ss:$16 sps:$4 sm:$0xff]   ;;  %v9041_v61 = vld [vmem:[%s12200_s3 + $0x8cc] ss:$16 sps:$4 sm:$0xff]  }
 0x290   :  { %4121 = vmatprep.subr.bf16.mxu0 %v8966_v35  ;;  %4162 = vmatprep.subr.bf16.mxu1 %v8969_v21 }
 0x293   :  { %4122 = vmatpush1.bf16.msra.mxu0 %v8964_v22  ;;  %4163 = vmatpush1.bf16.msra.mxu1 %v8967_v3 }
 0x294   :  { %4123 = vmatprep.subr.bf16.mxu0 %v8972_v43  ;;  %4164 = vmatprep.subr.bf16.mxu1 %v8975_v13 }
 0x297   :  { %4124 = vmatpush1.bf16.msra.mxu0 %v8970_v5  ;;  %4165 = vmatpush1.bf16.msra.mxu1 %v8973_v49 }
 0x298   :  { %4125 = vmatprep.subr.bf16.mxu0 %v8978_v60  ;;  %4166 = vmatprep.subr.bf16.mxu1 %v8981_v24 }
 0x29b   :  { %4126 = vmatpush1.bf16.msra.mxu0 %v8976_v29  ;;  %4167 = vmatpush1.bf16.msra.mxu1 %v8979_v25  ;;  %v9036_v29 = vld [vmem:[%s12200_s3 + $0x8c0] ss:$16 sps:$4 sm:$0xff]   ;;  %v9039_v25 = vld [vmem:[%s12200_s3 + $0x8c8] ss:$16 sps:$4 sm:$0xff]  }
 0x29c   :  { %4127 = vmatprep.subr.bf16.mxu0 %v8984_v59  ;;  %4168 = vmatprep.subr.bf16.mxu1 %v8987_v20 }
 0x29d   :  { %v11245_v37 = vpop.f32.mrb[128].mxu0  ;;  %v11247_v47 = vpop.f32.mrb[128].mxu1 }
 0x29e   :  { %v11249_v52 = vpop.f32.mrb[129].mxu0  ;;  %v11251_v9 = vpop.f32.mrb[129].mxu1 }
 0x29f   :  { %4128 = vmatpush1.bf16.msra.mxu0 %v8982_v50  ;;  %4169 = vmatpush1.bf16.msra.mxu1 %v8985_v41  ;;  %v2234_v48 = vpop.f32.mrb[130].mxu0  ;;  %v2275_v54 = vpop.f32.mrb[130].mxu1  ;;  %v9044_v50 = vld [vmem:[%s12200_s3 + $0x8e4] ss:$16 sps:$4 sm:$0xff]   ;;  %v9047_v41 = vld [vmem:[%s12200_s3 + $0x8ec] ss:$16 sps:$4 sm:$0xff]  }
 0x2a0   :  { %v2235_v58 = vpop.f32.mrb[131].mxu0  ;;  %v2276_v10 = vpop.f32.mrb[131].mxu1  ;;  %4129 = vmatprep.subr.bf16.mxu0 %v8990_v27  ;;  %4170 = vmatprep.subr.bf16.mxu1 %v8993_v31  ;;  %v9042_v27 = vld [vmem:[%s12200_s3 + $0x8e0] ss:$16 sps:$4 sm:$0xff]   ;;  %v9045_v31 = vld [vmem:[%s12200_s3 + $0x8e8] ss:$16 sps:$4 sm:$0xff]  }
 0x2a1   :  { %v9056_v48 = vld [vmem:[%s12200_s3 + $0x924] ss:$16 sps:$4 sm:$0xff]   ;;  %v9059_v54 = vld [vmem:[%s12200_s3 + $0x92c] ss:$16 sps:$4 sm:$0xff]  }
 0x2a2   :  { %v9062_v58 = vld [vmem:[%s12200_s3 + $0x944] ss:$16 sps:$4 sm:$0xff]   ;;  %v9065_v10 = vld [vmem:[%s12200_s3 + $0x94c] ss:$16 sps:$4 sm:$0xff]  }
 0x2a3   :  { %4130 = vmatpush1.bf16.msra.mxu0 %v8988_v57  ;;  %4171 = vmatpush1.bf16.msra.mxu1 %v8991_v53  ;;  %v9054_v57 = vld [vmem:[%s12200_s3 + $0x920] ss:$16 sps:$4 sm:$0xff]   ;;  %v9057_v53 = vld [vmem:[%s12200_s3 + $0x928] ss:$16 sps:$4 sm:$0xff]  }
 0x2a4   :  { %4131 = vmatprep.subr.bf16.mxu0 %v8996_v44  ;;  %4172 = vmatprep.subr.bf16.mxu1 %v8999_v7  ;;  %v9060_v44 = vld [vmem:[%s12200_s3 + $0x940] ss:$16 sps:$4 sm:$0xff]   ;;  %v9063_v7 = vld [vmem:[%s12200_s3 + $0x948] ss:$16 sps:$4 sm:$0xff]  }
 0x2a7   :  { %4132 = vmatpush1.bf16.msra.mxu0 %v8994_v51  ;;  %4173 = vmatpush1.bf16.msra.mxu1 %v8997_v1  ;;  %v9068_v51 = vld [vmem:[%s12200_s3 + $0x964] ss:$16 sps:$4 sm:$0xff]   ;;  %v9071_v1 = vld [vmem:[%s12200_s3 + $0x96c] ss:$16 sps:$4 sm:$0xff]  }
 0x2a8   :  { %4396 = vmatprep.subr.bf16.mxu0 %v9002_v19  ;;  %4437 = vmatprep.subr.bf16.mxu1 %v9005_v38  ;;  %v9066_v19 = vld [vmem:[%s12200_s3 + $0x960] ss:$16 sps:$4 sm:$0xff]   ;;  %v9069_v38 = vld [vmem:[%s12200_s3 + $0x968] ss:$16 sps:$4 sm:$0xff]  }
 0x2aa   :  { %4150 = vmatmul.mubr.bf16.vlgmr.msra.gmra.mrb[156].mxu0 %v3955_v63  ;;  %4191 = vmatmul.mubr.bf16.vlgmr.msra.gmra.mrb[156].mxu1 %v3955_v63  ;;  %v9072_v63 = vld [vmem:[%s12200_s3 + $0x980] ss:$16 sps:$4 sm:$0xff]  }
 0x2ab   :  { %4397 = vmatpush1.bf16.msra.mxu0 %v9000_v56  ;;  %4438 = vmatpush1.bf16.msra.mxu1 %v9003_v46  ;;  %v9074_v56 = vld [vmem:[%s12200_s3 + $0x984] ss:$16 sps:$4 sm:$0xff]   ;;  %v9077_v46 = vld [vmem:[%s12200_s3 + $0x98c] ss:$16 sps:$4 sm:$0xff]  }
 0x2ac   :  { %4398 = vmatprep.subr.bf16.mxu0 %v9008_v12  ;;  %4439 = vmatprep.subr.bf16.mxu1 %v9011_v36  ;;  %v9075_v12 = vld [vmem:[%s12200_s3 + $0x988] ss:$16 sps:$4 sm:$0xff]   ;;  %v9080_v36 = vld [vmem:[%s12200_s3 + $0x9a4] ss:$16 sps:$4 sm:$0xff]  }
 0x2ad   :  { %4428 = vmatprep.mubr.bf16.mxu0 %v9443_v55  ;;  %4469 = vmatprep.mubr.bf16.mxu1 %v9443_v55 }
 0x2af   :  { %4399 = vmatpush1.bf16.msra.mxu0 %v9006_v18  ;;  %4440 = vmatpush1.bf16.msra.mxu1 %v9009_v39  ;;  %v9083_v18 = vld [vmem:[%s12200_s3 + $0x9ac] ss:$16 sps:$4 sm:$0xff]   ;;  %v9078_v39 = vld [vmem:[%s12200_s3 + $0x9a0] ss:$16 sps:$4 sm:$0xff]  }
 0x2b0   :  { %4400 = vmatprep.subr.bf16.mxu0 %v9014_v4  ;;  %4441 = vmatprep.subr.bf16.mxu1 %v9017_v40  ;;  %v9081_v4 = vld [vmem:[%s12200_s3 + $0x9a8] ss:$16 sps:$4 sm:$0xff]   ;;  %v9086_v40 = vld [vmem:[%s12200_s3 + $0x9c4] ss:$16 sps:$4 sm:$0xff]  }
 0x2b3   :  { %4401 = vmatpush1.bf16.msra.mxu0 %v9012_v6  ;;  %4442 = vmatpush1.bf16.msra.mxu1 %v9015_v28  ;;  %v9089_v6 = vld [vmem:[%s12200_s3 + $0x9cc] ss:$16 sps:$4 sm:$0xff]  }
 0x2b4   :  { %4402 = vmatprep.subr.bf16.mxu0 %v9020_v23  ;;  %4443 = vmatprep.subr.bf16.mxu1 %v9023_v42 }
 0x2b7   :  { %4403 = vmatpush1.bf16.msra.mxu0 %v9018_v0  ;;  %4444 = vmatpush1.bf16.msra.mxu1 %v9021_v8 }
 0x2b8   :  { %4404 = vmatprep.subr.bf16.mxu0 %v9026_v2  ;;  %4445 = vmatprep.subr.bf16.mxu1 %v9029_v15 }
 0x2bb   :  { %4405 = vmatpush1.bf16.msra.mxu0 %v9024_v11  ;;  %4446 = vmatpush1.bf16.msra.mxu1 %v9027_v45 }
 0x2bc   :  { %4406 = vmatprep.subr.bf16.mxu0 %v9032_v32  ;;  %4447 = vmatprep.subr.bf16.mxu1 %v9035_v14  ;;  %v9084_v14 = vld [vmem:[%s12200_s3 + $0x9c0] ss:$16 sps:$4 sm:$0xff]  }
 0x2bd   :  { %v2472_v35 = vpop.f32.mrb[132].mxu0  ;;  %v2513_v21 = vpop.f32.mrb[132].mxu1 }
 0x2be   :  { %v11353_v22 = vadd.f32 %v2472_v35, %v11245_v37  ;;  %v11356_v3 = vadd.f32 %v2513_v21, %v11247_v47  ;;  %v2474_v43 = vpop.f32.mrb[133].mxu0  ;;  %v2515_v13 = vpop.f32.mrb[133].mxu1  ;;  %v9050_v37 = vld [vmem:[%s12200_s3 + $0x904] ss:$16 sps:$4 sm:$0xff]   ;;  %v9053_v47 = vld [vmem:[%s12200_s3 + $0x90c] ss:$16 sps:$4 sm:$0xff]  }
 0x2bf   :  { %v11359_v5 = vadd.f32 %v2474_v43, %v11249_v52  ;;  %v11362_v49 = vadd.f32 %v2515_v13, %v11251_v9  ;;  %v2476_v60 = vpop.f32.mrb[134].mxu0  ;;  %v2517_v24 = vpop.f32.mrb[134].mxu1  ;;  %4407 = vmatpush1.bf16.msra.mxu0 %v9030_v34  ;;  %4448 = vmatpush1.bf16.msra.mxu1 %v9033_v30  ;;  %v9048_v52 = vld [vmem:[%s12200_s3 + $0x900] ss:$16 sps:$4 sm:$0xff]   ;;  %v9051_v9 = vld [vmem:[%s12200_s3 + $0x908] ss:$16 sps:$4 sm:$0xff]  }
 0x2c0   :  { %v2477_v59 = vpop.f32.mrb[135].mxu0  ;;  %v2518_v20 = vpop.f32.mrb[135].mxu1  ;;  %4408 = vmatprep.subr.bf16.mxu0 %v9038_v17  ;;  %4449 = vmatprep.subr.bf16.mxu1 %v9041_v61  ;;  %v9087_v34 = vld [vmem:[%s12200_s3 + $0x9c8] ss:$16 sps:$4 sm:$0xff]   ;;  %v9092_v61 = vld [vmem:[%s12200_s3 + $0x9e4] ss:$16 sps:$4 sm:$0xff]  }
 0x2c1   :  { %v9095_v35 = vld [vmem:[%s12200_s3 + $0x9ec] ss:$16 sps:$4 sm:$0xff]   ;;  %v9090_v21 = vld [vmem:[%s12200_s3 + $0x9e0] ss:$16 sps:$4 sm:$0xff]   ;;  %v9104_v60 = vld [vmem:[%s12200_s3 + $0xa24] ss:$16 sps:$4 sm:$0xff]  }
 0x2c2   :  { %v9101_v43 = vld [vmem:[%s12200_s3 + $0xa0c] ss:$16 sps:$4 sm:$0xff]   ;;  %v9096_v13 = vld [vmem:[%s12200_s3 + $0xa00] ss:$16 sps:$4 sm:$0xff]  }
 0x2c3   :  { %4409 = vmatpush1.bf16.msra.mxu0 %v9036_v29  ;;  %4450 = vmatpush1.bf16.msra.mxu1 %v9039_v25  ;;  %v9107_v24 = vld [vmem:[%s12200_s3 + $0xa2c] ss:$16 sps:$4 sm:$0xff]   ;;  %v9102_v29 = vld [vmem:[%s12200_s3 + $0xa20] ss:$16 sps:$4 sm:$0xff]   ;;  %v9110_v25 = vld [vmem:[%s12200_s3 + $0xa44] ss:$16 sps:$4 sm:$0xff]  }
 0x2c4   :  { %4410 = vmatprep.subr.bf16.mxu0 %v9044_v50  ;;  %4451 = vmatprep.subr.bf16.mxu1 %v9047_v41  ;;  %v9113_v59 = vld [vmem:[%s12200_s3 + $0xa4c] ss:$16 sps:$4 sm:$0xff]   ;;  %v9108_v20 = vld [vmem:[%s12200_s3 + $0xa40] ss:$16 sps:$4 sm:$0xff]   ;;  %v9111_v50 = vld [vmem:[%s12200_s3 + $0xa48] ss:$16 sps:$4 sm:$0xff]  }
 0x2c5   :  { %v9116_v41 = vld [vmem:[%s12200_s3 + $0xa64] ss:$16 sps:$4 sm:$0xff]  }
 0x2c7   :  { %4411 = vmatpush1.bf16.msra.mxu0 %v9042_v27  ;;  %4452 = vmatpush1.bf16.msra.mxu1 %v9045_v31  ;;  %v9119_v27 = vld [vmem:[%s12200_s3 + $0xa6c] ss:$16 sps:$4 sm:$0xff]   ;;  %v9114_v31 = vld [vmem:[%s12200_s3 + $0xa60] ss:$16 sps:$4 sm:$0xff]  }
 0x2c8   :  { %4678 = vmatprep.subr.bf16.mxu0 %v9050_v37  ;;  %4719 = vmatprep.subr.bf16.mxu1 %v9053_v47  ;;  %v9117_v37 = vld [vmem:[%s12200_s3 + $0xa68] ss:$16 sps:$4 sm:$0xff]   ;;  %v9122_v47 = vld [vmem:[%s12200_s3 + $0xa84] ss:$16 sps:$4 sm:$0xff]  }
 0x2ca   :  { %4429 = vmatmul.mubr.bf16.vlgmr.msra.gmra.mrb[160].mxu0 %v10652_v26  ;;  %4470 = vmatmul.mubr.bf16.vlgmr.msra.gmra.mrb[160].mxu1 %v10652_v26 }
 0x2cb   :  { %4679 = vmatpush1.bf16.msra.mxu0 %v9048_v52  ;;  %4720 = vmatpush1.bf16.msra.mxu1 %v9051_v9  ;;  %v9125_v52 = vld [vmem:[%s12200_s3 + $0xa8c] ss:$16 sps:$4 sm:$0xff]   ;;  %v9120_v9 = vld [vmem:[%s12200_s3 + $0xa80] ss:$16 sps:$4 sm:$0xff]  }
 0x2cc   :  { %4680 = vmatprep.subr.bf16.mxu0 %v9056_v48  ;;  %4721 = vmatprep.subr.bf16.mxu1 %v9059_v54  ;;  %v9123_v48 = vld [vmem:[%s12200_s3 + $0xa88] ss:$16 sps:$4 sm:$0xff]   ;;  %v9128_v54 = vld [vmem:[%s12200_s3 + $0xaa4] ss:$16 sps:$4 sm:$0xff]  }
 0x2cd   :  { %4710 = vmatprep.mubr.bf16.mxu0 %v9443_v55  ;;  %4751 = vmatprep.mubr.bf16.mxu1 %v9443_v55 }
 0x2cf   :  { %4681 = vmatpush1.bf16.msra.mxu0 %v9054_v57  ;;  %4722 = vmatpush1.bf16.msra.mxu1 %v9057_v53  ;;  %v9131_v57 = vld [vmem:[%s12200_s3 + $0xaac] ss:$16 sps:$4 sm:$0xff]   ;;  %v9126_v53 = vld [vmem:[%s12200_s3 + $0xaa0] ss:$16 sps:$4 sm:$0xff]  }
 0x2d0   :  { %4682 = vmatprep.subr.bf16.mxu0 %v9062_v58  ;;  %4723 = vmatprep.subr.bf16.mxu1 %v9065_v10  ;;  %v9129_v58 = vld [vmem:[%s12200_s3 + $0xaa8] ss:$16 sps:$4 sm:$0xff]   ;;  %v9134_v10 = vld [vmem:[%s12200_s3 + $0xac4] ss:$16 sps:$4 sm:$0xff]  }
 0x2d3   :  { %4683 = vmatpush1.bf16.msra.mxu0 %v9060_v44  ;;  %4724 = vmatpush1.bf16.msra.mxu1 %v9063_v7  ;;  %v9137_v44 = vld [vmem:[%s12200_s3 + $0xacc] ss:$16 sps:$4 sm:$0xff]  }
 0x2d4   :  { %4684 = vmatprep.subr.bf16.mxu0 %v9068_v51  ;;  %4725 = vmatprep.subr.bf16.mxu1 %v9071_v1 }
 0x2d7   :  { %4685 = vmatpush1.bf16.msra.mxu0 %v9066_v19  ;;  %4726 = vmatpush1.bf16.msra.mxu1 %v9069_v38 }
 0x2d8   :  { %4686 = vmatprep.subr.bf16.mxu0 %v9074_v56  ;;  %4727 = vmatprep.subr.bf16.mxu1 %v9077_v46 }
 0x2db   :  { %4687 = vmatpush1.bf16.msra.mxu0 %v9072_v63  ;;  %4728 = vmatpush1.bf16.msra.mxu1 %v9075_v12 }
 0x2dc   :  { %4688 = vmatprep.subr.bf16.mxu0 %v9080_v36  ;;  %4729 = vmatprep.subr.bf16.mxu1 %v9083_v18  ;;  %v9132_v18 = vld [vmem:[%s12200_s3 + $0xac0] ss:$16 sps:$4 sm:$0xff]  }
 0x2dd   :  { %v2747_v28 = vpop.f32.mrb[136].mxu0  ;;  %v2788_v23 = vpop.f32.mrb[136].mxu1 }
 0x2de   :  { %v11465_v42 = vadd.f32 %v2747_v28, %v11353_v22  ;;  %v11468_v0 = vadd.f32 %v2788_v23, %v11356_v3  ;;  %v2749_v8 = vpop.f32.mrb[137].mxu0  ;;  %v2790_v2 = vpop.f32.mrb[137].mxu1  ;;  %v9093_v22 = vld [vmem:[%s12200_s3 + $0x9e8] ss:$16 sps:$4 sm:$0xff]   ;;  %v9098_v3 = vld [vmem:[%s12200_s3 + $0xa04] ss:$16 sps:$4 sm:$0xff]  }
 0x2df   :  { %v11471_v15 = vadd.f32 %v2749_v8, %v11359_v5  ;;  %v11474_v11 = vadd.f32 %v2790_v2, %v11362_v49  ;;  %v2751_v45 = vpop.f32.mrb[138].mxu0  ;;  %v2792_v32 = vpop.f32.mrb[138].mxu1  ;;  %4689 = vmatpush1.bf16.msra.mxu0 %v9078_v39  ;;  %4730 = vmatpush1.bf16.msra.mxu1 %v9081_v4  ;;  %v9099_v5 = vld [vmem:[%s12200_s3 + $0xa08] ss:$16 sps:$4 sm:$0xff]   ;;  %v4516_v49 = vrot.slane %v10652_v26, 4 }
 0x2e0   :  { %v2752_v30 = vpop.f32.mrb[139].mxu0  ;;  %v2793_v17 = vpop.f32.mrb[139].mxu1  ;;  %4690 = vmatprep.subr.bf16.mxu0 %v9086_v40  ;;  %4731 = vmatprep.subr.bf16.mxu1 %v9089_v6  ;;  %v9105_v26 = vld [vmem:[%s12200_s3 + $0xa28] ss:$16 sps:$4 sm:$0xff]   ;;  %v9140_v6 = vld [vmem:[%s12200_s3 + $0xae4] ss:$16 sps:$4 sm:$0xff]  }
 0x2e1   :  { %v9135_v39 = vld [vmem:[%s12200_s3 + $0xac8] ss:$16 sps:$4 sm:$0xff]   ;;  %v9143_v28 = vld [vmem:[%s12200_s3 + $0xaec] ss:$16 sps:$4 sm:$0xff]   ;;  %v9138_v23 = vld [vmem:[%s12200_s3 + $0xae0] ss:$16 sps:$4 sm:$0xff]  }
 0x2e2   :  { %v9149_v8 = vld [vmem:[%s12200_s3 + $0xb0c] ss:$16 sps:$4 sm:$0xff]   ;;  %v9144_v2 = vld [vmem:[%s12200_s3 + $0xb00] ss:$16 sps:$4 sm:$0xff]  }
 0x2e3   :  { %4691 = vmatpush1.bf16.msra.mxu0 %v9084_v14  ;;  %4732 = vmatpush1.bf16.msra.mxu1 %v9087_v34  ;;  %v9155_v45 = vld [vmem:[%s12200_s3 + $0xb2c] ss:$16 sps:$4 sm:$0xff]   ;;  %v9150_v32 = vld [vmem:[%s12200_s3 + $0xb20] ss:$16 sps:$4 sm:$0xff]   ;;  %v9153_v14 = vld [vmem:[%s12200_s3 + $0xb28] ss:$16 sps:$4 sm:$0xff]  }
 0x2e4   :  { %4692 = vmatprep.subr.bf16.mxu0 %v9092_v61  ;;  %4733 = vmatprep.subr.bf16.mxu1 %v9095_v35  ;;  %v9158_v34 = vld [vmem:[%s12200_s3 + $0xb44] ss:$16 sps:$4 sm:$0xff]   ;;  %v9161_v30 = vld [vmem:[%s12200_s3 + $0xb4c] ss:$16 sps:$4 sm:$0xff]   ;;  %v9156_v17 = vld [vmem:[%s12200_s3 + $0xb40] ss:$16 sps:$4 sm:$0xff]  }
 0x2e5   :  { %v9159_v61 = vld [vmem:[%s12200_s3 + $0xb48] ss:$16 sps:$4 sm:$0xff]   ;;  %v9164_v35 = vld [vmem:[%s12200_s3 + $0xb64] ss:$16 sps:$4 sm:$0xff]  }
 0x2e7   :  { %4693 = vmatpush1.bf16.msra.mxu0 %v9090_v21  ;;  %4734 = vmatpush1.bf16.msra.mxu1 %v9093_v22  ;;  %v9167_v21 = vld [vmem:[%s12200_s3 + $0xb6c] ss:$16 sps:$4 sm:$0xff]   ;;  %v9162_v22 = vld [vmem:[%s12200_s3 + $0xb60] ss:$16 sps:$4 sm:$0xff]  }
 0x2e8   :  { %4957 = vmatprep.subr.bf16.mxu0 %v9098_v3  ;;  %4998 = vmatprep.subr.bf16.mxu1 %v9101_v43  ;;  %v9165_v3 = vld [vmem:[%s12200_s3 + $0xb68] ss:$16 sps:$4 sm:$0xff]   ;;  %v9170_v43 = vld [vmem:[%s12200_s3 + $0xb84] ss:$16 sps:$4 sm:$0xff]  }
 0x2ea   :  { %4711 = vmatmul.mubr.bf16.vlgmr.msra.gmra.mrb[164].mxu0 %v4516_v49  ;;  %4752 = vmatmul.mubr.bf16.vlgmr.msra.gmra.mrb[164].mxu1 %v4516_v49  ;;  %v9171_v49 = vld [vmem:[%s12200_s3 + $0xb88] ss:$16 sps:$4 sm:$0xff]  }
 0x2eb   :  { %4958 = vmatpush1.bf16.msra.mxu0 %v9096_v13  ;;  %4999 = vmatpush1.bf16.msra.mxu1 %v9099_v5  ;;  %v9173_v13 = vld [vmem:[%s12200_s3 + $0xb8c] ss:$16 sps:$4 sm:$0xff]   ;;  %v9168_v5 = vld [vmem:[%s12200_s3 + $0xb80] ss:$16 sps:$4 sm:$0xff]  }
 0x2ec   :  { %4959 = vmatprep.subr.bf16.mxu0 %v9104_v60  ;;  %5000 = vmatprep.subr.bf16.mxu1 %v9107_v24  ;;  %v9176_v60 = vld [vmem:[%s12200_s3 + $0xba4] ss:$16 sps:$4 sm:$0xff]   ;;  %v9179_v24 = vld [vmem:[%s12200_s3 + $0xbac] ss:$16 sps:$4 sm:$0xff]  }
 0x2ed   :  { %4989 = vmatprep.mubr.bf16.mxu0 %v9443_v55  ;;  %5030 = vmatprep.mubr.bf16.mxu1 %v9443_v55 }
 0x2ef   :  { %4960 = vmatpush1.bf16.msra.mxu0 %v9102_v29  ;;  %5001 = vmatpush1.bf16.msra.mxu1 %v9105_v26  ;;  %v9174_v29 = vld [vmem:[%s12200_s3 + $0xba0] ss:$16 sps:$4 sm:$0xff]   ;;  %v9177_v26 = vld [vmem:[%s12200_s3 + $0xba8] ss:$16 sps:$4 sm:$0xff]  }
 0x2f0   :  { %4961 = vmatprep.subr.bf16.mxu0 %v9110_v25  ;;  %5002 = vmatprep.subr.bf16.mxu1 %v9113_v59  ;;  %v9182_v25 = vld [vmem:[%s12200_s3 + $0xbc4] ss:$16 sps:$4 sm:$0xff]   ;;  %v9185_v59 = vld [vmem:[%s12200_s3 + $0xbcc] ss:$16 sps:$4 sm:$0xff]  }
 0x2f3   :  { %4962 = vmatpush1.bf16.msra.mxu0 %v9108_v20  ;;  %5003 = vmatpush1.bf16.msra.mxu1 %v9111_v50 }
 0x2f4   :  { %4963 = vmatprep.subr.bf16.mxu0 %v9116_v41  ;;  %5004 = vmatprep.subr.bf16.mxu1 %v9119_v27 }
 0x2f7   :  { %4964 = vmatpush1.bf16.msra.mxu0 %v9114_v31  ;;  %5005 = vmatpush1.bf16.msra.mxu1 %v9117_v37 }
 0x2f8   :  { %4965 = vmatprep.subr.bf16.mxu0 %v9122_v47  ;;  %5006 = vmatprep.subr.bf16.mxu1 %v9125_v52 }
 0x2fb   :  { %4966 = vmatpush1.bf16.msra.mxu0 %v9120_v9  ;;  %5007 = vmatpush1.bf16.msra.mxu1 %v9123_v48 }
 0x2fc   :  { %4967 = vmatprep.subr.bf16.mxu0 %v9128_v54  ;;  %5008 = vmatprep.subr.bf16.mxu1 %v9131_v57  ;;  %v9180_v54 = vld [vmem:[%s12200_s3 + $0xbc0] ss:$16 sps:$4 sm:$0xff]   ;;  %v9183_v57 = vld [vmem:[%s12200_s3 + $0xbc8] ss:$16 sps:$4 sm:$0xff]  }
 0x2fd   :  { %v3029_v7 = vpop.f32.mrb[140].mxu0  ;;  %v3070_v51 = vpop.f32.mrb[140].mxu1 }
 0x2fe   :  { %v11576_v1 = vadd.f32 %v3029_v7, %v11465_v42  ;;  %v11579_v19 = vadd.f32 %v3070_v51, %v11468_v0  ;;  %v3031_v38 = vpop.f32.mrb[141].mxu0  ;;  %v3072_v56 = vpop.f32.mrb[141].mxu1  ;;  %v9141_v42 = vld [vmem:[%s12200_s3 + $0xae8] ss:$16 sps:$4 sm:$0xff]   ;;  %v9146_v0 = vld [vmem:[%s12200_s3 + $0xb04] ss:$16 sps:$4 sm:$0xff]  }
 0x2ff   :  { %v11582_v46 = vadd.f32 %v3031_v38, %v11471_v15  ;;  %v11585_v63 = vadd.f32 %v3072_v56, %v11474_v11  ;;  %v3033_v12 = vpop.f32.mrb[142].mxu0  ;;  %v3074_v36 = vpop.f32.mrb[142].mxu1  ;;  %4968 = vmatpush1.bf16.msra.mxu0 %v9126_v53  ;;  %5009 = vmatpush1.bf16.msra.mxu1 %v9129_v58  ;;  %v9147_v15 = vld [vmem:[%s12200_s3 + $0xb08] ss:$16 sps:$4 sm:$0xff]   ;;  %v9152_v11 = vld [vmem:[%s12200_s3 + $0xb24] ss:$16 sps:$4 sm:$0xff]  }
 0x300   :  { %v3034_v4 = vpop.f32.mrb[143].mxu0  ;;  %v3075_v40 = vpop.f32.mrb[143].mxu1  ;;  %4969 = vmatprep.subr.bf16.mxu0 %v9134_v10  ;;  %5010 = vmatprep.subr.bf16.mxu1 %v9137_v44  ;;  %v9188_v10 = vld [vmem:[%s12200_s3 + $0xbe4] ss:$16 sps:$4 sm:$0xff]   ;;  %v9191_v44 = vld [vmem:[%s12200_s3 + $0xbec] ss:$16 sps:$4 sm:$0xff]  }
 0x301   :  { %v9186_v7 = vld [vmem:[%s12200_s3 + $0xbe0] ss:$16 sps:$4 sm:$0xff]   ;;  %v9189_v51 = vld [vmem:[%s12200_s3 + $0xbe8] ss:$16 sps:$4 sm:$0xff]   ;;  %v9203_v12 = vld [vmem:[%s12200_s3 + $0xc2c] ss:$16 sps:$4 sm:$0xff]  }
 0x302   :  { %v9192_v38 = vld [vmem:[%s12200_s3 + $0xc00] ss:$16 sps:$4 sm:$0xff]   ;;  %v9195_v56 = vld [vmem:[%s12200_s3 + $0xc08] ss:$16 sps:$4 sm:$0xff]  }
 0x303   :  { %4970 = vmatpush1.bf16.msra.mxu0 %v9132_v18  ;;  %5011 = vmatpush1.bf16.msra.mxu1 %v9135_v39  ;;  %v9198_v36 = vld [vmem:[%s12200_s3 + $0xc20] ss:$16 sps:$4 sm:$0xff]   ;;  %v9206_v18 = vld [vmem:[%s12200_s3 + $0xc44] ss:$16 sps:$4 sm:$0xff]   ;;  %v9209_v39 = vld [vmem:[%s12200_s3 + $0xc4c] ss:$16 sps:$4 sm:$0xff]  }
 0x304   :  { %4971 = vmatprep.subr.bf16.mxu0 %v9140_v6  ;;  %5012 = vmatprep.subr.bf16.mxu1 %v9143_v28  ;;  %v9204_v4 = vld [vmem:[%s12200_s3 + $0xc40] ss:$16 sps:$4 sm:$0xff]   ;;  %v9207_v40 = vld [vmem:[%s12200_s3 + $0xc48] ss:$16 sps:$4 sm:$0xff]   ;;  %v9212_v6 = vld [vmem:[%s12200_s3 + $0xc64] ss:$16 sps:$4 sm:$0xff]  }
 0x305   :  { %v9215_v28 = vld [vmem:[%s12200_s3 + $0xc6c] ss:$16 sps:$4 sm:$0xff]  }
 0x307   :  { %4972 = vmatpush1.bf16.msra.mxu0 %v9138_v23  ;;  %5013 = vmatpush1.bf16.msra.mxu1 %v9141_v42  ;;  %v9210_v23 = vld [vmem:[%s12200_s3 + $0xc60] ss:$16 sps:$4 sm:$0xff]   ;;  %v9213_v42 = vld [vmem:[%s12200_s3 + $0xc68] ss:$16 sps:$4 sm:$0xff]  }
 0x308   :  { %5239 = vmatprep.subr.bf16.mxu0 %v9146_v0  ;;  %5280 = vmatprep.subr.bf16.mxu1 %v9149_v8  ;;  %v9218_v0 = vld [vmem:[%s12200_s3 + $0xc84] ss:$16 sps:$4 sm:$0xff]   ;;  %v9221_v8 = vld [vmem:[%s12200_s3 + $0xc8c] ss:$16 sps:$4 sm:$0xff]  }
 0x30a   :  { %4990 = vmatmul.mubr.bf16.vlgmr.msra.gmra.mrb[168].mxu0 %v10686_v62  ;;  %5031 = vmatmul.mubr.bf16.vlgmr.msra.gmra.mrb[168].mxu1 %v10686_v62 }
 0x30b   :  { %5240 = vmatpush1.bf16.msra.mxu0 %v9144_v2  ;;  %5281 = vmatpush1.bf16.msra.mxu1 %v9147_v15  ;;  %v9216_v2 = vld [vmem:[%s12200_s3 + $0xc80] ss:$16 sps:$4 sm:$0xff]   ;;  %v9219_v15 = vld [vmem:[%s12200_s3 + $0xc88] ss:$16 sps:$4 sm:$0xff]  }
 0x30c   :  { %5241 = vmatprep.subr.bf16.mxu0 %v9152_v11  ;;  %5282 = vmatprep.subr.bf16.mxu1 %v9155_v45  ;;  %v9224_v11 = vld [vmem:[%s12200_s3 + $0xca4] ss:$16 sps:$4 sm:$0xff]   ;;  %v9227_v45 = vld [vmem:[%s12200_s3 + $0xcac] ss:$16 sps:$4 sm:$0xff]  }
 0x30d   :  { %5271 = vmatprep.mubr.bf16.mxu0 %v9443_v55  ;;  %5312 = vmatprep.mubr.bf16.mxu1 %v9443_v55 }
 0x30f   :  { %5242 = vmatpush1.bf16.msra.mxu0 %v9150_v32  ;;  %5283 = vmatpush1.bf16.msra.mxu1 %v9153_v14  ;;  %v9222_v32 = vld [vmem:[%s12200_s3 + $0xca0] ss:$16 sps:$4 sm:$0xff]   ;;  %v9225_v14 = vld [vmem:[%s12200_s3 + $0xca8] ss:$16 sps:$4 sm:$0xff]  }
 0x310   :  { %5243 = vmatprep.subr.bf16.mxu0 %v9158_v34  ;;  %5284 = vmatprep.subr.bf16.mxu1 %v9161_v30  ;;  %v9230_v34 = vld [vmem:[%s12200_s3 + $0xcc4] ss:$16 sps:$4 sm:$0xff]   ;;  %v9233_v30 = vld [vmem:[%s12200_s3 + $0xccc] ss:$16 sps:$4 sm:$0xff]  }
 0x313   :  { %5244 = vmatpush1.bf16.msra.mxu0 %v9156_v17  ;;  %5285 = vmatpush1.bf16.msra.mxu1 %v9159_v61 }
 0x314   :  { %5245 = vmatprep.subr.bf16.mxu0 %v9164_v35  ;;  %5286 = vmatprep.subr.bf16.mxu1 %v9167_v21 }
 0x317   :  { %5246 = vmatpush1.bf16.msra.mxu0 %v9162_v22  ;;  %5287 = vmatpush1.bf16.msra.mxu1 %v9165_v3 }
 0x318   :  { %5247 = vmatprep.subr.bf16.mxu0 %v9170_v43  ;;  %5288 = vmatprep.subr.bf16.mxu1 %v9173_v13 }
 0x31b   :  { %5248 = vmatpush1.bf16.msra.mxu0 %v9168_v5  ;;  %5289 = vmatpush1.bf16.msra.mxu1 %v9171_v49 }
 0x31c   :  { %5249 = vmatprep.subr.bf16.mxu0 %v9176_v60  ;;  %5290 = vmatprep.subr.bf16.mxu1 %v9179_v24  ;;  %v9228_v60 = vld [vmem:[%s12200_s3 + $0xcc0] ss:$16 sps:$4 sm:$0xff]   ;;  %v9231_v24 = vld [vmem:[%s12200_s3 + $0xcc8] ss:$16 sps:$4 sm:$0xff]  }
 0x31d   :  { %v3308_v20 = vpop.f32.mrb[144].mxu0  ;;  %v3349_v50 = vpop.f32.mrb[144].mxu1 }
 0x31e   :  { %v11688_v41 = vadd.f32 %v3308_v20, %v11576_v1  ;;  %v11691_v27 = vadd.f32 %v3349_v50, %v11579_v19  ;;  %v3310_v31 = vpop.f32.mrb[145].mxu0  ;;  %v3351_v37 = vpop.f32.mrb[145].mxu1  ;;  %v9194_v1 = vld [vmem:[%s12200_s3 + $0xc04] ss:$16 sps:$4 sm:$0xff]   ;;  %v9197_v19 = vld [vmem:[%s12200_s3 + $0xc0c] ss:$16 sps:$4 sm:$0xff]  }
 0x31f   :  { %v11694_v47 = vadd.f32 %v3310_v31, %v11582_v46  ;;  %v11697_v52 = vadd.f32 %v3351_v37, %v11585_v63  ;;  %v3312_v9 = vpop.f32.mrb[146].mxu0  ;;  %v3353_v48 = vpop.f32.mrb[146].mxu1  ;;  %5250 = vmatpush1.bf16.msra.mxu0 %v9174_v29  ;;  %5291 = vmatpush1.bf16.msra.mxu1 %v9177_v26  ;;  %v5077_v46 = vrot.slane %v10686_v62, 4  ;;  %v9200_v63 = vld [vmem:[%s12200_s3 + $0xc24] ss:$16 sps:$4 sm:$0xff]  }
 0x320   :  { %v3313_v53 = vpop.f32.mrb[147].mxu0  ;;  %v3354_v58 = vpop.f32.mrb[147].mxu1  ;;  %5251 = vmatprep.subr.bf16.mxu0 %v9182_v25  ;;  %5292 = vmatprep.subr.bf16.mxu1 %v9185_v59  ;;  %v9201_v62 = vld [vmem:[%s12200_s3 + $0xc28] ss:$16 sps:$4 sm:$0xff]   ;;  %v9236_v25 = vld [vmem:[%s12200_s3 + $0xce4] ss:$16 sps:$4 sm:$0xff]  }
 0x321   :  { %v9239_v59 = vld [vmem:[%s12200_s3 + $0xcec] ss:$16 sps:$4 sm:$0xff]   ;;  %v9234_v20 = vld [vmem:[%s12200_s3 + $0xce0] ss:$16 sps:$4 sm:$0xff]   ;;  %v9237_v50 = vld [vmem:[%s12200_s3 + $0xce8] ss:$16 sps:$4 sm:$0xff]  }
 0x322   :  { %v9240_v31 = vld [vmem:[%s12200_s3 + $0xd00] ss:$16 sps:$4 sm:$0xff]   ;;  %v9243_v37 = vld [vmem:[%s12200_s3 + $0xd08] ss:$16 sps:$4 sm:$0xff]  }
 0x323   :  { %5252 = vmatpush1.bf16.msra.mxu0 %v9180_v54  ;;  %5293 = vmatpush1.bf16.msra.mxu1 %v9183_v57  ;;  %v9246_v9 = vld [vmem:[%s12200_s3 + $0xd20] ss:$16 sps:$4 sm:$0xff]   ;;  %v9249_v48 = vld [vmem:[%s12200_s3 + $0xd28] ss:$16 sps:$4 sm:$0xff]   ;;  %v9254_v54 = vld [vmem:[%s12200_s3 + $0xd44] ss:$16 sps:$4 sm:$0xff]  }
 0x324   :  { %5253 = vmatprep.subr.bf16.mxu0 %v9188_v10  ;;  %5294 = vmatprep.subr.bf16.mxu1 %v9191_v44  ;;  %v9257_v57 = vld [vmem:[%s12200_s3 + $0xd4c] ss:$16 sps:$4 sm:$0xff]   ;;  %v9252_v53 = vld [vmem:[%s12200_s3 + $0xd40] ss:$16 sps:$4 sm:$0xff]   ;;  %v9255_v58 = vld [vmem:[%s12200_s3 + $0xd48] ss:$16 sps:$4 sm:$0xff]  }
 0x325   :  { %v9260_v10 = vld [vmem:[%s12200_s3 + $0xd64] ss:$16 sps:$4 sm:$0xff]   ;;  %v9263_v44 = vld [vmem:[%s12200_s3 + $0xd6c] ss:$16 sps:$4 sm:$0xff]  }
 0x327   :  { %5254 = vmatpush1.bf16.msra.mxu0 %v9186_v7  ;;  %5295 = vmatpush1.bf16.msra.mxu1 %v9189_v51  ;;  %v9258_v7 = vld [vmem:[%s12200_s3 + $0xd60] ss:$16 sps:$4 sm:$0xff]   ;;  %v9261_v51 = vld [vmem:[%s12200_s3 + $0xd68] ss:$16 sps:$4 sm:$0xff]  }
 0x328   :  { %5518 = vmatprep.subr.bf16.mxu0 %v9194_v1  ;;  %5559 = vmatprep.subr.bf16.mxu1 %v9197_v19  ;;  %v9266_v1 = vld [vmem:[%s12200_s3 + $0xd84] ss:$16 sps:$4 sm:$0xff]   ;;  %v9269_v19 = vld [vmem:[%s12200_s3 + $0xd8c] ss:$16 sps:$4 sm:$0xff]  }
 0x32a   :  { %5272 = vmatmul.mubr.bf16.vlgmr.msra.gmra.mrb[172].mxu0 %v5077_v46  ;;  %5313 = vmatmul.mubr.bf16.vlgmr.msra.gmra.mrb[172].mxu1 %v5077_v46  ;;  %v9272_v46 = vld [vmem:[%s12200_s3 + $0xda4] ss:$16 sps:$4 sm:$0xff]  }
 0x32b   :  { %5519 = vmatpush1.bf16.msra.mxu0 %v9192_v38  ;;  %5560 = vmatpush1.bf16.msra.mxu1 %v9195_v56  ;;  %v9264_v38 = vld [vmem:[%s12200_s3 + $0xd80] ss:$16 sps:$4 sm:$0xff]   ;;  %v9267_v56 = vld [vmem:[%s12200_s3 + $0xd88] ss:$16 sps:$4 sm:$0xff]  }
 0x32c   :  { %5520 = vmatprep.subr.bf16.mxu0 %v9200_v63  ;;  %5561 = vmatprep.subr.bf16.mxu1 %v9203_v12  ;;  %v9275_v63 = vld [vmem:[%s12200_s3 + $0xdac] ss:$16 sps:$4 sm:$0xff]   ;;  %v9270_v12 = vld [vmem:[%s12200_s3 + $0xda0] ss:$16 sps:$4 sm:$0xff]  }
 0x32d   :  { %5550 = vmatprep.mubr.bf16.mxu0 %v9443_v55  ;;  %5591 = vmatprep.mubr.bf16.mxu1 %v9443_v55 }
 0x32f   :  { %5521 = vmatpush1.bf16.msra.mxu0 %v9198_v36  ;;  %5562 = vmatpush1.bf16.msra.mxu1 %v9201_v62  ;;  %v9273_v36 = vld [vmem:[%s12200_s3 + $0xda8] ss:$16 sps:$4 sm:$0xff]   ;;  %v9278_v62 = vld [vmem:[%s12200_s3 + $0xdc4] ss:$16 sps:$4 sm:$0xff]  }
 0x330   :  { %5522 = vmatprep.subr.bf16.mxu0 %v9206_v18  ;;  %5563 = vmatprep.subr.bf16.mxu1 %v9209_v39  ;;  %v9281_v18 = vld [vmem:[%s12200_s3 + $0xdcc] ss:$16 sps:$4 sm:$0xff]  }
 0x333   :  { %5523 = vmatpush1.bf16.msra.mxu0 %v9204_v4  ;;  %5564 = vmatpush1.bf16.msra.mxu1 %v9207_v40 }
 0x334   :  { %5524 = vmatprep.subr.bf16.mxu0 %v9212_v6  ;;  %5565 = vmatprep.subr.bf16.mxu1 %v9215_v28 }
 0x337   :  { %5525 = vmatpush1.bf16.msra.mxu0 %v9210_v23  ;;  %5566 = vmatpush1.bf16.msra.mxu1 %v9213_v42 }
 0x338   :  { %5526 = vmatprep.subr.bf16.mxu0 %v9218_v0  ;;  %5567 = vmatprep.subr.bf16.mxu1 %v9221_v8 }
 0x33b   :  { %5527 = vmatpush1.bf16.msra.mxu0 %v9216_v2  ;;  %5568 = vmatpush1.bf16.msra.mxu1 %v9219_v15  ;;  %v9276_v15 = vld [vmem:[%s12200_s3 + $0xdc0] ss:$16 sps:$4 sm:$0xff]  }
 0x33c   :  { %5528 = vmatprep.subr.bf16.mxu0 %v9224_v11  ;;  %5569 = vmatprep.subr.bf16.mxu1 %v9227_v45  ;;  %v9279_v11 = vld [vmem:[%s12200_s3 + $0xdc8] ss:$16 sps:$4 sm:$0xff]  }
 0x33d   :  { %v3590_v17 = vpop.f32.mrb[148].mxu0  ;;  %v3631_v61 = vpop.f32.mrb[148].mxu1 }
 0x33e   :  { %v11799_v35 = vadd.f32 %v3590_v17, %v11688_v41  ;;  %v11802_v21 = vadd.f32 %v3631_v61, %v11691_v27  ;;  %v3592_v22 = vpop.f32.mrb[149].mxu0  ;;  %v3633_v3 = vpop.f32.mrb[149].mxu1  ;;  %v9242_v41 = vld [vmem:[%s12200_s3 + $0xd04] ss:$16 sps:$4 sm:$0xff]   ;;  %v9245_v27 = vld [vmem:[%s12200_s3 + $0xd0c] ss:$16 sps:$4 sm:$0xff]  }
 0x33f   :  { %v11805_v43 = vadd.f32 %v3592_v22, %v11694_v47  ;;  %v11808_v13 = vadd.f32 %v3633_v3, %v11697_v52  ;;  %v3594_v5 = vpop.f32.mrb[150].mxu0  ;;  %v3635_v49 = vpop.f32.mrb[150].mxu1  ;;  %5529 = vmatpush1.bf16.msra.mxu0 %v9222_v32  ;;  %5570 = vmatpush1.bf16.msra.mxu1 %v9225_v14  ;;  %v9248_v47 = vld [vmem:[%s12200_s3 + $0xd24] ss:$16 sps:$4 sm:$0xff]   ;;  %v9251_v52 = vld [vmem:[%s12200_s3 + $0xd2c] ss:$16 sps:$4 sm:$0xff]  }
 0x340   :  { %v3595_v29 = vpop.f32.mrb[151].mxu0  ;;  %v3636_v26 = vpop.f32.mrb[151].mxu1  ;;  %5530 = vmatprep.subr.bf16.mxu0 %v9230_v34  ;;  %5571 = vmatprep.subr.bf16.mxu1 %v9233_v30  ;;  %v9284_v14 = vld [vmem:[%s12200_s3 + $0xde4] ss:$16 sps:$4 sm:$0xff]   ;;  %v9287_v34 = vld [vmem:[%s12200_s3 + $0xdec] ss:$16 sps:$4 sm:$0xff]  }
 0x341   :  { %v9282_v30 = vld [vmem:[%s12200_s3 + $0xde0] ss:$16 sps:$4 sm:$0xff]   ;;  %v9285_v17 = vld [vmem:[%s12200_s3 + $0xde8] ss:$16 sps:$4 sm:$0xff]   ;;  %v9290_v61 = vld [vmem:[%s12200_s3 + $0xe04] ss:$16 sps:$4 sm:$0xff]  }
 0x342   :  { %v9291_v22 = vld [vmem:[%s12200_s3 + $0xe08] ss:$16 sps:$4 sm:$0xff]   ;;  %v5638_v3 = vrot.slane %v10716_v33, 4  ;;  %v9294_v5 = vld [vmem:[%s12200_s3 + $0xe20] ss:$16 sps:$4 sm:$0xff]  }
 0x343   :  { %5531 = vmatpush1.bf16.msra.mxu0 %v9228_v60  ;;  %5572 = vmatpush1.bf16.msra.mxu1 %v9231_v24  ;;  %v9302_v49 = vld [vmem:[%s12200_s3 + $0xe44] ss:$16 sps:$4 sm:$0xff]   ;;  %v9305_v60 = vld [vmem:[%s12200_s3 + $0xe4c] ss:$16 sps:$4 sm:$0xff]   ;;  %v9300_v24 = vld [vmem:[%s12200_s3 + $0xe40] ss:$16 sps:$4 sm:$0xff]  }
 0x344   :  { %5532 = vmatprep.subr.bf16.mxu0 %v9236_v25  ;;  %5573 = vmatprep.subr.bf16.mxu1 %v9239_v59  ;;  %v9303_v29 = vld [vmem:[%s12200_s3 + $0xe48] ss:$16 sps:$4 sm:$0xff]   ;;  %v9308_v26 = vld [vmem:[%s12200_s3 + $0xe64] ss:$16 sps:$4 sm:$0xff]   ;;  %v9311_v25 = vld [vmem:[%s12200_s3 + $0xe6c] ss:$16 sps:$4 sm:$0xff]  }
 0x345   :  { %v9306_v59 = vld [vmem:[%s12200_s3 + $0xe60] ss:$16 sps:$4 sm:$0xff]  }
 0x347   :  { %5533 = vmatpush1.bf16.msra.mxu0 %v9234_v20  ;;  %5574 = vmatpush1.bf16.msra.mxu1 %v9237_v50  ;;  %v9309_v20 = vld [vmem:[%s12200_s3 + $0xe68] ss:$16 sps:$4 sm:$0xff]   ;;  %v9314_v50 = vld [vmem:[%s12200_s3 + $0xe84] ss:$16 sps:$4 sm:$0xff]  }
 0x348   :  { %5800 = vmatprep.subr.bf16.mxu0 %v9242_v41  ;;  %5841 = vmatprep.subr.bf16.mxu1 %v9245_v27  ;;  %v9317_v41 = vld [vmem:[%s12200_s3 + $0xe8c] ss:$16 sps:$4 sm:$0xff]   ;;  %v9312_v27 = vld [vmem:[%s12200_s3 + $0xe80] ss:$16 sps:$4 sm:$0xff]  }
 0x34a   :  { %5551 = vmatmul.mubr.bf16.vlgmr.msra.gmra.mrb[176].mxu0 %v10716_v33  ;;  %5592 = vmatmul.mubr.bf16.vlgmr.msra.gmra.mrb[176].mxu1 %v10716_v33  ;;  %v9297_v33 = vld [vmem:[%s12200_s3 + $0xe28] ss:$16 sps:$4 sm:$0xff]  }
 0x34b   :  { %5801 = vmatpush1.bf16.msra.mxu0 %v9240_v31  ;;  %5842 = vmatpush1.bf16.msra.mxu1 %v9243_v37  ;;  %v9315_v31 = vld [vmem:[%s12200_s3 + $0xe88] ss:$16 sps:$4 sm:$0xff]   ;;  %v9320_v37 = vld [vmem:[%s12200_s3 + $0xea4] ss:$16 sps:$4 sm:$0xff]  }
 0x34c   :  { %5802 = vmatprep.subr.bf16.mxu0 %v9248_v47  ;;  %5843 = vmatprep.subr.bf16.mxu1 %v9251_v52  ;;  %v9323_v47 = vld [vmem:[%s12200_s3 + $0xeac] ss:$16 sps:$4 sm:$0xff]   ;;  %v9318_v52 = vld [vmem:[%s12200_s3 + $0xea0] ss:$16 sps:$4 sm:$0xff]  }
 0x34d   :  { %5832 = vmatprep.mubr.bf16.mxu0 %v9443_v55  ;;  %5873 = vmatprep.mubr.bf16.mxu1 %v9443_v55 }
 0x34f   :  { %5803 = vmatpush1.bf16.msra.mxu0 %v9246_v9  ;;  %5844 = vmatpush1.bf16.msra.mxu1 %v9249_v48  ;;  %v9321_v9 = vld [vmem:[%s12200_s3 + $0xea8] ss:$16 sps:$4 sm:$0xff]   ;;  %v9326_v48 = vld [vmem:[%s12200_s3 + $0xec4] ss:$16 sps:$4 sm:$0xff]  }
 0x350   :  { %5804 = vmatprep.subr.bf16.mxu0 %v9254_v54  ;;  %5845 = vmatprep.subr.bf16.mxu1 %v9257_v57  ;;  %v9329_v54 = vld [vmem:[%s12200_s3 + $0xecc] ss:$16 sps:$4 sm:$0xff]  }
 0x353   :  { %5805 = vmatpush1.bf16.msra.mxu0 %v9252_v53  ;;  %5846 = vmatpush1.bf16.msra.mxu1 %v9255_v58 }
 0x354   :  { %5806 = vmatprep.subr.bf16.mxu0 %v9260_v10  ;;  %5847 = vmatprep.subr.bf16.mxu1 %v9263_v44 }
 0x357   :  { %5807 = vmatpush1.bf16.msra.mxu0 %v9258_v7  ;;  %5848 = vmatpush1.bf16.msra.mxu1 %v9261_v51 }
 0x358   :  { %5808 = vmatprep.subr.bf16.mxu0 %v9266_v1  ;;  %5849 = vmatprep.subr.bf16.mxu1 %v9269_v19 }
 0x35b   :  { %5809 = vmatpush1.bf16.msra.mxu0 %v9264_v38  ;;  %5850 = vmatpush1.bf16.msra.mxu1 %v9267_v56  ;;  %v9324_v56 = vld [vmem:[%s12200_s3 + $0xec0] ss:$16 sps:$4 sm:$0xff]  }
 0x35c   :  { %5810 = vmatprep.subr.bf16.mxu0 %v9272_v46  ;;  %5851 = vmatprep.subr.bf16.mxu1 %v9275_v63  ;;  %v9327_v46 = vld [vmem:[%s12200_s3 + $0xec8] ss:$16 sps:$4 sm:$0xff]  }
 0x35d   :  { %v3869_v39 = vpop.f32.mrb[152].mxu0  ;;  %v3910_v4 = vpop.f32.mrb[152].mxu1 }
 0x35e   :  { %v11911_v40 = vadd.f32 %v3869_v39, %v11799_v35  ;;  %v11914_v6 = vadd.f32 %v3910_v4, %v11802_v21  ;;  %v3871_v28 = vpop.f32.mrb[153].mxu0  ;;  %v3912_v23 = vpop.f32.mrb[153].mxu1  ;;  %v9293_v35 = vld [vmem:[%s12200_s3 + $0xe0c] ss:$16 sps:$4 sm:$0xff]   ;;  %v9288_v21 = vld [vmem:[%s12200_s3 + $0xe00] ss:$16 sps:$4 sm:$0xff]  }
 0x35f   :  { %v11917_v42 = vadd.f32 %v3871_v28, %v11805_v43  ;;  %v11920_v0 = vadd.f32 %v3912_v23, %v11808_v13  ;;  %v3873_v8 = vpop.f32.mrb[154].mxu0  ;;  %v3914_v2 = vpop.f32.mrb[154].mxu1  ;;  %5811 = vmatpush1.bf16.msra.mxu0 %v9270_v12  ;;  %5852 = vmatpush1.bf16.msra.mxu1 %v9273_v36  ;;  %v9296_v43 = vld [vmem:[%s12200_s3 + $0xe24] ss:$16 sps:$4 sm:$0xff]   ;;  %v9299_v13 = vld [vmem:[%s12200_s3 + $0xe2c] ss:$16 sps:$4 sm:$0xff]  }
 0x360   :  { %v3874_v45 = vpop.f32.mrb[155].mxu0  ;;  %v3915_v32 = vpop.f32.mrb[155].mxu1  ;;  %5812 = vmatprep.subr.bf16.mxu0 %v9278_v62  ;;  %5853 = vmatprep.subr.bf16.mxu1 %v9281_v18  ;;  %v9332_v36 = vld [vmem:[%s12200_s3 + $0xee4] ss:$16 sps:$4 sm:$0xff]   ;;  %v9335_v62 = vld [vmem:[%s12200_s3 + $0xeec] ss:$16 sps:$4 sm:$0xff]  }
 0x361   :  { %v9330_v18 = vld [vmem:[%s12200_s3 + $0xee0] ss:$16 sps:$4 sm:$0xff]   ;;  %v9333_v39 = vld [vmem:[%s12200_s3 + $0xee8] ss:$16 sps:$4 sm:$0xff]   ;;  %v9338_v4 = vld [vmem:[%s12200_s3 + $0xf04] ss:$16 sps:$4 sm:$0xff]  }
 0x362   :  { %v9339_v28 = vld [vmem:[%s12200_s3 + $0xf08] ss:$16 sps:$4 sm:$0xff]   ;;  %v9344_v23 = vld [vmem:[%s12200_s3 + $0xf24] ss:$16 sps:$4 sm:$0xff]  }
 0x363   :  { %5813 = vmatpush1.bf16.msra.mxu0 %v9276_v15  ;;  %5854 = vmatpush1.bf16.msra.mxu1 %v9279_v11  ;;  %v9345_v8 = vld [vmem:[%s12200_s3 + $0xf28] ss:$16 sps:$4 sm:$0xff]   ;;  %v9350_v2 = vld [vmem:[%s12200_s3 + $0xf44] ss:$16 sps:$4 sm:$0xff]   ;;  %v9353_v15 = vld [vmem:[%s12200_s3 + $0xf4c] ss:$16 sps:$4 sm:$0xff]  }
 0x364   :  { %5814 = vmatprep.subr.bf16.mxu0 %v9284_v14  ;;  %5855 = vmatprep.subr.bf16.mxu1 %v9287_v34  ;;  %v9348_v11 = vld [vmem:[%s12200_s3 + $0xf40] ss:$16 sps:$4 sm:$0xff]   ;;  %v9351_v45 = vld [vmem:[%s12200_s3 + $0xf48] ss:$16 sps:$4 sm:$0xff]   ;;  %v9356_v32 = vld [vmem:[%s12200_s3 + $0xf64] ss:$16 sps:$4 sm:$0xff]  }
 0x365   :  { %v9354_v14 = vld [vmem:[%s12200_s3 + $0xf60] ss:$16 sps:$4 sm:$0xff]   ;;  %v9357_v34 = vld [vmem:[%s12200_s3 + $0xf68] ss:$16 sps:$4 sm:$0xff]  }
 0x367   :  { %5815 = vmatpush1.bf16.msra.mxu0 %v9282_v30  ;;  %5856 = vmatpush1.bf16.msra.mxu1 %v9285_v17  ;;  %v9362_v30 = vld [vmem:[%s12200_s3 + $0xf84] ss:$16 sps:$4 sm:$0xff]   ;;  %v9365_v17 = vld [vmem:[%s12200_s3 + $0xf8c] ss:$16 sps:$4 sm:$0xff]  }
 0x368   :  { %6079 = vmatprep.subr.bf16.mxu0 %v9290_v61  ;;  %6120 = vmatprep.subr.bf16.mxu1 %v9293_v35  ;;  %v9360_v61 = vld [vmem:[%s12200_s3 + $0xf80] ss:$16 sps:$4 sm:$0xff]   ;;  %v9363_v35 = vld [vmem:[%s12200_s3 + $0xf88] ss:$16 sps:$4 sm:$0xff]  }
 0x36a   :  { %5833 = vmatmul.mubr.bf16.vlgmr.msra.gmra.mrb[180].mxu0 %v5638_v3  ;;  %5874 = vmatmul.mubr.bf16.vlgmr.msra.gmra.mrb[180].mxu1 %v5638_v3  ;;  %v9366_v3 = vld [vmem:[%s12200_s3 + $0xfa0] ss:$16 sps:$4 sm:$0xff]  }
 0x36b   :  { %6080 = vmatpush1.bf16.msra.mxu0 %v9288_v21  ;;  %6121 = vmatpush1.bf16.msra.mxu1 %v9291_v22  ;;  %v9368_v21 = vld [vmem:[%s12200_s3 + $0xfa4] ss:$16 sps:$4 sm:$0xff]   ;;  %v9371_v22 = vld [vmem:[%s12200_s3 + $0xfac] ss:$16 sps:$4 sm:$0xff]  }
 0x36c   :  { %6081 = vmatprep.subr.bf16.mxu0 %v9296_v43  ;;  %6122 = vmatprep.subr.bf16.mxu1 %v9299_v13  ;;  %v9369_v43 = vld [vmem:[%s12200_s3 + $0xfa8] ss:$16 sps:$4 sm:$0xff]   ;;  %v9374_v13 = vld [vmem:[%s12200_s3 + $0xfc4] ss:$16 sps:$4 sm:$0xff]  }
 0x36d   :  { %6111 = vmatprep.mubr.bf16.mxu0 %v9443_v55  ;;  %6152 = vmatprep.mubr.bf16.mxu1 %v9443_v55 }
 0x36f   :  { %6082 = vmatpush1.bf16.msra.mxu0 %v9294_v5  ;;  %6123 = vmatpush1.bf16.msra.mxu1 %v9297_v33  ;;  %v9377_v5 = vld [vmem:[%s12200_s3 + $0xfcc] ss:$16 sps:$4 sm:$0xff]  }
 0x370   :  { %6083 = vmatprep.subr.bf16.mxu0 %v9302_v49  ;;  %6124 = vmatprep.subr.bf16.mxu1 %v9305_v60 }
 0x373   :  { %6084 = vmatpush1.bf16.msra.mxu0 %v9300_v24  ;;  %6125 = vmatpush1.bf16.msra.mxu1 %v9303_v29 }
 0x374   :  { %6085 = vmatprep.subr.bf16.mxu0 %v9308_v26  ;;  %6126 = vmatprep.subr.bf16.mxu1 %v9311_v25 }
 0x377   :  { %6086 = vmatpush1.bf16.msra.mxu0 %v9306_v59  ;;  %6127 = vmatpush1.bf16.msra.mxu1 %v9309_v20 }
 0x378   :  { %6087 = vmatprep.subr.bf16.mxu0 %v9314_v50  ;;  %6128 = vmatprep.subr.bf16.mxu1 %v9317_v41  ;;  %v9372_v41 = vld [vmem:[%s12200_s3 + $0xfc0] ss:$16 sps:$4 sm:$0xff]  }
 0x37b   :  { %6088 = vmatpush1.bf16.msra.mxu0 %v9312_v27  ;;  %6129 = vmatpush1.bf16.msra.mxu1 %v9315_v31  ;;  %v9375_v27 = vld [vmem:[%s12200_s3 + $0xfc8] ss:$16 sps:$4 sm:$0xff]  }
 0x37c   :  { %6089 = vmatprep.subr.bf16.mxu0 %v9320_v37  ;;  %6130 = vmatprep.subr.bf16.mxu1 %v9323_v47  ;;  %v9380_v47 = vld [vmem:[%s12200_s3 + $0xfe4] ss:$16 sps:$4 sm:$0xff]  }
 0x37d   :  { %v4151_v57 = vpop.f32.mrb[156].mxu0  ;;  %v4192_v53 = vpop.f32.mrb[156].mxu1 }
 0x37e   :  { %v12022_v58 = vadd.f32 %v4151_v57, %v11911_v40  ;;  %v12025_v10 = vadd.f32 %v4192_v53, %v11914_v6  ;;  %v4153_v44 = vpop.f32.mrb[157].mxu0  ;;  %v4194_v7 = vpop.f32.mrb[157].mxu1  ;;  %v9341_v40 = vld [vmem:[%s12200_s3 + $0xf0c] ss:$16 sps:$4 sm:$0xff]   ;;  %v9336_v6 = vld [vmem:[%s12200_s3 + $0xf00] ss:$16 sps:$4 sm:$0xff]  }
 0x37f   :  { %v12028_v51 = vadd.f32 %v4153_v44, %v11917_v42  ;;  %v12031_v1 = vadd.f32 %v4194_v7, %v11920_v0  ;;  %v4155_v19 = vpop.f32.mrb[158].mxu0  ;;  %v4196_v38 = vpop.f32.mrb[158].mxu1  ;;  %6090 = vmatpush1.bf16.msra.mxu0 %v9318_v52  ;;  %6131 = vmatpush1.bf16.msra.mxu1 %v9321_v9  ;;  %v9347_v42 = vld [vmem:[%s12200_s3 + $0xf2c] ss:$16 sps:$4 sm:$0xff]   ;;  %v9342_v0 = vld [vmem:[%s12200_s3 + $0xf20] ss:$16 sps:$4 sm:$0xff]  }
 0x380   :  { %v4156_v63 = vpop.f32.mrb[159].mxu0  ;;  %v4197_v12 = vpop.f32.mrb[159].mxu1  ;;  %6091 = vmatprep.subr.bf16.mxu0 %v9326_v48  ;;  %6132 = vmatprep.subr.bf16.mxu1 %v9329_v54  ;;  %v9383_v52 = vld [vmem:[%s12200_s3 + $0xfec] ss:$16 sps:$4 sm:$0xff]   ;;  %v9378_v9 = vld [vmem:[%s12200_s3 + $0xfe0] ss:$16 sps:$4 sm:$0xff]  }
 0x381   :  { %v9381_v48 = vld [vmem:[%s12200_s3 + $0xfe8] ss:$16 sps:$4 sm:$0xff]   ;;  %v6199_v54 = vrot.slane %v10745_v16, 4 }
 0x383   :  { %6092 = vmatpush1.bf16.msra.mxu0 %v9324_v56  ;;  %6133 = vmatpush1.bf16.msra.mxu1 %v9327_v46 }
 0x384   :  { %6093 = vmatprep.subr.bf16.mxu0 %v9332_v36  ;;  %6134 = vmatprep.subr.bf16.mxu1 %v9335_v62 }
 0x387   :  { %6094 = vmatpush1.bf16.msra.mxu0 %v9330_v18  ;;  %6135 = vmatpush1.bf16.msra.mxu1 %v9333_v39 }
 0x388   :  { %6361 = vmatprep.subr.bf16.mxu0 %v9338_v4  ;;  %6402 = vmatprep.subr.bf16.mxu1 %v9341_v40 }
 0x38a   :  { %6112 = vmatmul.mubr.bf16.vlgmr.msra.gmra.mrb[184].mxu0 %v10745_v16  ;;  %6153 = vmatmul.mubr.bf16.vlgmr.msra.gmra.mrb[184].mxu1 %v10745_v16 }
 0x38b   :  { %6362 = vmatpush1.bf16.msra.mxu0 %v9336_v6  ;;  %6403 = vmatpush1.bf16.msra.mxu1 %v9339_v28 }
 0x38c   :  { %6363 = vmatprep.subr.bf16.mxu0 %v9344_v23  ;;  %6404 = vmatprep.subr.bf16.mxu1 %v9347_v42 }
 0x38d   :  { %6393 = vmatprep.mubr.bf16.mxu0 %v9443_v55  ;;  %6434 = vmatprep.mubr.bf16.mxu1 %v9443_v55  ;;  %v9359_v55 = vld [vmem:[%s12200_s3 + $0xf6c] ss:$16 sps:$4 sm:$0xff]  }
 0x38f   :  { %6364 = vmatpush1.bf16.msra.mxu0 %v9342_v0  ;;  %6405 = vmatpush1.bf16.msra.mxu1 %v9345_v8 }
 0x390   :  { %6365 = vmatprep.subr.bf16.mxu0 %v9350_v2  ;;  %6406 = vmatprep.subr.bf16.mxu1 %v9353_v15 }
 0x393   :  { %6366 = vmatpush1.bf16.msra.mxu0 %v9348_v11  ;;  %6407 = vmatpush1.bf16.msra.mxu1 %v9351_v45 }
 0x394   :  { %6367 = vmatprep.subr.bf16.mxu0 %v9356_v32  ;;  %6408 = vmatprep.subr.bf16.mxu1 %v9359_v55 }
 0x397   :  { %6368 = vmatpush1.bf16.msra.mxu0 %v9354_v14  ;;  %6409 = vmatpush1.bf16.msra.mxu1 %v9357_v34 }
 0x398   :  { %6369 = vmatprep.subr.bf16.mxu0 %v9362_v30  ;;  %6410 = vmatprep.subr.bf16.mxu1 %v9365_v17 }
 0x39b   :  { %6370 = vmatpush1.bf16.msra.mxu0 %v9360_v61  ;;  %6411 = vmatpush1.bf16.msra.mxu1 %v9363_v35 }
 0x39c   :  { %6371 = vmatprep.subr.bf16.mxu0 %v9368_v21  ;;  %6412 = vmatprep.subr.bf16.mxu1 %v9371_v22 }
 0x39d   :  { %v4430_v33 = vpop.f32.mrb[160].mxu0  ;;  %v4471_v49 = vpop.f32.mrb[160].mxu1 }
 0x39e   :  { %v4478_v60 = vadd.f32 %v4430_v33, %v12022_v58  ;;  %v4480_v24 = vadd.f32 %v4471_v49, %v12025_v10  ;;  %v4432_v29 = vpop.f32.mrb[161].mxu0  ;;  %v4473_v26 = vpop.f32.mrb[161].mxu1 }
 0x39f   :  { %v4479_v25 = vadd.f32 %v4432_v29, %v12028_v51  ;;  %v4481_v59 = vadd.f32 %v4473_v26, %v12031_v1  ;;  %v4434_v20 = vpop.f32.mrb[162].mxu0  ;;  %v4475_v50 = vpop.f32.mrb[162].mxu1  ;;  %6372 = vmatpush1.bf16.msra.mxu0 %v9366_v3  ;;  %6413 = vmatpush1.bf16.msra.mxu1 %v9369_v43 }
 0x3a0   :  { %v4435_v31 = vpop.f32.mrb[163].mxu0  ;;  %v4476_v37 = vpop.f32.mrb[163].mxu1  ;;  %6373 = vmatprep.subr.bf16.mxu0 %v9374_v13  ;;  %6414 = vmatprep.subr.bf16.mxu1 %v9377_v5 }
 0x3a3   :  { %6374 = vmatpush1.bf16.msra.mxu0 %v9372_v41  ;;  %6415 = vmatpush1.bf16.msra.mxu1 %v9375_v27 }
 0x3a4   :  { %6375 = vmatprep.subr.bf16.mxu0 %v9380_v47  ;;  %6416 = vmatprep.subr.bf16.mxu1 %v9383_v52 }
 0x3a7   :  { %6376 = vmatpush1.bf16.msra.mxu0 %v9378_v9  ;;  %6417 = vmatpush1.bf16.msra.mxu1 %v9381_v48 }
 0x3aa   :  { %6394 = vmatmul.mubr.bf16.vlgmr.msra.gmra.mrb[188].mxu0 %v6199_v54  ;;  %6435 = vmatmul.mubr.bf16.vlgmr.msra.gmra.mrb[188].mxu1 %v6199_v54 }
 0x3bd   :  { %v4712_v57 = vpop.f32.mrb[164].mxu0  ;;  %v4753_v53 = vpop.f32.mrb[164].mxu1 }
 0x3be   :  { %v4760_v58 = vadd.f32 %v4712_v57, %v4478_v60  ;;  %v4762_v10 = vadd.f32 %v4753_v53, %v4480_v24  ;;  %v4714_v44 = vpop.f32.mrb[165].mxu0  ;;  %v4755_v7 = vpop.f32.mrb[165].mxu1 }
 0x3bf   :  { %v4761_v51 = vadd.f32 %v4714_v44, %v4479_v25  ;;  %v4763_v1 = vadd.f32 %v4755_v7, %v4481_v59  ;;  %v4716_v19 = vpop.f32.mrb[166].mxu0  ;;  %v4757_v38 = vpop.f32.mrb[166].mxu1 }
 0x3c0   :  { %v4717_v56 = vpop.f32.mrb[167].mxu0  ;;  %v4758_v46 = vpop.f32.mrb[167].mxu1  ;;  %v6449_v19 = vlaneseq }
 0x3c2   :  { %v6450_v38 = vshrl.u32 %v6449_v19, 7 }
 0x3c4   :  { %v12156_v56 = vsub.s32 0, %v6450_v38  ;;  %v12158_v46 = vsub.s32 2, %v6450_v38  ;;  %vm6518_vm0 = vcmp.lt.s32.totalorder %v6450_v38, 4 }
 0x3dd   :  { %v4991_v63 = vpop.f32.mrb[168].mxu0  ;;  %v5032_v12 = vpop.f32.mrb[168].mxu1 }
 0x3de   :  { %v5039_v36 = vadd.f32 %v4991_v63, %v4760_v58  ;;  %v5041_v62 = vadd.f32 %v5032_v12, %v4762_v10  ;;  %v4993_v18 = vpop.f32.mrb[169].mxu0  ;;  %v5034_v16 = vpop.f32.mrb[169].mxu1  ;;  %v6447_v63 = vld [vmem:[%s12201_s4] sm:$0xf]  ;;  %v12163_v12 = vsub.s32 1, %v6450_v38 }
 0x3df   :  { %v5040_v39 = vadd.f32 %v4993_v18, %v4761_v51  ;;  %v5042_v4 = vadd.f32 %v5034_v16, %v4763_v1  ;;  %v4995_v40 = vpop.f32.mrb[170].mxu0  ;;  %v5036_v6 = vpop.f32.mrb[170].mxu1  ;;  %v6460_v18 = vrot.slane %v6447_v63, %v12158_v46 }
 0x3e0   :  { %v4996_v28 = vpop.f32.mrb[171].mxu0  ;;  %v5037_v23 = vpop.f32.mrb[171].mxu1  ;;  %v6456_v40 = vrot.slane %v6447_v63, %v12163_v12 }
 0x3fd   :  { %v5273_v42 = vpop.f32.mrb[172].mxu0  ;;  %v5314_v0 = vpop.f32.mrb[172].mxu1 }
 0x3fe   :  { %v5321_v8 = vadd.f32 %v5273_v42, %v5039_v36  ;;  %v5323_v2 = vadd.f32 %v5314_v0, %v5041_v62  ;;  %v5275_v15 = vpop.f32.mrb[173].mxu0  ;;  %v5316_v11 = vpop.f32.mrb[173].mxu1  ;;  %v12165_v36 = vsub.s32 3, %v6450_v38  ;;  %v6452_v62 = vrot.slane %v6447_v63, %v12156_v56 }
 0x3ff   :  { %v5322_v45 = vadd.f32 %v5275_v15, %v5040_v39  ;;  %v5324_v32 = vadd.f32 %v5316_v11, %v5042_v4  ;;  %v5277_v55 = vpop.f32.mrb[174].mxu0  ;;  %v5318_v14 = vpop.f32.mrb[174].mxu1  ;;  %v6477_v39 = vld [vmem:[%s12202_s5] sm:$0xf] }
 0x400   :  { %v5278_v34 = vpop.f32.mrb[175].mxu0  ;;  %v5319_v30 = vpop.f32.mrb[175].mxu1  ;;  %v6464_v6 = vrot.slane %v6447_v63, %v12165_v36 }
 0x41d   :  { %v5552_v17 = vpop.f32.mrb[176].mxu0  ;;  %v5593_v61 = vpop.f32.mrb[176].mxu1 }
 0x41e   :  { %v5600_v35 = vadd.f32 %v5552_v17, %v5321_v8  ;;  %v5602_v21 = vadd.f32 %v5593_v61, %v5323_v2  ;;  %v5554_v22 = vpop.f32.mrb[177].mxu0  ;;  %v5595_v3 = vpop.f32.mrb[177].mxu1  ;;  %v6486_v17 = vrot.slane %v6477_v39, %v12163_v12 }
 0x41f   :  { %v5601_v43 = vadd.f32 %v5554_v22, %v5322_v45  ;;  %v5603_v13 = vadd.f32 %v5595_v3, %v5324_v32  ;;  %v5556_v5 = vpop.f32.mrb[178].mxu0  ;;  %v5597_v33 = vpop.f32.mrb[178].mxu1  ;;  %v6482_v32 = vrot.slane %v6477_v39, %v12156_v56  ;;  %v6490_v3 = vrot.slane %v6477_v39, %v12158_v46 }
 0x420   :  { %v5557_v49 = vpop.f32.mrb[179].mxu0  ;;  %v5598_v60 = vpop.f32.mrb[179].mxu1  ;;  %v6494_v33 = vrot.slane %v6477_v39, %v12165_v36 }
 0x43d   :  { %v5834_v24 = vpop.f32.mrb[180].mxu0  ;;  %v5875_v29 = vpop.f32.mrb[180].mxu1 }
 0x43e   :  { %v5882_v26 = vadd.f32 %v5834_v24, %v5600_v35  ;;  %v5884_v25 = vadd.f32 %v5875_v29, %v5602_v21  ;;  %v5836_v59 = vpop.f32.mrb[181].mxu0  ;;  %v5877_v20 = vpop.f32.mrb[181].mxu1 }
 0x43f   :  { %v5883_v50 = vadd.f32 %v5836_v59, %v5601_v43  ;;  %v5885_v41 = vadd.f32 %v5877_v20, %v5603_v13  ;;  %v5838_v27 = vpop.f32.mrb[182].mxu0  ;;  %v5879_v31 = vpop.f32.mrb[182].mxu1 }
 0x440   :  { %v5839_v37 = vpop.f32.mrb[183].mxu0  ;;  %v5880_v47 = vpop.f32.mrb[183].mxu1 }
 0x45d   :  { %v6113_v52 = vpop.f32.mrb[184].mxu0  ;;  %v6154_v9 = vpop.f32.mrb[184].mxu1 }
 0x45e   :  { %v6161_v48 = vadd.f32 %v6113_v52, %v5882_v26  ;;  %v6163_v54 = vadd.f32 %v6154_v9, %v5884_v25  ;;  %v6115_v57 = vpop.f32.mrb[185].mxu0  ;;  %v6156_v53 = vpop.f32.mrb[185].mxu1  ;;  %v7876_v25 = vld [vmem:[#allocation2] ss:$0 sm:$0xff] }
 0x45f   :  { %v6162_v58 = vadd.f32 %v6115_v57, %v5883_v50  ;;  %v6164_v10 = vadd.f32 %v6156_v53, %v5885_v41  ;;  %v6117_v44 = vpop.f32.mrb[186].mxu0  ;;  %v6158_v7 = vpop.f32.mrb[186].mxu1 }
 0x460   :  { %v6118_v51 = vpop.f32.mrb[187].mxu0  ;;  %v6159_v1 = vpop.f32.mrb[187].mxu1 }
 0x47d   :  { %v6395_v16 = vpop.f32.mrb[188].mxu0  ;;  %v6436_v4 = vpop.f32.mrb[188].mxu1 }
 0x47e   :  { %v6443_v28 = vadd.f32 %v6395_v16, %v6161_v48  ;;  %v6445_v23 = vadd.f32 %v6436_v4, %v6163_v54  ;;  %v6397_v42 = vpop.f32.mrb[189].mxu0  ;;  %v6438_v0 = vpop.f32.mrb[189].mxu1 }
 0x47f   :  { %v6444_v8 = vadd.f32 %v6397_v42, %v6162_v58  ;;  %v6446_v2 = vadd.f32 %v6438_v0, %v6164_v10  ;;  %v6399_v15 = vpop.f32.mrb[190].mxu0  ;;  %v6440_v11 = vpop.f32.mrb[190].mxu1 }
 0x480   :  { %v6469_v45 = vadd.f32 %v6452_v62, %v6443_v28  ;;  %v6471_v55 = vadd.f32 %v6460_v18, %v6445_v23  ;;  %v6400_v14 = vpop.f32.mrb[191].mxu0  ;;  %v6441_v34 = vpop.f32.mrb[191].mxu1 }
 0x481   :  { %v6470_v30 = vadd.f32 %v6456_v40, %v6444_v8  ;;  %v6472_v61 = vadd.f32 %v6464_v6, %v6446_v2 }
 0x482   :  { %v6473_v35 = vmax.f32 %v6469_v45, 0.0  ;;  %v6475_v21 = vmax.f32 %v6471_v55, 0.0 }
 0x483   :  { %v6474_v22 = vmax.f32 %v6470_v30, 0.0  ;;  %v6476_v5 = vmax.f32 %v6472_v61, 0.0 }
 0x484   :  { %v6499_v43 = vmul.f32 %v6482_v32, %v6473_v35  ;;  %v6501_v49 = vmul.f32 %v6490_v3, %v6475_v21  ;;  %v6573_v32 = vld [vmem:[%s12204_s7] sm:$0xf]  ;;  %s9444_s7 = smov [#allocation4]  }
 0x485   :  { %v6500_v13 = vmul.f32 %v6486_v17, %v6474_v22  ;;  %v6502_v24 = vmul.f32 %v6494_v33, %v6476_v5  ;;  %v6578_v17 = vrot.slane %v6573_v32, %v12156_v56  ;;  %v6582_v61 = vrot.slane %v6573_v32, %v12163_v12  ;;  %s6619_s16 = sshll.u32 %s9444_s7, 4  ;;  %s6620_s16 = int_to_ptr.vmem [resolvable:$true] %s6619_s16 }
 0x486   :  { %s9419_s17 = scalar_lea.vmem %s6620_s16, 16  ;;  %s9423_s1 = scalar_lea.vmem %s6620_s16, 32 }
 0x487   :  { %v6503_v60 = vadd.f32 %v6500_v13, %v6499_v43  ;;  %v6590_v13 = vrot.slane %v6573_v32, %v12165_v36  ;;  %p9420_p0 = scmp.ne.s32.totalorder %s6620_s16, %s9419_s17  ;;  %p9424_p1 = scmp.lt.s32.totalorder %s6620_s16, %s6620_s16 }
 0x488   :  { %p9425_p2 = scmp.lt.s32.totalorder %s9423_s1, %s9419_s17 }
 0x489   :  { %v6504_v29 = vadd.f32 %v6503_v60, %v6501_v49 }
 0x48a   :  { %p9426_p3 = por %p9425_p2, %p9424_p1 }
 0x48b   :  { %v6505_v26 = vadd.f32 %v6504_v29, %v6502_v24 }
 0x48c   :  { %p9427_p4 = pnand %p9426_p3, %p9420_p0 }
 0x48d   :  { %6506 = vadd.xlane.f32.xlu0 %v6505_v26 }
 0x51a   :  { %v6507_v59 = vpop.xlane.xlu0 %6506 }
 0x51b   :  { %v6515_v20 = vadd.f32 %v7876_v25, %v6507_v59 }
 0x51d   :  { %v6519_v50 = vsel %vm6518_vm0, %v6515_v20, -1e+30 }
 0x51e   :  { %v6521_v41 = vsel %vm6520_vm1, %v6519_v50, -inf }
 0x51f   :  { %v6522_v27 = vrot.slane %v6521_v41, 4 }
 0x521   :  { %v6523_v31 = vmax.f32 %v6521_v41, %v6522_v27  ;;  %v6609_v27 = vld [vmem:[#allocation3] sm:$0x1] }
 0x523   :  { %v6524_v37 = vrot.slane %v6523_v31, 2 }
 0x525   :  { %v6525_v47 = vmax.f32 %v6523_v31, %v6524_v37 }
 0x527   :  { %v6526_v52 = vrot.slane %v6525_v47, 1 }
 0x529   :  { %v6527_v9 = vmax.f32 %v6525_v47, %v6526_v52 }
 0x52b   :  { %v6528_v48 = vsub.f32 %v6519_v50, %v6527_v9 }
 0x52d   :  { %v6529_v54 = vmul.f32 1.442695, %v6528_v48 }
 0x52f   :  { %9384 = vpow2.f32 %v6529_v54 }
 0x539   :  { %v9385_v57 = vpop.eup %9384 }
 0x53a   :  { %v6531_v53 = vsel %vm6520_vm1, %v9385_v57, 0.0 }
 0x53b   :  { %v6532_v58 = vrot.slane %v6531_v53, 4 }
 0x53d   :  { %v6533_v10 = vadd.f32 %v6532_v58, %v6531_v53 }
 0x53f   :  { %v6534_v44 = vrot.slane %v6533_v10, 2 }
 0x541   :  { %v6535_v7 = vadd.f32 %v6534_v44, %v6533_v10 }
 0x543   :  { %v6536_v51 = vrot.slane %v6535_v7, 1 }
 0x545   :  { %v6537_v1 = vadd.f32 %v6536_v51, %v6535_v7 }
 0x547   :  { %9386 = vrcp.f32 %v6537_v1 }
 0x551   :  { %v9387_v19 = vpop.eup %9386 }
 0x552   :  { %v6539_v38 = vmul.f32 %v9387_v19, %v9385_v57 }
 0x554   :  { %6542 = vperm.xlu0 %8391, %v6539_v38  }
 0x5d3   :  { %v6543_v63 = vpop.permute.xlu0 %6542 }
 0x5d4   :  { %v6545_v62 = vmul.f32 %v6543_v63, %v6473_v35  ;;  %v6546_v18 = vmul.f32 %v6543_v63, %v6474_v22  ;;  %v6547_v16 = vmul.f32 %v6543_v63, %v6475_v21  ;;  %v6548_v39 = vmul.f32 %v6543_v63, %v6476_v5 }
 0x5d5   :  { %v6586_v35 = vrot.slane %v6573_v32, %v12158_v46 }
 0x5d6   :  { %v6549_v4 = vrot.slane %v6545_v62, 4  ;;  %v6555_v40 = vrot.slane %v6546_v18, 4  ;;  %v6561_v6 = vrot.slane %v6547_v16, 4  ;;  %v6567_v28 = vrot.slane %v6548_v39, 4 }
 0x5d8   :  { %v6550_v23 = vadd.f32 %v6549_v4, %v6545_v62  ;;  %v6556_v42 = vadd.f32 %v6555_v40, %v6546_v18  ;;  %v6562_v0 = vadd.f32 %v6561_v6, %v6547_v16  ;;  %v6568_v8 = vadd.f32 %v6567_v28, %v6548_v39 }
 0x5da   :  { %v6551_v2 = vrot.slane %v6550_v23, 2  ;;  %v6557_v15 = vrot.slane %v6556_v42, 2  ;;  %v6563_v11 = vrot.slane %v6562_v0, 2  ;;  %v6569_v45 = vrot.slane %v6568_v8, 2 }
 0x5dc   :  { %v6552_v55 = vadd.f32 %v6551_v2, %v6550_v23  ;;  %v6558_v14 = vadd.f32 %v6557_v15, %v6556_v42  ;;  %v6564_v34 = vadd.f32 %v6563_v11, %v6562_v0  ;;  %v6570_v30 = vadd.f32 %v6569_v45, %v6568_v8 }
 0x5de   :  { %v6553_v21 = vrot.slane %v6552_v55, 1  ;;  %v6559_v22 = vrot.slane %v6558_v14, 1  ;;  %v6565_v3 = vrot.slane %v6564_v34, 1  ;;  %v6571_v43 = vrot.slane %v6570_v30, 1 }
 0x5e0   :  { %v6554_v5 = vadd.f32 %v6553_v21, %v6552_v55  ;;  %v6560_v33 = vadd.f32 %v6559_v22, %v6558_v14  ;;  %v6566_v49 = vadd.f32 %v6565_v3, %v6564_v34  ;;  %v6572_v60 = vadd.f32 %v6571_v43, %v6570_v30 }
 0x5e2   :  { %v6595_v24 = vmul.f32 %v6578_v17, %v6554_v5  ;;  %v6596_v29 = vmul.f32 %v6582_v61, %v6560_v33  ;;  %v6597_v26 = vmul.f32 %v6586_v35, %v6566_v49  ;;  %v6598_v25 = vmul.f32 %v6590_v13, %v6572_v60 }
 0x5e4   :  { %v6600_v56 = vsel %vm6599_vm2, %v6595_v24, 0.0  ;;  %v6601_v59 = vsel %vm6599_vm2, %v6596_v29, 0.0  ;;  %v6603_v20 = vsel %vm6599_vm2, %v6597_v26, 0.0  ;;  %v6605_v50 = vsel %vm6599_vm2, %v6598_v25, 0.0 }
 0x5e5   :  { %v6602_v12 = vadd.f32 %v6601_v59, %v6600_v56 }
 0x5e7   :  { %v6604_v46 = vadd.f32 %v6603_v20, %v6602_v12 }
 0x5e9   :  { %v6606_v41 = vadd.f32 %v6605_v50, %v6604_v46 }
 0x5eb   :  { %6607 = vadd.xlane.f32.xlu1 %v6606_v41 }
 0x678   :  { %v6608_v36 = vpop.xlane.xlu1 %6607 }
 0x679   :  { %v6610_v31 = vadd.f32 %v6609_v27, %v6608_v36 }
 0x67b   :  { %6612 = vst.msk [vmem:[#allocation4] sm:$0x1] %vm6611_vm3, %v6610_v31 }
 0x67c   :  { %9430 = shalt.err (!%p9427_p4)
}
 0x67d   :  { %s9431_s8 = scalar_lea.hbm %s12205_s9, 16 }
 0x67e   :  { %p9432_p5 = scmp.ne.s32.totalorder %s12205_s9, %s9431_s8  ;;  %p9435_p6 = scmp.lt.u32.totalorder %s9431_s8, %s12205_s9 }
 0x680   :  { %p9437_p7 = pnand %p9435_p6, %p9432_p5 }
 0x682   :  { %9440 = shalt.err (!%p9437_p7)
}
 0x683   :  { %6622 = dma.vmem_to_hbm [thread:$0]  %s6620_s16, 16, %s12205_s9, [#allocation5]  }
 0x684   :  { %9441 = dma.done.wait [#allocation5], 16  }
 0x685   :  { %9442 = vsyncadd [#allocation5], 4294967280 }
 0x686   :  { %6626 = vsyncpa [#allocation5], 1 }

</bundles_post_ra>
